<compile_context>
chip_gen: v7x
topology: tpu7x:2x2x1
jax: 0.10.0
libtpu: 0.0.40
codegen_flags: <defaults>
</compile_context>

<pallas_src>
import functools

import numpy as np
import jax
import jax.numpy as jnp
from jax.experimental import pallas as pl
from jax.experimental.pallas import tpu as pltpu


# ----------------------------------------------------------------------------------
# Static pixel-gather operators (built once with numpy -> kernel constants).
# Padding, stride-2 and the align_corners bilinear upsampling are folded in, so no
# im2col patches are ever materialized.  All 9 taps are lane-concatenated so each
# conv stage needs a single gather matmul.
# ----------------------------------------------------------------------------------

def _bilinear_matrix(n_in, n_out):
    # nn.Upsample(scale_factor=2, mode='bilinear', align_corners=True)
    src = np.arange(n_out, dtype=np.float64) * (n_in - 1) / (n_out - 1)
    i0 = np.clip(np.floor(src).astype(np.int64), 0, n_in - 2)
    frac = src - i0
    m = np.zeros((n_out, n_in), dtype=np.float64)
    m[np.arange(n_out), i0] += 1.0 - frac
    m[np.arange(n_out), i0 + 1] += frac
    return m                                                  # (n_out, n_in)


def _down_gather_cat(h_in, w_in):
    """3x3 / stride 2 / pad 1 conv pixel selection; all 9 taps lane-concatenated:
    returns (P_in, 9 * P_out)."""
    h_out = (h_in + 2 - 3) // 2 + 1
    w_out = (w_in + 2 - 3) // 2 + 1
    taps = []
    for dh in range(3):
        gh = np.zeros((h_out, h_in))
        for oh in range(h_out):
            ih = 2 * oh + dh - 1
            if 0 <= ih < h_in:
                gh[oh, ih] = 1.0
        for dw in range(3):
            gw = np.zeros((w_out, w_in))
            for ow in range(w_out):
                iw = 2 * ow + dw - 1
                if 0 <= iw < w_in:
                    gw[ow, iw] = 1.0
            taps.append(np.kron(gh, gw).T)                    # (P_in, P_out)
    return np.concatenate(taps, axis=1)                       # (P_in, 9*P_out)


def _up_gather_cat(h_in, w_in):
    """(bilinear x2, align_corners=True) o (3x3 pad 1 conv tap shift); all 9 taps
    lane-concatenated: returns (P_in, 9 * P_out), P_out = 4 * P_in."""
    h_mid, w_mid = 2 * h_in, 2 * w_in
    ah = _bilinear_matrix(h_in, h_mid)
    aw = _bilinear_matrix(w_in, w_mid)
    taps = []
    for dh in range(3):
        gh = np.zeros((h_mid, h_in))
        for oh in range(h_mid):
            mh = oh + dh - 1
            if 0 <= mh < h_mid:
                gh[oh] = ah[mh]
        for dw in range(3):
            gw = np.zeros((w_mid, w_in))
            for ow in range(w_mid):
                mw = ow + dw - 1
                if 0 <= mw < w_mid:
                    gw[ow] = aw[mw]
            taps.append(np.kron(gh, gw).T)                    # (P_in, P_out)
    return np.concatenate(taps, axis=1)                       # (P_in, 9*P_out)


def _conv_weight_blocks_T(w, num_agent):
    # w: (3, 3, C_in, C_out) -> (9, N*C_out, N*C_in): per-tap kron(I_N, w_tap^T).
    # The block-diagonal kron is deliberate: one matmul serves all agents of a
    # batch slice (raises M); its MAC overhead (~N x on a tiny matmul) is accepted
    # because the gather contraction dominates.  It does not grow with block_b.
    eye = jnp.eye(num_agent, dtype=w.dtype)
    taps = []
    for dh in range(w.shape[0]):
        for dw in range(w.shape[1]):
            taps.append(jnp.kron(eye, w[dh, dw].T))
    return jnp.stack(taps)                                    # (9, NC, NC)


# ----------------------------------------------------------------------------------
# Single-buffering support probe (pipeline_mode=pl.Buffered(1) on constant operands).
# ----------------------------------------------------------------------------------

_SINGLE_BUFFER_OK = None


def _buffered(n):
    try:
        return pl.Buffered(n)
    except TypeError:
        return pl.Buffered(buffer_count=n)


def _single_buffer_supported():
    """Probe once (eagerly) whether pipeline_mode=pl.Buffered(1) lowers on this
    Pallas/Mosaic install; fall back to default double buffering otherwise."""
    global _SINGLE_BUFFER_OK
    if _SINGLE_BUFFER_OK is not None:
        return _SINGLE_BUFFER_OK
    try:
        def _k(c3_ref, c_ref, x_ref, o_ref):
            o_ref[...] = x_ref[...] + c_ref[...] + c3_ref[0]

        with jax.ensure_compile_time_eval():
            f = pl.pallas_call(
                _k,
                out_shape=jax.ShapeDtypeStruct((16, 128), jnp.float32),
                grid=(2,),
                in_specs=[
                    pl.BlockSpec((2, 8, 128), lambda i: (0, 0, 0),
                                 pipeline_mode=_buffered(1)),
                    pl.BlockSpec((8, 128), lambda i: (0, 0),
                                 pipeline_mode=_buffered(1)),
                    pl.BlockSpec((8, 128), lambda i: (i, 0)),
                ],
                out_specs=pl.BlockSpec((8, 128), lambda i: (i, 0)),
            )
            out = f(jnp.ones((2, 8, 128), jnp.float32),
                    jnp.ones((8, 128), jnp.float32),
                    jnp.ones((16, 128), jnp.float32))
            jax.block_until_ready(out)
        _SINGLE_BUFFER_OK = True
    except Exception:
        _SINGLE_BUFFER_OK = False
    return _SINGLE_BUFFER_OK


# ----------------------------------------------------------------------------------
# The fused Pallas kernel (one grid step = block_b batch elements, all agents).
# Activation layout: rows = (batch_slice, agent, channel) on sublanes, pixels on lanes.
# ----------------------------------------------------------------------------------

def _disconet_kernel(x_ref,
                     g1_ref, g2_ref, g3_ref, g4_ref,
                     kw1_ref, kw2_ref, kw3_ref, kw4_ref,
                     sc_ref, sh_ref,
                     w1a_ref, w1b_ref, s1_ref, b1_ref,
                     w2_ref, s2_ref, b2_ref,
                     w3_ref, s3_ref, b3_ref,
                     w4_ref, b4_ref,
                     o_ref,
                     *, num_agent, channels, block_b):
    n, c = num_agent, channels
    nc = n * c
    f32, bf16 = jnp.float32, jnp.bfloat16

    def conv_stage(h_bf, g_ref, kw_ref, stage):
        """relu(scale * (3x3 conv with folded pad/stride/bilinear) + shift).

        One fused pixel-gather matmul over all 9 taps (lanes = 9*P_out), then the
        per-tap (NC, NC) block-diagonal channel mixes, looped over batch slices.
        """
        p_out = g_ref.shape[1] // 9
        z = jnp.dot(h_bf, g_ref[...], preferred_element_type=f32)     # (R, 9*P_out)
        zb = z.astype(bf16)
        rows = []
        for bb in range(block_b):                                     # static unroll
            zbb = zb[bb * nc:(bb + 1) * nc, :]
            acc = jnp.dot(kw_ref[0], zbb[:, 0:p_out], preferred_element_type=f32)
            for t in range(1, 9):
                acc = acc + jnp.dot(kw_ref[t], zbb[:, t * p_out:(t + 1) * p_out],
                                    preferred_element_type=f32)
            rows.append(acc)
        acc = rows[0] if block_b == 1 else jnp.concatenate(rows, axis=0)
        y = acc * sc_ref[stage] + sh_ref[stage]                       # folded BN (+bias)
        return jnp.maximum(y, 0.0)                                    # (R, P_out) f32

    # ---------------- encoder: two (3x3, stride 2, conv + BN + ReLU) stages --------
    h = conv_stage(x_ref[...], g1_ref, kw1_ref, 0)                    # (R, P1)
    h = conv_stage(h.astype(bf16), g2_ref, kw2_ref, 1)                # (R, P2) f32
    p2 = g2_ref.shape[1] // 9
    na = block_b * n

    # ---------------- pixel-weighted fusion (pair MLP + softmax + weighted sum) ----
    # Layer-1 linearity:  W1 @ [f_i; f_j] = W1a @ f_i + W1b @ f_j.
    # Pair axis lives on lanes with order (j outermost, then (bb, i), then pixel);
    # no (2C, ...) pair tensor and no scratch buffer is ever materialized.
    f_f32 = [h[r * c:(r + 1) * c, :] for r in range(na)]              # (C, P2) each
    f_bf = [s.astype(bf16) for s in f_f32]
    order = [(j, bb, i) for j in range(n) for bb in range(block_b) for i in range(n)]
    rhs_i = jnp.concatenate([f_bf[bb * n + i] for (j, bb, i) in order], axis=1)
    rhs_j = jnp.concatenate([f_bf[bb * n + j] for (j, bb, i) in order], axis=1)

    pre = (jnp.dot(w1a_ref[...], rhs_i, preferred_element_type=f32)
           + jnp.dot(w1b_ref[...], rhs_j, preferred_element_type=f32))
    z = jnp.maximum(s1_ref[...] * pre + b1_ref[...], 0.0)             # (128, L)
    z = jnp.maximum(s2_ref[...] * jnp.dot(w2_ref[...], z.astype(bf16),
                                          preferred_element_type=f32) + b2_ref[...], 0.0)
    z = jnp.maximum(s3_ref[...] * jnp.dot(w3_ref[...], z.astype(bf16),
                                          preferred_element_type=f32) + b3_ref[...], 0.0)
    logits = jnp.maximum(jnp.dot(w4_ref[...], z.astype(bf16),
                                 preferred_element_type=f32) + b4_ref[...], 0.0)  # (1, L)

    # Softmax over the neighbour index j (outermost lane block): per-j slices are
    # full (1, block_b*n*P2) rows, so max / exp / sum are wide VPU/EUP ops.  The
    # max subtraction is mathematically identical to the PyTorch exp/sum division.
    lp = na * p2
    lg = [logits[:, j * lp:(j + 1) * lp] for j in range(n)]
    m = lg[0]
    for j in range(1, n):
        m = jnp.maximum(m, lg[j])
    ex = [jnp.exp(v - m) for v in lg]
    denom = ex[0]
    for j in range(1, n):
        denom = denom + ex[j]
    inv = pl.reciprocal(denom)                       # exact reciprocal (weights sum to 1)
    wgt = [e * inv for e in ex]                      # n x (1, block_b*n*P2)

    # Weighted neighbour sum in f32, reassembled into the (R, P2) conv layout.
    fused_rows = []
    for bb in range(block_b):
        for i in range(n):
            off = (bb * n + i) * p2
            acc = wgt[0][:, off:off + p2] * f_f32[bb * n + 0]
            for j in range(1, n):
                acc = acc + wgt[j][:, off:off + p2] * f_f32[bb * n + j]
            fused_rows.append(acc)
    fused = fused_rows[0] if len(fused_rows) == 1 else jnp.concatenate(fused_rows, axis=0)

    # ---------------- decoder: two (bilinear x2 + 3x3 conv + BN + ReLU) stages -----
    h = conv_stage(fused.astype(bf16), g3_ref, kw3_ref, 2)            # (R, P1)
    h = conv_stage(h.astype(bf16), g4_ref, kw4_ref, 3)                # (R, P0)
    o_ref[...] = h.astype(o_ref.dtype)


# ----------------------------------------------------------------------------------
# Parameter folding / forward wrapper
# ----------------------------------------------------------------------------------

def fold_bn(gamma, beta, mean, var, bias=None, eps=1e-5):
    scale = gamma / jnp.sqrt(var + eps)
    b = bias if bias is not None else 0.0
    shift = (b - mean) * scale + beta
    return scale, shift


def init_params(key, C):
    ks = list(jax.random.split(key, 48))

    def nk():
        return ks.pop(0)

    def bn(cout):
        gamma = 1.0 + 0.1 * jax.random.normal(nk(), (cout,), jnp.float32)
        beta = 0.05 * jax.random.normal(nk(), (cout,), jnp.float32)
        mean = 0.05 * jax.random.normal(nk(), (cout,), jnp.float32)
        var = 1.0 + 0.1 * jax.random.uniform(nk(), (cout,), jnp.float32)
        return gamma, beta, mean, var

    def conv_bn(cin, cout, k, bias=True):
        w = jax.random.normal(nk(), (k, k, cin, cout), jnp.float32) / float(k * k * cin) ** 0.5
        b = 0.05 * jax.random.normal(nk(), (cout,), jnp.float32) if bias else None
        scale, shift = fold_bn(*bn(cout), bias=b)
        return {'w': w, 'scale': scale, 'shift': shift}

    def lin_bn(cin, cout):
        w = jax.random.normal(nk(), (cin, cout), jnp.float32) / float(cin) ** 0.5
        b = 0.05 * jax.random.normal(nk(), (cout,), jnp.float32)
        scale, shift = fold_bn(*bn(cout), bias=b)
        return w, scale, shift

    params = {
        'down1': conv_bn(C, C, 3, bias=True),
        'down2': conv_bn(C, C, 3, bias=True),
        'up1': conv_bn(C, C, 3, bias=False),
        'up2': conv_bn(C, C, 3, bias=False),
    }
    w1, s1, b1 = lin_bn(2 * C, 128)
    w2, s2, b2 = lin_bn(128, 32)
    w3, s3, b3 = lin_bn(32, 8)
    w4 = jax.random.normal(nk(), (8, 1), jnp.float32) / 8.0 ** 0.5
    b4 = 0.05 * jax.random.normal(nk(), (1,), jnp.float32)
    params['pwf'] = dict(w1=w1, s1=s1, b1=b1, w2=w2, s2=s2, b2=b2,
                         w3=w3, s3=s3, b3=b3, w4=w4, b4=b4)
    return params


def disconet_forward(x, params, *, block_b=None, out_dtype=jnp.float32):
    B, N, C, H, W = x.shape
    assert H % 4 == 0 and W % 4 == 0
    H1, W1 = H // 2, W // 2
    H2, W2 = H1 // 2, W1 // 2
    P0, P1, P2 = H * W, H1 * W1, H2 * W2
    NC = N * C
    mxu_dt = jnp.bfloat16

    # -------- batch blocking: raise matmul M toward the MXU height --------
    # Smallest divisor of B that reaches ~MXU-height rows keeps the grid long
    # (megacore / v7x 2-TC sharding); otherwise the largest divisor that fits.
    if block_b is None:
        divs = [d for d in range(1, B + 1) if B % d == 0 and d * NC <= 128]
        if not divs:
            divs = [1]
        full = [d for d in divs if d * NC >= 96]
        block_b = min(full) if full else max(divs)
    assert B % block_b == 0
    R = block_b * NC
    grid = (B // block_b,)

    # -------- constant pixel-gather operators (all 9 taps lane-concatenated) -------
    g1 = jnp.asarray(_down_gather_cat(H, W), mxu_dt)         # (P0, 9*P1)
    g2 = jnp.asarray(_down_gather_cat(H1, W1), mxu_dt)       # (P1, 9*P2)
    g3 = jnp.asarray(_up_gather_cat(H2, W2), mxu_dt)         # (P2, 9*P1)
    g4 = jnp.asarray(_up_gather_cat(H1, W1), mxu_dt)         # (P1, 9*P0)

    def stage_weights(p):
        kw = _conv_weight_blocks_T(p['w'], N).astype(mxu_dt)               # (9, NC, NC)
        sc_ = jnp.tile(p['scale'], block_b * N)[:, None].astype(jnp.float32)   # (R, 1)
        sh_ = jnp.tile(p['shift'], block_b * N)[:, None].astype(jnp.float32)
        return kw, sc_, sh_

    kw1, sc1, sh1 = stage_weights(params['down1'])
    kw2, sc2, sh2 = stage_weights(params['down2'])
    kw3, sc3, sh3 = stage_weights(params['up1'])
    kw4, sc4, sh4 = stage_weights(params['up2'])
    sc = jnp.stack([sc1, sc2, sc3, sc4])                      # (4, R, 1)
    sh = jnp.stack([sh1, sh2, sh3, sh4])

    mlp = params['pwf']
    w1t = mlp['w1'].T                                         # (128, 2C)
    w1a = w1t[:, :C].astype(mxu_dt)                           # "target i" half
    w1b = w1t[:, C:].astype(mxu_dt)                           # "neighbour j" half
    s1 = mlp['s1'][:, None].astype(jnp.float32); b1 = mlp['b1'][:, None].astype(jnp.float32)
    w2 = mlp['w2'].T.astype(mxu_dt); s2 = mlp['s2'][:, None]; b2 = mlp['b2'][:, None]
    w3 = mlp['w3'].T.astype(mxu_dt); s3 = mlp['s3'][:, None]; b3 = mlp['b3'][:, None]
    w4 = mlp['w4'].T.astype(mxu_dt); b4 = mlp['b4'][:, None]

    # (B, N, C, H, W) -> (B*N*C, H*W): pure reshape, rows on sublanes, pixels on
    # lanes (lane-dense).  bf16 for MXU operands (input quantization vs f32 ref).
    x_t = x.reshape(B * NC, P0).astype(mxu_dt)

    operands = [g1, g2, g3, g4, kw1, kw2, kw3, kw4, sc, sh,
                w1a, w1b, s1, b1, w2, s2, b2, w3, s3, b3, w4, b4]

    use_single_buf = _single_buffer_supported()

    def const_spec(a):
        idx = lambda b, _nd=a.ndim: (0,) * _nd
        # Grid-invariant operands: single-buffer the larger ones (halves their
        # VMEM footprint); x / output keep default double buffering.
        if use_single_buf and int(a.size) * jnp.dtype(a.dtype).itemsize >= 4096:
            return pl.BlockSpec(a.shape, idx, pipeline_mode=_buffered(1))
        return pl.BlockSpec(a.shape, idx)

    # -------- explicit VMEM budget --------
    const_bytes = sum(int(a.size) * jnp.dtype(a.dtype).itemsize for a in operands)
    io_block_bytes = R * P0 * (jnp.dtype(mxu_dt).itemsize + jnp.dtype(out_dtype).itemsize)
    interm_bytes = R * 9 * P0 * 6 + R * 9 * P1 * 6            # fused-gather temps (f32+bf16)
    needed = (const_bytes * (1 if use_single_buf else 2)
              + 2 * io_block_bytes + interm_bytes + (4 << 20))
    try:
        vmem_cap = int(pltpu.get_tpu_info().vmem_capacity_bytes)
    except Exception:
        vmem_cap = 64 << 20
    vmem_limit = int(min(max(needed, 32 << 20), max(vmem_cap - (4 << 20), 16 << 20)))

    out = pl.pallas_call(
        functools.partial(_disconet_kernel, num_agent=N, channels=C, block_b=block_b),
        out_shape=jax.ShapeDtypeStruct((B * NC, P0), out_dtype),
        grid=grid,
        in_specs=[pl.BlockSpec((R, P0), lambda b: (b, 0))]
                 + [const_spec(a) for a in operands],
        out_specs=pl.BlockSpec((R, P0), lambda b: (b, 0)),
        compiler_params=pltpu.CompilerParams(
            dimension_semantics=("parallel",),
            vmem_limit_bytes=vmem_limit),
    )(x_t, *operands)

    return out.reshape(B, N, C, H, W)


# TODO(synk): DiscoNet.outage() draws from np.random on the host; with the module
# defaults p_com_outage=0.0 (and only_v2i=False) it never fires, so the all-neighbour
# fusion path is the one modeled here.

if __name__ == "__main__":
    key = jax.random.PRNGKey(0)
    k_in, k_par = jax.random.split(key)
    # Small-but-representative shapes: 4 batches, 3 agents, 16 channels, 16x16 BEV.
    # block_b heuristic picks 2 -> grid=(2,) (even, megacore friendly), M = 96 rows.
    B, N, C, H, W = 4, 3, 16, 16, 16
    x = jax.random.normal(k_in, (B, N, C, H, W), jnp.float32)
    params = init_params(k_par, C)

    _single_buffer_supported()            # probe Buffered(1) support eagerly, outside jit
    fwd = jax.jit(disconet_forward)
    out = jax.block_until_ready(fwd(x, params))
    assert out.shape == (B, N, C, H, W), out.shape
    assert bool(jnp.all(jnp.isfinite(out)))
    print("KERNEL_OK")
</pallas_src>

<mosaic_0001>
module attributes {stable_mosaic.version = 11 : i64} {
  func.func @_disconet_kernel(%arg0: i32, %arg1: memref<96x256xbf16, #tpu.memory_space<vmem>>, %arg2: memref<256x576xbf16, #tpu.memory_space<vmem>>, %arg3: memref<64x144xbf16, #tpu.memory_space<vmem>>, %arg4: memref<16x576xbf16, #tpu.memory_space<vmem>>, %arg5: memref<64x2304xbf16, #tpu.memory_space<vmem>>, %arg6: memref<9x48x48xbf16, #tpu.memory_space<vmem>>, %arg7: memref<9x48x48xbf16, #tpu.memory_space<vmem>>, %arg8: memref<9x48x48xbf16, #tpu.memory_space<vmem>>, %arg9: memref<9x48x48xbf16, #tpu.memory_space<vmem>>, %arg10: memref<4x96x1xf32, #tpu.memory_space<vmem>>, %arg11: memref<4x96x1xf32, #tpu.memory_space<vmem>>, %arg12: memref<128x16xbf16, #tpu.memory_space<vmem>>, %arg13: memref<128x16xbf16, #tpu.memory_space<vmem>>, %arg14: memref<128x1xf32, #tpu.memory_space<vmem>>, %arg15: memref<128x1xf32, #tpu.memory_space<vmem>>, %arg16: memref<32x128xbf16, #tpu.memory_space<vmem>>, %arg17: memref<32x1xf32, #tpu.memory_space<vmem>>, %arg18: memref<32x1xf32, #tpu.memory_space<vmem>>, %arg19: memref<8x32xbf16, #tpu.memory_space<vmem>>, %arg20: memref<8x1xf32, #tpu.memory_space<vmem>>, %arg21: memref<8x1xf32, #tpu.memory_space<vmem>>, %arg22: memref<1x8xbf16, #tpu.memory_space<vmem>>, %arg23: memref<1x1xf32, #tpu.memory_space<vmem>>, %arg24: memref<96x256xf32, #tpu.memory_space<vmem>>) attributes {dimension_semantics = [#tpu.dimension_semantics<parallel>], iteration_bounds = array<i64: 2>, scalar_prefetch = 0 : i64, scratch_operands = 0 : i64, tpu.core_type = #tpu.core_type<tc>, window_params = [{transform_indices = @transform_0, window_bounds = array<i64: 96, 256>}, {pipeline_mode = #tpu.pipeline_mode<synchronous>, transform_indices = @transform_1, window_bounds = array<i64: 256, 576>}, {pipeline_mode = #tpu.pipeline_mode<synchronous>, transform_indices = @transform_2, window_bounds = array<i64: 64, 144>}, {pipeline_mode = #tpu.pipeline_mode<synchronous>, transform_indices = @transform_3, window_bounds = array<i64: 16, 576>}, {pipeline_mode = #tpu.pipeline_mode<synchronous>, transform_indices = @transform_4, window_bounds = array<i64: 64, 2304>}, {pipeline_mode = #tpu.pipeline_mode<synchronous>, transform_indices = @transform_5, window_bounds = array<i64: 9, 48, 48>}, {pipeline_mode = #tpu.pipeline_mode<synchronous>, transform_indices = @transform_6, window_bounds = array<i64: 9, 48, 48>}, {pipeline_mode = #tpu.pipeline_mode<synchronous>, transform_indices = @transform_7, window_bounds = array<i64: 9, 48, 48>}, {pipeline_mode = #tpu.pipeline_mode<synchronous>, transform_indices = @transform_8, window_bounds = array<i64: 9, 48, 48>}, {pipeline_mode = #tpu.pipeline_mode<synchronous>, transform_indices = @transform_9, window_bounds = array<i64: 4, 96, 1>}, {pipeline_mode = #tpu.pipeline_mode<synchronous>, transform_indices = @transform_10, window_bounds = array<i64: 4, 96, 1>}, {pipeline_mode = #tpu.pipeline_mode<synchronous>, transform_indices = @transform_11, window_bounds = array<i64: 128, 16>}, {pipeline_mode = #tpu.pipeline_mode<synchronous>, transform_indices = @transform_12, window_bounds = array<i64: 128, 16>}, {pipeline_mode = #tpu.pipeline_mode<synchronous>, transform_indices = @transform_13, window_bounds = array<i64: 128, 1>}, {pipeline_mode = #tpu.pipeline_mode<synchronous>, transform_indices = @transform_14, window_bounds = array<i64: 128, 1>}, {pipeline_mode = #tpu.pipeline_mode<synchronous>, transform_indices = @transform_15, window_bounds = array<i64: 32, 128>}, {pipeline_mode = #tpu.pipeline_mode<synchronous>, transform_indices = @transform_16, window_bounds = array<i64: 32, 1>}, {pipeline_mode = #tpu.pipeline_mode<synchronous>, transform_indices = @transform_17, window_bounds = array<i64: 32, 1>}, {pipeline_mode = #tpu.pipeline_mode<synchronous>, transform_indices = @transform_18, window_bounds = array<i64: 8, 32>}, {pipeline_mode = #tpu.pipeline_mode<synchronous>, transform_indices = @transform_19, window_bounds = array<i64: 8, 1>}, {pipeline_mode = #tpu.pipeline_mode<synchronous>, transform_indices = @transform_20, window_bounds = array<i64: 8, 1>}, {pipeline_mode = #tpu.pipeline_mode<synchronous>, transform_indices = @transform_21, window_bounds = array<i64: 1, 8>}, {pipeline_mode = #tpu.pipeline_mode<synchronous>, transform_indices = @transform_22, window_bounds = array<i64: 1, 1>}, {transform_indices = @transform_23, window_bounds = array<i64: 96, 256>}]} {
    %c0 = arith.constant 0 : index
    %c0_0 = arith.constant 0 : index
    %0 = vector.load %arg1[%c0, %c0_0] : memref<96x256xbf16, #tpu.memory_space<vmem>>, vector<96x256xbf16>
    %c0_1 = arith.constant 0 : index
    %c0_2 = arith.constant 0 : index
    %1 = vector.load %arg2[%c0_1, %c0_2] : memref<256x576xbf16, #tpu.memory_space<vmem>>, vector<256x576xbf16>
    %cst = arith.constant dense<0.000000e+00> : vector<96x576xf32>
    %2 = tpu.matmul %0, %1, %cst {dimension_numbers = #tpu.dot_dimension_numbers<[1], [0], [0], [1], [0, 0, 1, 1], [], []>} : vector<96x256xbf16>, vector<256x576xbf16>, vector<96x576xf32> -> vector<96x576xf32>
    %3 = arith.truncf %2 : vector<96x576xf32> to vector<96x576xbf16>
    %4 = vector.extract_strided_slice %3 {offsets = [0, 0], sizes = [48, 576], strides = [1, 1]} : vector<96x576xbf16> to vector<48x576xbf16>
    %c0_3 = arith.constant 0 : index
    %c0_4 = arith.constant 0 : index
    %c0_5 = arith.constant 0 : index
    %5 = vector.load %arg6[%c0_3, %c0_4, %c0_5] : memref<9x48x48xbf16, #tpu.memory_space<vmem>>, vector<1x48x48xbf16>
    %6 = vector.shape_cast %5 : vector<1x48x48xbf16> to vector<48x48xbf16>
    %7 = vector.extract_strided_slice %4 {offsets = [0, 0], sizes = [48, 64], strides = [1, 1]} : vector<48x576xbf16> to vector<48x64xbf16>
    %cst_6 = arith.constant dense<0.000000e+00> : vector<48x64xf32>
    %8 = tpu.matmul %6, %7, %cst_6 {dimension_numbers = #tpu.dot_dimension_numbers<[1], [0], [0], [1], [0, 0, 1, 1], [], []>} : vector<48x48xbf16>, vector<48x64xbf16>, vector<48x64xf32> -> vector<48x64xf32>
    %c1 = arith.constant 1 : index
    %c0_7 = arith.constant 0 : index
    %c0_8 = arith.constant 0 : index
    %9 = vector.load %arg6[%c1, %c0_7, %c0_8] : memref<9x48x48xbf16, #tpu.memory_space<vmem>>, vector<1x48x48xbf16>
    %10 = vector.shape_cast %9 : vector<1x48x48xbf16> to vector<48x48xbf16>
    %11 = vector.extract_strided_slice %4 {offsets = [0, 64], sizes = [48, 64], strides = [1, 1]} : vector<48x576xbf16> to vector<48x64xbf16>
    %cst_9 = arith.constant dense<0.000000e+00> : vector<48x64xf32>
    %12 = tpu.matmul %10, %11, %cst_9 {dimension_numbers = #tpu.dot_dimension_numbers<[1], [0], [0], [1], [0, 0, 1, 1], [], []>} : vector<48x48xbf16>, vector<48x64xbf16>, vector<48x64xf32> -> vector<48x64xf32>
    %13 = arith.addf %8, %12 : vector<48x64xf32>
    %c2 = arith.constant 2 : index
    %c0_10 = arith.constant 0 : index
    %c0_11 = arith.constant 0 : index
    %14 = vector.load %arg6[%c2, %c0_10, %c0_11] : memref<9x48x48xbf16, #tpu.memory_space<vmem>>, vector<1x48x48xbf16>
    %15 = vector.shape_cast %14 : vector<1x48x48xbf16> to vector<48x48xbf16>
    %16 = vector.extract_strided_slice %4 {offsets = [0, 128], sizes = [48, 64], strides = [1, 1]} : vector<48x576xbf16> to vector<48x64xbf16>
    %cst_12 = arith.constant dense<0.000000e+00> : vector<48x64xf32>
    %17 = tpu.matmul %15, %16, %cst_12 {dimension_numbers = #tpu.dot_dimension_numbers<[1], [0], [0], [1], [0, 0, 1, 1], [], []>} : vector<48x48xbf16>, vector<48x64xbf16>, vector<48x64xf32> -> vector<48x64xf32>
    %18 = arith.addf %13, %17 : vector<48x64xf32>
    %c3 = arith.constant 3 : index
    %c0_13 = arith.constant 0 : index
    %c0_14 = arith.constant 0 : index
    %19 = vector.load %arg6[%c3, %c0_13, %c0_14] : memref<9x48x48xbf16, #tpu.memory_space<vmem>>, vector<1x48x48xbf16>
    %20 = vector.shape_cast %19 : vector<1x48x48xbf16> to vector<48x48xbf16>
    %21 = vector.extract_strided_slice %4 {offsets = [0, 192], sizes = [48, 64], strides = [1, 1]} : vector<48x576xbf16> to vector<48x64xbf16>
    %cst_15 = arith.constant dense<0.000000e+00> : vector<48x64xf32>
    %22 = tpu.matmul %20, %21, %cst_15 {dimension_numbers = #tpu.dot_dimension_numbers<[1], [0], [0], [1], [0, 0, 1, 1], [], []>} : vector<48x48xbf16>, vector<48x64xbf16>, vector<48x64xf32> -> vector<48x64xf32>
    %23 = arith.addf %18, %22 : vector<48x64xf32>
    %c4 = arith.constant 4 : index
    %c0_16 = arith.constant 0 : index
    %c0_17 = arith.constant 0 : index
    %24 = vector.load %arg6[%c4, %c0_16, %c0_17] : memref<9x48x48xbf16, #tpu.memory_space<vmem>>, vector<1x48x48xbf16>
    %25 = vector.shape_cast %24 : vector<1x48x48xbf16> to vector<48x48xbf16>
    %26 = vector.extract_strided_slice %4 {offsets = [0, 256], sizes = [48, 64], strides = [1, 1]} : vector<48x576xbf16> to vector<48x64xbf16>
    %cst_18 = arith.constant dense<0.000000e+00> : vector<48x64xf32>
    %27 = tpu.matmul %25, %26, %cst_18 {dimension_numbers = #tpu.dot_dimension_numbers<[1], [0], [0], [1], [0, 0, 1, 1], [], []>} : vector<48x48xbf16>, vector<48x64xbf16>, vector<48x64xf32> -> vector<48x64xf32>
    %28 = arith.addf %23, %27 : vector<48x64xf32>
    %c5 = arith.constant 5 : index
    %c0_19 = arith.constant 0 : index
    %c0_20 = arith.constant 0 : index
    %29 = vector.load %arg6[%c5, %c0_19, %c0_20] : memref<9x48x48xbf16, #tpu.memory_space<vmem>>, vector<1x48x48xbf16>
    %30 = vector.shape_cast %29 : vector<1x48x48xbf16> to vector<48x48xbf16>
    %31 = vector.extract_strided_slice %4 {offsets = [0, 320], sizes = [48, 64], strides = [1, 1]} : vector<48x576xbf16> to vector<48x64xbf16>
    %cst_21 = arith.constant dense<0.000000e+00> : vector<48x64xf32>
    %32 = tpu.matmul %30, %31, %cst_21 {dimension_numbers = #tpu.dot_dimension_numbers<[1], [0], [0], [1], [0, 0, 1, 1], [], []>} : vector<48x48xbf16>, vector<48x64xbf16>, vector<48x64xf32> -> vector<48x64xf32>
    %33 = arith.addf %28, %32 : vector<48x64xf32>
    %c6 = arith.constant 6 : index
    %c0_22 = arith.constant 0 : index
    %c0_23 = arith.constant 0 : index
    %34 = vector.load %arg6[%c6, %c0_22, %c0_23] : memref<9x48x48xbf16, #tpu.memory_space<vmem>>, vector<1x48x48xbf16>
    %35 = vector.shape_cast %34 : vector<1x48x48xbf16> to vector<48x48xbf16>
    %36 = vector.extract_strided_slice %4 {offsets = [0, 384], sizes = [48, 64], strides = [1, 1]} : vector<48x576xbf16> to vector<48x64xbf16>
    %cst_24 = arith.constant dense<0.000000e+00> : vector<48x64xf32>
    %37 = tpu.matmul %35, %36, %cst_24 {dimension_numbers = #tpu.dot_dimension_numbers<[1], [0], [0], [1], [0, 0, 1, 1], [], []>} : vector<48x48xbf16>, vector<48x64xbf16>, vector<48x64xf32> -> vector<48x64xf32>
    %38 = arith.addf %33, %37 : vector<48x64xf32>
    %c7 = arith.constant 7 : index
    %c0_25 = arith.constant 0 : index
    %c0_26 = arith.constant 0 : index
    %39 = vector.load %arg6[%c7, %c0_25, %c0_26] : memref<9x48x48xbf16, #tpu.memory_space<vmem>>, vector<1x48x48xbf16>
    %40 = vector.shape_cast %39 : vector<1x48x48xbf16> to vector<48x48xbf16>
    %41 = vector.extract_strided_slice %4 {offsets = [0, 448], sizes = [48, 64], strides = [1, 1]} : vector<48x576xbf16> to vector<48x64xbf16>
    %cst_27 = arith.constant dense<0.000000e+00> : vector<48x64xf32>
    %42 = tpu.matmul %40, %41, %cst_27 {dimension_numbers = #tpu.dot_dimension_numbers<[1], [0], [0], [1], [0, 0, 1, 1], [], []>} : vector<48x48xbf16>, vector<48x64xbf16>, vector<48x64xf32> -> vector<48x64xf32>
    %43 = arith.addf %38, %42 : vector<48x64xf32>
    %c8 = arith.constant 8 : index
    %c0_28 = arith.constant 0 : index
    %c0_29 = arith.constant 0 : index
    %44 = vector.load %arg6[%c8, %c0_28, %c0_29] : memref<9x48x48xbf16, #tpu.memory_space<vmem>>, vector<1x48x48xbf16>
    %45 = vector.shape_cast %44 : vector<1x48x48xbf16> to vector<48x48xbf16>
    %46 = vector.extract_strided_slice %4 {offsets = [0, 512], sizes = [48, 64], strides = [1, 1]} : vector<48x576xbf16> to vector<48x64xbf16>
    %cst_30 = arith.constant dense<0.000000e+00> : vector<48x64xf32>
    %47 = tpu.matmul %45, %46, %cst_30 {dimension_numbers = #tpu.dot_dimension_numbers<[1], [0], [0], [1], [0, 0, 1, 1], [], []>} : vector<48x48xbf16>, vector<48x64xbf16>, vector<48x64xf32> -> vector<48x64xf32>
    %48 = arith.addf %43, %47 : vector<48x64xf32>
    %49 = vector.extract_strided_slice %3 {offsets = [48, 0], sizes = [48, 576], strides = [1, 1]} : vector<96x576xbf16> to vector<48x576xbf16>
    %c0_31 = arith.constant 0 : index
    %c0_32 = arith.constant 0 : index
    %c0_33 = arith.constant 0 : index
    %50 = vector.load %arg6[%c0_31, %c0_32, %c0_33] : memref<9x48x48xbf16, #tpu.memory_space<vmem>>, vector<1x48x48xbf16>
    %51 = vector.shape_cast %50 : vector<1x48x48xbf16> to vector<48x48xbf16>
    %52 = vector.extract_strided_slice %49 {offsets = [0, 0], sizes = [48, 64], strides = [1, 1]} : vector<48x576xbf16> to vector<48x64xbf16>
    %cst_34 = arith.constant dense<0.000000e+00> : vector<48x64xf32>
    %53 = tpu.matmul %51, %52, %cst_34 {dimension_numbers = #tpu.dot_dimension_numbers<[1], [0], [0], [1], [0, 0, 1, 1], [], []>} : vector<48x48xbf16>, vector<48x64xbf16>, vector<48x64xf32> -> vector<48x64xf32>
    %c1_35 = arith.constant 1 : index
    %c0_36 = arith.constant 0 : index
    %c0_37 = arith.constant 0 : index
    %54 = vector.load %arg6[%c1_35, %c0_36, %c0_37] : memref<9x48x48xbf16, #tpu.memory_space<vmem>>, vector<1x48x48xbf16>
    %55 = vector.shape_cast %54 : vector<1x48x48xbf16> to vector<48x48xbf16>
    %56 = vector.extract_strided_slice %49 {offsets = [0, 64], sizes = [48, 64], strides = [1, 1]} : vector<48x576xbf16> to vector<48x64xbf16>
    %cst_38 = arith.constant dense<0.000000e+00> : vector<48x64xf32>
    %57 = tpu.matmul %55, %56, %cst_38 {dimension_numbers = #tpu.dot_dimension_numbers<[1], [0], [0], [1], [0, 0, 1, 1], [], []>} : vector<48x48xbf16>, vector<48x64xbf16>, vector<48x64xf32> -> vector<48x64xf32>
    %58 = arith.addf %53, %57 : vector<48x64xf32>
    %c2_39 = arith.constant 2 : index
    %c0_40 = arith.constant 0 : index
    %c0_41 = arith.constant 0 : index
    %59 = vector.load %arg6[%c2_39, %c0_40, %c0_41] : memref<9x48x48xbf16, #tpu.memory_space<vmem>>, vector<1x48x48xbf16>
    %60 = vector.shape_cast %59 : vector<1x48x48xbf16> to vector<48x48xbf16>
    %61 = vector.extract_strided_slice %49 {offsets = [0, 128], sizes = [48, 64], strides = [1, 1]} : vector<48x576xbf16> to vector<48x64xbf16>
    %cst_42 = arith.constant dense<0.000000e+00> : vector<48x64xf32>
    %62 = tpu.matmul %60, %61, %cst_42 {dimension_numbers = #tpu.dot_dimension_numbers<[1], [0], [0], [1], [0, 0, 1, 1], [], []>} : vector<48x48xbf16>, vector<48x64xbf16>, vector<48x64xf32> -> vector<48x64xf32>
    %63 = arith.addf %58, %62 : vector<48x64xf32>
    %c3_43 = arith.constant 3 : index
    %c0_44 = arith.constant 0 : index
    %c0_45 = arith.constant 0 : index
    %64 = vector.load %arg6[%c3_43, %c0_44, %c0_45] : memref<9x48x48xbf16, #tpu.memory_space<vmem>>, vector<1x48x48xbf16>
    %65 = vector.shape_cast %64 : vector<1x48x48xbf16> to vector<48x48xbf16>
    %66 = vector.extract_strided_slice %49 {offsets = [0, 192], sizes = [48, 64], strides = [1, 1]} : vector<48x576xbf16> to vector<48x64xbf16>
    %cst_46 = arith.constant dense<0.000000e+00> : vector<48x64xf32>
    %67 = tpu.matmul %65, %66, %cst_46 {dimension_numbers = #tpu.dot_dimension_numbers<[1], [0], [0], [1], [0, 0, 1, 1], [], []>} : vector<48x48xbf16>, vector<48x64xbf16>, vector<48x64xf32> -> vector<48x64xf32>
    %68 = arith.addf %63, %67 : vector<48x64xf32>
    %c4_47 = arith.constant 4 : index
    %c0_48 = arith.constant 0 : index
    %c0_49 = arith.constant 0 : index
    %69 = vector.load %arg6[%c4_47, %c0_48, %c0_49] : memref<9x48x48xbf16, #tpu.memory_space<vmem>>, vector<1x48x48xbf16>
    %70 = vector.shape_cast %69 : vector<1x48x48xbf16> to vector<48x48xbf16>
    %71 = vector.extract_strided_slice %49 {offsets = [0, 256], sizes = [48, 64], strides = [1, 1]} : vector<48x576xbf16> to vector<48x64xbf16>
    %cst_50 = arith.constant dense<0.000000e+00> : vector<48x64xf32>
    %72 = tpu.matmul %70, %71, %cst_50 {dimension_numbers = #tpu.dot_dimension_numbers<[1], [0], [0], [1], [0, 0, 1, 1], [], []>} : vector<48x48xbf16>, vector<48x64xbf16>, vector<48x64xf32> -> vector<48x64xf32>
    %73 = arith.addf %68, %72 : vector<48x64xf32>
    %c5_51 = arith.constant 5 : index
    %c0_52 = arith.constant 0 : index
    %c0_53 = arith.constant 0 : index
    %74 = vector.load %arg6[%c5_51, %c0_52, %c0_53] : memref<9x48x48xbf16, #tpu.memory_space<vmem>>, vector<1x48x48xbf16>
    %75 = vector.shape_cast %74 : vector<1x48x48xbf16> to vector<48x48xbf16>
    %76 = vector.extract_strided_slice %49 {offsets = [0, 320], sizes = [48, 64], strides = [1, 1]} : vector<48x576xbf16> to vector<48x64xbf16>
    %cst_54 = arith.constant dense<0.000000e+00> : vector<48x64xf32>
    %77 = tpu.matmul %75, %76, %cst_54 {dimension_numbers = #tpu.dot_dimension_numbers<[1], [0], [0], [1], [0, 0, 1, 1], [], []>} : vector<48x48xbf16>, vector<48x64xbf16>, vector<48x64xf32> -> vector<48x64xf32>
    %78 = arith.addf %73, %77 : vector<48x64xf32>
    %c6_55 = arith.constant 6 : index
    %c0_56 = arith.constant 0 : index
    %c0_57 = arith.constant 0 : index
    %79 = vector.load %arg6[%c6_55, %c0_56, %c0_57] : memref<9x48x48xbf16, #tpu.memory_space<vmem>>, vector<1x48x48xbf16>
    %80 = vector.shape_cast %79 : vector<1x48x48xbf16> to vector<48x48xbf16>
    %81 = vector.extract_strided_slice %49 {offsets = [0, 384], sizes = [48, 64], strides = [1, 1]} : vector<48x576xbf16> to vector<48x64xbf16>
    %cst_58 = arith.constant dense<0.000000e+00> : vector<48x64xf32>
    %82 = tpu.matmul %80, %81, %cst_58 {dimension_numbers = #tpu.dot_dimension_numbers<[1], [0], [0], [1], [0, 0, 1, 1], [], []>} : vector<48x48xbf16>, vector<48x64xbf16>, vector<48x64xf32> -> vector<48x64xf32>
    %83 = arith.addf %78, %82 : vector<48x64xf32>
    %c7_59 = arith.constant 7 : index
    %c0_60 = arith.constant 0 : index
    %c0_61 = arith.constant 0 : index
    %84 = vector.load %arg6[%c7_59, %c0_60, %c0_61] : memref<9x48x48xbf16, #tpu.memory_space<vmem>>, vector<1x48x48xbf16>
    %85 = vector.shape_cast %84 : vector<1x48x48xbf16> to vector<48x48xbf16>
    %86 = vector.extract_strided_slice %49 {offsets = [0, 448], sizes = [48, 64], strides = [1, 1]} : vector<48x576xbf16> to vector<48x64xbf16>
    %cst_62 = arith.constant dense<0.000000e+00> : vector<48x64xf32>
    %87 = tpu.matmul %85, %86, %cst_62 {dimension_numbers = #tpu.dot_dimension_numbers<[1], [0], [0], [1], [0, 0, 1, 1], [], []>} : vector<48x48xbf16>, vector<48x64xbf16>, vector<48x64xf32> -> vector<48x64xf32>
    %88 = arith.addf %83, %87 : vector<48x64xf32>
    %c8_63 = arith.constant 8 : index
    %c0_64 = arith.constant 0 : index
    %c0_65 = arith.constant 0 : index
    %89 = vector.load %arg6[%c8_63, %c0_64, %c0_65] : memref<9x48x48xbf16, #tpu.memory_space<vmem>>, vector<1x48x48xbf16>
    %90 = vector.shape_cast %89 : vector<1x48x48xbf16> to vector<48x48xbf16>
    %91 = vector.extract_strided_slice %49 {offsets = [0, 512], sizes = [48, 64], strides = [1, 1]} : vector<48x576xbf16> to vector<48x64xbf16>
    %cst_66 = arith.constant dense<0.000000e+00> : vector<48x64xf32>
    %92 = tpu.matmul %90, %91, %cst_66 {dimension_numbers = #tpu.dot_dimension_numbers<[1], [0], [0], [1], [0, 0, 1, 1], [], []>} : vector<48x48xbf16>, vector<48x64xbf16>, vector<48x64xf32> -> vector<48x64xf32>
    %93 = arith.addf %88, %92 : vector<48x64xf32>
    %94 = tpu.concatenate %48, %93 in 0 : vector<48x64xf32>, vector<48x64xf32> -> vector<96x64xf32>
    %c0_67 = arith.constant 0 : index
    %c0_68 = arith.constant 0 : index
    %c0_69 = arith.constant 0 : index
    %95 = vector.load %arg10[%c0_67, %c0_68, %c0_69] : memref<4x96x1xf32, #tpu.memory_space<vmem>>, vector<1x96x1xf32>
    %96 = vector.shape_cast %95 : vector<1x96x1xf32> to vector<96x1xf32>
    %97 = vector.broadcast %96 : vector<96x1xf32> to vector<96x64xf32>
    %98 = arith.mulf %94, %97 : vector<96x64xf32>
    %c0_70 = arith.constant 0 : index
    %c0_71 = arith.constant 0 : index
    %c0_72 = arith.constant 0 : index
    %99 = vector.load %arg11[%c0_70, %c0_71, %c0_72] : memref<4x96x1xf32, #tpu.memory_space<vmem>>, vector<1x96x1xf32>
    %100 = vector.shape_cast %99 : vector<1x96x1xf32> to vector<96x1xf32>
    %101 = vector.broadcast %100 : vector<96x1xf32> to vector<96x64xf32>
    %102 = arith.addf %98, %101 : vector<96x64xf32>
    %cst_73 = arith.constant 0.000000e+00 : f32
    %103 = vector.broadcast %cst_73 : f32 to vector<96x64xf32>
    %104 = arith.maximumf %102, %103 : vector<96x64xf32>
    %105 = arith.truncf %104 : vector<96x64xf32> to vector<96x64xbf16>
    %c0_74 = arith.constant 0 : index
    %c0_75 = arith.constant 0 : index
    %106 = vector.load %arg3[%c0_74, %c0_75] : memref<64x144xbf16, #tpu.memory_space<vmem>>, vector<64x144xbf16>
    %cst_76 = arith.constant dense<0.000000e+00> : vector<96x144xf32>
    %107 = tpu.matmul %105, %106, %cst_76 {dimension_numbers = #tpu.dot_dimension_numbers<[1], [0], [0], [1], [0, 0, 1, 1], [], []>} : vector<96x64xbf16>, vector<64x144xbf16>, vector<96x144xf32> -> vector<96x144xf32>
    %108 = arith.truncf %107 : vector<96x144xf32> to vector<96x144xbf16>
    %109 = vector.extract_strided_slice %108 {offsets = [0, 0], sizes = [48, 144], strides = [1, 1]} : vector<96x144xbf16> to vector<48x144xbf16>
    %c0_77 = arith.constant 0 : index
    %c0_78 = arith.constant 0 : index
    %c0_79 = arith.constant 0 : index
    %110 = vector.load %arg7[%c0_77, %c0_78, %c0_79] : memref<9x48x48xbf16, #tpu.memory_space<vmem>>, vector<1x48x48xbf16>
    %111 = vector.shape_cast %110 : vector<1x48x48xbf16> to vector<48x48xbf16>
    %112 = vector.extract_strided_slice %109 {offsets = [0, 0], sizes = [48, 16], strides = [1, 1]} : vector<48x144xbf16> to vector<48x16xbf16>
    %cst_80 = arith.constant dense<0.000000e+00> : vector<48x16xf32>
    %113 = tpu.matmul %111, %112, %cst_80 {dimension_numbers = #tpu.dot_dimension_numbers<[1], [0], [0], [1], [0, 0, 1, 1], [], []>} : vector<48x48xbf16>, vector<48x16xbf16>, vector<48x16xf32> -> vector<48x16xf32>
    %c1_81 = arith.constant 1 : index
    %c0_82 = arith.constant 0 : index
    %c0_83 = arith.constant 0 : index
    %114 = vector.load %arg7[%c1_81, %c0_82, %c0_83] : memref<9x48x48xbf16, #tpu.memory_space<vmem>>, vector<1x48x48xbf16>
    %115 = vector.shape_cast %114 : vector<1x48x48xbf16> to vector<48x48xbf16>
    %116 = vector.extract_strided_slice %109 {offsets = [0, 16], sizes = [48, 16], strides = [1, 1]} : vector<48x144xbf16> to vector<48x16xbf16>
    %cst_84 = arith.constant dense<0.000000e+00> : vector<48x16xf32>
    %117 = tpu.matmul %115, %116, %cst_84 {dimension_numbers = #tpu.dot_dimension_numbers<[1], [0], [0], [1], [0, 0, 1, 1], [], []>} : vector<48x48xbf16>, vector<48x16xbf16>, vector<48x16xf32> -> vector<48x16xf32>
    %118 = arith.addf %113, %117 : vector<48x16xf32>
    %c2_85 = arith.constant 2 : index
    %c0_86 = arith.constant 0 : index
    %c0_87 = arith.constant 0 : index
    %119 = vector.load %arg7[%c2_85, %c0_86, %c0_87] : memref<9x48x48xbf16, #tpu.memory_space<vmem>>, vector<1x48x48xbf16>
    %120 = vector.shape_cast %119 : vector<1x48x48xbf16> to vector<48x48xbf16>
    %121 = vector.extract_strided_slice %109 {offsets = [0, 32], sizes = [48, 16], strides = [1, 1]} : vector<48x144xbf16> to vector<48x16xbf16>
    %cst_88 = arith.constant dense<0.000000e+00> : vector<48x16xf32>
    %122 = tpu.matmul %120, %121, %cst_88 {dimension_numbers = #tpu.dot_dimension_numbers<[1], [0], [0], [1], [0, 0, 1, 1], [], []>} : vector<48x48xbf16>, vector<48x16xbf16>, vector<48x16xf32> -> vector<48x16xf32>
    %123 = arith.addf %118, %122 : vector<48x16xf32>
    %c3_89 = arith.constant 3 : index
    %c0_90 = arith.constant 0 : index
    %c0_91 = arith.constant 0 : index
    %124 = vector.load %arg7[%c3_89, %c0_90, %c0_91] : memref<9x48x48xbf16, #tpu.memory_space<vmem>>, vector<1x48x48xbf16>
    %125 = vector.shape_cast %124 : vector<1x48x48xbf16> to vector<48x48xbf16>
    %126 = vector.extract_strided_slice %109 {offsets = [0, 48], sizes = [48, 16], strides = [1, 1]} : vector<48x144xbf16> to vector<48x16xbf16>
    %cst_92 = arith.constant dense<0.000000e+00> : vector<48x16xf32>
    %127 = tpu.matmul %125, %126, %cst_92 {dimension_numbers = #tpu.dot_dimension_numbers<[1], [0], [0], [1], [0, 0, 1, 1], [], []>} : vector<48x48xbf16>, vector<48x16xbf16>, vector<48x16xf32> -> vector<48x16xf32>
    %128 = arith.addf %123, %127 : vector<48x16xf32>
    %c4_93 = arith.constant 4 : index
    %c0_94 = arith.constant 0 : index
    %c0_95 = arith.constant 0 : index
    %129 = vector.load %arg7[%c4_93, %c0_94, %c0_95] : memref<9x48x48xbf16, #tpu.memory_space<vmem>>, vector<1x48x48xbf16>
    %130 = vector.shape_cast %129 : vector<1x48x48xbf16> to vector<48x48xbf16>
    %131 = vector.extract_strided_slice %109 {offsets = [0, 64], sizes = [48, 16], strides = [1, 1]} : vector<48x144xbf16> to vector<48x16xbf16>
    %cst_96 = arith.constant dense<0.000000e+00> : vector<48x16xf32>
    %132 = tpu.matmul %130, %131, %cst_96 {dimension_numbers = #tpu.dot_dimension_numbers<[1], [0], [0], [1], [0, 0, 1, 1], [], []>} : vector<48x48xbf16>, vector<48x16xbf16>, vector<48x16xf32> -> vector<48x16xf32>
    %133 = arith.addf %128, %132 : vector<48x16xf32>
    %c5_97 = arith.constant 5 : index
    %c0_98 = arith.constant 0 : index
    %c0_99 = arith.constant 0 : index
    %134 = vector.load %arg7[%c5_97, %c0_98, %c0_99] : memref<9x48x48xbf16, #tpu.memory_space<vmem>>, vector<1x48x48xbf16>
    %135 = vector.shape_cast %134 : vector<1x48x48xbf16> to vector<48x48xbf16>
    %136 = vector.extract_strided_slice %109 {offsets = [0, 80], sizes = [48, 16], strides = [1, 1]} : vector<48x144xbf16> to vector<48x16xbf16>
    %cst_100 = arith.constant dense<0.000000e+00> : vector<48x16xf32>
    %137 = tpu.matmul %135, %136, %cst_100 {dimension_numbers = #tpu.dot_dimension_numbers<[1], [0], [0], [1], [0, 0, 1, 1], [], []>} : vector<48x48xbf16>, vector<48x16xbf16>, vector<48x16xf32> -> vector<48x16xf32>
    %138 = arith.addf %133, %137 : vector<48x16xf32>
    %c6_101 = arith.constant 6 : index
    %c0_102 = arith.constant 0 : index
    %c0_103 = arith.constant 0 : index
    %139 = vector.load %arg7[%c6_101, %c0_102, %c0_103] : memref<9x48x48xbf16, #tpu.memory_space<vmem>>, vector<1x48x48xbf16>
    %140 = vector.shape_cast %139 : vector<1x48x48xbf16> to vector<48x48xbf16>
    %141 = vector.extract_strided_slice %109 {offsets = [0, 96], sizes = [48, 16], strides = [1, 1]} : vector<48x144xbf16> to vector<48x16xbf16>
    %cst_104 = arith.constant dense<0.000000e+00> : vector<48x16xf32>
    %142 = tpu.matmul %140, %141, %cst_104 {dimension_numbers = #tpu.dot_dimension_numbers<[1], [0], [0], [1], [0, 0, 1, 1], [], []>} : vector<48x48xbf16>, vector<48x16xbf16>, vector<48x16xf32> -> vector<48x16xf32>
    %143 = arith.addf %138, %142 : vector<48x16xf32>
    %c7_105 = arith.constant 7 : index
    %c0_106 = arith.constant 0 : index
    %c0_107 = arith.constant 0 : index
    %144 = vector.load %arg7[%c7_105, %c0_106, %c0_107] : memref<9x48x48xbf16, #tpu.memory_space<vmem>>, vector<1x48x48xbf16>
    %145 = vector.shape_cast %144 : vector<1x48x48xbf16> to vector<48x48xbf16>
    %146 = vector.extract_strided_slice %109 {offsets = [0, 112], sizes = [48, 16], strides = [1, 1]} : vector<48x144xbf16> to vector<48x16xbf16>
    %cst_108 = arith.constant dense<0.000000e+00> : vector<48x16xf32>
    %147 = tpu.matmul %145, %146, %cst_108 {dimension_numbers = #tpu.dot_dimension_numbers<[1], [0], [0], [1], [0, 0, 1, 1], [], []>} : vector<48x48xbf16>, vector<48x16xbf16>, vector<48x16xf32> -> vector<48x16xf32>
    %148 = arith.addf %143, %147 : vector<48x16xf32>
    %c8_109 = arith.constant 8 : index
    %c0_110 = arith.constant 0 : index
    %c0_111 = arith.constant 0 : index
    %149 = vector.load %arg7[%c8_109, %c0_110, %c0_111] : memref<9x48x48xbf16, #tpu.memory_space<vmem>>, vector<1x48x48xbf16>
    %150 = vector.shape_cast %149 : vector<1x48x48xbf16> to vector<48x48xbf16>
    %151 = vector.extract_strided_slice %109 {offsets = [0, 128], sizes = [48, 16], strides = [1, 1]} : vector<48x144xbf16> to vector<48x16xbf16>
    %cst_112 = arith.constant dense<0.000000e+00> : vector<48x16xf32>
    %152 = tpu.matmul %150, %151, %cst_112 {dimension_numbers = #tpu.dot_dimension_numbers<[1], [0], [0], [1], [0, 0, 1, 1], [], []>} : vector<48x48xbf16>, vector<48x16xbf16>, vector<48x16xf32> -> vector<48x16xf32>
    %153 = arith.addf %148, %152 : vector<48x16xf32>
    %154 = vector.extract_strided_slice %108 {offsets = [48, 0], sizes = [48, 144], strides = [1, 1]} : vector<96x144xbf16> to vector<48x144xbf16>
    %c0_113 = arith.constant 0 : index
    %c0_114 = arith.constant 0 : index
    %c0_115 = arith.constant 0 : index
    %155 = vector.load %arg7[%c0_113, %c0_114, %c0_115] : memref<9x48x48xbf16, #tpu.memory_space<vmem>>, vector<1x48x48xbf16>
    %156 = vector.shape_cast %155 : vector<1x48x48xbf16> to vector<48x48xbf16>
    %157 = vector.extract_strided_slice %154 {offsets = [0, 0], sizes = [48, 16], strides = [1, 1]} : vector<48x144xbf16> to vector<48x16xbf16>
    %cst_116 = arith.constant dense<0.000000e+00> : vector<48x16xf32>
    %158 = tpu.matmul %156, %157, %cst_116 {dimension_numbers = #tpu.dot_dimension_numbers<[1], [0], [0], [1], [0, 0, 1, 1], [], []>} : vector<48x48xbf16>, vector<48x16xbf16>, vector<48x16xf32> -> vector<48x16xf32>
    %c1_117 = arith.constant 1 : index
    %c0_118 = arith.constant 0 : index
    %c0_119 = arith.constant 0 : index
    %159 = vector.load %arg7[%c1_117, %c0_118, %c0_119] : memref<9x48x48xbf16, #tpu.memory_space<vmem>>, vector<1x48x48xbf16>
    %160 = vector.shape_cast %159 : vector<1x48x48xbf16> to vector<48x48xbf16>
    %161 = vector.extract_strided_slice %154 {offsets = [0, 16], sizes = [48, 16], strides = [1, 1]} : vector<48x144xbf16> to vector<48x16xbf16>
    %cst_120 = arith.constant dense<0.000000e+00> : vector<48x16xf32>
    %162 = tpu.matmul %160, %161, %cst_120 {dimension_numbers = #tpu.dot_dimension_numbers<[1], [0], [0], [1], [0, 0, 1, 1], [], []>} : vector<48x48xbf16>, vector<48x16xbf16>, vector<48x16xf32> -> vector<48x16xf32>
    %163 = arith.addf %158, %162 : vector<48x16xf32>
    %c2_121 = arith.constant 2 : index
    %c0_122 = arith.constant 0 : index
    %c0_123 = arith.constant 0 : index
    %164 = vector.load %arg7[%c2_121, %c0_122, %c0_123] : memref<9x48x48xbf16, #tpu.memory_space<vmem>>, vector<1x48x48xbf16>
    %165 = vector.shape_cast %164 : vector<1x48x48xbf16> to vector<48x48xbf16>
    %166 = vector.extract_strided_slice %154 {offsets = [0, 32], sizes = [48, 16], strides = [1, 1]} : vector<48x144xbf16> to vector<48x16xbf16>
    %cst_124 = arith.constant dense<0.000000e+00> : vector<48x16xf32>
    %167 = tpu.matmul %165, %166, %cst_124 {dimension_numbers = #tpu.dot_dimension_numbers<[1], [0], [0], [1], [0, 0, 1, 1], [], []>} : vector<48x48xbf16>, vector<48x16xbf16>, vector<48x16xf32> -> vector<48x16xf32>
    %168 = arith.addf %163, %167 : vector<48x16xf32>
    %c3_125 = arith.constant 3 : index
    %c0_126 = arith.constant 0 : index
    %c0_127 = arith.constant 0 : index
    %169 = vector.load %arg7[%c3_125, %c0_126, %c0_127] : memref<9x48x48xbf16, #tpu.memory_space<vmem>>, vector<1x48x48xbf16>
    %170 = vector.shape_cast %169 : vector<1x48x48xbf16> to vector<48x48xbf16>
    %171 = vector.extract_strided_slice %154 {offsets = [0, 48], sizes = [48, 16], strides = [1, 1]} : vector<48x144xbf16> to vector<48x16xbf16>
    %cst_128 = arith.constant dense<0.000000e+00> : vector<48x16xf32>
    %172 = tpu.matmul %170, %171, %cst_128 {dimension_numbers = #tpu.dot_dimension_numbers<[1], [0], [0], [1], [0, 0, 1, 1], [], []>} : vector<48x48xbf16>, vector<48x16xbf16>, vector<48x16xf32> -> vector<48x16xf32>
    %173 = arith.addf %168, %172 : vector<48x16xf32>
    %c4_129 = arith.constant 4 : index
    %c0_130 = arith.constant 0 : index
    %c0_131 = arith.constant 0 : index
    %174 = vector.load %arg7[%c4_129, %c0_130, %c0_131] : memref<9x48x48xbf16, #tpu.memory_space<vmem>>, vector<1x48x48xbf16>
    %175 = vector.shape_cast %174 : vector<1x48x48xbf16> to vector<48x48xbf16>
    %176 = vector.extract_strided_slice %154 {offsets = [0, 64], sizes = [48, 16], strides = [1, 1]} : vector<48x144xbf16> to vector<48x16xbf16>
    %cst_132 = arith.constant dense<0.000000e+00> : vector<48x16xf32>
    %177 = tpu.matmul %175, %176, %cst_132 {dimension_numbers = #tpu.dot_dimension_numbers<[1], [0], [0], [1], [0, 0, 1, 1], [], []>} : vector<48x48xbf16>, vector<48x16xbf16>, vector<48x16xf32> -> vector<48x16xf32>
    %178 = arith.addf %173, %177 : vector<48x16xf32>
    %c5_133 = arith.constant 5 : index
    %c0_134 = arith.constant 0 : index
    %c0_135 = arith.constant 0 : index
    %179 = vector.load %arg7[%c5_133, %c0_134, %c0_135] : memref<9x48x48xbf16, #tpu.memory_space<vmem>>, vector<1x48x48xbf16>
    %180 = vector.shape_cast %179 : vector<1x48x48xbf16> to vector<48x48xbf16>
    %181 = vector.extract_strided_slice %154 {offsets = [0, 80], sizes = [48, 16], strides = [1, 1]} : vector<48x144xbf16> to vector<48x16xbf16>
    %cst_136 = arith.constant dense<0.000000e+00> : vector<48x16xf32>
    %182 = tpu.matmul %180, %181, %cst_136 {dimension_numbers = #tpu.dot_dimension_numbers<[1], [0], [0], [1], [0, 0, 1, 1], [], []>} : vector<48x48xbf16>, vector<48x16xbf16>, vector<48x16xf32> -> vector<48x16xf32>
    %183 = arith.addf %178, %182 : vector<48x16xf32>
    %c6_137 = arith.constant 6 : index
    %c0_138 = arith.constant 0 : index
    %c0_139 = arith.constant 0 : index
    %184 = vector.load %arg7[%c6_137, %c0_138, %c0_139] : memref<9x48x48xbf16, #tpu.memory_space<vmem>>, vector<1x48x48xbf16>
    %185 = vector.shape_cast %184 : vector<1x48x48xbf16> to vector<48x48xbf16>
    %186 = vector.extract_strided_slice %154 {offsets = [0, 96], sizes = [48, 16], strides = [1, 1]} : vector<48x144xbf16> to vector<48x16xbf16>
    %cst_140 = arith.constant dense<0.000000e+00> : vector<48x16xf32>
    %187 = tpu.matmul %185, %186, %cst_140 {dimension_numbers = #tpu.dot_dimension_numbers<[1], [0], [0], [1], [0, 0, 1, 1], [], []>} : vector<48x48xbf16>, vector<48x16xbf16>, vector<48x16xf32> -> vector<48x16xf32>
    %188 = arith.addf %183, %187 : vector<48x16xf32>
    %c7_141 = arith.constant 7 : index
    %c0_142 = arith.constant 0 : index
    %c0_143 = arith.constant 0 : index
    %189 = vector.load %arg7[%c7_141, %c0_142, %c0_143] : memref<9x48x48xbf16, #tpu.memory_space<vmem>>, vector<1x48x48xbf16>
    %190 = vector.shape_cast %189 : vector<1x48x48xbf16> to vector<48x48xbf16>
    %191 = vector.extract_strided_slice %154 {offsets = [0, 112], sizes = [48, 16], strides = [1, 1]} : vector<48x144xbf16> to vector<48x16xbf16>
    %cst_144 = arith.constant dense<0.000000e+00> : vector<48x16xf32>
    %192 = tpu.matmul %190, %191, %cst_144 {dimension_numbers = #tpu.dot_dimension_numbers<[1], [0], [0], [1], [0, 0, 1, 1], [], []>} : vector<48x48xbf16>, vector<48x16xbf16>, vector<48x16xf32> -> vector<48x16xf32>
    %193 = arith.addf %188, %192 : vector<48x16xf32>
    %c8_145 = arith.constant 8 : index
    %c0_146 = arith.constant 0 : index
    %c0_147 = arith.constant 0 : index
    %194 = vector.load %arg7[%c8_145, %c0_146, %c0_147] : memref<9x48x48xbf16, #tpu.memory_space<vmem>>, vector<1x48x48xbf16>
    %195 = vector.shape_cast %194 : vector<1x48x48xbf16> to vector<48x48xbf16>
    %196 = vector.extract_strided_slice %154 {offsets = [0, 128], sizes = [48, 16], strides = [1, 1]} : vector<48x144xbf16> to vector<48x16xbf16>
    %cst_148 = arith.constant dense<0.000000e+00> : vector<48x16xf32>
    %197 = tpu.matmul %195, %196, %cst_148 {dimension_numbers = #tpu.dot_dimension_numbers<[1], [0], [0], [1], [0, 0, 1, 1], [], []>} : vector<48x48xbf16>, vector<48x16xbf16>, vector<48x16xf32> -> vector<48x16xf32>
    %198 = arith.addf %193, %197 : vector<48x16xf32>
    %199 = tpu.concatenate %153, %198 in 0 : vector<48x16xf32>, vector<48x16xf32> -> vector<96x16xf32>
    %c1_149 = arith.constant 1 : index
    %c0_150 = arith.constant 0 : index
    %c0_151 = arith.constant 0 : index
    %200 = vector.load %arg10[%c1_149, %c0_150, %c0_151] : memref<4x96x1xf32, #tpu.memory_space<vmem>>, vector<1x96x1xf32>
    %201 = vector.shape_cast %200 : vector<1x96x1xf32> to vector<96x1xf32>
    %202 = vector.broadcast %201 : vector<96x1xf32> to vector<96x16xf32>
    %203 = arith.mulf %199, %202 : vector<96x16xf32>
    %c1_152 = arith.constant 1 : index
    %c0_153 = arith.constant 0 : index
    %c0_154 = arith.constant 0 : index
    %204 = vector.load %arg11[%c1_152, %c0_153, %c0_154] : memref<4x96x1xf32, #tpu.memory_space<vmem>>, vector<1x96x1xf32>
    %205 = vector.shape_cast %204 : vector<1x96x1xf32> to vector<96x1xf32>
    %206 = vector.broadcast %205 : vector<96x1xf32> to vector<96x16xf32>
    %207 = arith.addf %203, %206 : vector<96x16xf32>
    %cst_155 = arith.constant 0.000000e+00 : f32
    %208 = vector.broadcast %cst_155 : f32 to vector<96x16xf32>
    %209 = arith.maximumf %207, %208 : vector<96x16xf32>
    %210 = vector.extract_strided_slice %209 {offsets = [0, 0], sizes = [16, 16], strides = [1, 1]} : vector<96x16xf32> to vector<16x16xf32>
    %211 = vector.extract_strided_slice %209 {offsets = [16, 0], sizes = [16, 16], strides = [1, 1]} : vector<96x16xf32> to vector<16x16xf32>
    %212 = vector.extract_strided_slice %209 {offsets = [32, 0], sizes = [16, 16], strides = [1, 1]} : vector<96x16xf32> to vector<16x16xf32>
    %213 = vector.extract_strided_slice %209 {offsets = [48, 0], sizes = [16, 16], strides = [1, 1]} : vector<96x16xf32> to vector<16x16xf32>
    %214 = vector.extract_strided_slice %209 {offsets = [64, 0], sizes = [16, 16], strides = [1, 1]} : vector<96x16xf32> to vector<16x16xf32>
    %215 = vector.extract_strided_slice %209 {offsets = [80, 0], sizes = [16, 16], strides = [1, 1]} : vector<96x16xf32> to vector<16x16xf32>
    %216 = arith.truncf %210 : vector<16x16xf32> to vector<16x16xbf16>
    %217 = arith.truncf %211 : vector<16x16xf32> to vector<16x16xbf16>
    %218 = arith.truncf %212 : vector<16x16xf32> to vector<16x16xbf16>
    %219 = arith.truncf %213 : vector<16x16xf32> to vector<16x16xbf16>
    %220 = arith.truncf %214 : vector<16x16xf32> to vector<16x16xbf16>
    %221 = arith.truncf %215 : vector<16x16xf32> to vector<16x16xbf16>
    %222 = tpu.concatenate %216, %217, %218, %219, %220, %221, %216, %217, %218, %219, %220, %221, %216, %217, %218, %219 in 1 : vector<16x16xbf16>, vector<16x16xbf16>, vector<16x16xbf16>, vector<16x16xbf16>, vector<16x16xbf16>, vector<16x16xbf16>, vector<16x16xbf16>, vector<16x16xbf16>, vector<16x16xbf16>, vector<16x16xbf16>, vector<16x16xbf16>, vector<16x16xbf16>, vector<16x16xbf16>, vector<16x16xbf16>, vector<16x16xbf16>, vector<16x16xbf16> -> vector<16x256xbf16>
    %223 = tpu.concatenate %220, %221 in 1 : vector<16x16xbf16>, vector<16x16xbf16> -> vector<16x32xbf16>
    %224 = tpu.concatenate %222, %223 in 1 : vector<16x256xbf16>, vector<16x32xbf16> -> vector<16x288xbf16>
    %225 = tpu.concatenate %216, %216, %216, %219, %219, %219, %217, %217, %217, %220, %220, %220, %218, %218, %218, %221 in 1 : vector<16x16xbf16>, vector<16x16xbf16>, vector<16x16xbf16>, vector<16x16xbf16>, vector<16x16xbf16>, vector<16x16xbf16>, vector<16x16xbf16>, vector<16x16xbf16>, vector<16x16xbf16>, vector<16x16xbf16>, vector<16x16xbf16>, vector<16x16xbf16>, vector<16x16xbf16>, vector<16x16xbf16>, vector<16x16xbf16>, vector<16x16xbf16> -> vector<16x256xbf16>
    %226 = tpu.concatenate %221, %221 in 1 : vector<16x16xbf16>, vector<16x16xbf16> -> vector<16x32xbf16>
    %227 = tpu.concatenate %225, %226 in 1 : vector<16x256xbf16>, vector<16x32xbf16> -> vector<16x288xbf16>
    %c0_156 = arith.constant 0 : index
    %c0_157 = arith.constant 0 : index
    %228 = vector.load %arg12[%c0_156, %c0_157] : memref<128x16xbf16, #tpu.memory_space<vmem>>, vector<128x16xbf16>
    %cst_158 = arith.constant dense<0.000000e+00> : vector<128x288xf32>
    %229 = tpu.matmul %228, %224, %cst_158 {dimension_numbers = #tpu.dot_dimension_numbers<[1], [0], [0], [1], [0, 0, 1, 1], [], []>} : vector<128x16xbf16>, vector<16x288xbf16>, vector<128x288xf32> -> vector<128x288xf32>
    %c0_159 = arith.constant 0 : index
    %c0_160 = arith.constant 0 : index
    %230 = vector.load %arg13[%c0_159, %c0_160] : memref<128x16xbf16, #tpu.memory_space<vmem>>, vector<128x16xbf16>
    %cst_161 = arith.constant dense<0.000000e+00> : vector<128x288xf32>
    %231 = tpu.matmul %230, %227, %cst_161 {dimension_numbers = #tpu.dot_dimension_numbers<[1], [0], [0], [1], [0, 0, 1, 1], [], []>} : vector<128x16xbf16>, vector<16x288xbf16>, vector<128x288xf32> -> vector<128x288xf32>
    %232 = arith.addf %229, %231 : vector<128x288xf32>
    %c0_162 = arith.constant 0 : index
    %c0_163 = arith.constant 0 : index
    %233 = vector.load %arg14[%c0_162, %c0_163] : memref<128x1xf32, #tpu.memory_space<vmem>>, vector<128x1xf32>
    %234 = vector.broadcast %233 : vector<128x1xf32> to vector<128x288xf32>
    %235 = arith.mulf %234, %232 : vector<128x288xf32>
    %c0_164 = arith.constant 0 : index
    %c0_165 = arith.constant 0 : index
    %236 = vector.load %arg15[%c0_164, %c0_165] : memref<128x1xf32, #tpu.memory_space<vmem>>, vector<128x1xf32>
    %237 = vector.broadcast %236 : vector<128x1xf32> to vector<128x288xf32>
    %238 = arith.addf %235, %237 : vector<128x288xf32>
    %cst_166 = arith.constant 0.000000e+00 : f32
    %239 = vector.broadcast %cst_166 : f32 to vector<128x288xf32>
    %240 = arith.maximumf %238, %239 : vector<128x288xf32>
    %c0_167 = arith.constant 0 : index
    %c0_168 = arith.constant 0 : index
    %241 = vector.load %arg17[%c0_167, %c0_168] : memref<32x1xf32, #tpu.memory_space<vmem>>, vector<32x1xf32>
    %c0_169 = arith.constant 0 : index
    %c0_170 = arith.constant 0 : index
    %242 = vector.load %arg16[%c0_169, %c0_170] : memref<32x128xbf16, #tpu.memory_space<vmem>>, vector<32x128xbf16>
    %243 = arith.truncf %240 : vector<128x288xf32> to vector<128x288xbf16>
    %cst_171 = arith.constant dense<0.000000e+00> : vector<32x288xf32>
    %244 = tpu.matmul %242, %243, %cst_171 {dimension_numbers = #tpu.dot_dimension_numbers<[1], [0], [0], [1], [0, 0, 1, 1], [], []>} : vector<32x128xbf16>, vector<128x288xbf16>, vector<32x288xf32> -> vector<32x288xf32>
    %245 = vector.broadcast %241 : vector<32x1xf32> to vector<32x288xf32>
    %246 = arith.mulf %245, %244 : vector<32x288xf32>
    %c0_172 = arith.constant 0 : index
    %c0_173 = arith.constant 0 : index
    %247 = vector.load %arg18[%c0_172, %c0_173] : memref<32x1xf32, #tpu.memory_space<vmem>>, vector<32x1xf32>
    %248 = vector.broadcast %247 : vector<32x1xf32> to vector<32x288xf32>
    %249 = arith.addf %246, %248 : vector<32x288xf32>
    %cst_174 = arith.constant 0.000000e+00 : f32
    %250 = vector.broadcast %cst_174 : f32 to vector<32x288xf32>
    %251 = arith.maximumf %249, %250 : vector<32x288xf32>
    %c0_175 = arith.constant 0 : index
    %c0_176 = arith.constant 0 : index
    %252 = vector.load %arg20[%c0_175, %c0_176] : memref<8x1xf32, #tpu.memory_space<vmem>>, vector<8x1xf32>
    %c0_177 = arith.constant 0 : index
    %c0_178 = arith.constant 0 : index
    %253 = vector.load %arg19[%c0_177, %c0_178] : memref<8x32xbf16, #tpu.memory_space<vmem>>, vector<8x32xbf16>
    %254 = arith.truncf %251 : vector<32x288xf32> to vector<32x288xbf16>
    %cst_179 = arith.constant dense<0.000000e+00> : vector<8x288xf32>
    %255 = tpu.matmul %253, %254, %cst_179 {dimension_numbers = #tpu.dot_dimension_numbers<[1], [0], [0], [1], [0, 0, 1, 1], [], []>} : vector<8x32xbf16>, vector<32x288xbf16>, vector<8x288xf32> -> vector<8x288xf32>
    %256 = vector.broadcast %252 : vector<8x1xf32> to vector<8x288xf32>
    %257 = arith.mulf %256, %255 : vector<8x288xf32>
    %c0_180 = arith.constant 0 : index
    %c0_181 = arith.constant 0 : index
    %258 = vector.load %arg21[%c0_180, %c0_181] : memref<8x1xf32, #tpu.memory_space<vmem>>, vector<8x1xf32>
    %259 = vector.broadcast %258 : vector<8x1xf32> to vector<8x288xf32>
    %260 = arith.addf %257, %259 : vector<8x288xf32>
    %cst_182 = arith.constant 0.000000e+00 : f32
    %261 = vector.broadcast %cst_182 : f32 to vector<8x288xf32>
    %262 = arith.maximumf %260, %261 : vector<8x288xf32>
    %c0_183 = arith.constant 0 : index
    %c0_184 = arith.constant 0 : index
    %263 = vector.load %arg22[%c0_183, %c0_184] : memref<1x8xbf16, #tpu.memory_space<vmem>>, vector<1x8xbf16>
    %264 = arith.truncf %262 : vector<8x288xf32> to vector<8x288xbf16>
    %cst_185 = arith.constant dense<0.000000e+00> : vector<1x288xf32>
    %265 = tpu.matmul %263, %264, %cst_185 {dimension_numbers = #tpu.dot_dimension_numbers<[1], [0], [0], [1], [0, 0, 1, 1], [], []>} : vector<1x8xbf16>, vector<8x288xbf16>, vector<1x288xf32> -> vector<1x288xf32>
    %c0_186 = arith.constant 0 : index
    %c0_187 = arith.constant 0 : index
    %266 = vector.load %arg23[%c0_186, %c0_187] : memref<1x1xf32, #tpu.memory_space<vmem>>, vector<1x1xf32>
    %267 = vector.broadcast %266 : vector<1x1xf32> to vector<1x288xf32>
    %268 = arith.addf %265, %267 : vector<1x288xf32>
    %cst_188 = arith.constant 0.000000e+00 : f32
    %269 = vector.broadcast %cst_188 : f32 to vector<1x288xf32>
    %270 = arith.maximumf %268, %269 : vector<1x288xf32>
    %271 = vector.extract_strided_slice %270 {offsets = [0, 0], sizes = [1, 96], strides = [1, 1]} : vector<1x288xf32> to vector<1x96xf32>
    %272 = vector.extract_strided_slice %270 {offsets = [0, 96], sizes = [1, 96], strides = [1, 1]} : vector<1x288xf32> to vector<1x96xf32>
    %273 = vector.extract_strided_slice %270 {offsets = [0, 192], sizes = [1, 96], strides = [1, 1]} : vector<1x288xf32> to vector<1x96xf32>
    %274 = arith.maximumf %271, %272 : vector<1x96xf32>
    %275 = arith.maximumf %274, %273 : vector<1x96xf32>
    %276 = arith.subf %271, %275 : vector<1x96xf32>
    %277 = math.exp %276 : vector<1x96xf32>
    %278 = arith.subf %272, %275 : vector<1x96xf32>
    %279 = math.exp %278 : vector<1x96xf32>
    %280 = arith.subf %273, %275 : vector<1x96xf32>
    %281 = math.exp %280 : vector<1x96xf32>
    %282 = arith.addf %277, %279 : vector<1x96xf32>
    %283 = arith.addf %282, %281 : vector<1x96xf32>
    %284 = tpu.reciprocal %283 : vector<1x96xf32> -> vector<1x96xf32>
    %285 = arith.mulf %277, %284 : vector<1x96xf32>
    %286 = arith.mulf %279, %284 : vector<1x96xf32>
    %287 = arith.mulf %281, %284 : vector<1x96xf32>
    %288 = vector.extract_strided_slice %285 {offsets = [0, 0], sizes = [1, 16], strides = [1, 1]} : vector<1x96xf32> to vector<1x16xf32>
    %289 = vector.broadcast %288 : vector<1x16xf32> to vector<16x16xf32>
    %290 = arith.mulf %289, %210 : vector<16x16xf32>
    %291 = vector.extract_strided_slice %286 {offsets = [0, 0], sizes = [1, 16], strides = [1, 1]} : vector<1x96xf32> to vector<1x16xf32>
    %292 = vector.broadcast %291 : vector<1x16xf32> to vector<16x16xf32>
    %293 = arith.mulf %292, %211 : vector<16x16xf32>
    %294 = arith.addf %290, %293 : vector<16x16xf32>
    %295 = vector.extract_strided_slice %287 {offsets = [0, 0], sizes = [1, 16], strides = [1, 1]} : vector<1x96xf32> to vector<1x16xf32>
    %296 = vector.broadcast %295 : vector<1x16xf32> to vector<16x16xf32>
    %297 = arith.mulf %296, %212 : vector<16x16xf32>
    %298 = arith.addf %294, %297 : vector<16x16xf32>
    %299 = vector.extract_strided_slice %285 {offsets = [0, 16], sizes = [1, 16], strides = [1, 1]} : vector<1x96xf32> to vector<1x16xf32>
    %300 = vector.broadcast %299 : vector<1x16xf32> to vector<16x16xf32>
    %301 = arith.mulf %300, %210 : vector<16x16xf32>
    %302 = vector.extract_strided_slice %286 {offsets = [0, 16], sizes = [1, 16], strides = [1, 1]} : vector<1x96xf32> to vector<1x16xf32>
    %303 = vector.broadcast %302 : vector<1x16xf32> to vector<16x16xf32>
    %304 = arith.mulf %303, %211 : vector<16x16xf32>
    %305 = arith.addf %301, %304 : vector<16x16xf32>
    %306 = vector.extract_strided_slice %287 {offsets = [0, 16], sizes = [1, 16], strides = [1, 1]} : vector<1x96xf32> to vector<1x16xf32>
    %307 = vector.broadcast %306 : vector<1x16xf32> to vector<16x16xf32>
    %308 = arith.mulf %307, %212 : vector<16x16xf32>
    %309 = arith.addf %305, %308 : vector<16x16xf32>
    %310 = vector.extract_strided_slice %285 {offsets = [0, 32], sizes = [1, 16], strides = [1, 1]} : vector<1x96xf32> to vector<1x16xf32>
    %311 = vector.broadcast %310 : vector<1x16xf32> to vector<16x16xf32>
    %312 = arith.mulf %311, %210 : vector<16x16xf32>
    %313 = vector.extract_strided_slice %286 {offsets = [0, 32], sizes = [1, 16], strides = [1, 1]} : vector<1x96xf32> to vector<1x16xf32>
    %314 = vector.broadcast %313 : vector<1x16xf32> to vector<16x16xf32>
    %315 = arith.mulf %314, %211 : vector<16x16xf32>
    %316 = arith.addf %312, %315 : vector<16x16xf32>
    %317 = vector.extract_strided_slice %287 {offsets = [0, 32], sizes = [1, 16], strides = [1, 1]} : vector<1x96xf32> to vector<1x16xf32>
    %318 = vector.broadcast %317 : vector<1x16xf32> to vector<16x16xf32>
    %319 = arith.mulf %318, %212 : vector<16x16xf32>
    %320 = arith.addf %316, %319 : vector<16x16xf32>
    %321 = vector.extract_strided_slice %285 {offsets = [0, 48], sizes = [1, 16], strides = [1, 1]} : vector<1x96xf32> to vector<1x16xf32>
    %322 = vector.broadcast %321 : vector<1x16xf32> to vector<16x16xf32>
    %323 = arith.mulf %322, %213 : vector<16x16xf32>
    %324 = vector.extract_strided_slice %286 {offsets = [0, 48], sizes = [1, 16], strides = [1, 1]} : vector<1x96xf32> to vector<1x16xf32>
    %325 = vector.broadcast %324 : vector<1x16xf32> to vector<16x16xf32>
    %326 = arith.mulf %325, %214 : vector<16x16xf32>
    %327 = arith.addf %323, %326 : vector<16x16xf32>
    %328 = vector.extract_strided_slice %287 {offsets = [0, 48], sizes = [1, 16], strides = [1, 1]} : vector<1x96xf32> to vector<1x16xf32>
    %329 = vector.broadcast %328 : vector<1x16xf32> to vector<16x16xf32>
    %330 = arith.mulf %329, %215 : vector<16x16xf32>
    %331 = arith.addf %327, %330 : vector<16x16xf32>
    %332 = vector.extract_strided_slice %285 {offsets = [0, 64], sizes = [1, 16], strides = [1, 1]} : vector<1x96xf32> to vector<1x16xf32>
    %333 = vector.broadcast %332 : vector<1x16xf32> to vector<16x16xf32>
    %334 = arith.mulf %333, %213 : vector<16x16xf32>
    %335 = vector.extract_strided_slice %286 {offsets = [0, 64], sizes = [1, 16], strides = [1, 1]} : vector<1x96xf32> to vector<1x16xf32>
    %336 = vector.broadcast %335 : vector<1x16xf32> to vector<16x16xf32>
    %337 = arith.mulf %336, %214 : vector<16x16xf32>
    %338 = arith.addf %334, %337 : vector<16x16xf32>
    %339 = vector.extract_strided_slice %287 {offsets = [0, 64], sizes = [1, 16], strides = [1, 1]} : vector<1x96xf32> to vector<1x16xf32>
    %340 = vector.broadcast %339 : vector<1x16xf32> to vector<16x16xf32>
    %341 = arith.mulf %340, %215 : vector<16x16xf32>
    %342 = arith.addf %338, %341 : vector<16x16xf32>
    %343 = vector.extract_strided_slice %285 {offsets = [0, 80], sizes = [1, 16], strides = [1, 1]} : vector<1x96xf32> to vector<1x16xf32>
    %344 = vector.broadcast %343 : vector<1x16xf32> to vector<16x16xf32>
    %345 = arith.mulf %344, %213 : vector<16x16xf32>
    %346 = vector.extract_strided_slice %286 {offsets = [0, 80], sizes = [1, 16], strides = [1, 1]} : vector<1x96xf32> to vector<1x16xf32>
    %347 = vector.broadcast %346 : vector<1x16xf32> to vector<16x16xf32>
    %348 = arith.mulf %347, %214 : vector<16x16xf32>
    %349 = arith.addf %345, %348 : vector<16x16xf32>
    %350 = vector.extract_strided_slice %287 {offsets = [0, 80], sizes = [1, 16], strides = [1, 1]} : vector<1x96xf32> to vector<1x16xf32>
    %351 = vector.broadcast %350 : vector<1x16xf32> to vector<16x16xf32>
    %352 = arith.mulf %351, %215 : vector<16x16xf32>
    %353 = arith.addf %349, %352 : vector<16x16xf32>
    %354 = tpu.concatenate %298, %309, %320, %331, %342, %353 in 0 : vector<16x16xf32>, vector<16x16xf32>, vector<16x16xf32>, vector<16x16xf32>, vector<16x16xf32>, vector<16x16xf32> -> vector<96x16xf32>
    %355 = arith.truncf %354 : vector<96x16xf32> to vector<96x16xbf16>
    %c0_189 = arith.constant 0 : index
    %c0_190 = arith.constant 0 : index
    %356 = vector.load %arg4[%c0_189, %c0_190] : memref<16x576xbf16, #tpu.memory_space<vmem>>, vector<16x576xbf16>
    %cst_191 = arith.constant dense<0.000000e+00> : vector<96x576xf32>
    %357 = tpu.matmul %355, %356, %cst_191 {dimension_numbers = #tpu.dot_dimension_numbers<[1], [0], [0], [1], [0, 0, 1, 1], [], []>} : vector<96x16xbf16>, vector<16x576xbf16>, vector<96x576xf32> -> vector<96x576xf32>
    %358 = arith.truncf %357 : vector<96x576xf32> to vector<96x576xbf16>
    %359 = vector.extract_strided_slice %358 {offsets = [0, 0], sizes = [48, 576], strides = [1, 1]} : vector<96x576xbf16> to vector<48x576xbf16>
    %c0_192 = arith.constant 0 : index
    %c0_193 = arith.constant 0 : index
    %c0_194 = arith.constant 0 : index
    %360 = vector.load %arg8[%c0_192, %c0_193, %c0_194] : memref<9x48x48xbf16, #tpu.memory_space<vmem>>, vector<1x48x48xbf16>
    %361 = vector.shape_cast %360 : vector<1x48x48xbf16> to vector<48x48xbf16>
    %362 = vector.extract_strided_slice %359 {offsets = [0, 0], sizes = [48, 64], strides = [1, 1]} : vector<48x576xbf16> to vector<48x64xbf16>
    %cst_195 = arith.constant dense<0.000000e+00> : vector<48x64xf32>
    %363 = tpu.matmul %361, %362, %cst_195 {dimension_numbers = #tpu.dot_dimension_numbers<[1], [0], [0], [1], [0, 0, 1, 1], [], []>} : vector<48x48xbf16>, vector<48x64xbf16>, vector<48x64xf32> -> vector<48x64xf32>
    %c1_196 = arith.constant 1 : index
    %c0_197 = arith.constant 0 : index
    %c0_198 = arith.constant 0 : index
    %364 = vector.load %arg8[%c1_196, %c0_197, %c0_198] : memref<9x48x48xbf16, #tpu.memory_space<vmem>>, vector<1x48x48xbf16>
    %365 = vector.shape_cast %364 : vector<1x48x48xbf16> to vector<48x48xbf16>
    %366 = vector.extract_strided_slice %359 {offsets = [0, 64], sizes = [48, 64], strides = [1, 1]} : vector<48x576xbf16> to vector<48x64xbf16>
    %cst_199 = arith.constant dense<0.000000e+00> : vector<48x64xf32>
    %367 = tpu.matmul %365, %366, %cst_199 {dimension_numbers = #tpu.dot_dimension_numbers<[1], [0], [0], [1], [0, 0, 1, 1], [], []>} : vector<48x48xbf16>, vector<48x64xbf16>, vector<48x64xf32> -> vector<48x64xf32>
    %368 = arith.addf %363, %367 : vector<48x64xf32>
    %c2_200 = arith.constant 2 : index
    %c0_201 = arith.constant 0 : index
    %c0_202 = arith.constant 0 : index
    %369 = vector.load %arg8[%c2_200, %c0_201, %c0_202] : memref<9x48x48xbf16, #tpu.memory_space<vmem>>, vector<1x48x48xbf16>
    %370 = vector.shape_cast %369 : vector<1x48x48xbf16> to vector<48x48xbf16>
    %371 = vector.extract_strided_slice %359 {offsets = [0, 128], sizes = [48, 64], strides = [1, 1]} : vector<48x576xbf16> to vector<48x64xbf16>
    %cst_203 = arith.constant dense<0.000000e+00> : vector<48x64xf32>
    %372 = tpu.matmul %370, %371, %cst_203 {dimension_numbers = #tpu.dot_dimension_numbers<[1], [0], [0], [1], [0, 0, 1, 1], [], []>} : vector<48x48xbf16>, vector<48x64xbf16>, vector<48x64xf32> -> vector<48x64xf32>
    %373 = arith.addf %368, %372 : vector<48x64xf32>
    %c3_204 = arith.constant 3 : index
    %c0_205 = arith.constant 0 : index
    %c0_206 = arith.constant 0 : index
    %374 = vector.load %arg8[%c3_204, %c0_205, %c0_206] : memref<9x48x48xbf16, #tpu.memory_space<vmem>>, vector<1x48x48xbf16>
    %375 = vector.shape_cast %374 : vector<1x48x48xbf16> to vector<48x48xbf16>
    %376 = vector.extract_strided_slice %359 {offsets = [0, 192], sizes = [48, 64], strides = [1, 1]} : vector<48x576xbf16> to vector<48x64xbf16>
    %cst_207 = arith.constant dense<0.000000e+00> : vector<48x64xf32>
    %377 = tpu.matmul %375, %376, %cst_207 {dimension_numbers = #tpu.dot_dimension_numbers<[1], [0], [0], [1], [0, 0, 1, 1], [], []>} : vector<48x48xbf16>, vector<48x64xbf16>, vector<48x64xf32> -> vector<48x64xf32>
    %378 = arith.addf %373, %377 : vector<48x64xf32>
    %c4_208 = arith.constant 4 : index
    %c0_209 = arith.constant 0 : index
    %c0_210 = arith.constant 0 : index
    %379 = vector.load %arg8[%c4_208, %c0_209, %c0_210] : memref<9x48x48xbf16, #tpu.memory_space<vmem>>, vector<1x48x48xbf16>
    %380 = vector.shape_cast %379 : vector<1x48x48xbf16> to vector<48x48xbf16>
    %381 = vector.extract_strided_slice %359 {offsets = [0, 256], sizes = [48, 64], strides = [1, 1]} : vector<48x576xbf16> to vector<48x64xbf16>
    %cst_211 = arith.constant dense<0.000000e+00> : vector<48x64xf32>
    %382 = tpu.matmul %380, %381, %cst_211 {dimension_numbers = #tpu.dot_dimension_numbers<[1], [0], [0], [1], [0, 0, 1, 1], [], []>} : vector<48x48xbf16>, vector<48x64xbf16>, vector<48x64xf32> -> vector<48x64xf32>
    %383 = arith.addf %378, %382 : vector<48x64xf32>
    %c5_212 = arith.constant 5 : index
    %c0_213 = arith.constant 0 : index
    %c0_214 = arith.constant 0 : index
    %384 = vector.load %arg8[%c5_212, %c0_213, %c0_214] : memref<9x48x48xbf16, #tpu.memory_space<vmem>>, vector<1x48x48xbf16>
    %385 = vector.shape_cast %384 : vector<1x48x48xbf16> to vector<48x48xbf16>
    %386 = vector.extract_strided_slice %359 {offsets = [0, 320], sizes = [48, 64], strides = [1, 1]} : vector<48x576xbf16> to vector<48x64xbf16>
    %cst_215 = arith.constant dense<0.000000e+00> : vector<48x64xf32>
    %387 = tpu.matmul %385, %386, %cst_215 {dimension_numbers = #tpu.dot_dimension_numbers<[1], [0], [0], [1], [0, 0, 1, 1], [], []>} : vector<48x48xbf16>, vector<48x64xbf16>, vector<48x64xf32> -> vector<48x64xf32>
    %388 = arith.addf %383, %387 : vector<48x64xf32>
    %c6_216 = arith.constant 6 : index
    %c0_217 = arith.constant 0 : index
    %c0_218 = arith.constant 0 : index
    %389 = vector.load %arg8[%c6_216, %c0_217, %c0_218] : memref<9x48x48xbf16, #tpu.memory_space<vmem>>, vector<1x48x48xbf16>
    %390 = vector.shape_cast %389 : vector<1x48x48xbf16> to vector<48x48xbf16>
    %391 = vector.extract_strided_slice %359 {offsets = [0, 384], sizes = [48, 64], strides = [1, 1]} : vector<48x576xbf16> to vector<48x64xbf16>
    %cst_219 = arith.constant dense<0.000000e+00> : vector<48x64xf32>
    %392 = tpu.matmul %390, %391, %cst_219 {dimension_numbers = #tpu.dot_dimension_numbers<[1], [0], [0], [1], [0, 0, 1, 1], [], []>} : vector<48x48xbf16>, vector<48x64xbf16>, vector<48x64xf32> -> vector<48x64xf32>
    %393 = arith.addf %388, %392 : vector<48x64xf32>
    %c7_220 = arith.constant 7 : index
    %c0_221 = arith.constant 0 : index
    %c0_222 = arith.constant 0 : index
    %394 = vector.load %arg8[%c7_220, %c0_221, %c0_222] : memref<9x48x48xbf16, #tpu.memory_space<vmem>>, vector<1x48x48xbf16>
    %395 = vector.shape_cast %394 : vector<1x48x48xbf16> to vector<48x48xbf16>
    %396 = vector.extract_strided_slice %359 {offsets = [0, 448], sizes = [48, 64], strides = [1, 1]} : vector<48x576xbf16> to vector<48x64xbf16>
    %cst_223 = arith.constant dense<0.000000e+00> : vector<48x64xf32>
    %397 = tpu.matmul %395, %396, %cst_223 {dimension_numbers = #tpu.dot_dimension_numbers<[1], [0], [0], [1], [0, 0, 1, 1], [], []>} : vector<48x48xbf16>, vector<48x64xbf16>, vector<48x64xf32> -> vector<48x64xf32>
    %398 = arith.addf %393, %397 : vector<48x64xf32>
    %c8_224 = arith.constant 8 : index
    %c0_225 = arith.constant 0 : index
    %c0_226 = arith.constant 0 : index
    %399 = vector.load %arg8[%c8_224, %c0_225, %c0_226] : memref<9x48x48xbf16, #tpu.memory_space<vmem>>, vector<1x48x48xbf16>
    %400 = vector.shape_cast %399 : vector<1x48x48xbf16> to vector<48x48xbf16>
    %401 = vector.extract_strided_slice %359 {offsets = [0, 512], sizes = [48, 64], strides = [1, 1]} : vector<48x576xbf16> to vector<48x64xbf16>
    %cst_227 = arith.constant dense<0.000000e+00> : vector<48x64xf32>
    %402 = tpu.matmul %400, %401, %cst_227 {dimension_numbers = #tpu.dot_dimension_numbers<[1], [0], [0], [1], [0, 0, 1, 1], [], []>} : vector<48x48xbf16>, vector<48x64xbf16>, vector<48x64xf32> -> vector<48x64xf32>
    %403 = arith.addf %398, %402 : vector<48x64xf32>
    %404 = vector.extract_strided_slice %358 {offsets = [48, 0], sizes = [48, 576], strides = [1, 1]} : vector<96x576xbf16> to vector<48x576xbf16>
    %c0_228 = arith.constant 0 : index
    %c0_229 = arith.constant 0 : index
    %c0_230 = arith.constant 0 : index
    %405 = vector.load %arg8[%c0_228, %c0_229, %c0_230] : memref<9x48x48xbf16, #tpu.memory_space<vmem>>, vector<1x48x48xbf16>
    %406 = vector.shape_cast %405 : vector<1x48x48xbf16> to vector<48x48xbf16>
    %407 = vector.extract_strided_slice %404 {offsets = [0, 0], sizes = [48, 64], strides = [1, 1]} : vector<48x576xbf16> to vector<48x64xbf16>
    %cst_231 = arith.constant dense<0.000000e+00> : vector<48x64xf32>
    %408 = tpu.matmul %406, %407, %cst_231 {dimension_numbers = #tpu.dot_dimension_numbers<[1], [0], [0], [1], [0, 0, 1, 1], [], []>} : vector<48x48xbf16>, vector<48x64xbf16>, vector<48x64xf32> -> vector<48x64xf32>
    %c1_232 = arith.constant 1 : index
    %c0_233 = arith.constant 0 : index
    %c0_234 = arith.constant 0 : index
    %409 = vector.load %arg8[%c1_232, %c0_233, %c0_234] : memref<9x48x48xbf16, #tpu.memory_space<vmem>>, vector<1x48x48xbf16>
    %410 = vector.shape_cast %409 : vector<1x48x48xbf16> to vector<48x48xbf16>
    %411 = vector.extract_strided_slice %404 {offsets = [0, 64], sizes = [48, 64], strides = [1, 1]} : vector<48x576xbf16> to vector<48x64xbf16>
    %cst_235 = arith.constant dense<0.000000e+00> : vector<48x64xf32>
    %412 = tpu.matmul %410, %411, %cst_235 {dimension_numbers = #tpu.dot_dimension_numbers<[1], [0], [0], [1], [0, 0, 1, 1], [], []>} : vector<48x48xbf16>, vector<48x64xbf16>, vector<48x64xf32> -> vector<48x64xf32>
    %413 = arith.addf %408, %412 : vector<48x64xf32>
    %c2_236 = arith.constant 2 : index
    %c0_237 = arith.constant 0 : index
    %c0_238 = arith.constant 0 : index
    %414 = vector.load %arg8[%c2_236, %c0_237, %c0_238] : memref<9x48x48xbf16, #tpu.memory_space<vmem>>, vector<1x48x48xbf16>
    %415 = vector.shape_cast %414 : vector<1x48x48xbf16> to vector<48x48xbf16>
    %416 = vector.extract_strided_slice %404 {offsets = [0, 128], sizes = [48, 64], strides = [1, 1]} : vector<48x576xbf16> to vector<48x64xbf16>
    %cst_239 = arith.constant dense<0.000000e+00> : vector<48x64xf32>
    %417 = tpu.matmul %415, %416, %cst_239 {dimension_numbers = #tpu.dot_dimension_numbers<[1], [0], [0], [1], [0, 0, 1, 1], [], []>} : vector<48x48xbf16>, vector<48x64xbf16>, vector<48x64xf32> -> vector<48x64xf32>
    %418 = arith.addf %413, %417 : vector<48x64xf32>
    %c3_240 = arith.constant 3 : index
    %c0_241 = arith.constant 0 : index
    %c0_242 = arith.constant 0 : index
    %419 = vector.load %arg8[%c3_240, %c0_241, %c0_242] : memref<9x48x48xbf16, #tpu.memory_space<vmem>>, vector<1x48x48xbf16>
    %420 = vector.shape_cast %419 : vector<1x48x48xbf16> to vector<48x48xbf16>
    %421 = vector.extract_strided_slice %404 {offsets = [0, 192], sizes = [48, 64], strides = [1, 1]} : vector<48x576xbf16> to vector<48x64xbf16>
    %cst_243 = arith.constant dense<0.000000e+00> : vector<48x64xf32>
    %422 = tpu.matmul %420, %421, %cst_243 {dimension_numbers = #tpu.dot_dimension_numbers<[1], [0], [0], [1], [0, 0, 1, 1], [], []>} : vector<48x48xbf16>, vector<48x64xbf16>, vector<48x64xf32> -> vector<48x64xf32>
    %423 = arith.addf %418, %422 : vector<48x64xf32>
    %c4_244 = arith.constant 4 : index
    %c0_245 = arith.constant 0 : index
    %c0_246 = arith.constant 0 : index
    %424 = vector.load %arg8[%c4_244, %c0_245, %c0_246] : memref<9x48x48xbf16, #tpu.memory_space<vmem>>, vector<1x48x48xbf16>
    %425 = vector.shape_cast %424 : vector<1x48x48xbf16> to vector<48x48xbf16>
    %426 = vector.extract_strided_slice %404 {offsets = [0, 256], sizes = [48, 64], strides = [1, 1]} : vector<48x576xbf16> to vector<48x64xbf16>
    %cst_247 = arith.constant dense<0.000000e+00> : vector<48x64xf32>
    %427 = tpu.matmul %425, %426, %cst_247 {dimension_numbers = #tpu.dot_dimension_numbers<[1], [0], [0], [1], [0, 0, 1, 1], [], []>} : vector<48x48xbf16>, vector<48x64xbf16>, vector<48x64xf32> -> vector<48x64xf32>
    %428 = arith.addf %423, %427 : vector<48x64xf32>
    %c5_248 = arith.constant 5 : index
    %c0_249 = arith.constant 0 : index
    %c0_250 = arith.constant 0 : index
    %429 = vector.load %arg8[%c5_248, %c0_249, %c0_250] : memref<9x48x48xbf16, #tpu.memory_space<vmem>>, vector<1x48x48xbf16>
    %430 = vector.shape_cast %429 : vector<1x48x48xbf16> to vector<48x48xbf16>
    %431 = vector.extract_strided_slice %404 {offsets = [0, 320], sizes = [48, 64], strides = [1, 1]} : vector<48x576xbf16> to vector<48x64xbf16>
    %cst_251 = arith.constant dense<0.000000e+00> : vector<48x64xf32>
    %432 = tpu.matmul %430, %431, %cst_251 {dimension_numbers = #tpu.dot_dimension_numbers<[1], [0], [0], [1], [0, 0, 1, 1], [], []>} : vector<48x48xbf16>, vector<48x64xbf16>, vector<48x64xf32> -> vector<48x64xf32>
    %433 = arith.addf %428, %432 : vector<48x64xf32>
    %c6_252 = arith.constant 6 : index
    %c0_253 = arith.constant 0 : index
    %c0_254 = arith.constant 0 : index
    %434 = vector.load %arg8[%c6_252, %c0_253, %c0_254] : memref<9x48x48xbf16, #tpu.memory_space<vmem>>, vector<1x48x48xbf16>
    %435 = vector.shape_cast %434 : vector<1x48x48xbf16> to vector<48x48xbf16>
    %436 = vector.extract_strided_slice %404 {offsets = [0, 384], sizes = [48, 64], strides = [1, 1]} : vector<48x576xbf16> to vector<48x64xbf16>
    %cst_255 = arith.constant dense<0.000000e+00> : vector<48x64xf32>
    %437 = tpu.matmul %435, %436, %cst_255 {dimension_numbers = #tpu.dot_dimension_numbers<[1], [0], [0], [1], [0, 0, 1, 1], [], []>} : vector<48x48xbf16>, vector<48x64xbf16>, vector<48x64xf32> -> vector<48x64xf32>
    %438 = arith.addf %433, %437 : vector<48x64xf32>
    %c7_256 = arith.constant 7 : index
    %c0_257 = arith.constant 0 : index
    %c0_258 = arith.constant 0 : index
    %439 = vector.load %arg8[%c7_256, %c0_257, %c0_258] : memref<9x48x48xbf16, #tpu.memory_space<vmem>>, vector<1x48x48xbf16>
    %440 = vector.shape_cast %439 : vector<1x48x48xbf16> to vector<48x48xbf16>
    %441 = vector.extract_strided_slice %404 {offsets = [0, 448], sizes = [48, 64], strides = [1, 1]} : vector<48x576xbf16> to vector<48x64xbf16>
    %cst_259 = arith.constant dense<0.000000e+00> : vector<48x64xf32>
    %442 = tpu.matmul %440, %441, %cst_259 {dimension_numbers = #tpu.dot_dimension_numbers<[1], [0], [0], [1], [0, 0, 1, 1], [], []>} : vector<48x48xbf16>, vector<48x64xbf16>, vector<48x64xf32> -> vector<48x64xf32>
    %443 = arith.addf %438, %442 : vector<48x64xf32>
    %c8_260 = arith.constant 8 : index
    %c0_261 = arith.constant 0 : index
    %c0_262 = arith.constant 0 : index
    %444 = vector.load %arg8[%c8_260, %c0_261, %c0_262] : memref<9x48x48xbf16, #tpu.memory_space<vmem>>, vector<1x48x48xbf16>
    %445 = vector.shape_cast %444 : vector<1x48x48xbf16> to vector<48x48xbf16>
    %446 = vector.extract_strided_slice %404 {offsets = [0, 512], sizes = [48, 64], strides = [1, 1]} : vector<48x576xbf16> to vector<48x64xbf16>
    %cst_263 = arith.constant dense<0.000000e+00> : vector<48x64xf32>
    %447 = tpu.matmul %445, %446, %cst_263 {dimension_numbers = #tpu.dot_dimension_numbers<[1], [0], [0], [1], [0, 0, 1, 1], [], []>} : vector<48x48xbf16>, vector<48x64xbf16>, vector<48x64xf32> -> vector<48x64xf32>
    %448 = arith.addf %443, %447 : vector<48x64xf32>
    %449 = tpu.concatenate %403, %448 in 0 : vector<48x64xf32>, vector<48x64xf32> -> vector<96x64xf32>
    %c2_264 = arith.constant 2 : index
    %c0_265 = arith.constant 0 : index
    %c0_266 = arith.constant 0 : index
    %450 = vector.load %arg10[%c2_264, %c0_265, %c0_266] : memref<4x96x1xf32, #tpu.memory_space<vmem>>, vector<1x96x1xf32>
    %451 = vector.shape_cast %450 : vector<1x96x1xf32> to vector<96x1xf32>
    %452 = vector.broadcast %451 : vector<96x1xf32> to vector<96x64xf32>
    %453 = arith.mulf %449, %452 : vector<96x64xf32>
    %c2_267 = arith.constant 2 : index
    %c0_268 = arith.constant 0 : index
    %c0_269 = arith.constant 0 : index
    %454 = vector.load %arg11[%c2_267, %c0_268, %c0_269] : memref<4x96x1xf32, #tpu.memory_space<vmem>>, vector<1x96x1xf32>
    %455 = vector.shape_cast %454 : vector<1x96x1xf32> to vector<96x1xf32>
    %456 = vector.broadcast %455 : vector<96x1xf32> to vector<96x64xf32>
    %457 = arith.addf %453, %456 : vector<96x64xf32>
    %cst_270 = arith.constant 0.000000e+00 : f32
    %458 = vector.broadcast %cst_270 : f32 to vector<96x64xf32>
    %459 = arith.maximumf %457, %458 : vector<96x64xf32>
    %460 = arith.truncf %459 : vector<96x64xf32> to vector<96x64xbf16>
    %c0_271 = arith.constant 0 : index
    %c0_272 = arith.constant 0 : index
    %461 = vector.load %arg5[%c0_271, %c0_272] : memref<64x2304xbf16, #tpu.memory_space<vmem>>, vector<64x2304xbf16>
    %cst_273 = arith.constant dense<0.000000e+00> : vector<96x2304xf32>
    %462 = tpu.matmul %460, %461, %cst_273 {dimension_numbers = #tpu.dot_dimension_numbers<[1], [0], [0], [1], [0, 0, 1, 1], [], []>} : vector<96x64xbf16>, vector<64x2304xbf16>, vector<96x2304xf32> -> vector<96x2304xf32>
    %463 = arith.truncf %462 : vector<96x2304xf32> to vector<96x2304xbf16>
    %464 = vector.extract_strided_slice %463 {offsets = [0, 0], sizes = [48, 2304], strides = [1, 1]} : vector<96x2304xbf16> to vector<48x2304xbf16>
    %c0_274 = arith.constant 0 : index
    %c0_275 = arith.constant 0 : index
    %c0_276 = arith.constant 0 : index
    %465 = vector.load %arg9[%c0_274, %c0_275, %c0_276] : memref<9x48x48xbf16, #tpu.memory_space<vmem>>, vector<1x48x48xbf16>
    %466 = vector.shape_cast %465 : vector<1x48x48xbf16> to vector<48x48xbf16>
    %467 = vector.extract_strided_slice %464 {offsets = [0, 0], sizes = [48, 256], strides = [1, 1]} : vector<48x2304xbf16> to vector<48x256xbf16>
    %cst_277 = arith.constant dense<0.000000e+00> : vector<48x256xf32>
    %468 = tpu.matmul %466, %467, %cst_277 {dimension_numbers = #tpu.dot_dimension_numbers<[1], [0], [0], [1], [0, 0, 1, 1], [], []>} : vector<48x48xbf16>, vector<48x256xbf16>, vector<48x256xf32> -> vector<48x256xf32>
    %c1_278 = arith.constant 1 : index
    %c0_279 = arith.constant 0 : index
    %c0_280 = arith.constant 0 : index
    %469 = vector.load %arg9[%c1_278, %c0_279, %c0_280] : memref<9x48x48xbf16, #tpu.memory_space<vmem>>, vector<1x48x48xbf16>
    %470 = vector.shape_cast %469 : vector<1x48x48xbf16> to vector<48x48xbf16>
    %471 = vector.extract_strided_slice %464 {offsets = [0, 256], sizes = [48, 256], strides = [1, 1]} : vector<48x2304xbf16> to vector<48x256xbf16>
    %cst_281 = arith.constant dense<0.000000e+00> : vector<48x256xf32>
    %472 = tpu.matmul %470, %471, %cst_281 {dimension_numbers = #tpu.dot_dimension_numbers<[1], [0], [0], [1], [0, 0, 1, 1], [], []>} : vector<48x48xbf16>, vector<48x256xbf16>, vector<48x256xf32> -> vector<48x256xf32>
    %473 = arith.addf %468, %472 : vector<48x256xf32>
    %c2_282 = arith.constant 2 : index
    %c0_283 = arith.constant 0 : index
    %c0_284 = arith.constant 0 : index
    %474 = vector.load %arg9[%c2_282, %c0_283, %c0_284] : memref<9x48x48xbf16, #tpu.memory_space<vmem>>, vector<1x48x48xbf16>
    %475 = vector.shape_cast %474 : vector<1x48x48xbf16> to vector<48x48xbf16>
    %476 = vector.extract_strided_slice %464 {offsets = [0, 512], sizes = [48, 256], strides = [1, 1]} : vector<48x2304xbf16> to vector<48x256xbf16>
    %cst_285 = arith.constant dense<0.000000e+00> : vector<48x256xf32>
    %477 = tpu.matmul %475, %476, %cst_285 {dimension_numbers = #tpu.dot_dimension_numbers<[1], [0], [0], [1], [0, 0, 1, 1], [], []>} : vector<48x48xbf16>, vector<48x256xbf16>, vector<48x256xf32> -> vector<48x256xf32>
    %478 = arith.addf %473, %477 : vector<48x256xf32>
    %c3_286 = arith.constant 3 : index
    %c0_287 = arith.constant 0 : index
    %c0_288 = arith.constant 0 : index
    %479 = vector.load %arg9[%c3_286, %c0_287, %c0_288] : memref<9x48x48xbf16, #tpu.memory_space<vmem>>, vector<1x48x48xbf16>
    %480 = vector.shape_cast %479 : vector<1x48x48xbf16> to vector<48x48xbf16>
    %481 = vector.extract_strided_slice %464 {offsets = [0, 768], sizes = [48, 256], strides = [1, 1]} : vector<48x2304xbf16> to vector<48x256xbf16>
    %cst_289 = arith.constant dense<0.000000e+00> : vector<48x256xf32>
    %482 = tpu.matmul %480, %481, %cst_289 {dimension_numbers = #tpu.dot_dimension_numbers<[1], [0], [0], [1], [0, 0, 1, 1], [], []>} : vector<48x48xbf16>, vector<48x256xbf16>, vector<48x256xf32> -> vector<48x256xf32>
    %483 = arith.addf %478, %482 : vector<48x256xf32>
    %c4_290 = arith.constant 4 : index
    %c0_291 = arith.constant 0 : index
    %c0_292 = arith.constant 0 : index
    %484 = vector.load %arg9[%c4_290, %c0_291, %c0_292] : memref<9x48x48xbf16, #tpu.memory_space<vmem>>, vector<1x48x48xbf16>
    %485 = vector.shape_cast %484 : vector<1x48x48xbf16> to vector<48x48xbf16>
    %486 = vector.extract_strided_slice %464 {offsets = [0, 1024], sizes = [48, 256], strides = [1, 1]} : vector<48x2304xbf16> to vector<48x256xbf16>
    %cst_293 = arith.constant dense<0.000000e+00> : vector<48x256xf32>
    %487 = tpu.matmul %485, %486, %cst_293 {dimension_numbers = #tpu.dot_dimension_numbers<[1], [0], [0], [1], [0, 0, 1, 1], [], []>} : vector<48x48xbf16>, vector<48x256xbf16>, vector<48x256xf32> -> vector<48x256xf32>
    %488 = arith.addf %483, %487 : vector<48x256xf32>
    %c5_294 = arith.constant 5 : index
    %c0_295 = arith.constant 0 : index
    %c0_296 = arith.constant 0 : index
    %489 = vector.load %arg9[%c5_294, %c0_295, %c0_296] : memref<9x48x48xbf16, #tpu.memory_space<vmem>>, vector<1x48x48xbf16>
    %490 = vector.shape_cast %489 : vector<1x48x48xbf16> to vector<48x48xbf16>
    %491 = vector.extract_strided_slice %464 {offsets = [0, 1280], sizes = [48, 256], strides = [1, 1]} : vector<48x2304xbf16> to vector<48x256xbf16>
    %cst_297 = arith.constant dense<0.000000e+00> : vector<48x256xf32>
    %492 = tpu.matmul %490, %491, %cst_297 {dimension_numbers = #tpu.dot_dimension_numbers<[1], [0], [0], [1], [0, 0, 1, 1], [], []>} : vector<48x48xbf16>, vector<48x256xbf16>, vector<48x256xf32> -> vector<48x256xf32>
    %493 = arith.addf %488, %492 : vector<48x256xf32>
    %c6_298 = arith.constant 6 : index
    %c0_299 = arith.constant 0 : index
    %c0_300 = arith.constant 0 : index
    %494 = vector.load %arg9[%c6_298, %c0_299, %c0_300] : memref<9x48x48xbf16, #tpu.memory_space<vmem>>, vector<1x48x48xbf16>
    %495 = vector.shape_cast %494 : vector<1x48x48xbf16> to vector<48x48xbf16>
    %496 = vector.extract_strided_slice %464 {offsets = [0, 1536], sizes = [48, 256], strides = [1, 1]} : vector<48x2304xbf16> to vector<48x256xbf16>
    %cst_301 = arith.constant dense<0.000000e+00> : vector<48x256xf32>
    %497 = tpu.matmul %495, %496, %cst_301 {dimension_numbers = #tpu.dot_dimension_numbers<[1], [0], [0], [1], [0, 0, 1, 1], [], []>} : vector<48x48xbf16>, vector<48x256xbf16>, vector<48x256xf32> -> vector<48x256xf32>
    %498 = arith.addf %493, %497 : vector<48x256xf32>
    %c7_302 = arith.constant 7 : index
    %c0_303 = arith.constant 0 : index
    %c0_304 = arith.constant 0 : index
    %499 = vector.load %arg9[%c7_302, %c0_303, %c0_304] : memref<9x48x48xbf16, #tpu.memory_space<vmem>>, vector<1x48x48xbf16>
    %500 = vector.shape_cast %499 : vector<1x48x48xbf16> to vector<48x48xbf16>
    %501 = vector.extract_strided_slice %464 {offsets = [0, 1792], sizes = [48, 256], strides = [1, 1]} : vector<48x2304xbf16> to vector<48x256xbf16>
    %cst_305 = arith.constant dense<0.000000e+00> : vector<48x256xf32>
    %502 = tpu.matmul %500, %501, %cst_305 {dimension_numbers = #tpu.dot_dimension_numbers<[1], [0], [0], [1], [0, 0, 1, 1], [], []>} : vector<48x48xbf16>, vector<48x256xbf16>, vector<48x256xf32> -> vector<48x256xf32>
    %503 = arith.addf %498, %502 : vector<48x256xf32>
    %c8_306 = arith.constant 8 : index
    %c0_307 = arith.constant 0 : index
    %c0_308 = arith.constant 0 : index
    %504 = vector.load %arg9[%c8_306, %c0_307, %c0_308] : memref<9x48x48xbf16, #tpu.memory_space<vmem>>, vector<1x48x48xbf16>
    %505 = vector.shape_cast %504 : vector<1x48x48xbf16> to vector<48x48xbf16>
    %506 = vector.extract_strided_slice %464 {offsets = [0, 2048], sizes = [48, 256], strides = [1, 1]} : vector<48x2304xbf16> to vector<48x256xbf16>
    %cst_309 = arith.constant dense<0.000000e+00> : vector<48x256xf32>
    %507 = tpu.matmul %505, %506, %cst_309 {dimension_numbers = #tpu.dot_dimension_numbers<[1], [0], [0], [1], [0, 0, 1, 1], [], []>} : vector<48x48xbf16>, vector<48x256xbf16>, vector<48x256xf32> -> vector<48x256xf32>
    %508 = arith.addf %503, %507 : vector<48x256xf32>
    %509 = vector.extract_strided_slice %463 {offsets = [48, 0], sizes = [48, 2304], strides = [1, 1]} : vector<96x2304xbf16> to vector<48x2304xbf16>
    %c0_310 = arith.constant 0 : index
    %c0_311 = arith.constant 0 : index
    %c0_312 = arith.constant 0 : index
    %510 = vector.load %arg9[%c0_310, %c0_311, %c0_312] : memref<9x48x48xbf16, #tpu.memory_space<vmem>>, vector<1x48x48xbf16>
    %511 = vector.shape_cast %510 : vector<1x48x48xbf16> to vector<48x48xbf16>
    %512 = vector.extract_strided_slice %509 {offsets = [0, 0], sizes = [48, 256], strides = [1, 1]} : vector<48x2304xbf16> to vector<48x256xbf16>
    %cst_313 = arith.constant dense<0.000000e+00> : vector<48x256xf32>
    %513 = tpu.matmul %511, %512, %cst_313 {dimension_numbers = #tpu.dot_dimension_numbers<[1], [0], [0], [1], [0, 0, 1, 1], [], []>} : vector<48x48xbf16>, vector<48x256xbf16>, vector<48x256xf32> -> vector<48x256xf32>
    %c1_314 = arith.constant 1 : index
    %c0_315 = arith.constant 0 : index
    %c0_316 = arith.constant 0 : index
    %514 = vector.load %arg9[%c1_314, %c0_315, %c0_316] : memref<9x48x48xbf16, #tpu.memory_space<vmem>>, vector<1x48x48xbf16>
    %515 = vector.shape_cast %514 : vector<1x48x48xbf16> to vector<48x48xbf16>
    %516 = vector.extract_strided_slice %509 {offsets = [0, 256], sizes = [48, 256], strides = [1, 1]} : vector<48x2304xbf16> to vector<48x256xbf16>
    %cst_317 = arith.constant dense<0.000000e+00> : vector<48x256xf32>
    %517 = tpu.matmul %515, %516, %cst_317 {dimension_numbers = #tpu.dot_dimension_numbers<[1], [0], [0], [1], [0, 0, 1, 1], [], []>} : vector<48x48xbf16>, vector<48x256xbf16>, vector<48x256xf32> -> vector<48x256xf32>
    %518 = arith.addf %513, %517 : vector<48x256xf32>
    %c2_318 = arith.constant 2 : index
    %c0_319 = arith.constant 0 : index
    %c0_320 = arith.constant 0 : index
    %519 = vector.load %arg9[%c2_318, %c0_319, %c0_320] : memref<9x48x48xbf16, #tpu.memory_space<vmem>>, vector<1x48x48xbf16>
    %520 = vector.shape_cast %519 : vector<1x48x48xbf16> to vector<48x48xbf16>
    %521 = vector.extract_strided_slice %509 {offsets = [0, 512], sizes = [48, 256], strides = [1, 1]} : vector<48x2304xbf16> to vector<48x256xbf16>
    %cst_321 = arith.constant dense<0.000000e+00> : vector<48x256xf32>
    %522 = tpu.matmul %520, %521, %cst_321 {dimension_numbers = #tpu.dot_dimension_numbers<[1], [0], [0], [1], [0, 0, 1, 1], [], []>} : vector<48x48xbf16>, vector<48x256xbf16>, vector<48x256xf32> -> vector<48x256xf32>
    %523 = arith.addf %518, %522 : vector<48x256xf32>
    %c3_322 = arith.constant 3 : index
    %c0_323 = arith.constant 0 : index
    %c0_324 = arith.constant 0 : index
    %524 = vector.load %arg9[%c3_322, %c0_323, %c0_324] : memref<9x48x48xbf16, #tpu.memory_space<vmem>>, vector<1x48x48xbf16>
    %525 = vector.shape_cast %524 : vector<1x48x48xbf16> to vector<48x48xbf16>
    %526 = vector.extract_strided_slice %509 {offsets = [0, 768], sizes = [48, 256], strides = [1, 1]} : vector<48x2304xbf16> to vector<48x256xbf16>
    %cst_325 = arith.constant dense<0.000000e+00> : vector<48x256xf32>
    %527 = tpu.matmul %525, %526, %cst_325 {dimension_numbers = #tpu.dot_dimension_numbers<[1], [0], [0], [1], [0, 0, 1, 1], [], []>} : vector<48x48xbf16>, vector<48x256xbf16>, vector<48x256xf32> -> vector<48x256xf32>
    %528 = arith.addf %523, %527 : vector<48x256xf32>
    %c4_326 = arith.constant 4 : index
    %c0_327 = arith.constant 0 : index
    %c0_328 = arith.constant 0 : index
    %529 = vector.load %arg9[%c4_326, %c0_327, %c0_328] : memref<9x48x48xbf16, #tpu.memory_space<vmem>>, vector<1x48x48xbf16>
    %530 = vector.shape_cast %529 : vector<1x48x48xbf16> to vector<48x48xbf16>
    %531 = vector.extract_strided_slice %509 {offsets = [0, 1024], sizes = [48, 256], strides = [1, 1]} : vector<48x2304xbf16> to vector<48x256xbf16>
    %cst_329 = arith.constant dense<0.000000e+00> : vector<48x256xf32>
    %532 = tpu.matmul %530, %531, %cst_329 {dimension_numbers = #tpu.dot_dimension_numbers<[1], [0], [0], [1], [0, 0, 1, 1], [], []>} : vector<48x48xbf16>, vector<48x256xbf16>, vector<48x256xf32> -> vector<48x256xf32>
    %533 = arith.addf %528, %532 : vector<48x256xf32>
    %c5_330 = arith.constant 5 : index
    %c0_331 = arith.constant 0 : index
    %c0_332 = arith.constant 0 : index
    %534 = vector.load %arg9[%c5_330, %c0_331, %c0_332] : memref<9x48x48xbf16, #tpu.memory_space<vmem>>, vector<1x48x48xbf16>
    %535 = vector.shape_cast %534 : vector<1x48x48xbf16> to vector<48x48xbf16>
    %536 = vector.extract_strided_slice %509 {offsets = [0, 1280], sizes = [48, 256], strides = [1, 1]} : vector<48x2304xbf16> to vector<48x256xbf16>
    %cst_333 = arith.constant dense<0.000000e+00> : vector<48x256xf32>
    %537 = tpu.matmul %535, %536, %cst_333 {dimension_numbers = #tpu.dot_dimension_numbers<[1], [0], [0], [1], [0, 0, 1, 1], [], []>} : vector<48x48xbf16>, vector<48x256xbf16>, vector<48x256xf32> -> vector<48x256xf32>
    %538 = arith.addf %533, %537 : vector<48x256xf32>
    %c6_334 = arith.constant 6 : index
    %c0_335 = arith.constant 0 : index
    %c0_336 = arith.constant 0 : index
    %539 = vector.load %arg9[%c6_334, %c0_335, %c0_336] : memref<9x48x48xbf16, #tpu.memory_space<vmem>>, vector<1x48x48xbf16>
    %540 = vector.shape_cast %539 : vector<1x48x48xbf16> to vector<48x48xbf16>
    %541 = vector.extract_strided_slice %509 {offsets = [0, 1536], sizes = [48, 256], strides = [1, 1]} : vector<48x2304xbf16> to vector<48x256xbf16>
    %cst_337 = arith.constant dense<0.000000e+00> : vector<48x256xf32>
    %542 = tpu.matmul %540, %541, %cst_337 {dimension_numbers = #tpu.dot_dimension_numbers<[1], [0], [0], [1], [0, 0, 1, 1], [], []>} : vector<48x48xbf16>, vector<48x256xbf16>, vector<48x256xf32> -> vector<48x256xf32>
    %543 = arith.addf %538, %542 : vector<48x256xf32>
    %c7_338 = arith.constant 7 : index
    %c0_339 = arith.constant 0 : index
    %c0_340 = arith.constant 0 : index
    %544 = vector.load %arg9[%c7_338, %c0_339, %c0_340] : memref<9x48x48xbf16, #tpu.memory_space<vmem>>, vector<1x48x48xbf16>
    %545 = vector.shape_cast %544 : vector<1x48x48xbf16> to vector<48x48xbf16>
    %546 = vector.extract_strided_slice %509 {offsets = [0, 1792], sizes = [48, 256], strides = [1, 1]} : vector<48x2304xbf16> to vector<48x256xbf16>
    %cst_341 = arith.constant dense<0.000000e+00> : vector<48x256xf32>
    %547 = tpu.matmul %545, %546, %cst_341 {dimension_numbers = #tpu.dot_dimension_numbers<[1], [0], [0], [1], [0, 0, 1, 1], [], []>} : vector<48x48xbf16>, vector<48x256xbf16>, vector<48x256xf32> -> vector<48x256xf32>
    %548 = arith.addf %543, %547 : vector<48x256xf32>
    %c8_342 = arith.constant 8 : index
    %c0_343 = arith.constant 0 : index
    %c0_344 = arith.constant 0 : index
    %549 = vector.load %arg9[%c8_342, %c0_343, %c0_344] : memref<9x48x48xbf16, #tpu.memory_space<vmem>>, vector<1x48x48xbf16>
    %550 = vector.shape_cast %549 : vector<1x48x48xbf16> to vector<48x48xbf16>
    %551 = vector.extract_strided_slice %509 {offsets = [0, 2048], sizes = [48, 256], strides = [1, 1]} : vector<48x2304xbf16> to vector<48x256xbf16>
    %cst_345 = arith.constant dense<0.000000e+00> : vector<48x256xf32>
    %552 = tpu.matmul %550, %551, %cst_345 {dimension_numbers = #tpu.dot_dimension_numbers<[1], [0], [0], [1], [0, 0, 1, 1], [], []>} : vector<48x48xbf16>, vector<48x256xbf16>, vector<48x256xf32> -> vector<48x256xf32>
    %553 = arith.addf %548, %552 : vector<48x256xf32>
    %554 = tpu.concatenate %508, %553 in 0 : vector<48x256xf32>, vector<48x256xf32> -> vector<96x256xf32>
    %c3_346 = arith.constant 3 : index
    %c0_347 = arith.constant 0 : index
    %c0_348 = arith.constant 0 : index
    %555 = vector.load %arg10[%c3_346, %c0_347, %c0_348] : memref<4x96x1xf32, #tpu.memory_space<vmem>>, vector<1x96x1xf32>
    %556 = vector.shape_cast %555 : vector<1x96x1xf32> to vector<96x1xf32>
    %557 = vector.broadcast %556 : vector<96x1xf32> to vector<96x256xf32>
    %558 = arith.mulf %554, %557 : vector<96x256xf32>
    %c3_349 = arith.constant 3 : index
    %c0_350 = arith.constant 0 : index
    %c0_351 = arith.constant 0 : index
    %559 = vector.load %arg11[%c3_349, %c0_350, %c0_351] : memref<4x96x1xf32, #tpu.memory_space<vmem>>, vector<1x96x1xf32>
    %560 = vector.shape_cast %559 : vector<1x96x1xf32> to vector<96x1xf32>
    %561 = vector.broadcast %560 : vector<96x1xf32> to vector<96x256xf32>
    %562 = arith.addf %558, %561 : vector<96x256xf32>
    %cst_352 = arith.constant 0.000000e+00 : f32
    %563 = vector.broadcast %cst_352 : f32 to vector<96x256xf32>
    %564 = arith.maximumf %562, %563 : vector<96x256xf32>
    %c0_353 = arith.constant 0 : index
    %c0_354 = arith.constant 0 : index
    %565 = vector.load %arg24[%c0_353, %c0_354] : memref<96x256xf32, #tpu.memory_space<vmem>>, vector<96x256xf32>
    tpu.vector_store %arg24[%c0_353, %c0_354], %564 {strides = array<i32>} : memref<96x256xf32, #tpu.memory_space<vmem>>, vector<96x256xf32>,
    return
  }
  func.func @transform_0(%arg0: i32) -> (i32, i32) {
    %c0_i32 = arith.constant 0 : i32
    %c0_i32_0 = arith.constant 0 : i32
    return %arg0, %c0_i32 : i32, i32
  }
  func.func @transform_1(%arg0: i32) -> (i32, i32) {
    %c0_i32 = arith.constant 0 : i32
    %c0_i32_0 = arith.constant 0 : i32
    %c0_i32_1 = arith.constant 0 : i32
    return %c0_i32, %c0_i32_0 : i32, i32
  }
  func.func @transform_2(%arg0: i32) -> (i32, i32) {
    %c0_i32 = arith.constant 0 : i32
    %c0_i32_0 = arith.constant 0 : i32
    %c0_i32_1 = arith.constant 0 : i32
    return %c0_i32, %c0_i32_0 : i32, i32
  }
  func.func @transform_3(%arg0: i32) -> (i32, i32) {
    %c0_i32 = arith.constant 0 : i32
    %c0_i32_0 = arith.constant 0 : i32
    %c0_i32_1 = arith.constant 0 : i32
    return %c0_i32, %c0_i32_0 : i32, i32
  }
  func.func @transform_4(%arg0: i32) -> (i32, i32) {
    %c0_i32 = arith.constant 0 : i32
    %c0_i32_0 = arith.constant 0 : i32
    %c0_i32_1 = arith.constant 0 : i32
    return %c0_i32, %c0_i32_0 : i32, i32
  }
  func.func @transform_5(%arg0: i32) -> (i32, i32, i32) {
    %c0_i32 = arith.constant 0 : i32
    %c0_i32_0 = arith.constant 0 : i32
    %c0_i32_1 = arith.constant 0 : i32
    %c0_i32_2 = arith.constant 0 : i32
    return %c0_i32, %c0_i32_0, %c0_i32_1 : i32, i32, i32
  }
  func.func @transform_6(%arg0: i32) -> (i32, i32, i32) {
    %c0_i32 = arith.constant 0 : i32
    %c0_i32_0 = arith.constant 0 : i32
    %c0_i32_1 = arith.constant 0 : i32
    %c0_i32_2 = arith.constant 0 : i32
    return %c0_i32, %c0_i32_0, %c0_i32_1 : i32, i32, i32
  }
  func.func @transform_7(%arg0: i32) -> (i32, i32, i32) {
    %c0_i32 = arith.constant 0 : i32
    %c0_i32_0 = arith.constant 0 : i32
    %c0_i32_1 = arith.constant 0 : i32
    %c0_i32_2 = arith.constant 0 : i32
    return %c0_i32, %c0_i32_0, %c0_i32_1 : i32, i32, i32
  }
  func.func @transform_8(%arg0: i32) -> (i32, i32, i32) {
    %c0_i32 = arith.constant 0 : i32
    %c0_i32_0 = arith.constant 0 : i32
    %c0_i32_1 = arith.constant 0 : i32
    %c0_i32_2 = arith.constant 0 : i32
    return %c0_i32, %c0_i32_0, %c0_i32_1 : i32, i32, i32
  }
  func.func @transform_9(%arg0: i32) -> (i32, i32, i32) {
    %c0_i32 = arith.constant 0 : i32
    %c0_i32_0 = arith.constant 0 : i32
    %c0_i32_1 = arith.constant 0 : i32
    %c0_i32_2 = arith.constant 0 : i32
    return %c0_i32, %c0_i32_0, %c0_i32_1 : i32, i32, i32
  }
  func.func @transform_10(%arg0: i32) -> (i32, i32, i32) {
    %c0_i32 = arith.constant 0 : i32
    %c0_i32_0 = arith.constant 0 : i32
    %c0_i32_1 = arith.constant 0 : i32
    %c0_i32_2 = arith.constant 0 : i32
    return %c0_i32, %c0_i32_0, %c0_i32_1 : i32, i32, i32
  }
  func.func @transform_11(%arg0: i32) -> (i32, i32) {
    %c0_i32 = arith.constant 0 : i32
    %c0_i32_0 = arith.constant 0 : i32
    %c0_i32_1 = arith.constant 0 : i32
    return %c0_i32, %c0_i32_0 : i32, i32
  }
  func.func @transform_12(%arg0: i32) -> (i32, i32) {
    %c0_i32 = arith.constant 0 : i32
    %c0_i32_0 = arith.constant 0 : i32
    %c0_i32_1 = arith.constant 0 : i32
    return %c0_i32, %c0_i32_0 : i32, i32
  }
  func.func @transform_13(%arg0: i32) -> (i32, i32) {
    %c0_i32 = arith.constant 0 : i32
    %c0_i32_0 = arith.constant 0 : i32
    %c0_i32_1 = arith.constant 0 : i32
    return %c0_i32, %c0_i32_0 : i32, i32
  }
  func.func @transform_14(%arg0: i32) -> (i32, i32) {
    %c0_i32 = arith.constant 0 : i32
    %c0_i32_0 = arith.constant 0 : i32
    %c0_i32_1 = arith.constant 0 : i32
    return %c0_i32, %c0_i32_0 : i32, i32
  }
  func.func @transform_15(%arg0: i32) -> (i32, i32) {
    %c0_i32 = arith.constant 0 : i32
    %c0_i32_0 = arith.constant 0 : i32
    %c0_i32_1 = arith.constant 0 : i32
    return %c0_i32, %c0_i32_0 : i32, i32
  }
  func.func @transform_16(%arg0: i32) -> (i32, i32) {
    %c0_i32 = arith.constant 0 : i32
    %c0_i32_0 = arith.constant 0 : i32
    %c0_i32_1 = arith.constant 0 : i32
    return %c0_i32, %c0_i32_0 : i32, i32
  }
  func.func @transform_17(%arg0: i32) -> (i32, i32) {
    %c0_i32 = arith.constant 0 : i32
    %c0_i32_0 = arith.constant 0 : i32
    %c0_i32_1 = arith.constant 0 : i32
    return %c0_i32, %c0_i32_0 : i32, i32
  }
  func.func @transform_18(%arg0: i32) -> (i32, i32) {
    %c0_i32 = arith.constant 0 : i32
    %c0_i32_0 = arith.constant 0 : i32
    %c0_i32_1 = arith.constant 0 : i32
    return %c0_i32, %c0_i32_0 : i32, i32
  }
  func.func @transform_19(%arg0: i32) -> (i32, i32) {
    %c0_i32 = arith.constant 0 : i32
    %c0_i32_0 = arith.constant 0 : i32
    %c0_i32_1 = arith.constant 0 : i32
    return %c0_i32, %c0_i32_0 : i32, i32
  }
  func.func @transform_20(%arg0: i32) -> (i32, i32) {
    %c0_i32 = arith.constant 0 : i32
    %c0_i32_0 = arith.constant 0 : i32
    %c0_i32_1 = arith.constant 0 : i32
    return %c0_i32, %c0_i32_0 : i32, i32
  }
  func.func @transform_21(%arg0: i32) -> (i32, i32) {
    %c0_i32 = arith.constant 0 : i32
    %c0_i32_0 = arith.constant 0 : i32
    %c0_i32_1 = arith.constant 0 : i32
    return %c0_i32, %c0_i32_0 : i32, i32
  }
  func.func @transform_22(%arg0: i32) -> (i32, i32) {
    %c0_i32 = arith.constant 0 : i32
    %c0_i32_0 = arith.constant 0 : i32
    %c0_i32_1 = arith.constant 0 : i32
    return %c0_i32, %c0_i32_0 : i32, i32
  }
  func.func @transform_23(%arg0: i32) -> (i32, i32) {
    %c0_i32 = arith.constant 0 : i32
    %c0_i32_0 = arith.constant 0 : i32
    return %arg0, %c0_i32 : i32, i32
  }
}

</mosaic_0001>

<bundles_post_ra>
// kernel: tile.43
= control target key start
LH: loop header
LB: loop body
LE: loop exit
PB: predicated region body
PF: predicated region fallthrough
CT: control target
= control target key end

     0   :  { %s22_s0 = inlined_call_operand.vmem [shape: f32[16], index: 0, kind: input, shape index: {}]   ;;  %s23_s1 = inlined_call_operand.vmem [shape: f32[6,16], index: 1, kind: output, shape index: {}]  }
   0x1   :  { %v4_v0 = vld [vmem:[%s22_s0] ss:$0 sm:$0xff] }
   0x2   :  { %5 = vst [vmem:[%s23_s1] sm:$0xff] %v4_v0 }

// kernel: tile.0
= control target key start
LH: loop header
LB: loop body
LE: loop exit
PB: predicated region body
PF: predicated region fallthrough
CT: control target
= control target key end

     0   :  { %s217_s10 = smov 127   ;;  %s218_s11 = smov 125   ;;  %vm3_vm0 = vcmask 7168   ;;  %s482_s0 = inlined_call_operand.vmem [shape: f32[6,16], index: 0, kind: input, shape index: {}]   ;;  %s483_s1 = inlined_call_operand.vmem [shape: f32[1,96,1], index: 1, kind: output, shape index: {}]  }
   0x1   :  { %v7_v0 = vld [vmem:[%s482_s0] sm:$0x3f]   ;;  %s219_s16 = smov 126   ;;  %s220_s17 = smov 124  }
   0x2   :  { %v27_v1 = vld [vmem:[%s482_s0] sm:$0x3f]   ;;  %8 = vrot.lane.b32.xlu0 %v7_v0, %s217_s10  ;;  %s221_s22 = smov 123   ;;  %s222_s23 = smov 122  }
   0x3   :  { %28 = vrot.lane.b32.xlu1 %v27_v1, %s218_s11  ;;  %v17_v2 = vld [vmem:[%s482_s0] sm:$0x3f]   ;;  %s223_s28 = smov 121   ;;  %s224_s29 = smov 120  }
   0x4   :  { %v37_v3 = vld [vmem:[%s482_s0] sm:$0x3f]   ;;  %s225_s13 = smov 119   ;;  %s226_s14 = smov 118  }
   0x5   :  { %v47_v4 = vld [vmem:[%s482_s0] sm:$0x3f]   ;;  %s227_s19 = smov 117   ;;  %s228_s20 = smov 116  }
   0x6   :  { %18 = vrot.lane.b32.xlu0 %v17_v2, %s219_s16  ;;  %v57_v5 = vld [vmem:[%s482_s0] sm:$0x3f]   ;;  %s229_s25 = smov 115   ;;  %s230_s26 = smov 114  }
   0x7   :  { %38 = vrot.lane.b32.xlu1 %v37_v3, %s220_s17  ;;  %v67_v6 = vld [vmem:[%s482_s0] sm:$0x3f]  }
   0x8   :  { %v77_v7 = vld [vmem:[%s482_s0] sm:$0x3f]  }
   0x9   :  { %v87_v8 = vld [vmem:[%s482_s0] sm:$0x3f]  }
   0xa   :  { %48 = vrot.lane.b32.xlu0 %v47_v4, %s221_s22  ;;  %v97_v9 = vld [vmem:[%s482_s0] sm:$0x3f]  }
   0xb   :  { %58 = vrot.lane.b32.xlu1 %v57_v5, %s222_s23  ;;  %v2_v10 = vld [vmem:[%s482_s0] sm:$0x3f]  }
   0xc   :  { %4 = vst.msk [vmem:[%s483_s1] ss:$16 sm:$0x3] %vm3_vm0, %v2_v10   ;;  %5 = vst.msk [vmem:[%s483_s1] ss:$16 sm:$0xc] %vm3_vm0, %v2_v10  }
   0xd   :  { %6 = vst.msk [vmem:[%s483_s1] ss:$16 sm:$0x30] %vm3_vm0, %v2_v10   ;;  %v107_v11 = vld [vmem:[%s482_s0] sm:$0x3f]  }
   0xe   :  { %68 = vrot.lane.b32.xlu0 %v67_v6, %s223_s28  ;;  %v117_v12 = vld [vmem:[%s482_s0] sm:$0x3f]  }
   0xf   :  { %78 = vrot.lane.b32.xlu1 %v77_v7, %s224_s29  ;;  %v127_v13 = vld [vmem:[%s482_s0] sm:$0x3f]  }
  0x10   :  { %v137_v14 = vld [vmem:[%s482_s0] sm:$0x3f]  }
  0x11   :  { %v147_v15 = vld [vmem:[%s482_s0] sm:$0x3f]   ;;  %s231_s0 = smov 113  }
  0x12   :  { %88 = vrot.lane.b32.xlu0 %v87_v8, %s225_s13 }
  0x13   :  { %98 = vrot.lane.b32.xlu1 %v97_v9, %s226_s14 }
  0x16   :  { %108 = vrot.lane.b32.xlu0 %v107_v11, %s227_s19 }
  0x17   :  { %118 = vrot.lane.b32.xlu1 %v117_v12, %s228_s20 }
  0x1a   :  { %128 = vrot.lane.b32.xlu0 %v127_v13, %s229_s25 }
  0x1b   :  { %138 = vrot.lane.b32.xlu1 %v137_v14, %s230_s26 }
  0x1e   :  { %148 = vrot.lane.b32.xlu0 %v147_v15, %s231_s0 }
  0x74   :  { %v9_v16 = vpop.permute.xlu0 %8  }
  0x75   :  { %v29_v17 = vpop.permute.xlu1 %28   ;;  %157 = vst.msk [vmem:[%s483_s1 + $0x1] ss:$16 sm:$0x3] %vm3_vm0, %v9_v16   ;;  %158 = vst.msk [vmem:[%s483_s1 + $0x1] ss:$16 sm:$0xc] %vm3_vm0, %v9_v16  }
  0x76   :  { %159 = vst.msk [vmem:[%s483_s1 + $0x1] ss:$16 sm:$0x30] %vm3_vm0, %v9_v16   ;;  %163 = vst.msk [vmem:[%s483_s1 + $0x3] ss:$16 sm:$0x3] %vm3_vm0, %v29_v17  }
  0x77   :  { %164 = vst.msk [vmem:[%s483_s1 + $0x3] ss:$16 sm:$0xc] %vm3_vm0, %v29_v17   ;;  %165 = vst.msk [vmem:[%s483_s1 + $0x3] ss:$16 sm:$0x30] %vm3_vm0, %v29_v17  }
  0x78   :  { %v19_v18 = vpop.permute.xlu0 %18  }
  0x79   :  { %v39_v19 = vpop.permute.xlu1 %38   ;;  %160 = vst.msk [vmem:[%s483_s1 + $0x2] ss:$16 sm:$0x3] %vm3_vm0, %v19_v18   ;;  %161 = vst.msk [vmem:[%s483_s1 + $0x2] ss:$16 sm:$0xc] %vm3_vm0, %v19_v18  }
  0x7a   :  { %162 = vst.msk [vmem:[%s483_s1 + $0x2] ss:$16 sm:$0x30] %vm3_vm0, %v19_v18   ;;  %166 = vst.msk [vmem:[%s483_s1 + $0x4] ss:$16 sm:$0x3] %vm3_vm0, %v39_v19  }
  0x7b   :  { %167 = vst.msk [vmem:[%s483_s1 + $0x4] ss:$16 sm:$0xc] %vm3_vm0, %v39_v19   ;;  %168 = vst.msk [vmem:[%s483_s1 + $0x4] ss:$16 sm:$0x30] %vm3_vm0, %v39_v19  }
  0x7c   :  { %v49_v20 = vpop.permute.xlu0 %48  }
  0x7d   :  { %v59_v21 = vpop.permute.xlu1 %58   ;;  %169 = vst.msk [vmem:[%s483_s1 + $0x5] ss:$16 sm:$0x3] %vm3_vm0, %v49_v20   ;;  %170 = vst.msk [vmem:[%s483_s1 + $0x5] ss:$16 sm:$0xc] %vm3_vm0, %v49_v20  }
  0x7e   :  { %171 = vst.msk [vmem:[%s483_s1 + $0x5] ss:$16 sm:$0x30] %vm3_vm0, %v49_v20   ;;  %172 = vst.msk [vmem:[%s483_s1 + $0x6] ss:$16 sm:$0x3] %vm3_vm0, %v59_v21  }
  0x7f   :  { %173 = vst.msk [vmem:[%s483_s1 + $0x6] ss:$16 sm:$0xc] %vm3_vm0, %v59_v21   ;;  %174 = vst.msk [vmem:[%s483_s1 + $0x6] ss:$16 sm:$0x30] %vm3_vm0, %v59_v21  }
  0x80   :  { %v69_v22 = vpop.permute.xlu0 %68  }
  0x81   :  { %v79_v23 = vpop.permute.xlu1 %78   ;;  %175 = vst.msk [vmem:[%s483_s1 + $0x7] ss:$16 sm:$0x3] %vm3_vm0, %v69_v22   ;;  %176 = vst.msk [vmem:[%s483_s1 + $0x7] ss:$16 sm:$0xc] %vm3_vm0, %v69_v22  }
  0x82   :  { %177 = vst.msk [vmem:[%s483_s1 + $0x7] ss:$16 sm:$0x30] %vm3_vm0, %v69_v22   ;;  %178 = vst.msk [vmem:[%s483_s1 + $0x8] ss:$16 sm:$0x3] %vm3_vm0, %v79_v23  }
  0x83   :  { %179 = vst.msk [vmem:[%s483_s1 + $0x8] ss:$16 sm:$0xc] %vm3_vm0, %v79_v23   ;;  %180 = vst.msk [vmem:[%s483_s1 + $0x8] ss:$16 sm:$0x30] %vm3_vm0, %v79_v23  }
  0x84   :  { %v89_v24 = vpop.permute.xlu0 %88  }
  0x85   :  { %v99_v25 = vpop.permute.xlu1 %98   ;;  %181 = vst.msk [vmem:[%s483_s1 + $0x9] ss:$16 sm:$0x3] %vm3_vm0, %v89_v24   ;;  %182 = vst.msk [vmem:[%s483_s1 + $0x9] ss:$16 sm:$0xc] %vm3_vm0, %v89_v24  }
  0x86   :  { %183 = vst.msk [vmem:[%s483_s1 + $0x9] ss:$16 sm:$0x30] %vm3_vm0, %v89_v24   ;;  %184 = vst.msk [vmem:[%s483_s1 + $0xa] ss:$16 sm:$0x3] %vm3_vm0, %v99_v25  }
  0x87   :  { %185 = vst.msk [vmem:[%s483_s1 + $0xa] ss:$16 sm:$0xc] %vm3_vm0, %v99_v25   ;;  %186 = vst.msk [vmem:[%s483_s1 + $0xa] ss:$16 sm:$0x30] %vm3_vm0, %v99_v25  }
  0x88   :  { %v109_v26 = vpop.permute.xlu0 %108  }
  0x89   :  { %v119_v27 = vpop.permute.xlu1 %118   ;;  %187 = vst.msk [vmem:[%s483_s1 + $0xb] ss:$16 sm:$0x3] %vm3_vm0, %v109_v26   ;;  %188 = vst.msk [vmem:[%s483_s1 + $0xb] ss:$16 sm:$0xc] %vm3_vm0, %v109_v26  }
  0x8a   :  { %189 = vst.msk [vmem:[%s483_s1 + $0xb] ss:$16 sm:$0x30] %vm3_vm0, %v109_v26   ;;  %190 = vst.msk [vmem:[%s483_s1 + $0xc] ss:$16 sm:$0x3] %vm3_vm0, %v119_v27  }
  0x8b   :  { %191 = vst.msk [vmem:[%s483_s1 + $0xc] ss:$16 sm:$0xc] %vm3_vm0, %v119_v27   ;;  %192 = vst.msk [vmem:[%s483_s1 + $0xc] ss:$16 sm:$0x30] %vm3_vm0, %v119_v27  }
  0x8c   :  { %v129_v28 = vpop.permute.xlu0 %128  }
  0x8d   :  { %v139_v29 = vpop.permute.xlu1 %138   ;;  %193 = vst.msk [vmem:[%s483_s1 + $0xd] ss:$16 sm:$0x3] %vm3_vm0, %v129_v28   ;;  %194 = vst.msk [vmem:[%s483_s1 + $0xd] ss:$16 sm:$0xc] %vm3_vm0, %v129_v28  }
  0x8e   :  { %195 = vst.msk [vmem:[%s483_s1 + $0xd] ss:$16 sm:$0x30] %vm3_vm0, %v129_v28   ;;  %196 = vst.msk [vmem:[%s483_s1 + $0xe] ss:$16 sm:$0x3] %vm3_vm0, %v139_v29  }
  0x8f   :  { %197 = vst.msk [vmem:[%s483_s1 + $0xe] ss:$16 sm:$0xc] %vm3_vm0, %v139_v29   ;;  %198 = vst.msk [vmem:[%s483_s1 + $0xe] ss:$16 sm:$0x30] %vm3_vm0, %v139_v29  }
  0x90   :  { %v149_v30 = vpop.permute.xlu0 %148  }
  0x91   :  { %199 = vst.msk [vmem:[%s483_s1 + $0xf] ss:$16 sm:$0x3] %vm3_vm0, %v149_v30   ;;  %200 = vst.msk [vmem:[%s483_s1 + $0xf] ss:$16 sm:$0xc] %vm3_vm0, %v149_v30  }
  0x92   :  { %201 = vst.msk [vmem:[%s483_s1 + $0xf] ss:$16 sm:$0x30] %vm3_vm0, %v149_v30  }

// kernel: disconet_forward.1
= control target key start
LH: loop header
LB: loop body
LE: loop exit
PB: predicated region body
PF: predicated region fallthrough
CT: control target
= control target key end

     0   :  { %s16131_s24 = smov 0   ;;  %s19735_s0 = inlined_call_operand.vmem [shape: bf16[192,256], index: 0, kind: input, shape index: {}]   ;;  %s19736_s1 = inlined_call_operand.vmem [shape: bf16[256,576], index: 1, kind: input, shape index: {}]   ;;  %s19737_s2 = inlined_call_operand.vmem [shape: bf16[64,144], index: 2, kind: input, shape index: {}]   ;;  %s19738_s3 = inlined_call_operand.vmem [shape: bf16[16,576], index: 3, kind: input, shape index: {}]   ;;  %s19739_s4 = inlined_call_operand.vmem [shape: bf16[64,2304], index: 4, kind: input, shape index: {}]   ;;  %s19740_s5 = inlined_call_operand.vmem [shape: bf16[9,48,48], index: 5, kind: input, shape index: {}]   ;;  %s19741_s6 = inlined_call_operand.vmem [shape: bf16[9,48,48], index: 6, kind: input, shape index: {}]   ;;  %s19742_s7 = inlined_call_operand.vmem [shape: bf16[9,48,48], index: 7, kind: input, shape index: {}]   ;;  %s19743_s8 = inlined_call_operand.vmem [shape: bf16[9,48,48], index: 8, kind: input, shape index: {}]   ;;  %s19744_s9 = inlined_call_operand.vmem [shape: f32[4,96,1], index: 9, kind: input, shape index: {}]   ;;  %s19745_s10 = inlined_call_operand.vmem [shape: f32[4,96,1], index: 10, kind: input, shape index: {}]   ;;  %s19746_s11 = inlined_call_operand.vmem [shape: bf16[128,16], index: 11, kind: input, shape index: {}]   ;;  %s19747_s12 = inlined_call_operand.vmem [shape: bf16[128,16], index: 12, kind: input, shape index: {}]   ;;  %s19748_s13 = inlined_call_operand.vmem [shape: f32[128,1], index: 13, kind: input, shape index: {}]   ;;  %s19749_s14 = inlined_call_operand.vmem [shape: f32[128,1], index: 14, kind: input, shape index: {}]   ;;  %s19750_s15 = inlined_call_operand.vmem [shape: bf16[32,128], index: 15, kind: input, shape index: {}]   ;;  %s19751_s16 = inlined_call_operand.vmem [shape: f32[32,1], index: 16, kind: input, shape index: {}]   ;;  %s19752_s17 = inlined_call_operand.vmem [shape: f32[32,1], index: 17, kind: input, shape index: {}]   ;;  %s19753_s18 = inlined_call_operand.vmem [shape: bf16[8,32], index: 18, kind: input, shape index: {}]   ;;  %s19754_s19 = inlined_call_operand.vmem [shape: f32[8,1], index: 19, kind: input, shape index: {}]   ;;  %s19755_s20 = inlined_call_operand.vmem [shape: f32[8,1], index: 20, kind: input, shape index: {}]   ;;  %s19756_s21 = inlined_call_operand.vmem [shape: bf16[1,8], index: 21, kind: input, shape index: {}]   ;;  %s19757_s22 = inlined_call_operand.<no memory space> [shape: f32[1,1], index: 22, kind: input, shape index: {}]   ;;  %s19758_s23 = inlined_call_operand.vmem [shape: f32[192,256], index: 23, kind: output, shape index: {}]  }
   0x1   :  { %19789 = sst [smem:[#allocation4_spill]] %s19735_s0  ;;  %v28_v0 = vstv %s19757_s22 }
   0x2   :  { %19790 = sst [smem:[#allocation5_spill]] %s19736_s1  ;;  %29 = vst [vmem:[#allocation2] sm:$0x1] %v28_v0 }
   0x3   :  { %19791 = sst [smem:[#allocation6_spill]] %s19737_s2 }
   0x4   :  { %19792 = sst [smem:[#allocation7_spill]] %s19738_s3 }
   0x5   :  { %19793 = sst [smem:[#allocation8_spill]] %s19739_s4 }
   0x6   :  { %19794 = sst [smem:[#allocation9_spill]] %s19740_s5 }
   0x7   :  { %19795 = sst [smem:[#allocation10_spill]] %s19741_s6 }
   0x8   :  { %19796 = sst [smem:[#allocation11_spill]] %s19742_s7 }
   0x9 LB: > { %19797 = sst [smem:[#allocation3_spill]] %s15996_s24  ;;  %s12335_s25 = sadd.s32 4294967295, %s15996_s24   ;;  %s15996_s24 = sphi %s16131_s24, %s35_s24  }
   0xa   : > { %p12339_p0 = scmp.ge.s32.totalorder %s15996_s24, 1  ;;  %p641_p1 = scmp.lt.s32.totalorder %s15996_s24, 3 }
   0xc   : > { %p642_p2 = pnand %p12339_p0, %p641_p1 }
   0xd   : > { %s19798_s26 = sld [smem:[#allocation5_spill]] (!%p642_p2)  ;;  %s707_s0 = smul.u32 (!%p642_p2), 12, %s12335_s25  ;;  %vm16000_vm0 = vmmov (!%p642_p2), 0   ;;  %vm1643_vm1 = vcmask (!%p642_p2), 392192   ;;  %vm3322_vm2 = vcmask (!%p642_p2), 523264   ;;  %vm5188_vm3 = vcmask (!%p642_p2), 130048  }
   0xe   : > { %645 = sbr.rel (%p642_p2) target bundleno = 5013 (0x1395), region = 112  ;;  %s19799_s22 = sld [smem:[#allocation4_spill]] (!%p642_p2)  ;;  %vm5192_vm4 = vcmask (!%p642_p2), 261120   ;;  %vm5199_vm5 = vcmask (!%p642_p2), 654336   ;;  %vm5202_vm6 = vcmask (!%p642_p2), 785408   ;;  %vm5205_vm7 = vcmask (!%p642_p2), 916480  }
   0xf   : > { %p708_p3 = scmp.lt.s32.totalorder (!%p642_p2), %s707_s0, 23  ;;  %s19772_s27 = smov (!%p642_p2), 64   ;;  %vm6553_vm8 = vcmask (!%p642_p2), 1043456   ;;  %vm6549_vm9 = vcmask (!%p642_p2), 64512  }
  0x10   : > { %s19800_s28 = sld [smem:[#allocation9_spill]] (!%p642_p2)  ;;  %s19801_s1 = sld [smem:[#allocation6_spill]] (!%p642_p2) }
  0x11   : > { %s19766_s25 = smov (!%p642_p2), 112   ;;  %s19774_s7 = smov (!%p642_p2), 96  }
  0x12   : > { %s19768_s29 = smov (!%p642_p2), 80   ;;  %s19776_s4 = smov (!%p642_p2), 32  }
  0x13   : > { %v15595_v1 = vld [vmem:[%s19798_s26 + $0x4] ss:$20 sps:$4 sm:$0xff] (!%p642_p2)   ;;  %v15597_v2 = vld [vmem:[%s19798_s26] ss:$20 sps:$4 sm:$0xff] (!%p642_p2)   ;;  %v15600_v4 = vld [vmem:[%s19798_s26 + $0x28] ss:$20 sps:$4 sm:$0xff] (!%p642_p2)  }
  0x14   : > { %1306 = vmatprep.subr.bf16.mxu0 (!%p642_p2), %v15595_v1  ;;  %v15598_v3 = vld [vmem:[%s19798_s26 + $0x2c] ss:$20 sps:$4 sm:$0xff] (!%p642_p2)   ;;  %v15601_v5 = vld [vmem:[%s19798_s26 + $0x54] ss:$20 sps:$4 sm:$0xff] (!%p642_p2)   ;;  %v15603_v6 = vld [vmem:[%s19798_s26 + $0x50] ss:$20 sps:$4 sm:$0xff] (!%p642_p2)  }
  0x15   : > { %1307 = vmatpush1.bf16.msra.mxu0 %v15597_v2  ;;  %v15604_v7 = vld [vmem:[%s19798_s26 + $0x7c] ss:$20 sps:$4 sm:$0xff]   ;;  %v15606_v8 = vld [vmem:[%s19798_s26 + $0x78] ss:$20 sps:$4 sm:$0xff]   ;;  %s19817_s0 = smov (!%p708_p3, %s707_s0), 23  ;;  %s19802_s6 = sld [smem:[#allocation10_spill]] }
  0x16   : > { %1308 = vmatprep.subr.bf16.mxu0 %v15598_v3  ;;  %v15607_v9 = vld [vmem:[%s19798_s26 + $0xa4] ss:$20 sps:$4 sm:$0xff]   ;;  %v15609_v10 = vld [vmem:[%s19798_s26 + $0xa0] ss:$20 sps:$4 sm:$0xff]   ;;  %s13244_s3 = sshll.u32 %s19817_s0, 3  ;;  %s19807_s30 = smov 112  }
  0x17   : > { %v15610_v11 = vld [vmem:[%s19798_s26 + $0xcc] ss:$20 sps:$4 sm:$0xff]   ;;  %v15612_v12 = vld [vmem:[%s19798_s26 + $0xc8] ss:$20 sps:$4 sm:$0xff]   ;;  %s16181_s2 = scalar_lea.vmem %s19799_s22, %s13244_s3  ;;  %v15615_v15 = vld [vmem:[%s19798_s26 + $0xf0] ss:$20 sps:$4 sm:$0xff]  }
  0x18   : > { %v15613_v13 = vld [vmem:[%s19798_s26 + $0xf4] ss:$20 sps:$4 sm:$0xff]   ;;  %v16187_v14 = vld [vmem:[%s16181_s2 + $0x4] ss:$8 sps:$4 sm:$0xff]   ;;  %v15616_v16 = vld [vmem:[%s19798_s26 + $0x11c] ss:$20 sps:$4 sm:$0xff]  }
  0x19   : > { %1309 = vmatpush1.bf16.msra.mxu0 %v15600_v4  ;;  %1338 = vmatprep.mubr.bf16.mxu0 %v16187_v14  ;;  %v15618_v17 = vld [vmem:[%s19798_s26 + $0x118] ss:$20 sps:$4 sm:$0xff]   ;;  %v15654_v19 = vld [vmem:[%s19798_s26 + $0x8] ss:$20 sps:$4 sm:$0xff]   ;;  %v15659_v22 = vld [vmem:[%s19798_s26 + $0x30] ss:$20 sps:$4 sm:$0xff]  }
  0x1a   : > { %1310 = vmatprep.subr.bf16.mxu0 %v15601_v5  ;;  %1431 = vmatprep.mubr.bf16.mxu1 %v16187_v14  ;;  %v15652_v18 = vld [vmem:[%s19798_s26 + $0xc] ss:$20 sps:$4 sm:$0xff]   ;;  %v15655_v20 = vld [vmem:[%s19798_s26 + $0x34] ss:$20 sps:$4 sm:$0xff]   ;;  %v15619_v21 = vld [vmem:[%s19798_s26 + $0x144] ss:$20 sps:$4 sm:$0xff]  }
  0x1b   : > { %1399 = vmatprep.subr.bf16.mxu1 %v15652_v18  ;;  %v15661_v23 = vld [vmem:[%s19798_s26 + $0x5c] ss:$20 sps:$4 sm:$0xff]   ;;  %v15621_v24 = vld [vmem:[%s19798_s26 + $0x140] ss:$20 sps:$4 sm:$0xff]   ;;  %v15663_v26 = vld [vmem:[%s19798_s26 + $0x58] ss:$20 sps:$4 sm:$0xff]  }
  0x1c   : > { %1400 = vmatpush1.bf16.msra.mxu1 %v15654_v19  ;;  %v15622_v25 = vld [vmem:[%s19798_s26 + $0x16c] ss:$20 sps:$4 sm:$0xff]   ;;  %v15664_v27 = vld [vmem:[%s19798_s26 + $0x84] ss:$20 sps:$4 sm:$0xff]   ;;  %v15624_v28 = vld [vmem:[%s19798_s26 + $0x168] ss:$20 sps:$4 sm:$0xff]  }
  0x1d   : > { %1311 = vmatpush1.bf16.msra.mxu0 %v15603_v6  ;;  %1401 = vmatprep.subr.bf16.mxu1 %v15655_v20  ;;  %v15625_v29 = vld [vmem:[%s19798_s26 + $0x194] ss:$20 sps:$4 sm:$0xff]   ;;  %v15670_v31 = vld [vmem:[%s19798_s26 + $0xac] ss:$20 sps:$4 sm:$0xff]   ;;  %v15627_v32 = vld [vmem:[%s19798_s26 + $0x190] ss:$20 sps:$4 sm:$0xff]  }
  0x1e   : > { %1312 = vmatprep.subr.bf16.mxu0 %v15604_v7  ;;  %v15668_v30 = vld [vmem:[%s19798_s26 + $0x80] ss:$20 sps:$4 sm:$0xff]   ;;  %v15628_v33 = vld [vmem:[%s19798_s26 + $0x1bc] ss:$20 sps:$4 sm:$0xff]   ;;  %v15630_v36 = vld [vmem:[%s19798_s26 + $0x1b8] ss:$20 sps:$4 sm:$0xff]  }
  0x1f   : > { %v15672_v34 = vld [vmem:[%s19798_s26 + $0xa8] ss:$20 sps:$4 sm:$0xff]   ;;  %v15631_v37 = vld [vmem:[%s19798_s26 + $0x1e4] ss:$20 sps:$4 sm:$0xff]   ;;  %v15633_v40 = vld [vmem:[%s19798_s26 + $0x1e0] ss:$20 sps:$4 sm:$0xff]  }
  0x20   : > { %1402 = vmatpush1.bf16.msra.mxu1 %v15659_v22  ;;  %v15673_v35 = vld [vmem:[%s19798_s26 + $0xd4] ss:$20 sps:$4 sm:$0xff]   ;;  %v15677_v38 = vld [vmem:[%s19798_s26 + $0xd0] ss:$20 sps:$4 sm:$0xff]   ;;  %v15634_v41 = vld [vmem:[%s19798_s26 + $0x20c] ss:$20 sps:$4 sm:$0xff]  }
  0x21   : > { %1313 = vmatpush1.bf16.msra.mxu0 %v15606_v8  ;;  %1403 = vmatprep.subr.bf16.mxu1 %v15661_v23  ;;  %v15679_v39 = vld [vmem:[%s19798_s26 + $0xfc] ss:$20 sps:$4 sm:$0xff]   ;;  %v15681_v43 = vld [vmem:[%s19798_s26 + $0xf8] ss:$20 sps:$4 sm:$0xff]   ;;  %v15637_v44 = vld [vmem:[%s19798_s26 + $0x234] ss:$20 sps:$4 sm:$0xff]  }
  0x22   : > { %1314 = vmatprep.subr.bf16.mxu0 %v15607_v9  ;;  %v15636_v42 = vld [vmem:[%s19798_s26 + $0x208] ss:$20 sps:$4 sm:$0xff]   ;;  %v15682_v45 = vld [vmem:[%s19798_s26 + $0x124] ss:$20 sps:$4 sm:$0xff]   ;;  %v15684_v46 = vld [vmem:[%s19798_s26 + $0x120] ss:$20 sps:$4 sm:$0xff]  }
  0x23   : > { %v15685_v47 = vld [vmem:[%s19798_s26 + $0x14c] ss:$20 sps:$4 sm:$0xff]   ;;  %v15639_v48 = vld [vmem:[%s19798_s26 + $0x230] ss:$20 sps:$4 sm:$0xff]   ;;  %v15687_v50 = vld [vmem:[%s19798_s26 + $0x148] ss:$20 sps:$4 sm:$0xff]  }
  0x24   : > { %1404 = vmatpush1.bf16.msra.mxu1 %v15663_v26  ;;  %v15640_v49 = vld [vmem:[%s19798_s26 + $0x25c] ss:$20 sps:$4 sm:$0xff]   ;;  %v15688_v51 = vld [vmem:[%s19798_s26 + $0x174] ss:$20 sps:$4 sm:$0xff]   ;;  %v15642_v52 = vld [vmem:[%s19798_s26 + $0x258] ss:$20 sps:$4 sm:$0xff]  }
  0x25   : > { %1315 = vmatpush1.bf16.msra.mxu0 %v15609_v10  ;;  %1405 = vmatprep.subr.bf16.mxu1 %v15664_v27  ;;  %v15690_v53 = vld [vmem:[%s19798_s26 + $0x170] ss:$20 sps:$4 sm:$0xff]   ;;  %v16309_v54 = vld [vmem:[%s16181_s2] ss:$8 sps:$4 sm:$0xff]   ;;  %v16315_v56 = vld [vmem:[%s16181_s2 + $0x14] ss:$8 sps:$4 sm:$0xff]  }
  0x26   : > { %1316 = vmatprep.subr.bf16.mxu0 %v15610_v11  ;;  %v15691_v55 = vld [vmem:[%s19798_s26 + $0x19c] ss:$20 sps:$4 sm:$0xff]   ;;  %v15693_v57 = vld [vmem:[%s19798_s26 + $0x198] ss:$20 sps:$4 sm:$0xff]   ;;  %v15696_v59 = vld [vmem:[%s19798_s26 + $0x1c0] ss:$20 sps:$4 sm:$0xff]  }
  0x27   : > { %v15694_v58 = vld [vmem:[%s19798_s26 + $0x1c4] ss:$20 sps:$4 sm:$0xff]   ;;  %v15697_v61 = vld [vmem:[%s19798_s26 + $0x1ec] ss:$20 sps:$4 sm:$0xff]   ;;  %v15699_v63 = vld [vmem:[%s19798_s26 + $0x1e8] ss:$20 sps:$4 sm:$0xff]  }
  0x28   : > { %1406 = vmatpush1.bf16.msra.mxu1 %v15668_v30  ;;  %v16329_v60 = vld [vmem:[%s16181_s2 + $0x10] ss:$8 sps:$4 sm:$0xff]   ;;  %v16335_v62 = vld [vmem:[%s16181_s2 + $0x24] ss:$8 sps:$4 sm:$0xff]   ;;  %v15700_v0 = vld [vmem:[%s19798_s26 + $0x214] ss:$20 sps:$4 sm:$0xff]  }
  0x29   : > { %1317 = vmatpush1.bf16.msra.mxu0 %v15612_v12  ;;  %1407 = vmatprep.subr.bf16.mxu1 %v15670_v31  ;;  %v15702_v1 = vld [vmem:[%s19798_s26 + $0x210] ss:$20 sps:$4 sm:$0xff]   ;;  %v16349_v2 = vld [vmem:[%s16181_s2 + $0x20] ss:$8 sps:$4 sm:$0xff]   ;;  %v16355_v4 = vld [vmem:[%s16181_s2 + $0x34] ss:$8 sps:$4 sm:$0xff]  }
  0x2a   : > { %1318 = vmatprep.subr.bf16.mxu0 %v15613_v13  ;;  %v15703_v3 = vld [vmem:[%s19798_s26 + $0x23c] ss:$20 sps:$4 sm:$0xff]   ;;  %v15705_v5 = vld [vmem:[%s19798_s26 + $0x238] ss:$20 sps:$4 sm:$0xff]   ;;  %v15708_v7 = vld [vmem:[%s19798_s26 + $0x260] ss:$20 sps:$4 sm:$0xff]  }
  0x2b   : > { %v15706_v6 = vld [vmem:[%s19798_s26 + $0x264] ss:$20 sps:$4 sm:$0xff]   ;;  %v16374_v10 = vld [vmem:[%s16181_s2 + $0x40] ss:$8 sps:$4 sm:$0xff]   ;;  %v16378_v11 = vld [vmem:[%s16181_s2 + $0x54] ss:$8 sps:$4 sm:$0xff]  }
  0x2c   : > { %1408 = vmatpush1.bf16.msra.mxu1 %v15672_v34  ;;  %v16369_v8 = vld [vmem:[%s16181_s2 + $0x30] ss:$8 sps:$4 sm:$0xff]   ;;  %v15666_v9 = vld [vmem:[%s16181_s2 + $0x44] ss:$8 sps:$4 sm:$0xff]   ;;  %v15714_v18 = vld [vmem:[%s19798_s26 + $0x60] ss:$20 sps:$4 sm:$0xff]  }
  0x2d   : > { %1319 = vmatpush1.bf16.msra.mxu0 %v15615_v15  ;;  %1409 = vmatprep.subr.bf16.mxu1 %v15673_v35  ;;  %v16384_v12 = vld [vmem:[%s16181_s2 + $0x50] ss:$8 sps:$4 sm:$0xff]   ;;  %v15715_v19 = vld [vmem:[%s19798_s26 + $0x1c8] ss:$20 sps:$4 sm:$0xff]   ;;  %v15722_v26 = vld [vmem:[%s19798_s26 + $0x100] ss:$20 sps:$4 sm:$0xff]  }
  0x2e   : > { %1320 = vmatprep.subr.bf16.mxu0 %v15616_v16  ;;  %v15709_v13 = vld [vmem:[%s19798_s26 + $0x150] ss:$20 sps:$4 sm:$0xff]   ;;  %v15711_v15 = vld [vmem:[%s19798_s26 + $0x178] ss:$20 sps:$4 sm:$0xff]   ;;  %v15716_v20 = vld [vmem:[%s19798_s26 + $0x88] ss:$20 sps:$4 sm:$0xff]  }
  0x2f   : > { %v15712_v16 = vld [vmem:[%s19798_s26 + $0x38] ss:$20 sps:$4 sm:$0xff]   ;;  %v15718_v22 = vld [vmem:[%s19798_s26 + $0xb0] ss:$20 sps:$4 sm:$0xff]   ;;  %v15723_v27 = vld [vmem:[%s19798_s26 + $0x268] ss:$20 sps:$4 sm:$0xff]  }
  0x30   : > { %1410 = vmatpush1.bf16.msra.mxu1 %v15677_v38  ;;  %v15719_v23 = vld [vmem:[%s19798_s26 + $0x218] ss:$20 sps:$4 sm:$0xff]   ;;  %s19770_s3 = smov 48   ;;  %s19782_s2 = smov 16  }
  0x31   : > { %1321 = vmatpush1.bf16.msra.mxu0 %v15618_v17  ;;  %1411 = vmatprep.subr.bf16.mxu1 %v15679_v39  ;;  %v15713_v17 = vld [vmem:[%s19798_s26 + $0x1a0] ss:$20 sps:$4 sm:$0xff]   ;;  %s19806_s22 = smov 48   ;;  %s19813_s5 = sld [smem:[#allocation11_spill]] }
  0x32   : > { %1322 = vmatprep.subr.bf16.mxu0 %v15619_v21  ;;  %v15717_v21 = vld [vmem:[%s19798_s26 + $0x1f0] ss:$20 sps:$4 sm:$0xff]  }
  0x34   : > { %1412 = vmatpush1.bf16.msra.mxu1 %v15681_v43 }
  0x35   : > { %1323 = vmatpush1.bf16.msra.mxu0 %v15621_v24  ;;  %1413 = vmatprep.subr.bf16.mxu1 %v15682_v45  ;;  %v15720_v24 = vld [vmem:[%s19798_s26 + $0xd8] ss:$20 sps:$4 sm:$0xff]  }
  0x36   : > { %1324 = vmatprep.subr.bf16.mxu0 %v15622_v25  ;;  %v15721_v25 = vld [vmem:[%s19798_s26 + $0x240] ss:$20 sps:$4 sm:$0xff]  }
  0x38   : > { %1414 = vmatpush1.bf16.msra.mxu1 %v15684_v46 }
  0x39   : > { %1325 = vmatpush1.bf16.msra.mxu0 %v15624_v28  ;;  %1415 = vmatprep.subr.bf16.mxu1 %v15685_v47  ;;  %v15724_v28 = vld [vmem:[%s19798_s26 + $0x128] ss:$20 sps:$4 sm:$0xff]  }
  0x3a   : > { %1326 = vmatprep.subr.bf16.mxu0 %v15625_v29  ;;  %v19785_v29 = vmov 0.0  }
  0x3c   : > { %1416 = vmatpush1.bf16.msra.mxu1 %v15687_v50 }
  0x3d   : > { %1327 = vmatpush1.bf16.msra.mxu0 %v15627_v32  ;;  %1417 = vmatprep.subr.bf16.mxu1 %v15688_v51 }
  0x3e   : > { %1328 = vmatprep.subr.bf16.mxu0 %v15628_v33 }
  0x40   : > { %1418 = vmatpush1.bf16.msra.mxu1 %v15690_v53 }
  0x41   : > { %1329 = vmatpush1.bf16.msra.mxu0 %v15630_v36  ;;  %1419 = vmatprep.subr.bf16.mxu1 %v15691_v55 }
  0x42   : > { %1330 = vmatprep.subr.bf16.mxu0 %v15631_v37 }
  0x44   : > { %1420 = vmatpush1.bf16.msra.mxu1 %v15693_v57 }
  0x45   : > { %1331 = vmatpush1.bf16.msra.mxu0 %v15633_v40  ;;  %1421 = vmatprep.subr.bf16.mxu1 %v15694_v58 }
  0x46   : > { %1332 = vmatprep.subr.bf16.mxu0 %v15634_v41 }
  0x48   : > { %1422 = vmatpush1.bf16.msra.mxu1 %v15696_v59 }
  0x49   : > { %1333 = vmatpush1.bf16.msra.mxu0 %v15636_v42  ;;  %1423 = vmatprep.subr.bf16.mxu1 %v15697_v61 }
  0x4a   : > { %1334 = vmatprep.subr.bf16.mxu0 %v15637_v44 }
  0x4c   : > { %1424 = vmatpush1.bf16.msra.mxu1 %v15699_v63 }
  0x4d   : > { %1335 = vmatpush1.bf16.msra.mxu0 %v15639_v48  ;;  %1425 = vmatprep.subr.bf16.mxu1 %v15700_v0 }
  0x4e   : > { %1336 = vmatprep.subr.bf16.mxu0 %v15640_v49 }
  0x50   : > { %1426 = vmatpush1.bf16.msra.mxu1 %v15702_v1 }
  0x51   : > { %1337 = vmatpush1.bf16.msra.mxu0 %v15642_v52  ;;  %1427 = vmatprep.subr.bf16.mxu1 %v15703_v3 }
  0x52   : > { %13246 = vmatprep.subr.bf16.mxu0 %v15709_v13 }
  0x54   : > { %1339 = vmatmul.mubr.bf16.vlgmr.msra.gmra.mrb[0].mxu0 %v16309_v54  ;;  %1428 = vmatpush1.bf16.msra.mxu1 %v15705_v5 }
  0x55   : > { %1348 = vmatprep.mubr.bf16.mxu0 %v16315_v56  ;;  %1429 = vmatprep.subr.bf16.mxu1 %v15706_v6 }
  0x58   : > { %1430 = vmatpush1.bf16.msra.mxu1 %v15708_v7 }
  0x59   : > { %14718 = vmatprep.subr.bf16.mxu1 %v15709_v13 }
  0x5b   : > { %1432 = vmatmul.mubr.bf16.vlgmr.msra.gmra.mrb[0].mxu1 %v16309_v54 }
  0x5c   : > { %1349 = vmatmul.mubr.bf16.gmra.mrb[4].mxu0 %v16329_v60  ;;  %1441 = vmatprep.mubr.bf16.mxu1 %v16315_v56 }
  0x5d   : > { %1358 = vmatprep.mubr.bf16.mxu0 %v16335_v62 }
  0x63   : > { %1442 = vmatmul.mubr.bf16.gmra.mrb[4].mxu1 %v16329_v60 }
  0x64   : > { %1359 = vmatmul.mubr.bf16.gmra.mrb[8].mxu0 %v16349_v2  ;;  %1451 = vmatprep.mubr.bf16.mxu1 %v16335_v62 }
  0x65   : > { %1368 = vmatprep.mubr.bf16.mxu0 %v16355_v4 }
  0x6b   : > { %1452 = vmatmul.mubr.bf16.gmra.mrb[8].mxu1 %v16349_v2 }
  0x6c   : > { %1369 = vmatmul.mubr.bf16.gmra.mrb[12].mxu0 %v16369_v8  ;;  %1461 = vmatprep.mubr.bf16.mxu1 %v16355_v4 }
  0x6d   : > { %1378 = vmatprep.mubr.bf16.mxu0 %v15666_v9 }
  0x73   : > { %1462 = vmatmul.mubr.bf16.gmra.mrb[12].mxu1 %v16369_v8 }
  0x74   : > { %1379 = vmatmul.mubr.bf16.gmra.mrb[16].mxu0 %v16374_v10  ;;  %1471 = vmatprep.mubr.bf16.mxu1 %v15666_v9 }
  0x75   : > { %1388 = vmatprep.mubr.bf16.mxu0 %v16378_v11 }
  0x7b   : > { %1472 = vmatmul.mubr.bf16.gmra.mrb[16].mxu1 %v16374_v10 }
  0x7c   : > { %1389 = vmatmul.mubr.bf16.gmra.mrb[20].mxu0 %v16384_v12  ;;  %1481 = vmatprep.mubr.bf16.mxu1 %v16378_v11 }
  0x7d   : > { %1524 = vmatprep.mubr.bf16.mxu0 %v16187_v14  ;;  %v15710_v14 = vld [vmem:[%s19798_s26 + $0x10] ss:$20 sps:$4 sm:$0xff]   ;;  %s19812_s26 = sld [smem:[#allocation7_spill]] }
  0x7e   : > { %13247 = vmatpush3.bf16.msra.mxu0 %v15710_v14  ;;  %14726 = vmatpush3.bf16.msra.mxu1 %v15710_v14 }
  0x7f   : > { %13248 = vmatprep.subr.bf16.mxu0 %v15711_v15  ;;  %14719 = vmatprep.subr.bf16.mxu1 %v15711_v15 }
  0x82   : > { %13249 = vmatpush3.bf16.msra.mxu0 %v15712_v16  ;;  %14727 = vmatpush3.bf16.msra.mxu1 %v15712_v16 }
  0x83   : > { %1482 = vmatmul.mubr.bf16.gmra.mrb[20].mxu1 %v16384_v12  ;;  %13250 = vmatprep.subr.bf16.mxu0 %v15713_v17 }
  0x84   : > { %1556 = vmatprep.mubr.bf16.mxu1 %v15666_v9  ;;  %14720 = vmatprep.subr.bf16.mxu1 %v15713_v17 }
  0x86   : > { %13251 = vmatpush3.bf16.msra.mxu0 %v15714_v18  ;;  %14728 = vmatpush3.bf16.msra.mxu1 %v15714_v18 }
  0x87   : > { %13252 = vmatprep.subr.bf16.mxu0 %v15715_v19  ;;  %14721 = vmatprep.subr.bf16.mxu1 %v15715_v19 }
  0x8a   : > { %13253 = vmatpush3.bf16.msra.mxu0 %v15716_v20  ;;  %14729 = vmatpush3.bf16.msra.mxu1 %v15716_v20 }
  0x8b   : > { %13254 = vmatprep.subr.bf16.mxu0 %v15717_v21  ;;  %14722 = vmatprep.subr.bf16.mxu1 %v15717_v21 }
  0x8e   : > { %13255 = vmatpush3.bf16.msra.mxu0 %v15718_v22  ;;  %14730 = vmatpush3.bf16.msra.mxu1 %v15718_v22 }
  0x8f   : > { %13256 = vmatprep.subr.bf16.mxu0 %v15719_v23  ;;  %14723 = vmatprep.subr.bf16.mxu1 %v15719_v23 }
  0x92   : > { %13257 = vmatpush3.bf16.msra.mxu0 %v15720_v24  ;;  %14731 = vmatpush3.bf16.msra.mxu1 %v15720_v24 }
  0x93   : > { %13258 = vmatprep.subr.bf16.mxu0 %v15721_v25  ;;  %14724 = vmatprep.subr.bf16.mxu1 %v15721_v25 }
  0x96   : > { %13259 = vmatpush3.bf16.msra.mxu0 %v15722_v26  ;;  %14732 = vmatpush3.bf16.msra.mxu1 %v15722_v26 }
  0x97   : > { %13260 = vmatprep.subr.bf16.mxu0 %v15723_v27  ;;  %14725 = vmatprep.subr.bf16.mxu1 %v15723_v27 }
  0x9a   : > { %13261 = vmatpush3.bf16.msra.mxu0 %v15724_v28  ;;  %14733 = vmatpush3.bf16.msra.mxu1 %v15724_v28 }
  0x9b   : > { %13662 = vmatprep.subr.bf16.mxu1 %v19785_v29  ;;  %13824 = vmatprep.subr.bf16.mxu0 %v19785_v29 }
  0x9d   : > { %1525 = vmatmul.mubr.bf16.vlgmr.msra.gmra.mrb[24].mxu0 %v16309_v54  ;;  %1557 = vmatmul.mubr.bf16.vlgmr.msra.gmra.mrb[24].mxu1 %v16374_v10 }
  0x9e   : > { %1532 = vmatprep.mubr.bf16.mxu0 %v16315_v56  ;;  %1564 = vmatprep.mubr.bf16.mxu1 %v16378_v11 }
  0xa5   : > { %1533 = vmatmul.mubr.bf16.gmra.mrb[28].mxu0 %v16329_v60  ;;  %1565 = vmatmul.mubr.bf16.gmra.mrb[28].mxu1 %v16384_v12 }
  0xa6   : > { %1540 = vmatprep.mubr.bf16.mxu0 %v16335_v62  ;;  %13668 = vmatprep.mubr.msk.bf16.mxu1 %vm16000_vm0, %v19785_v29 }
  0xad   : > { %1541 = vmatmul.mubr.bf16.gmra.mrb[32].mxu0 %v16349_v2 }
  0xae   : > { %1548 = vmatprep.mubr.bf16.mxu0 %v16355_v4 }
  0xb5   : > { %1549 = vmatmul.mubr.bf16.gmra.mrb[36].mxu0 %v16369_v8 }
  0xb6   : > { %13830 = vmatprep.mubr.msk.bf16.mxu0 %vm16000_vm0, %v19785_v29 }
 0x127   : > { %v1340_v30 = vpop.f32.mrb[0].mxu0 }
 0x128   : > { %v1342_v31 = vpop.f32.mrb[1].mxu0 }
 0x129   : > { %v1344_v32 = vpop.f32.mrb[2].mxu0 }
 0x12a   : > { %v1346_v33 = vpop.f32.mrb[3].mxu0  ;;  %v16456_v34 = vpack.c.bf16 %v1344_v32, %v1340_v30 }
 0x12b   : > { %v16458_v35 = vpack.c.bf16 %v1346_v33, %v1342_v31 }
 0x12c   : > { %1634 = vrot.lane.b32.xlu0 %v16456_v34, %s19772_s27 }
 0x12e   : > { %v1433_v51 = vpop.f32.mrb[0].mxu1 }
 0x12f   : > { %v1350_v36 = vpop.f32.mrb[4].mxu0  ;;  %v1435_v54 = vpop.f32.mrb[1].mxu1 }
 0x130   : > { %v1352_v37 = vpop.f32.mrb[5].mxu0  ;;  %v1437_v56 = vpop.f32.mrb[2].mxu1 }
 0x131   : > { %v1354_v38 = vpop.f32.mrb[6].mxu0  ;;  %v16484_v57 = vpack.c.bf16 %v1437_v56, %v1433_v51  ;;  %v1439_v58 = vpop.f32.mrb[3].mxu1  ;;  %v15727_v51 = vld [vmem:[%s19800_s28 + $0x28] sm:$0xff]  }
 0x132   : > { %v1356_v39 = vpop.f32.mrb[7].mxu0  ;;  %v16466_v40 = vpack.c.bf16 %v1354_v38, %v1350_v36  ;;  %v16486_v59 = vpack.c.bf16 %v1439_v58, %v1435_v54 }
 0x133   : > { %v16468_v41 = vpack.c.bf16 %v1356_v39, %v1352_v37 }
 0x134   : > { %1636 = vrot.lane.b32.xlu0 %v16466_v40, %s19772_s27 }
 0x136   : > { %v1443_v63 = vpop.f32.mrb[4].mxu1 }
 0x137   : > { %v1360_v42 = vpop.f32.mrb[8].mxu0  ;;  %v1445_v2 = vpop.f32.mrb[5].mxu1 }
 0x138   : > { %v1362_v43 = vpop.f32.mrb[9].mxu0  ;;  %v1447_v4 = vpop.f32.mrb[6].mxu1 }
 0x139   : > { %v1364_v44 = vpop.f32.mrb[10].mxu0  ;;  %v16494_v5 = vpack.c.bf16 %v1447_v4, %v1443_v63  ;;  %v1449_v6 = vpop.f32.mrb[7].mxu1  ;;  %v15731_v63 = vld [vmem:[%s19800_s28 + $0x30] sm:$0xff]  }
 0x13a   : > { %v1366_v45 = vpop.f32.mrb[11].mxu0  ;;  %v16472_v46 = vpack.c.bf16 %v1364_v44, %v1360_v42  ;;  %v16496_v7 = vpack.c.bf16 %v1449_v6, %v1445_v2 }
 0x13b   : > { %v16474_v47 = vpack.c.bf16 %v1366_v45, %v1362_v43 }
 0x13c   : > { %1638 = vrot.lane.b32.xlu1 %v16472_v46, %s19772_s27 }
 0x13e   : > { %v1453_v11 = vpop.f32.mrb[8].mxu1 }
 0x13f   : > { %v1370_v48 = vpop.f32.mrb[12].mxu0  ;;  %v1455_v14 = vpop.f32.mrb[9].mxu1 }
 0x140   : > { %v1372_v49 = vpop.f32.mrb[13].mxu0  ;;  %v1457_v16 = vpop.f32.mrb[10].mxu1 }
 0x141   : > { %v1374_v50 = vpop.f32.mrb[14].mxu0  ;;  %v1459_v17 = vpop.f32.mrb[11].mxu1  ;;  %v16508_v18 = vpack.c.bf16 %v1457_v16, %v1453_v11  ;;  %v16652_v11 = vld [vmem:[%s19800_s28 + $0x38] sm:$0xff]  }
 0x142   : > { %v16478_v52 = vpack.c.bf16 %v1374_v50, %v1370_v48  ;;  %v1376_v53 = vpop.f32.mrb[15].mxu0  ;;  %v16510_v19 = vpack.c.bf16 %v1459_v17, %v1455_v14  ;;  %v15725_v48 = vld [vmem:[%s19800_s28 + $0x18] sm:$0xff]   ;;  %v15726_v50 = vld [vmem:[%s19800_s28 + $0x20] sm:$0xff]  }
 0x143   : > { %v16480_v55 = vpack.c.bf16 %v1376_v53, %v1372_v49  ;;  %v15729_v53 = vld [vmem:[%s19800_s28 + $0x8] sm:$0xff]  }
 0x144   : > { %2488 = vrot.lane.b32.xlu1 %v16478_v52, %s19772_s27 }
 0x146   : > { %v1463_v20 = vpop.f32.mrb[12].mxu1 }
 0x147   : > { %v1380_v60 = vpop.f32.mrb[16].mxu0  ;;  %v1465_v21 = vpop.f32.mrb[13].mxu1 }
 0x148   : > { %v1382_v61 = vpop.f32.mrb[17].mxu0  ;;  %v1467_v22 = vpop.f32.mrb[14].mxu1 }
 0x149   : > { %v1384_v62 = vpop.f32.mrb[18].mxu0  ;;  %v1469_v23 = vpop.f32.mrb[15].mxu1  ;;  %v16520_v24 = vpack.c.bf16 %v1467_v22, %v1463_v20 }
 0x14a   : > { %v16488_v0 = vpack.c.bf16 %v1384_v62, %v1380_v60  ;;  %v1386_v1 = vpop.f32.mrb[19].mxu0  ;;  %v16522_v25 = vpack.c.bf16 %v1469_v23, %v1465_v21 }
 0x14b   : > { %v16490_v3 = vpack.c.bf16 %v1386_v1, %v1382_v61 }
 0x14c   : > { %2490 = vrot.lane.b32.xlu0 %v16488_v0, %s19772_s27 }
 0x14e   : > { %v1473_v26 = vpop.f32.mrb[16].mxu1 }
 0x14f   : > { %v1390_v8 = vpop.f32.mrb[20].mxu0  ;;  %v1475_v27 = vpop.f32.mrb[17].mxu1 }
 0x150   : > { %1910 = vrot.lane.b32.xlu0 %v16458_v35, %s19772_s27  ;;  %v1392_v9 = vpop.f32.mrb[21].mxu0  ;;  %v1477_v28 = vpop.f32.mrb[18].mxu1 }
 0x151   : > { %v1394_v10 = vpop.f32.mrb[22].mxu0  ;;  %v16528_v30 = vpack.c.bf16 %v1477_v28, %v1473_v26  ;;  %v1479_v31 = vpop.f32.mrb[19].mxu1 }
 0x152   : > { %v16500_v12 = vpack.c.bf16 %v1394_v10, %v1390_v8  ;;  %v1396_v13 = vpop.f32.mrb[23].mxu0  ;;  %v16532_v32 = vpack.c.bf16 %v1479_v31, %v1475_v27 }
 0x153   : > { %v16502_v15 = vpack.c.bf16 %v1396_v13, %v1392_v9 }
 0x154   : > { %1914 = vrot.lane.b32.xlu0 %v16474_v47, %s19772_s27  ;;  %2492 = vrot.lane.b32.xlu1 %v16500_v12, %s19772_s27 }
 0x156   : > { %v1483_v33 = vpop.f32.mrb[20].mxu1 }
 0x157   : > { %v1485_v36 = vpop.f32.mrb[21].mxu1 }
 0x158   : > { %2679 = vrot.lane.b32.xlu0 %v16490_v3, %s19772_s27  ;;  %1912 = vrot.lane.b32.xlu1 %v16468_v41, %s19772_s27  ;;  %v1487_v37 = vpop.f32.mrb[22].mxu1 }
 0x159   : > { %v16540_v38 = vpack.c.bf16 %v1487_v37, %v1483_v33  ;;  %v1489_v39 = vpop.f32.mrb[23].mxu1 }
 0x15a   : > { %v16542_v42 = vpack.c.bf16 %v1489_v39, %v1485_v36 }
 0x15c   : > { %2677 = vrot.lane.b32.xlu1 %v16480_v55, %s19772_s27  ;;  %2110 = vrot.lane.b32.xlu0 %v16484_v57, %s19772_s27 }
 0x160   : > { %2681 = vrot.lane.b32.xlu1 %v16502_v15, %s19772_s27  ;;  %2114 = vrot.lane.b32.xlu0 %v16508_v18, %s19772_s27 }
 0x164   : > { %2112 = vrot.lane.b32.xlu1 %v16494_v5, %s19772_s27  ;;  %2817 = vrot.lane.b32.xlu0 %v16528_v30, %s19772_s27 }
 0x168   : > { %2815 = vrot.lane.b32.xlu1 %v16520_v24, %s19772_s27  ;;  %2310 = vrot.lane.b32.xlu0 %v16486_v59, %s19772_s27 }
 0x16c   : > { %2819 = vrot.lane.b32.xlu1 %v16540_v38, %s19772_s27  ;;  %2314 = vrot.lane.b32.xlu0 %v16510_v19, %s19772_s27 }
 0x170   : > { %2312 = vrot.lane.b32.xlu1 %v16496_v7, %s19772_s27  ;;  %2955 = vrot.lane.b32.xlu0 %v16532_v32, %s19772_s27  ;;  %v13286_v20 = vpop.f32.mrb[24].mxu1 }
 0x171   : > { %v13287_v33 = vpop.f32.mrb[25].mxu1 }
 0x172   : > { %v16688_v36 = vadd.f32 %v13287_v33, %v13286_v20  ;;  %v13289_v37 = vpop.f32.mrb[26].mxu1  ;;  %v15743_v33 = vld [vmem:[%s19800_s28 + $0x90] sm:$0xff]  }
 0x173   : > { %v13290_v39 = vpop.f32.mrb[27].mxu1 }
 0x174   : > { %2953 = vrot.lane.b32.xlu1 %v16522_v25, %s19772_s27 }
 0x178   : > { %2957 = vrot.lane.b32.xlu1 %v16542_v42, %s19772_s27 }
 0x19e   : > { %v1635_v43 = vpop.permute.xlu0 %1634 }
 0x19f   : > { %13663 = vmatpush3.bf16.msra.mxu1 %v1635_v43  ;;  %v16690_v43 = vadd.f32 %v13290_v39, %v13289_v37  ;;  %v3097_v39 = vld [vmem:[%s19744_s9 + $0x48] sm:$0xff] }
 0x1a0   : > { %13664 = vmatprep.subr.bf16.mxu1 %v19785_v29 }
 0x1a6   : > { %v1637_v44 = vpop.permute.xlu0 %1636 }
 0x1a7   : > { %13665 = vmatpush3.bf16.msra.mxu1 %v1637_v44  ;;  %v13292_v44 = vpop.f32.mrb[28].mxu1 }
 0x1a8   : > { %13666 = vmatprep.subr.bf16.mxu1 %v19785_v29 }
 0x1ae   : > { %v1639_v45 = vpop.permute.xlu1 %1638 }
 0x1af   : > { %13667 = vmatpush3.bf16.msra.mxu1 %v1639_v45  ;;  %v15734_v45 = vld [vmem:[%s19800_s28 + $0x48] sm:$0xff]  }
 0x1b0   : > { %13680 = vmatprep.subr.bf16.mxu1 %v19785_v29 }
 0x1b2   : > { %13669 = vmatmul.mubr.msk.bf16.vlgmr.msra.gmra.mrb[32].mxu1 %vm1643_vm1, %v15725_v48 }
 0x1b3   : > { %13681 = vmatpush3.bf16.msra.mxu1 %v16456_v34  ;;  %13672 = vmatprep.mubr.msk.bf16.mxu1 %vm16000_vm0, %v19785_v29 }
 0x1b4   : > { %13682 = vmatprep.subr.bf16.mxu1 %v19785_v29 }
 0x1b6   : > { %v2489_v49 = vpop.permute.xlu1 %2488 }
 0x1b7   : > { %13683 = vmatpush3.bf16.msra.mxu1 %v16466_v40  ;;  %13825 = vmatpush3.bf16.msra.mxu0 %v2489_v49 }
 0x1b8   : > { %13684 = vmatprep.subr.bf16.mxu1 %v19785_v29  ;;  %13826 = vmatprep.subr.bf16.mxu0 %v19785_v29 }
 0x1ba   : > { %13673 = vmatmul.mubr.msk.bf16.gmra.mrb[36].mxu1 %vm1643_vm1, %v15726_v50 }
 0x1bb   : > { %13685 = vmatpush3.bf16.msra.mxu1 %v16472_v46  ;;  %13676 = vmatprep.mubr.msk.bf16.mxu1 %vm16000_vm0, %v19785_v29  ;;  %v15728_v46 = vld [vmem:[%s19800_s28] sm:$0xff]  }
 0x1bc   : > { %13698 = vmatprep.subr.bf16.mxu1 %v19785_v29 }
 0x1be   : > { %v2491_v34 = vpop.permute.xlu0 %2490 }
 0x1bf   : > { %13827 = vmatpush3.bf16.msra.mxu0 %v2491_v34 }
 0x1c0   : > { %13828 = vmatprep.subr.bf16.mxu0 %v19785_v29 }
 0x1c2   : > { %13677 = vmatmul.mubr.msk.bf16.gmra.mrb[40].mxu1 %vm1643_vm1, %v15727_v51  ;;  %v1911_v6 = vpop.permute.xlu0 %1910 }
 0x1c3   : > { %13686 = vmatprep.mubr.msk.bf16.mxu1 %vm16000_vm0, %v19785_v29 }
 0x1c6   : > { %v2493_v40 = vpop.permute.xlu1 %2492  ;;  %v1915_v17 = vpop.permute.xlu0 %1914 }
 0x1c7   : > { %13829 = vmatpush3.bf16.msra.mxu0 %v2493_v40 }
 0x1c8   : > { %13842 = vmatprep.subr.bf16.mxu0 %v19785_v29 }
 0x1ca   : > { %13687 = vmatmul.mubr.msk.bf16.vlgmr.msra.gmra.mrb[32].mxu1 %vm1643_vm1, %v15728_v46  ;;  %13831 = vmatmul.mubr.msk.bf16.vlgmr.msra.gmra.mrb[40].mxu0 %vm1643_vm1, %v15725_v48  ;;  %v1913_v10 = vpop.permute.xlu1 %1912  ;;  %v1597_v48 = vpack.c.bf16 %v16690_v43, %v16688_v36  ;;  %v15761_v36 = vld [vmem:[%s19801_s1 + $0x30] ss:$8 sps:$4 sm:$0xff]  }
 0x1cb   : > { %13699 = vmatpush3.bf16.msra.mxu1 %v16458_v35  ;;  %13843 = vmatpush3.bf16.msra.mxu0 %v16478_v52  ;;  %v13262_v35 = vpop.f32.mrb[24].mxu0  ;;  %v15730_v52 = vld [vmem:[%s19800_s28 + $0x10] sm:$0xff]  }
 0x1cc   : > { %13700 = vmatprep.subr.bf16.mxu1 %v19785_v29  ;;  %13844 = vmatprep.subr.bf16.mxu0 %v19785_v29 }
 0x1cd   : > { %13690 = vmatprep.mubr.msk.bf16.mxu1 %vm16000_vm0, %v19785_v29  ;;  %13834 = vmatprep.mubr.msk.bf16.mxu0 %vm16000_vm0, %v19785_v29 }
 0x1ce   : > { %v2678_v49 = vpop.permute.xlu1 %2677 }
 0x1cf   : > { %13701 = vmatpush3.bf16.msra.mxu1 %v16468_v41  ;;  %13845 = vmatpush3.bf16.msra.mxu0 %v16488_v0  ;;  %v13263_v41 = vpop.f32.mrb[25].mxu0 }
 0x1d0   : > { %13702 = vmatprep.subr.bf16.mxu1 %v19785_v29  ;;  %13846 = vmatprep.subr.bf16.mxu0 %v19785_v29  ;;  %v16619_v54 = vadd.f32 %v13263_v41, %v13262_v35 }
 0x1d2   : > { %13691 = vmatmul.mubr.msk.bf16.gmra.mrb[36].mxu1 %vm1643_vm1, %v15729_v53  ;;  %13835 = vmatmul.mubr.msk.bf16.gmra.mrb[44].mxu0 %vm1643_vm1, %v15726_v50  ;;  %v13293_v50 = vpop.f32.mrb[29].mxu1  ;;  %v2682_v41 = vpop.permute.xlu1 %2681 }
 0x1d3   : > { %13703 = vmatpush3.bf16.msra.mxu1 %v16474_v47  ;;  %13847 = vmatpush3.bf16.msra.mxu0 %v16500_v12  ;;  %v13265_v47 = vpop.f32.mrb[26].mxu0  ;;  %v16700_v34 = vadd.f32 %v13293_v50, %v13292_v44  ;;  %v3096_v44 = vld [vmem:[%s19744_s9 + $0x40] sm:$0xff]  ;;  %v3181_v50 = vld [vmem:[%s19745_s10 + $0x48] sm:$0xff] }
 0x1d4   : > { %13694 = vmatprep.mubr.msk.bf16.mxu1 %vm16000_vm0, %v19785_v29  ;;  %13838 = vmatprep.mubr.msk.bf16.mxu0 %vm16000_vm0, %v19785_v29  ;;  %v13266_v56 = vpop.f32.mrb[27].mxu0 }
 0x1d5   : > { %13716 = vmatprep.subr.bf16.mxu1 %v19785_v29  ;;  %13860 = vmatprep.subr.bf16.mxu0 %v19785_v29  ;;  %v16621_v58 = vadd.f32 %v13266_v56, %v13265_v47  ;;  %v13268_v61 = vpop.f32.mrb[28].mxu0  ;;  %v15738_v56 = vld [vmem:[%s19800_s28 + $0x68] sm:$0xff]  }
 0x1d6   : > { %v13269_v62 = vpop.f32.mrb[29].mxu0  ;;  %v2113_v47 = vpop.permute.xlu1 %2112 }
 0x1d7   : > { %v1577_v60 = vpack.c.bf16 %v16621_v58, %v16619_v54  ;;  %v16634_v0 = vadd.f32 %v13269_v62, %v13268_v61  ;;  %v13271_v1 = vpop.f32.mrb[30].mxu0  ;;  %v19787_v61 = vmov 0   ;;  %v3089_v62 = vld [vmem:[%s19744_s9 + $0x8] sm:$0xff] }
 0x1d8   : > { %v13272_v2 = vpop.f32.mrb[31].mxu0  ;;  %15569 = vset.pattern.permute.xlu1 %v19787_v61  ;;  %15568 = vset.pattern.permute.xlu0 %v19787_v61  ;;  %v15754_v54 = vld [vmem:[%s19801_s1 + $0x4] ss:$8 sps:$4 sm:$0xff]  }
 0x1d9   : > { %v16636_v4 = vadd.f32 %v13272_v2, %v13271_v1  ;;  %v13274_v9 = vpop.f32.mrb[32].mxu0  ;;  %3107 = vperm.xlu1 %15569, %v3089_v62   ;;  %v3172_v1 = vld [vmem:[%s19745_s10] sm:$0xff]  ;;  %v3091_v2 = vld [vmem:[%s19744_s9 + $0x18] sm:$0xff] }
 0x1da   : > { %13695 = vmatmul.mubr.msk.bf16.gmra.mrb[40].mxu1 %vm1643_vm1, %v15730_v52  ;;  %13839 = vmatmul.mubr.msk.bf16.gmra.mrb[48].mxu0 %vm1643_vm1, %v15727_v51  ;;  %v13275_v12 = vpop.f32.mrb[33].mxu0  ;;  %v13295_v51 = vpop.f32.mrb[30].mxu1 }
 0x1db   : > { %13704 = vmatprep.mubr.msk.bf16.mxu1 %vm16000_vm0, %v19785_v29  ;;  %13848 = vmatprep.mubr.msk.bf16.mxu0 %vm16000_vm0, %v19785_v29  ;;  %v1582_v8 = vpack.c.bf16 %v16636_v4, %v16634_v0  ;;  %v13277_v13 = vpop.f32.mrb[34].mxu0  ;;  %v13296_v40 = vpop.f32.mrb[31].mxu1  ;;  %v15749_v0 = vld [vmem:[%s19800_s28 + $0xc0] sm:$0xff]  }
 0x1dc   : > { %v13278_v14 = vpop.f32.mrb[35].mxu0  ;;  %v15752_v4 = vld [vmem:[%s19801_s1] ss:$8 sps:$4 sm:$0xff]  }
 0x1dd   : > { %v16659_v16 = vadd.f32 %v13278_v14, %v13277_v13  ;;  %v13280_v21 = vpop.f32.mrb[36].mxu0  ;;  %3186 = vperm.xlu1 %15569, %v3172_v1   ;;  %v3093_v13 = vld [vmem:[%s19744_s9 + $0x28] sm:$0xff]  ;;  %v3092_v14 = vld [vmem:[%s19744_s9 + $0x20] sm:$0xff] }
 0x1de   : > { %v13281_v22 = vpop.f32.mrb[37].mxu0 }
 0x1df   : > { %v16676_v23 = vadd.f32 %v13281_v22, %v13280_v21  ;;  %v13283_v26 = vpop.f32.mrb[38].mxu0  ;;  %v3177_v21 = vld [vmem:[%s19745_s10 + $0x28] sm:$0xff]  ;;  %v3095_v22 = vld [vmem:[%s19744_s9 + $0x38] sm:$0xff] }
 0x1e0   : > { %v13284_v27 = vpop.f32.mrb[39].mxu0 }
 0x1e1   : > { %v16678_v28 = vadd.f32 %v13284_v27, %v13283_v26  ;;  %v3179_v26 = vld [vmem:[%s19745_s10 + $0x38] sm:$0xff]  ;;  %v3178_v27 = vld [vmem:[%s19745_s10 + $0x30] sm:$0xff] }
 0x1e2   : > { %13705 = vmatmul.mubr.msk.bf16.vlgmr.msra.gmra.mrb[32].mxu1 %vm1643_vm1, %v15731_v63  ;;  %13849 = vmatmul.mubr.msk.bf16.vlgmr.msra.gmra.mrb[40].mxu0 %vm1643_vm1, %v15728_v46  ;;  %v16708_v46 = vadd.f32 %v13296_v40, %v13295_v51  ;;  %v3099_v51 = vld [vmem:[%s19744_s9 + $0x58] sm:$0xff]  ;;  %v3098_v40 = vld [vmem:[%s19744_s9 + $0x50] sm:$0xff] }
 0x1e3   : > { %13717 = vmatpush3.bf16.msra.mxu1 %v1911_v6  ;;  %13861 = vmatpush3.bf16.msra.mxu0 %v16480_v55  ;;  %v16655_v55 = vadd.f32 %v13275_v12, %v13274_v9  ;;  %v1592_v31 = vpack.c.bf16 %v16678_v28, %v16676_v23  ;;  %v3090_v6 = vld [vmem:[%s19744_s9 + $0x10] sm:$0xff]  ;;  %v3175_v9 = vld [vmem:[%s19745_s10 + $0x18] sm:$0xff]  ;;  %v2816_v12 = vpop.permute.xlu1 %2815  ;;  %v15760_v23 = vld [vmem:[%s19801_s1 + $0x24] ss:$8 sps:$4 sm:$0xff]  }
 0x1e4   : > { %13718 = vmatprep.subr.bf16.mxu1 %v19785_v29  ;;  %13862 = vmatprep.subr.bf16.mxu0 %v19785_v29  ;;  %v1602_v35 = vpack.c.bf16 %v16708_v46, %v16700_v34  ;;  %v15758_v28 = vld [vmem:[%s19801_s1 + $0x20] ss:$8 sps:$4 sm:$0xff]  }
 0x1e5   : > { %13708 = vmatprep.mubr.msk.bf16.mxu1 %vm16000_vm0, %v19785_v29  ;;  %13852 = vmatprep.mubr.msk.bf16.mxu0 %vm16000_vm0, %v19785_v29 }
 0x1e6   : > { %3112 = vperm.xlu1 %15569, %v3090_v6  }
 0x1e7   : > { %13719 = vmatpush3.bf16.msra.mxu1 %v1913_v10  ;;  %13863 = vmatpush3.bf16.msra.mxu0 %v16490_v3  ;;  %v1587_v3 = vpack.c.bf16 %v16659_v16, %v16655_v55  ;;  %v3174_v10 = vld [vmem:[%s19745_s10 + $0x10] sm:$0xff]  ;;  %v2820_v20 = vpop.permute.xlu1 %2819  ;;  %v15750_v16 = vld [vmem:[%s19800_s28 + $0xc8] sm:$0xff]  }
 0x1e8   : > { %13720 = vmatprep.subr.bf16.mxu1 %v19785_v29  ;;  %13864 = vmatprep.subr.bf16.mxu0 %v19785_v29  ;;  %v15755_v55 = vld [vmem:[%s19801_s1 + $0x10] ss:$8 sps:$4 sm:$0xff]  }
 0x1ea   : > { %13709 = vmatmul.mubr.msk.bf16.gmra.mrb[36].mxu1 %vm1643_vm1, %v16652_v11  ;;  %13853 = vmatmul.mubr.msk.bf16.gmra.mrb[44].mxu0 %vm1643_vm1, %v15729_v53  ;;  %v2680_v53 = vpop.permute.xlu0 %2679 }
 0x1eb   : > { %13721 = vmatpush3.bf16.msra.mxu1 %v1915_v17  ;;  %13865 = vmatpush3.bf16.msra.mxu0 %v16502_v15  ;;  %v15733_v15 = vld [vmem:[%s19800_s28 + $0x40] sm:$0xff]  }
 0x1ec   : > { %13712 = vmatprep.mubr.msk.bf16.mxu1 %vm16000_vm0, %v19785_v29  ;;  %13856 = vmatprep.mubr.msk.bf16.mxu0 %vm16000_vm0, %v19785_v29  ;;  %v15741_v17 = vld [vmem:[%s19800_s28 + $0x80] sm:$0xff]  }
 0x1ed   : > { %13734 = vmatprep.subr.bf16.mxu1 %v19785_v29  ;;  %13878 = vmatprep.subr.bf16.mxu0 %v19785_v29 }
 0x1ee   : > { %3196 = vperm.xlu1 %15569, %v3174_v10  }
 0x1f2   : > { %13713 = vmatmul.mubr.msk.bf16.gmra.mrb[40].mxu1 %vm1643_vm1, %v15733_v15  ;;  %13857 = vmatmul.mubr.msk.bf16.gmra.mrb[48].mxu0 %vm1643_vm1, %v15730_v52  ;;  %v2111_v52 = vpop.permute.xlu0 %2110 }
 0x1f3   : > { %13722 = vmatprep.mubr.msk.bf16.mxu1 %vm16000_vm0, %v19785_v29  ;;  %13866 = vmatprep.mubr.msk.bf16.mxu0 %vm16000_vm0, %v19785_v29 }
 0x1f4   : > { %3122 = vperm.xlu1 %15569, %v3092_v14  }
 0x1fa   : > { %13723 = vmatmul.mubr.msk.bf16.vlgmr.msra.gmra.mrb[32].mxu1 %vm1643_vm1, %v15734_v45  ;;  %13867 = vmatmul.mubr.msk.bf16.vlgmr.msra.gmra.mrb[40].mxu0 %vm1643_vm1, %v15731_v63  ;;  %v2115_v63 = vpop.permute.xlu0 %2114 }
 0x1fb   : > { %13735 = vmatpush3.bf16.msra.mxu1 %v16484_v57  ;;  %13879 = vmatpush3.bf16.msra.mxu0 %v2678_v49  ;;  %v15735_v57 = vld [vmem:[%s19800_s28 + $0x50] sm:$0xff]  }
 0x1fc   : > { %13736 = vmatprep.subr.bf16.mxu1 %v19785_v29  ;;  %13880 = vmatprep.subr.bf16.mxu0 %v19785_v29 }
 0x1fd   : > { %13726 = vmatprep.mubr.msk.bf16.mxu1 %vm16000_vm0, %v19785_v29  ;;  %13870 = vmatprep.mubr.msk.bf16.mxu0 %vm16000_vm0, %v19785_v29 }
 0x1ff   : > { %13737 = vmatpush3.bf16.msra.mxu1 %v16494_v5  ;;  %13881 = vmatpush3.bf16.msra.mxu0 %v2680_v53  ;;  %v15736_v5 = vld [vmem:[%s19800_s28 + $0x58] sm:$0xff]  }
 0x200   : > { %13738 = vmatprep.subr.bf16.mxu1 %v19785_v29  ;;  %13882 = vmatprep.subr.bf16.mxu0 %v19785_v29  ;;  %v3183_v53 = vld [vmem:[%s19745_s10 + $0x58] sm:$0xff] }
 0x202   : > { %13727 = vmatmul.mubr.msk.bf16.gmra.mrb[36].mxu1 %vm1643_vm1, %v15735_v57  ;;  %13871 = vmatmul.mubr.msk.bf16.gmra.mrb[44].mxu0 %vm1643_vm1, %v16652_v11  ;;  %v15740_v11 = vld [vmem:[%s19800_s28 + $0x78] sm:$0xff]  }
 0x203   : > { %13739 = vmatpush3.bf16.msra.mxu1 %v16508_v18  ;;  %13883 = vmatpush3.bf16.msra.mxu0 %v2682_v41  ;;  %v15737_v18 = vld [vmem:[%s19800_s28 + $0x60] sm:$0xff]   ;;  %v15746_v41 = vld [vmem:[%s19800_s28 + $0xa8] sm:$0xff]  }
 0x204   : > { %13730 = vmatprep.mubr.msk.bf16.mxu1 %vm16000_vm0, %v19785_v29  ;;  %13874 = vmatprep.mubr.msk.bf16.mxu0 %vm16000_vm0, %v19785_v29 }
 0x205   : > { %13896 = vmatprep.subr.bf16.mxu0 %v19785_v29  ;;  %13752 = vmatprep.subr.bf16.mxu1 %v19785_v29 }
 0x20a   : > { %13731 = vmatmul.mubr.msk.bf16.gmra.mrb[40].mxu1 %vm1643_vm1, %v15736_v5  ;;  %13875 = vmatmul.mubr.msk.bf16.gmra.mrb[48].mxu0 %vm1643_vm1, %v15733_v15  ;;  %v3094_v15 = vld [vmem:[%s19744_s9 + $0x30] sm:$0xff] }
 0x20b   : > { %13740 = vmatprep.mubr.msk.bf16.mxu1 %vm16000_vm0, %v19785_v29  ;;  %13884 = vmatprep.mubr.msk.bf16.mxu0 %vm16000_vm0, %v19785_v29 }
 0x212   : > { %13741 = vmatmul.mubr.msk.bf16.vlgmr.msra.gmra.mrb[32].mxu1 %vm1643_vm1, %v15737_v18  ;;  %13885 = vmatmul.mubr.msk.bf16.vlgmr.msra.gmra.mrb[40].mxu0 %vm1643_vm1, %v15734_v45  ;;  %v2313_v45 = vpop.permute.xlu1 %2312 }
 0x213   : > { %13897 = vmatpush3.bf16.msra.mxu0 %v16520_v24  ;;  %13753 = vmatpush3.bf16.msra.mxu1 %v2111_v52  ;;  %v3088_v24 = vld [vmem:[%s19744_s9] sm:$0xff]  ;;  %v15747_v52 = vld [vmem:[%s19800_s28 + $0xb0] sm:$0xff]  }
 0x214   : > { %13898 = vmatprep.subr.bf16.mxu0 %v19785_v29  ;;  %13744 = vmatprep.mubr.msk.bf16.mxu1 %vm16000_vm0, %v19785_v29 }
 0x215   : > { %13888 = vmatprep.mubr.msk.bf16.mxu0 %vm16000_vm0, %v19785_v29  ;;  %13754 = vmatprep.subr.bf16.mxu1 %v19785_v29 }
 0x216   : > { %3102 = vperm.xlu0 %15568, %v3088_v24  }
 0x217   : > { %13899 = vmatpush3.bf16.msra.mxu0 %v16528_v30  ;;  %13755 = vmatpush3.bf16.msra.mxu1 %v2113_v47  ;;  %v3173_v30 = vld [vmem:[%s19745_s10 + $0x8] sm:$0xff] }
 0x218   : > { %13900 = vmatprep.subr.bf16.mxu0 %v19785_v29  ;;  %13756 = vmatprep.subr.bf16.mxu1 %v19785_v29 }
 0x21a   : > { %13745 = vmatmul.mubr.msk.bf16.gmra.mrb[36].mxu1 %vm1643_vm1, %v15738_v56  ;;  %13889 = vmatmul.mubr.msk.bf16.gmra.mrb[44].mxu0 %vm1643_vm1, %v15735_v57  ;;  %v3182_v57 = vld [vmem:[%s19745_s10 + $0x50] sm:$0xff] }
 0x21b   : > { %13901 = vmatpush3.bf16.msra.mxu0 %v16540_v38  ;;  %13748 = vmatprep.mubr.msk.bf16.mxu1 %vm16000_vm0, %v19785_v29  ;;  %v15739_v38 = vld [vmem:[%s19800_s28 + $0x70] sm:$0xff]  }
 0x21c   : > { %13892 = vmatprep.mubr.msk.bf16.mxu0 %vm16000_vm0, %v19785_v29  ;;  %13757 = vmatpush3.bf16.msra.mxu1 %v2115_v63 }
 0x21d   : > { %13770 = vmatprep.subr.bf16.mxu1 %v19785_v29  ;;  %13914 = vmatprep.subr.bf16.mxu0 %v19785_v29 }
 0x21e   : > { %3191 = vperm.xlu0 %15568, %v3173_v30  }
 0x222   : > { %13749 = vmatmul.mubr.msk.bf16.gmra.mrb[40].mxu1 %vm1643_vm1, %v15739_v38  ;;  %13893 = vmatmul.mubr.msk.bf16.gmra.mrb[48].mxu0 %vm1643_vm1, %v15736_v5  ;;  %v2954_v5 = vpop.permute.xlu1 %2953 }
 0x223   : > { %13758 = vmatprep.mubr.msk.bf16.mxu1 %vm16000_vm0, %v19785_v29  ;;  %13902 = vmatprep.mubr.msk.bf16.mxu0 %vm16000_vm0, %v19785_v29 }
 0x224   : > { %3117 = vperm.xlu0 %15568, %v3091_v2  }
 0x226   : > { %v2958_v58 = vpop.permute.xlu1 %2957 }
 0x228   : > { %3201 = vperm.xlu0 %15568, %v3175_v9  }
 0x22a   : > { %13759 = vmatmul.mubr.msk.bf16.vlgmr.msra.gmra.mrb[32].mxu1 %vm1643_vm1, %v15740_v11  ;;  %13903 = vmatmul.mubr.msk.bf16.vlgmr.msra.gmra.mrb[40].mxu0 %vm1643_vm1, %v15737_v18 }
 0x22b   : > { %13771 = vmatpush3.bf16.msra.mxu1 %v16486_v59  ;;  %13915 = vmatpush3.bf16.msra.mxu0 %v2816_v12  ;;  %v2818_v59 = vpop.permute.xlu0 %2817 }
 0x22c   : > { %13772 = vmatprep.subr.bf16.mxu1 %v19785_v29  ;;  %13762 = vmatprep.mubr.msk.bf16.mxu1 %vm16000_vm0, %v19785_v29 }
 0x22d   : > { %13906 = vmatprep.mubr.msk.bf16.mxu0 %vm16000_vm0, %v19785_v29  ;;  %13916 = vmatprep.subr.bf16.mxu0 %v19785_v29 }
 0x22e   : > { %3127 = vperm.xlu0 %15568, %v3093_v13  }
 0x22f   : > { %13773 = vmatpush3.bf16.msra.mxu1 %v16496_v7  ;;  %13917 = vmatpush3.bf16.msra.mxu0 %v2818_v59  ;;  %v3176_v7 = vld [vmem:[%s19745_s10 + $0x20] sm:$0xff]  ;;  %v2311_v37 = vpop.permute.xlu0 %2310 }
 0x230   : > { %13774 = vmatprep.subr.bf16.mxu1 %v19785_v29  ;;  %13918 = vmatprep.subr.bf16.mxu0 %v19785_v29 }
 0x231   : > { %3206 = vperm.xlu1 %15569, %v3176_v7  }
 0x232   : > { %13763 = vmatmul.mubr.msk.bf16.gmra.mrb[36].mxu1 %vm1643_vm1, %v15741_v17  ;;  %13907 = vmatmul.mubr.msk.bf16.gmra.mrb[44].mxu0 %vm1643_vm1, %v15738_v56 }
 0x233   : > { %13775 = vmatpush3.bf16.msra.mxu1 %v16510_v19  ;;  %13766 = vmatprep.mubr.msk.bf16.mxu1 %vm16000_vm0, %v19785_v29  ;;  %v15742_v19 = vld [vmem:[%s19800_s28 + $0x88] sm:$0xff]   ;;  %v2315_v49 = vpop.permute.xlu0 %2314 }
 0x234   : > { %13910 = vmatprep.mubr.msk.bf16.mxu0 %vm16000_vm0, %v19785_v29  ;;  %13919 = vmatpush3.bf16.msra.mxu0 %v2820_v20 }
 0x235   : > { %13788 = vmatprep.subr.bf16.mxu1 %v19785_v29  ;;  %13932 = vmatprep.subr.bf16.mxu0 %v19785_v29 }
 0x236   : > { %3211 = vperm.xlu0 %15568, %v3177_v21   ;;  %3132 = vperm.xlu1 %15569, %v3094_v15  }
 0x237   : > { %v2956_v18 = vpop.permute.xlu0 %2955 }
 0x23a   : > { %13767 = vmatmul.mubr.msk.bf16.gmra.mrb[40].mxu1 %vm1643_vm1, %v15742_v19  ;;  %13911 = vmatmul.mubr.msk.bf16.gmra.mrb[48].mxu0 %vm1643_vm1, %v15739_v38 }
 0x23b   : > { %13776 = vmatprep.mubr.msk.bf16.mxu1 %vm16000_vm0, %v19785_v29  ;;  %13920 = vmatprep.mubr.msk.bf16.mxu0 %vm16000_vm0, %v19785_v29 }
 0x23c   : > { %3137 = vperm.xlu0 %15568, %v3095_v22   ;;  %3216 = vperm.xlu1 %15569, %v3178_v27  }
 0x240   : > { %3221 = vperm.xlu0 %15568, %v3179_v26   ;;  %3142 = vperm.xlu1 %15569, %v3096_v44  }
 0x242   : > { %13777 = vmatmul.mubr.msk.bf16.vlgmr.msra.gmra.mrb[32].mxu1 %vm1643_vm1, %v15743_v33  ;;  %13921 = vmatmul.mubr.msk.bf16.vlgmr.msra.gmra.mrb[40].mxu0 %vm1643_vm1, %v15740_v11 }
 0x243   : > { %13789 = vmatpush3.bf16.msra.mxu1 %v2311_v37  ;;  %13933 = vmatpush3.bf16.msra.mxu0 %v16522_v25  ;;  %v15744_v25 = vld [vmem:[%s19800_s28 + $0x98] sm:$0xff]  }
 0x244   : > { %13790 = vmatprep.subr.bf16.mxu1 %v19785_v29  ;;  %13934 = vmatprep.subr.bf16.mxu0 %v19785_v29 }
 0x245   : > { %13780 = vmatprep.mubr.msk.bf16.mxu1 %vm16000_vm0, %v19785_v29  ;;  %13924 = vmatprep.mubr.msk.bf16.mxu0 %vm16000_vm0, %v19785_v29 }
 0x246   : > { %3147 = vperm.xlu0 %15568, %v3097_v39  }
 0x247   : > { %13791 = vmatpush3.bf16.msra.mxu1 %v2313_v45  ;;  %13935 = vmatpush3.bf16.msra.mxu0 %v16532_v32  ;;  %v3180_v32 = vld [vmem:[%s19745_s10 + $0x40] sm:$0xff] }
 0x248   : > { %13792 = vmatprep.subr.bf16.mxu1 %v19785_v29  ;;  %13936 = vmatprep.subr.bf16.mxu0 %v19785_v29 }
 0x249   : > { %3226 = vperm.xlu1 %15569, %v3180_v32  }
 0x24a   : > { %13781 = vmatmul.mubr.msk.bf16.gmra.mrb[36].mxu1 %vm1643_vm1, %v15744_v25  ;;  %13925 = vmatmul.mubr.msk.bf16.gmra.mrb[44].mxu0 %vm1643_vm1, %v15741_v17 }
 0x24b   : > { %13793 = vmatpush3.bf16.msra.mxu1 %v2315_v49  ;;  %13937 = vmatpush3.bf16.msra.mxu0 %v16542_v42  ;;  %v15745_v42 = vld [vmem:[%s19800_s28 + $0xa0] sm:$0xff]  }
 0x24c   : > { %13784 = vmatprep.mubr.msk.bf16.mxu1 %vm16000_vm0, %v19785_v29  ;;  %13928 = vmatprep.mubr.msk.bf16.mxu0 %vm16000_vm0, %v19785_v29 }
 0x24d   : > { %13950 = vmatprep.subr.bf16.mxu0 %v19785_v29  ;;  %13806 = vmatprep.subr.bf16.mxu1 %v19785_v29 }
 0x24e   : > { %3231 = vperm.xlu0 %15568, %v3181_v50   ;;  %3152 = vperm.xlu1 %15569, %v3098_v40  }
 0x252   : > { %13785 = vmatmul.mubr.msk.bf16.gmra.mrb[40].mxu1 %vm1643_vm1, %v15745_v42  ;;  %13929 = vmatmul.mubr.msk.bf16.gmra.mrb[48].mxu0 %vm1643_vm1, %v15742_v19 }
 0x253   : > { %13794 = vmatprep.mubr.msk.bf16.mxu1 %vm16000_vm0, %v19785_v29  ;;  %13938 = vmatprep.mubr.msk.bf16.mxu0 %vm16000_vm0, %v19785_v29 }
 0x254   : > { %3157 = vperm.xlu0 %15568, %v3099_v51   ;;  %3236 = vperm.xlu1 %15569, %v3182_v57  }
 0x258   : > { %3241 = vperm.xlu0 %15568, %v3183_v53   ;;  %v3108_v43 = vpop.permute.xlu1 %3107 }
 0x25a   : > { %13795 = vmatmul.mubr.msk.bf16.vlgmr.msra.gmra.mrb[32].mxu1 %vm1643_vm1, %v15746_v41  ;;  %13939 = vmatmul.mubr.msk.bf16.vlgmr.msra.gmra.mrb[40].mxu0 %vm1643_vm1, %v15743_v33 }
 0x25b   : > { %13951 = vmatpush3.bf16.msra.mxu0 %v2954_v5  ;;  %13807 = vmatpush3.bf16.msra.mxu1 %v1577_v60  ;;  %v15748_v60 = vld [vmem:[%s19800_s28 + $0xb8] sm:$0xff]  }
 0x25c   : > { %13952 = vmatprep.subr.bf16.mxu0 %v19785_v29  ;;  %13798 = vmatprep.mubr.msk.bf16.mxu1 %vm16000_vm0, %v19785_v29  ;;  %v3187_v34 = vpop.permute.xlu1 %3186 }
 0x25d   : > { %13942 = vmatprep.mubr.msk.bf16.mxu0 %vm16000_vm0, %v19785_v29  ;;  %13808 = vmatprep.subr.bf16.mxu1 %v19785_v29 }
 0x25f   : > { %13953 = vmatpush3.bf16.msra.mxu0 %v2956_v18  ;;  %13809 = vmatpush3.bf16.msra.mxu1 %v1582_v8  ;;  %v15757_v8 = vld [vmem:[%s19801_s1 + $0x14] ss:$8 sps:$4 sm:$0xff]  }
 0x260   : > { %13954 = vmatprep.subr.bf16.mxu0 %v19785_v29  ;;  %13810 = vmatprep.subr.bf16.mxu1 %v19785_v29 }
 0x262   : > { %13799 = vmatmul.mubr.msk.bf16.gmra.mrb[36].mxu1 %vm1643_vm1, %v15747_v52  ;;  %13943 = vmatmul.mubr.msk.bf16.gmra.mrb[44].mxu0 %vm1643_vm1, %v15744_v25 }
 0x263   : > { %13955 = vmatpush3.bf16.msra.mxu0 %v2958_v58  ;;  %13802 = vmatprep.mubr.msk.bf16.mxu1 %vm16000_vm0, %v19785_v29 }
 0x264   : > { %13946 = vmatprep.mubr.msk.bf16.mxu0 %vm16000_vm0, %v19785_v29  ;;  %13811 = vmatpush3.bf16.msra.mxu1 %v1587_v3  ;;  %v15751_v3 = vld [vmem:[%s19800_s28 + $0xd0] sm:$0xff]  }
 0x265   : > { %13968 = vmatprep.subr.bf16.mxu0 %v19785_v29  ;;  %3341 = vmatprep.subr.bf16.mxu1 %v15754_v54 }
 0x26a   : > { %13803 = vmatmul.mubr.msk.bf16.gmra.mrb[40].mxu1 %vm1643_vm1, %v15748_v60  ;;  %13947 = vmatmul.mubr.msk.bf16.gmra.mrb[48].mxu0 %vm1643_vm1, %v15745_v42 }
 0x26b   : > { %13812 = vmatprep.mubr.msk.bf16.mxu1 %vm16000_vm0, %v19785_v29  ;;  %13956 = vmatprep.mubr.msk.bf16.mxu0 %vm16000_vm0, %v19785_v29 }
 0x272   : > { %13813 = vmatmul.mubr.msk.bf16.vlgmr.msra.gmra.mrb[32].mxu1 %vm1643_vm1, %v15749_v0  ;;  %13957 = vmatmul.mubr.msk.bf16.vlgmr.msra.gmra.mrb[40].mxu0 %vm1643_vm1, %v15746_v41 }
 0x273   : > { %13969 = vmatpush3.bf16.msra.mxu0 %v1592_v31  ;;  %13816 = vmatprep.mubr.msk.bf16.mxu1 %vm16000_vm0, %v19785_v29  ;;  %v15763_v31 = vld [vmem:[%s19801_s1 + $0x34] ss:$8 sps:$4 sm:$0xff]  }
 0x274   : > { %13960 = vmatprep.mubr.msk.bf16.mxu0 %vm16000_vm0, %v19785_v29  ;;  %13970 = vmatprep.subr.bf16.mxu0 %v19785_v29 }
 0x275   : > { %3342 = vmatpush1.bf16.msra.mxu1 %v15752_v4 }
 0x276   : > { %3343 = vmatprep.subr.bf16.mxu1 %v15757_v8 }
 0x277   : > { %13971 = vmatpush3.bf16.msra.mxu0 %v1597_v48 }
 0x278   : > { %13972 = vmatprep.subr.bf16.mxu0 %v19785_v29 }
 0x279   : > { %3344 = vmatpush1.bf16.msra.mxu1 %v15755_v55 }
 0x27a   : > { %13817 = vmatmul.mubr.msk.bf16.gmra.mrb[36].mxu1 %vm1643_vm1, %v15750_v16  ;;  %13961 = vmatmul.mubr.msk.bf16.gmra.mrb[44].mxu0 %vm1643_vm1, %v15747_v52 }
 0x27b   : > { %13820 = vmatprep.mubr.msk.bf16.mxu1 %vm16000_vm0, %v19785_v29  ;;  %13964 = vmatprep.mubr.msk.bf16.mxu0 %vm16000_vm0, %v19785_v29 }
 0x27c   : > { %13973 = vmatpush3.bf16.msra.mxu0 %v1602_v35  ;;  %3345 = vmatprep.subr.bf16.mxu1 %v15760_v23  ;;  %v3113_v35 = vpop.permute.xlu1 %3112 }
 0x27d   : > { %13986 = vmatprep.subr.bf16.mxu0 %v19785_v29  ;;  %3346 = vmatpush1.bf16.msra.mxu1 %v15758_v28 }
 0x27e   : > { %3347 = vmatprep.subr.bf16.mxu1 %v15763_v31 }
 0x280   : > { %v3197_v56 = vpop.permute.xlu1 %3196 }
 0x281   : > { %3348 = vmatpush1.bf16.msra.mxu1 %v15761_v36 }
 0x282   : > { %13821 = vmatmul.mubr.msk.bf16.gmra.mrb[40].mxu1 %vm1643_vm1, %v15751_v3  ;;  %13965 = vmatmul.mubr.msk.bf16.gmra.mrb[48].mxu0 %vm1643_vm1, %v15748_v60 }
 0x283   : > { %13974 = vmatprep.mubr.msk.bf16.mxu0 %vm16000_vm0, %v19785_v29  ;;  %3373 = vmatprep.mubr.bf16.mxu1 %v19787_v61 }
 0x284   : > { %14148 = vmatprep.subr.bf16.mxu1 %v19785_v29  ;;  %v3123_v62 = vpop.permute.xlu1 %3122 }
 0x28a   : > { %13975 = vmatmul.mubr.msk.bf16.vlgmr.msra.gmra.mrb[40].mxu0 %vm1643_vm1, %v15749_v0 }
 0x28b   : > { %13978 = vmatprep.mubr.msk.bf16.mxu0 %vm16000_vm0, %v19785_v29 }
 0x292   : > { %13979 = vmatmul.mubr.msk.bf16.gmra.mrb[44].mxu0 %vm1643_vm1, %v15750_v16 }
 0x293   : > { %13982 = vmatprep.mubr.msk.bf16.mxu0 %vm16000_vm0, %v19785_v29 }
 0x295   : > { %v3103_v48 = vpop.permute.xlu0 %3102 }
 0x29a   : > { %13983 = vmatmul.mubr.msk.bf16.gmra.mrb[48].mxu0 %vm1643_vm1, %v15751_v3 }
 0x29b   : > { %13992 = vmatprep.mubr.msk.bf16.mxu0 %vm16000_vm0, %v19785_v29 }
 0x29d   : > { %v3192_v46 = vpop.permute.xlu0 %3191 }
 0x2a3   : > { %v3118_v47 = vpop.permute.xlu0 %3117 }
 0x2a7   : > { %v3202_v24 = vpop.permute.xlu0 %3201 }
 0x2ad   : > { %v3128_v38 = vpop.permute.xlu0 %3127 }
 0x2b0   : > { %v3207_v12 = vpop.permute.xlu1 %3206 }
 0x2b5   : > { %v3212_v59 = vpop.permute.xlu0 %3211  ;;  %v3133_v27 = vpop.permute.xlu1 %3132 }
 0x2bb   : > { %v3138_v37 = vpop.permute.xlu0 %3137  ;;  %v3217_v32 = vpop.permute.xlu1 %3216 }
 0x2bf   : > { %v3222_v57 = vpop.permute.xlu0 %3221  ;;  %v3143_v52 = vpop.permute.xlu1 %3142 }
 0x2c5   : > { %v3148_v4 = vpop.permute.xlu0 %3147 }
 0x2c8   : > { %v3227_v28 = vpop.permute.xlu1 %3226 }
 0x345   : > { %v2456_v63 = vpop.f32.mrb[32].mxu1 }
 0x346   : > { %v3160_v30 = vmul.f32 %v3103_v48, %v2456_v63  ;;  %v13814_v1 = vpop.f32.mrb[33].mxu1  ;;  %v3153_v63 = vpop.permute.xlu1 %3152 }
 0x347   : > { %v2459_v2 = vpop.f32.mrb[34].mxu1 }
 0x348   : > { %v3244_v6 = vadd.f32 %v3187_v34, %v3160_v30  ;;  %v3161_v9 = vmul.f32 %v3108_v43, %v2459_v2  ;;  %v13815_v10 = vpop.f32.mrb[35].mxu1  ;;  %v3232_v43 = vpop.permute.xlu0 %3231 }
 0x34a   : > { %v3245_v11 = vadd.f32 %v3192_v46, %v3161_v9  ;;  %v3256_v13 = vmax.f32 %v3244_v6, 0.0 }
 0x34c   : > { %v3257_v14 = vmax.f32 %v3245_v11, 0.0  ;;  %v3158_v1 = vpop.permute.xlu0 %3157 }
 0x34d   : > { %v2464_v17 = vpop.f32.mrb[36].mxu1 }
 0x34e   : > { %v3268_v20 = vpack.c.bf16 %v3257_v14, %v3256_v13  ;;  %v3162_v21 = vmul.f32 %v3113_v35, %v2464_v17  ;;  %v13818_v7 = vpop.f32.mrb[37].mxu1 }
 0x34f   : > { %v2467_v19 = vpop.f32.mrb[38].mxu1 }
 0x350   : > { %v3246_v22 = vadd.f32 %v3197_v56, %v3162_v21  ;;  %v3163_v15 = vmul.f32 %v3118_v47, %v2467_v19  ;;  %v13819_v26 = vpop.f32.mrb[39].mxu1  ;;  %12573 = vmatmul.mubr.msk.bf16.vlgmr.msra.gmra.mrb[44].mxu1 %vm3322_vm2, %v3268_v20  ;;  %v3242_v20 = vpop.permute.xlu0 %3241 }
 0x351   : > { %3383 = vmatprep.mubr.bf16.mxu1 %v19787_v61 }
 0x352   : > { %v3247_v33 = vadd.f32 %v3202_v24, %v3163_v15  ;;  %v3258_v39 = vmax.f32 %v3246_v22, 0.0 }
 0x354   : > { %v3259_v44 = vmax.f32 %v3247_v33, 0.0 }
 0x355   : > { %v2472_v45 = vpop.f32.mrb[40].mxu1 }
 0x356   : > { %v3269_v25 = vpack.c.bf16 %v3259_v44, %v3258_v39  ;;  %v3164_v49 = vmul.f32 %v3123_v62, %v2472_v45  ;;  %v13822_v50 = vpop.f32.mrb[41].mxu1 }
 0x357   : > { %v2475_v42 = vpop.f32.mrb[42].mxu1 }
 0x358   : > { %v3248_v51 = vadd.f32 %v3207_v12, %v3164_v49  ;;  %v3165_v40 = vmul.f32 %v3128_v38, %v2475_v42  ;;  %v13823_v53 = vpop.f32.mrb[43].mxu1  ;;  %12574 = vmatmul.mubr.msk.bf16.gmra.mrb[48].mxu1 %vm3322_vm2, %v3269_v25  ;;  %v3237_v12 = vpop.permute.xlu1 %3236 }
 0x359   : > { %3393 = vmatprep.mubr.bf16.mxu1 %v19787_v61 }
 0x35a   : > { %v3249_v41 = vadd.f32 %v3212_v59, %v3165_v40  ;;  %v3260_v5 = vmax.f32 %v3248_v51, 0.0 }
 0x35c   : > { %v3261_v18 = vmax.f32 %v3249_v41, 0.0 }
 0x35d   : > { %v3059_v54 = vpop.f32.mrb[40].mxu0 }
 0x35e   : > { %v3270_v58 = vpack.c.bf16 %v3261_v18, %v3260_v5  ;;  %v3166_v60 = vmul.f32 %v3133_v27, %v3059_v54  ;;  %v13976_v0 = vpop.f32.mrb[41].mxu0 }
 0x35f   : > { %v3062_v8 = vpop.f32.mrb[42].mxu0 }
 0x360   : > { %v3250_v55 = vadd.f32 %v3217_v32, %v3166_v60  ;;  %v3167_v16 = vmul.f32 %v3138_v37, %v3062_v8  ;;  %v13977_v3 = vpop.f32.mrb[43].mxu0  ;;  %12575 = vmatmul.mubr.msk.bf16.gmra.mrb[52].mxu1 %vm3322_vm2, %v3270_v58 }
 0x361   : > { %3403 = vmatprep.mubr.bf16.mxu1 %v19787_v61 }
 0x362   : > { %v3251_v23 = vadd.f32 %v3222_v57, %v3167_v16  ;;  %v3262_v31 = vmax.f32 %v3250_v55, 0.0 }
 0x364   : > { %v3263_v36 = vmax.f32 %v3251_v23, 0.0 }
 0x365   : > { %v3067_v48 = vpop.f32.mrb[44].mxu0 }
 0x366   : > { %v3271_v34 = vpack.c.bf16 %v3263_v36, %v3262_v31  ;;  %v3168_v46 = vmul.f32 %v3143_v52, %v3067_v48  ;;  %v13980_v35 = vpop.f32.mrb[45].mxu0 }
 0x367   : > { %v3070_v47 = vpop.f32.mrb[46].mxu0  ;;  %v12728_v35 = vld [vmem:[%s19745_s10 + $0xa0] sm:$0xff] }
 0x368   : > { %v3252_v56 = vadd.f32 %v3227_v28, %v3168_v46  ;;  %v3169_v24 = vmul.f32 %v3148_v4, %v3070_v47  ;;  %v13981_v62 = vpop.f32.mrb[47].mxu0  ;;  %12576 = vmatmul.mubr.msk.bf16.gmra.mrb[56].mxu1 %vm3322_vm2, %v3271_v34  ;;  %v12716_v34 = vld [vmem:[%s19744_s9 + $0xa0] sm:$0xff] }
 0x369   : > { %3413 = vmatprep.mubr.bf16.mxu1 %v19787_v61  ;;  %v12708_v46 = vld [vmem:[%s19744_s9 + $0x60] sm:$0xff] }
 0x36a   : > { %v3253_v30 = vadd.f32 %v3232_v43, %v3169_v24  ;;  %v3264_v38 = vmax.f32 %v3252_v56, 0.0  ;;  %v12712_v47 = vld [vmem:[%s19744_s9 + $0x80] sm:$0xff]  ;;  %v12714_v56 = vld [vmem:[%s19744_s9 + $0x90] sm:$0xff] }
 0x36b   : > { %v12720_v24 = vld [vmem:[%s19745_s10 + $0x60] sm:$0xff] }
 0x36c   : > { %v3265_v2 = vmax.f32 %v3253_v30, 0.0  ;;  %v12724_v62 = vld [vmem:[%s19745_s10 + $0x80] sm:$0xff] }
 0x36d   : > { %v3075_v6 = vpop.f32.mrb[48].mxu0 }
 0x36e   : > { %v3272_v9 = vpack.c.bf16 %v3265_v2, %v3264_v38  ;;  %v3170_v10 = vmul.f32 %v3153_v63, %v3075_v6  ;;  %v13984_v11 = vpop.f32.mrb[49].mxu0  ;;  %v12717_v63 = vld [vmem:[%s19744_s9 + $0xa8] sm:$0xff]  ;;  %v12710_v2 = vld [vmem:[%s19744_s9 + $0x70] sm:$0xff] }
 0x36f   : > { %v3078_v13 = vpop.f32.mrb[50].mxu0  ;;  %v12709_v38 = vld [vmem:[%s19744_s9 + $0x68] sm:$0xff] }
 0x370   : > { %v3254_v14 = vadd.f32 %v3237_v12, %v3170_v10  ;;  %v3171_v59 = vmul.f32 %v3158_v1, %v3078_v13  ;;  %v13985_v17 = vpop.f32.mrb[51].mxu0  ;;  %12577 = vmatmul.mubr.msk.bf16.gmra.mrb[60].mxu1 %vm3322_vm2, %v3272_v9  ;;  %v12726_v1 = vld [vmem:[%s19745_s10 + $0x90] sm:$0xff]  ;;  %v12729_v6 = vld [vmem:[%s19745_s10 + $0xa8] sm:$0xff]  ;;  %v12715_v13 = vld [vmem:[%s19744_s9 + $0x98] sm:$0xff] }
 0x371   : > { %3423 = vmatprep.mubr.bf16.mxu1 %v19787_v61  ;;  %v12718_v10 = vld [vmem:[%s19744_s9 + $0xb0] sm:$0xff]  ;;  %v12713_v11 = vld [vmem:[%s19744_s9 + $0x88] sm:$0xff] }
 0x372   : > { %v3255_v21 = vadd.f32 %v3242_v20, %v3171_v59  ;;  %v3266_v7 = vmax.f32 %v3254_v14, 0.0  ;;  %v12722_v12 = vld [vmem:[%s19745_s10 + $0x70] sm:$0xff]  ;;  %v15764_v59 = vld [vmem:[%s19802_s6 + $0x18] sm:$0xff]   ;;  %v12721_v20 = vld [vmem:[%s19745_s10 + $0x68] sm:$0xff] }
 0x373   : > { %v12730_v17 = vld [vmem:[%s19745_s10 + $0xb0] sm:$0xff] }
 0x374   : > { %v3267_v19 = vmax.f32 %v3255_v21, 0.0  ;;  %v12725_v21 = vld [vmem:[%s19745_s10 + $0x88] sm:$0xff] }
 0x376   : > { %v3273_v22 = vpack.c.bf16 %v3267_v19, %v3266_v7  ;;  %v15765_v19 = vld [vmem:[%s19802_s6 + $0x20] sm:$0xff]  }
 0x378   : > { %12578 = vmatmul.mubr.msk.bf16.gmra.mrb[64].mxu1 %vm3322_vm2, %v3273_v22  ;;  %v12727_v22 = vld [vmem:[%s19745_s10 + $0x98] sm:$0xff] }
 0x379   : > { %14154 = vmatprep.mubr.msk.bf16.mxu1 %vm16000_vm0, %v19785_v29 }
 0x423   : > { %v3375_v15 = vpop.f32.mrb[44].mxu1 }
 0x424   : > { %v17045_v26 = vpop.f32.mrb[45].mxu1 }
 0x425   : > { %v3379_v27 = vpop.f32.mrb[46].mxu1 }
 0x426   : > { %v17047_v33 = vpack.c.bf16 %v3379_v27, %v3375_v15  ;;  %v17049_v37 = vpop.f32.mrb[47].mxu1  ;;  %v12711_v15 = vld [vmem:[%s19744_s9 + $0x78] sm:$0xff] }
 0x427   : > { %v3435_v39 = vpack.c.bf16 %v17049_v37, %v17045_v26  ;;  %v15787_v37 = vld [vmem:[%s19802_s6 + $0xb8] sm:$0xff]  }
 0x428   : > { %3477 = vrot.lane.b32.xlu1 %v17047_v33, %s19766_s25 }
 0x42b   : > { %v3385_v44 = vpop.f32.mrb[48].mxu1 }
 0x42c   : > { %v17055_v45 = vpop.f32.mrb[49].mxu1 }
 0x42d   : > { %v3389_v25 = vpop.f32.mrb[50].mxu1 }
 0x42e   : > { %v17057_v49 = vpack.c.bf16 %v3389_v25, %v3385_v44  ;;  %v17059_v50 = vpop.f32.mrb[51].mxu1  ;;  %v12719_v44 = vld [vmem:[%s19744_s9 + $0xb8] sm:$0xff] }
 0x42f   : > { %v3437_v32 = vpack.c.bf16 %v17059_v50, %v17055_v45  ;;  %v12723_v25 = vld [vmem:[%s19745_s10 + $0x78] sm:$0xff]  ;;  %v15789_v45 = vld [vmem:[%s19802_s6 + $0xc8] sm:$0xff]   ;;  %v15790_v50 = vld [vmem:[%s19802_s6 + $0xd0] sm:$0xff]  }
 0x430   : > { %3479 = vrot.lane.b32.xlu1 %v17057_v49, %s19766_s25 }
 0x433   : > { %v3395_v42 = vpop.f32.mrb[52].mxu1 }
 0x434   : > { %v17065_v51 = vpop.f32.mrb[53].mxu1 }
 0x435   : > { %v3399_v40 = vpop.f32.mrb[54].mxu1 }
 0x436   : > { %v17067_v53 = vpack.c.bf16 %v3399_v40, %v3395_v42  ;;  %v17069_v57 = vpop.f32.mrb[55].mxu1  ;;  %v15767_v40 = vld [vmem:[%s19802_s6] sm:$0xff]  }
 0x437   : > { %v3439_v41 = vpack.c.bf16 %v17069_v57, %v17065_v51 }
 0x438   : > { %3481 = vrot.lane.b32.xlu1 %v17067_v53, %s19766_s25 }
 0x43b   : > { %v3405_v5 = vpop.f32.mrb[56].mxu1 }
 0x43c   : > { %3655 = vrot.lane.b32.xlu1 %v17047_v33, %s19774_s7  ;;  %v17077_v18 = vpop.f32.mrb[57].mxu1 }
 0x43d   : > { %v3409_v52 = vpop.f32.mrb[58].mxu1 }
 0x43e   : > { %v17079_v54 = vpack.c.bf16 %v3409_v52, %v3405_v5  ;;  %v17081_v58 = vpop.f32.mrb[59].mxu1  ;;  %v15768_v52 = vld [vmem:[%s19802_s6 + $0x8] sm:$0xff]  }
 0x43f   : > { %v3441_v60 = vpack.c.bf16 %v17081_v58, %v17077_v18 }
 0x440   : > { %3657 = vrot.lane.b32.xlu1 %v17057_v49, %s19774_s7  ;;  %4348 = vrot.lane.b32.xlu0 %v17079_v54, %s19766_s25 }
 0x443   : > { %v3415_v0 = vpop.f32.mrb[60].mxu1 }
 0x444   : > { %3659 = vrot.lane.b32.xlu1 %v17067_v53, %s19774_s7  ;;  %v17091_v4 = vpop.f32.mrb[61].mxu1 }
 0x445   : > { %v3419_v8 = vpop.f32.mrb[62].mxu1 }
 0x446   : > { %v17093_v55 = vpack.c.bf16 %v3419_v8, %v3415_v0  ;;  %v17095_v16 = vpop.f32.mrb[63].mxu1  ;;  %v15769_v0 = vld [vmem:[%s19802_s6 + $0x10] sm:$0xff]  }
 0x447   : > { %v3443_v3 = vpack.c.bf16 %v17095_v16, %v17091_v4 }
 0x448   : > { %3758 = vrot.lane.b32.xlu1 %v17047_v33, %s19768_s29  ;;  %4350 = vrot.lane.b32.xlu0 %v17093_v55, %s19766_s25 }
 0x44b   : > { %v3425_v23 = vpop.f32.mrb[64].mxu1 }
 0x44c   : > { %3760 = vrot.lane.b32.xlu1 %v17057_v49, %s19768_s29  ;;  %v17105_v28 = vpop.f32.mrb[65].mxu1 }
 0x44d   : > { %v3429_v31 = vpop.f32.mrb[66].mxu1 }
 0x44e   : > { %v17107_v36 = vpack.c.bf16 %v3429_v31, %v3425_v23  ;;  %v17109_v43 = vpop.f32.mrb[67].mxu1  ;;  %v15770_v23 = vld [vmem:[%s19802_s6 + $0x30] sm:$0xff]  }
 0x44f   : > { %v3445_v48 = vpack.c.bf16 %v17109_v43, %v17105_v28 }
 0x450   : > { %3762 = vrot.lane.b32.xlu1 %v17067_v53, %s19768_s29  ;;  %4352 = vrot.lane.b32.xlu0 %v17107_v36, %s19766_s25 }
 0x454   : > { %3861 = vrot.lane.b32.xlu1 %v17047_v33, %s19772_s27  ;;  %4471 = vrot.lane.b32.xlu0 %v17079_v54, %s19774_s7 }
 0x458   : > { %3863 = vrot.lane.b32.xlu1 %v17057_v49, %s19772_s27  ;;  %4473 = vrot.lane.b32.xlu0 %v17093_v55, %s19774_s7 }
 0x45c   : > { %3865 = vrot.lane.b32.xlu1 %v17067_v53, %s19772_s27  ;;  %4475 = vrot.lane.b32.xlu0 %v17107_v36, %s19774_s7  ;;  %s19803_s7 = smov 96  }
 0x460   : > { %3964 = vrot.lane.b32.xlu1 %v17047_v33, %s19770_s3  ;;  %4543 = vrot.lane.b32.xlu0 %v17079_v54, %s19768_s29 }
 0x464   : > { %3966 = vrot.lane.b32.xlu1 %v17057_v49, %s19770_s3  ;;  %4545 = vrot.lane.b32.xlu0 %v17093_v55, %s19768_s29 }
 0x468   : > { %3968 = vrot.lane.b32.xlu1 %v17067_v53, %s19770_s3  ;;  %4547 = vrot.lane.b32.xlu0 %v17107_v36, %s19768_s29  ;;  %s19811_s29 = smov 16  }
 0x46c   : > { %4067 = vrot.lane.b32.xlu1 %v17047_v33, %s19776_s4  ;;  %4615 = vrot.lane.b32.xlu0 %v17079_v54, %s19772_s27 }
 0x470   : > { %4069 = vrot.lane.b32.xlu1 %v17057_v49, %s19776_s4  ;;  %4617 = vrot.lane.b32.xlu0 %v17093_v55, %s19772_s27 }
 0x474   : > { %4071 = vrot.lane.b32.xlu1 %v17067_v53, %s19776_s4  ;;  %4619 = vrot.lane.b32.xlu0 %v17107_v36, %s19772_s27  ;;  %s19804_s27 = smov 64  }
 0x478   : > { %4170 = vrot.lane.b32.xlu1 %v17047_v33, %s19782_s2  ;;  %4687 = vrot.lane.b32.xlu0 %v17079_v54, %s19770_s3 }
 0x47c   : > { %4172 = vrot.lane.b32.xlu1 %v17057_v49, %s19782_s2  ;;  %4689 = vrot.lane.b32.xlu0 %v17093_v55, %s19770_s3 }
 0x480   : > { %4174 = vrot.lane.b32.xlu1 %v17067_v53, %s19782_s2  ;;  %4691 = vrot.lane.b32.xlu0 %v17107_v36, %s19770_s3  ;;  %s19805_s3 = smov 80  }
 0x484   : > { %5021 = vperm.xlu1 %15569, %v12716_v34   ;;  %4759 = vrot.lane.b32.xlu0 %v17079_v54, %s19776_s4  ;;  %v15771_v34 = vld [vmem:[%s19802_s6 + $0x38] sm:$0xff]  }
 0x488   : > { %4981 = vperm.xlu1 %15569, %v12708_v46   ;;  %4761 = vrot.lane.b32.xlu0 %v17093_v55, %s19776_s4 }
 0x48c   : > { %5106 = vperm.xlu1 %15569, %v12728_v35   ;;  %4763 = vrot.lane.b32.xlu0 %v17107_v36, %s19776_s4 }
 0x490   : > { %5001 = vperm.xlu1 %15569, %v12712_v47   ;;  %4831 = vrot.lane.b32.xlu0 %v17079_v54, %s19782_s2  ;;  %v15772_v47 = vld [vmem:[%s19802_s6 + $0x40] sm:$0xff]  }
 0x494   : > { %5011 = vperm.xlu1 %15569, %v12714_v56   ;;  %4833 = vrot.lane.b32.xlu0 %v17093_v55, %s19782_s2 }
 0x498   : > { %5066 = vperm.xlu1 %15569, %v12720_v24   ;;  %4835 = vrot.lane.b32.xlu0 %v17107_v36, %s19782_s2 }
 0x49a   : > { %v3478_v30 = vpop.permute.xlu1 %3477 }
 0x49b   : > { %13987 = vmatpush3.bf16.msra.mxu0 %v3478_v30 }
 0x49c   : > { %5086 = vperm.xlu1 %15569, %v12724_v62   ;;  %5026 = vperm.xlu0 %15568, %v12717_v63   ;;  %v15773_v62 = vld [vmem:[%s19802_s6 + $0x48] sm:$0xff]  }
 0x49d   : > { %13988 = vmatprep.subr.bf16.mxu0 %v19785_v29 }
 0x4a0   : > { %5096 = vperm.xlu1 %15569, %v12726_v1   ;;  %4986 = vperm.xlu0 %15568, %v12709_v38   ;;  %v15774_v1 = vld [vmem:[%s19802_s6 + $0x50] sm:$0xff]  }
 0x4a2   : > { %v3480_v9 = vpop.permute.xlu1 %3479 }
 0x4a3   : > { %13989 = vmatpush3.bf16.msra.mxu0 %v3480_v9 }
 0x4a4   : > { %4991 = vperm.xlu1 %15569, %v12710_v2   ;;  %5111 = vperm.xlu0 %15568, %v12729_v6   ;;  %v15775_v6 = vld [vmem:[%s19802_s6 + $0x58] sm:$0xff]  }
 0x4a5   : > { %13990 = vmatprep.subr.bf16.mxu0 %v19785_v29 }
 0x4a8   : > { %5031 = vperm.xlu1 %15569, %v12718_v10   ;;  %5006 = vperm.xlu0 %15568, %v12713_v11   ;;  %v15776_v11 = vld [vmem:[%s19802_s6 + $0x60] sm:$0xff]  }
 0x4aa   : > { %v3482_v14 = vpop.permute.xlu1 %3481 }
 0x4ab   : > { %13991 = vmatpush3.bf16.msra.mxu0 %v3482_v14  ;;  %v15777_v14 = vld [vmem:[%s19802_s6 + $0x68] sm:$0xff]  }
 0x4ac   : > { %5076 = vperm.xlu1 %15569, %v12722_v12   ;;  %5016 = vperm.xlu0 %15568, %v12715_v13  }
 0x4ad   : > { %14004 = vmatprep.subr.bf16.mxu0 %v19785_v29 }
 0x4ae   : > { %13993 = vmatmul.mubr.msk.bf16.vlgmr.msra.gmra.mrb[52].mxu0 %vm1643_vm1, %v15764_v59 }
 0x4af   : > { %14005 = vmatpush3.bf16.msra.mxu0 %v17047_v33  ;;  %13996 = vmatprep.mubr.msk.bf16.mxu0 %vm16000_vm0, %v19785_v29  ;;  %v15766_v33 = vld [vmem:[%s19802_s6 + $0x28] sm:$0xff]  }
 0x4b0   : > { %5116 = vperm.xlu1 %15569, %v12730_v17   ;;  %5071 = vperm.xlu0 %15568, %v12721_v20   ;;  %v15778_v20 = vld [vmem:[%s19802_s6 + $0x70] sm:$0xff]  }
 0x4b1   : > { %14006 = vmatprep.subr.bf16.mxu0 %v19785_v29 }
 0x4b2   : > { %v4349_v7 = vpop.permute.xlu0 %4348 }
 0x4b3   : > { %14007 = vmatpush3.bf16.msra.mxu0 %v17057_v49  ;;  %14149 = vmatpush3.bf16.msra.mxu1 %v4349_v7  ;;  %v3656_v49 = vpop.permute.xlu1 %3655 }
 0x4b4   : > { %5091 = vperm.xlu0 %15568, %v12725_v21   ;;  %14008 = vmatprep.subr.bf16.mxu0 %v19785_v29 }
 0x4b5   : > { %14150 = vmatprep.subr.bf16.mxu1 %v19785_v29 }
 0x4b6   : > { %13997 = vmatmul.mubr.msk.bf16.gmra.mrb[56].mxu0 %vm1643_vm1, %v15765_v19 }
 0x4b7   : > { %14009 = vmatpush3.bf16.msra.mxu0 %v17067_v53  ;;  %14000 = vmatprep.mubr.msk.bf16.mxu0 %vm16000_vm0, %v19785_v29  ;;  %v12731_v53 = vld [vmem:[%s19745_s10 + $0xb8] sm:$0xff]  ;;  %v3658_v5 = vpop.permute.xlu1 %3657 }
 0x4b8   : > { %5101 = vperm.xlu0 %15568, %v12727_v22   ;;  %14022 = vmatprep.subr.bf16.mxu0 %v19785_v29 }
 0x4ba   : > { %v4351_v27 = vpop.permute.xlu0 %4350 }
 0x4bb   : > { %14151 = vmatpush3.bf16.msra.mxu1 %v4351_v27  ;;  %v15780_v27 = vld [vmem:[%s19802_s6 + $0x80] sm:$0xff]  }
 0x4bc   : > { %4996 = vperm.xlu0 %15568, %v12711_v15   ;;  %14152 = vmatprep.subr.bf16.mxu1 %v19785_v29 }
 0x4be   : > { %14001 = vmatmul.mubr.msk.bf16.gmra.mrb[60].mxu0 %vm1643_vm1, %v15766_v33 }
 0x4bf   : > { %14010 = vmatprep.mubr.msk.bf16.mxu0 %vm16000_vm0, %v19785_v29 }
 0x4c0   : > { %5036 = vperm.xlu0 %15568, %v12719_v44  }
 0x4c2   : > { %v4353_v42 = vpop.permute.xlu0 %4352 }
 0x4c3   : > { %14153 = vmatpush3.bf16.msra.mxu1 %v4353_v42 }
 0x4c4   : > { %5081 = vperm.xlu0 %15568, %v12723_v25   ;;  %14166 = vmatprep.subr.bf16.mxu1 %v19785_v29  ;;  %v15781_v25 = vld [vmem:[%s19802_s6 + $0x88] sm:$0xff]  }
 0x4c6   : > { %14011 = vmatmul.mubr.msk.bf16.vlgmr.msra.gmra.mrb[52].mxu0 %vm1643_vm1, %v15767_v40  ;;  %14155 = vmatmul.mubr.msk.bf16.vlgmr.msra.gmra.mrb[68].mxu1 %vm1643_vm1, %v15764_v59 }
 0x4c7   : > { %14023 = vmatpush3.bf16.msra.mxu0 %v3656_v49  ;;  %14167 = vmatpush3.bf16.msra.mxu1 %v17079_v54  ;;  %v3660_v54 = vpop.permute.xlu1 %3659 }
 0x4c8   : > { %5121 = vperm.xlu0 %15568, %v12731_v53   ;;  %14024 = vmatprep.subr.bf16.mxu0 %v19785_v29 }
 0x4c9   : > { %14168 = vmatprep.subr.bf16.mxu1 %v19785_v29  ;;  %14014 = vmatprep.mubr.msk.bf16.mxu0 %vm16000_vm0, %v19785_v29 }
 0x4ca   : > { %14158 = vmatprep.mubr.msk.bf16.mxu1 %vm16000_vm0, %v19785_v29 }
 0x4cb   : > { %14025 = vmatpush3.bf16.msra.mxu0 %v3658_v5  ;;  %14169 = vmatpush3.bf16.msra.mxu1 %v17093_v55  ;;  %v3759_v8 = vpop.permute.xlu1 %3758  ;;  %v4472_v55 = vpop.permute.xlu0 %4471 }
 0x4cc   : > { %14026 = vmatprep.subr.bf16.mxu0 %v19785_v29  ;;  %14170 = vmatprep.subr.bf16.mxu1 %v19785_v29 }
 0x4ce   : > { %14015 = vmatmul.mubr.msk.bf16.gmra.mrb[56].mxu0 %vm1643_vm1, %v15768_v52  ;;  %14159 = vmatmul.mubr.msk.bf16.gmra.mrb[72].mxu1 %vm1643_vm1, %v15765_v19  ;;  %v15779_v19 = vld [vmem:[%s19802_s6 + $0x78] sm:$0xff]  }
 0x4cf   : > { %14027 = vmatpush3.bf16.msra.mxu0 %v3660_v54  ;;  %14171 = vmatpush3.bf16.msra.mxu1 %v17107_v36  ;;  %v3761_v31 = vpop.permute.xlu1 %3760  ;;  %v4474_v36 = vpop.permute.xlu0 %4473 }
 0x4d0   : > { %14018 = vmatprep.mubr.msk.bf16.mxu0 %vm16000_vm0, %v19785_v29  ;;  %14162 = vmatprep.mubr.msk.bf16.mxu1 %vm16000_vm0, %v19785_v29 }
 0x4d1   : > { %14040 = vmatprep.subr.bf16.mxu0 %v19785_v29  ;;  %14184 = vmatprep.subr.bf16.mxu1 %v19785_v29 }
 0x4d3   : > { %v3763_v46 = vpop.permute.xlu1 %3762  ;;  %v4476_v35 = vpop.permute.xlu0 %4475 }
 0x4d6   : > { %14019 = vmatmul.mubr.msk.bf16.gmra.mrb[60].mxu0 %vm1643_vm1, %v15769_v0  ;;  %14163 = vmatmul.mubr.msk.bf16.gmra.mrb[76].mxu1 %vm1643_vm1, %v15766_v33 }
 0x4d7   : > { %14028 = vmatprep.mubr.msk.bf16.mxu0 %vm16000_vm0, %v19785_v29  ;;  %14172 = vmatprep.mubr.msk.bf16.mxu1 %vm16000_vm0, %v19785_v29  ;;  %v3862_v56 = vpop.permute.xlu1 %3861  ;;  %v4544_v24 = vpop.permute.xlu0 %4543 }
 0x4db   : > { %v3864_v63 = vpop.permute.xlu1 %3863  ;;  %v4546_v30 = vpop.permute.xlu0 %4545 }
 0x4de   : > { %14029 = vmatmul.mubr.msk.bf16.vlgmr.msra.gmra.mrb[52].mxu0 %vm1643_vm1, %v15770_v23  ;;  %14173 = vmatmul.mubr.msk.bf16.vlgmr.msra.gmra.mrb[68].mxu1 %vm1643_vm1, %v15767_v40  ;;  %v15782_v40 = vld [vmem:[%s19802_s6 + $0x90] sm:$0xff]  }
 0x4df   : > { %14041 = vmatpush3.bf16.msra.mxu0 %v3759_v8  ;;  %14185 = vmatpush3.bf16.msra.mxu1 %v4472_v55  ;;  %v3866_v38 = vpop.permute.xlu1 %3865  ;;  %v4548_v2 = vpop.permute.xlu0 %4547  ;;  %v15784_v8 = vld [vmem:[%s19802_s6 + $0xa0] sm:$0xff]  }
 0x4e0   : > { %14042 = vmatprep.subr.bf16.mxu0 %v19785_v29  ;;  %14186 = vmatprep.subr.bf16.mxu1 %v19785_v29 }
 0x4e1   : > { %14032 = vmatprep.mubr.msk.bf16.mxu0 %vm16000_vm0, %v19785_v29  ;;  %14176 = vmatprep.mubr.msk.bf16.mxu1 %vm16000_vm0, %v19785_v29 }
 0x4e3   : > { %14043 = vmatpush3.bf16.msra.mxu0 %v3761_v31  ;;  %14187 = vmatpush3.bf16.msra.mxu1 %v4474_v36  ;;  %v3965_v9 = vpop.permute.xlu1 %3964  ;;  %v4616_v10 = vpop.permute.xlu0 %4615  ;;  %v15786_v36 = vld [vmem:[%s19802_s6 + $0xb0] sm:$0xff]  }
 0x4e4   : > { %14044 = vmatprep.subr.bf16.mxu0 %v19785_v29  ;;  %14188 = vmatprep.subr.bf16.mxu1 %v19785_v29 }
 0x4e6   : > { %14033 = vmatmul.mubr.msk.bf16.gmra.mrb[56].mxu0 %vm1643_vm1, %v15771_v34  ;;  %14177 = vmatmul.mubr.msk.bf16.gmra.mrb[72].mxu1 %vm1643_vm1, %v15768_v52  ;;  %v15783_v52 = vld [vmem:[%s19802_s6 + $0x98] sm:$0xff]  }
 0x4e7   : > { %14045 = vmatpush3.bf16.msra.mxu0 %v3763_v46  ;;  %14189 = vmatpush3.bf16.msra.mxu1 %v4476_v35  ;;  %v3967_v12 = vpop.permute.xlu1 %3966  ;;  %v4618_v13 = vpop.permute.xlu0 %4617 }
 0x4e8   : > { %14036 = vmatprep.mubr.msk.bf16.mxu0 %vm16000_vm0, %v19785_v29  ;;  %14180 = vmatprep.mubr.msk.bf16.mxu1 %vm16000_vm0, %v19785_v29 }
 0x4e9   : > { %14058 = vmatprep.subr.bf16.mxu0 %v19785_v29  ;;  %14202 = vmatprep.subr.bf16.mxu1 %v19785_v29 }
 0x4eb   : > { %v3969_v59 = vpop.permute.xlu1 %3968  ;;  %v4620_v17 = vpop.permute.xlu0 %4619 }
 0x4ee   : > { %14037 = vmatmul.mubr.msk.bf16.gmra.mrb[60].mxu0 %vm1643_vm1, %v15772_v47  ;;  %14181 = vmatmul.mubr.msk.bf16.gmra.mrb[76].mxu1 %vm1643_vm1, %v15769_v0 }
 0x4ef   : > { %14046 = vmatprep.mubr.msk.bf16.mxu0 %vm16000_vm0, %v19785_v29  ;;  %14190 = vmatprep.mubr.msk.bf16.mxu1 %vm16000_vm0, %v19785_v29  ;;  %v4068_v21 = vpop.permute.xlu1 %4067  ;;  %v4688_v7 = vpop.permute.xlu0 %4687 }
 0x4f3   : > { %v4070_v22 = vpop.permute.xlu1 %4069  ;;  %v4690_v15 = vpop.permute.xlu0 %4689 }
 0x4f6   : > { %14047 = vmatmul.mubr.msk.bf16.vlgmr.msra.gmra.mrb[52].mxu0 %vm1643_vm1, %v15773_v62  ;;  %14191 = vmatmul.mubr.msk.bf16.vlgmr.msra.gmra.mrb[68].mxu1 %vm1643_vm1, %v15770_v23  ;;  %v15785_v23 = vld [vmem:[%s19802_s6 + $0xa8] sm:$0xff]  }
 0x4f7   : > { %14059 = vmatpush3.bf16.msra.mxu0 %v3862_v56  ;;  %14203 = vmatpush3.bf16.msra.mxu1 %v4544_v24  ;;  %v4072_v33 = vpop.permute.xlu1 %4071  ;;  %v4692_v44 = vpop.permute.xlu0 %4691 }
 0x4f8   : > { %14060 = vmatprep.subr.bf16.mxu0 %v19785_v29  ;;  %14204 = vmatprep.subr.bf16.mxu1 %v19785_v29 }
 0x4f9   : > { %14050 = vmatprep.mubr.msk.bf16.mxu0 %vm16000_vm0, %v19785_v29  ;;  %14194 = vmatprep.mubr.msk.bf16.mxu1 %vm16000_vm0, %v19785_v29 }
 0x4fb   : > { %14061 = vmatpush3.bf16.msra.mxu0 %v3864_v63  ;;  %14205 = vmatpush3.bf16.msra.mxu1 %v4546_v30  ;;  %v4171_v49 = vpop.permute.xlu1 %4170  ;;  %v4760_v42 = vpop.permute.xlu0 %4759 }
 0x4fc   : > { %14062 = vmatprep.subr.bf16.mxu0 %v19785_v29  ;;  %14206 = vmatprep.subr.bf16.mxu1 %v19785_v29 }
 0x4fe   : > { %14051 = vmatmul.mubr.msk.bf16.gmra.mrb[56].mxu0 %vm1643_vm1, %v15774_v1  ;;  %14195 = vmatmul.mubr.msk.bf16.gmra.mrb[72].mxu1 %vm1643_vm1, %v15771_v34 }
 0x4ff   : > { %14063 = vmatpush3.bf16.msra.mxu0 %v3866_v38  ;;  %14207 = vmatpush3.bf16.msra.mxu1 %v4548_v2  ;;  %v4173_v53 = vpop.permute.xlu1 %4172  ;;  %v4762_v5 = vpop.permute.xlu0 %4761 }
 0x500   : > { %14054 = vmatprep.mubr.msk.bf16.mxu0 %vm16000_vm0, %v19785_v29  ;;  %14198 = vmatprep.mubr.msk.bf16.mxu1 %vm16000_vm0, %v19785_v29 }
 0x501   : > { %14076 = vmatprep.subr.bf16.mxu0 %v19785_v29  ;;  %14220 = vmatprep.subr.bf16.mxu1 %v19785_v29 }
 0x503   : > { %v4175_v54 = vpop.permute.xlu1 %4174  ;;  %v4764_v0 = vpop.permute.xlu0 %4763 }
 0x506   : > { %14055 = vmatmul.mubr.msk.bf16.gmra.mrb[60].mxu0 %vm1643_vm1, %v15775_v6  ;;  %14199 = vmatmul.mubr.msk.bf16.gmra.mrb[76].mxu1 %vm1643_vm1, %v15772_v47 }
 0x507   : > { %14064 = vmatprep.mubr.msk.bf16.mxu0 %vm16000_vm0, %v19785_v29  ;;  %14208 = vmatprep.mubr.msk.bf16.mxu1 %vm16000_vm0, %v19785_v29  ;;  %v4832_v55 = vpop.permute.xlu0 %4831 }
 0x50b   : > { %v4834_v31 = vpop.permute.xlu0 %4833 }
 0x50e   : > { %14065 = vmatmul.mubr.msk.bf16.vlgmr.msra.gmra.mrb[52].mxu0 %vm1643_vm1, %v15776_v11  ;;  %14209 = vmatmul.mubr.msk.bf16.vlgmr.msra.gmra.mrb[68].mxu1 %vm1643_vm1, %v15773_v62 }
 0x50f   : > { %14077 = vmatpush3.bf16.msra.mxu0 %v3965_v9  ;;  %14221 = vmatpush3.bf16.msra.mxu1 %v4616_v10  ;;  %v4836_v26 = vpop.permute.xlu0 %4835 }
 0x510   : > { %14078 = vmatprep.subr.bf16.mxu0 %v19785_v29  ;;  %14222 = vmatprep.subr.bf16.mxu1 %v19785_v29 }
 0x511   : > { %14068 = vmatprep.mubr.msk.bf16.mxu0 %vm16000_vm0, %v19785_v29  ;;  %14212 = vmatprep.mubr.msk.bf16.mxu1 %vm16000_vm0, %v19785_v29 }
 0x513   : > { %14079 = vmatpush3.bf16.msra.mxu0 %v3967_v12  ;;  %14223 = vmatpush3.bf16.msra.mxu1 %v4618_v13 }
 0x514   : > { %14080 = vmatprep.subr.bf16.mxu0 %v19785_v29  ;;  %14224 = vmatprep.subr.bf16.mxu1 %v19785_v29 }
 0x516   : > { %14069 = vmatmul.mubr.msk.bf16.gmra.mrb[56].mxu0 %vm1643_vm1, %v15777_v14  ;;  %14213 = vmatmul.mubr.msk.bf16.gmra.mrb[72].mxu1 %vm1643_vm1, %v15774_v1 }
 0x517   : > { %14081 = vmatpush3.bf16.msra.mxu0 %v3969_v59  ;;  %14225 = vmatpush3.bf16.msra.mxu1 %v4620_v17 }
 0x518   : > { %14072 = vmatprep.mubr.msk.bf16.mxu0 %vm16000_vm0, %v19785_v29  ;;  %14216 = vmatprep.mubr.msk.bf16.mxu1 %vm16000_vm0, %v19785_v29 }
 0x519   : > { %14094 = vmatprep.subr.bf16.mxu0 %v19785_v29  ;;  %14238 = vmatprep.subr.bf16.mxu1 %v19785_v29 }
 0x51b   : > { %v17567_v51 = vpop.permute.xlu0 %5026 }
 0x51e   : > { %14073 = vmatmul.mubr.msk.bf16.gmra.mrb[60].mxu0 %vm1643_vm1, %v15778_v20  ;;  %14217 = vmatmul.mubr.msk.bf16.gmra.mrb[76].mxu1 %vm1643_vm1, %v15775_v6 }
 0x51f   : > { %14082 = vmatprep.mubr.msk.bf16.mxu0 %vm16000_vm0, %v19785_v29  ;;  %14226 = vmatprep.mubr.msk.bf16.mxu1 %vm16000_vm0, %v19785_v29 }
 0x526   : > { %14083 = vmatmul.mubr.msk.bf16.vlgmr.msra.gmra.mrb[52].mxu0 %vm1643_vm1, %v15779_v19  ;;  %14227 = vmatmul.mubr.msk.bf16.vlgmr.msra.gmra.mrb[68].mxu1 %vm1643_vm1, %v15776_v11 }
 0x527   : > { %14095 = vmatpush3.bf16.msra.mxu0 %v4068_v21  ;;  %14239 = vmatpush3.bf16.msra.mxu1 %v4688_v7 }
 0x528   : > { %14096 = vmatprep.subr.bf16.mxu0 %v19785_v29  ;;  %14240 = vmatprep.subr.bf16.mxu1 %v19785_v29 }
 0x529   : > { %14086 = vmatprep.mubr.msk.bf16.mxu0 %vm16000_vm0, %v19785_v29  ;;  %14230 = vmatprep.mubr.msk.bf16.mxu1 %vm16000_vm0, %v19785_v29 }
 0x52b   : > { %14097 = vmatpush3.bf16.msra.mxu0 %v4070_v22  ;;  %14241 = vmatpush3.bf16.msra.mxu1 %v4690_v15 }
 0x52c   : > { %14098 = vmatprep.subr.bf16.mxu0 %v19785_v29  ;;  %14242 = vmatprep.subr.bf16.mxu1 %v19785_v29 }
 0x52e   : > { %14087 = vmatmul.mubr.msk.bf16.gmra.mrb[56].mxu0 %vm1643_vm1, %v15780_v27  ;;  %14231 = vmatmul.mubr.msk.bf16.gmra.mrb[72].mxu1 %vm1643_vm1, %v15777_v14 }
 0x52f   : > { %14099 = vmatpush3.bf16.msra.mxu0 %v4072_v33  ;;  %14243 = vmatpush3.bf16.msra.mxu1 %v4692_v44 }
 0x530   : > { %14090 = vmatprep.mubr.msk.bf16.mxu0 %vm16000_vm0, %v19785_v29  ;;  %14234 = vmatprep.mubr.msk.bf16.mxu1 %vm16000_vm0, %v19785_v29 }
 0x531   : > { %14112 = vmatprep.subr.bf16.mxu0 %v19785_v29  ;;  %14256 = vmatprep.subr.bf16.mxu1 %v19785_v29 }
 0x536   : > { %14091 = vmatmul.mubr.msk.bf16.gmra.mrb[60].mxu0 %vm1643_vm1, %v15781_v25  ;;  %14235 = vmatmul.mubr.msk.bf16.gmra.mrb[76].mxu1 %vm1643_vm1, %v15778_v20 }
 0x537   : > { %14100 = vmatprep.mubr.msk.bf16.mxu0 %vm16000_vm0, %v19785_v29  ;;  %14244 = vmatprep.mubr.msk.bf16.mxu1 %vm16000_vm0, %v19785_v29 }
 0x53e   : > { %14101 = vmatmul.mubr.msk.bf16.vlgmr.msra.gmra.mrb[52].mxu0 %vm1643_vm1, %v15782_v40  ;;  %14245 = vmatmul.mubr.msk.bf16.vlgmr.msra.gmra.mrb[68].mxu1 %vm1643_vm1, %v15779_v19 }
 0x53f   : > { %14113 = vmatpush3.bf16.msra.mxu0 %v4171_v49  ;;  %14257 = vmatpush3.bf16.msra.mxu1 %v4760_v42 }
 0x540   : > { %14114 = vmatprep.subr.bf16.mxu0 %v19785_v29  ;;  %14258 = vmatprep.subr.bf16.mxu1 %v19785_v29 }
 0x541   : > { %14104 = vmatprep.mubr.msk.bf16.mxu0 %vm16000_vm0, %v19785_v29  ;;  %14248 = vmatprep.mubr.msk.bf16.mxu1 %vm16000_vm0, %v19785_v29 }
 0x543   : > { %14115 = vmatpush3.bf16.msra.mxu0 %v4173_v53  ;;  %14259 = vmatpush3.bf16.msra.mxu1 %v4762_v5 }
 0x544   : > { %14116 = vmatprep.subr.bf16.mxu0 %v19785_v29  ;;  %14260 = vmatprep.subr.bf16.mxu1 %v19785_v29 }
 0x546   : > { %14105 = vmatmul.mubr.msk.bf16.gmra.mrb[56].mxu0 %vm1643_vm1, %v15783_v52  ;;  %14249 = vmatmul.mubr.msk.bf16.gmra.mrb[72].mxu1 %vm1643_vm1, %v15780_v27 }
 0x547   : > { %14117 = vmatpush3.bf16.msra.mxu0 %v4175_v54  ;;  %14261 = vmatpush3.bf16.msra.mxu1 %v4764_v0 }
 0x548   : > { %14108 = vmatprep.mubr.msk.bf16.mxu0 %vm16000_vm0, %v19785_v29  ;;  %14252 = vmatprep.mubr.msk.bf16.mxu1 %vm16000_vm0, %v19785_v29 }
 0x549   : > { %14130 = vmatprep.subr.bf16.mxu0 %v19785_v29  ;;  %14274 = vmatprep.subr.bf16.mxu1 %v19785_v29 }
 0x54e   : > { %14109 = vmatmul.mubr.msk.bf16.gmra.mrb[60].mxu0 %vm1643_vm1, %v15784_v8  ;;  %14253 = vmatmul.mubr.msk.bf16.gmra.mrb[76].mxu1 %vm1643_vm1, %v15781_v25 }
 0x54f   : > { %14118 = vmatprep.mubr.msk.bf16.mxu0 %vm16000_vm0, %v19785_v29  ;;  %14262 = vmatprep.mubr.msk.bf16.mxu1 %vm16000_vm0, %v19785_v29 }
 0x556   : > { %14119 = vmatmul.mubr.msk.bf16.vlgmr.msra.gmra.mrb[52].mxu0 %vm1643_vm1, %v15785_v23  ;;  %14263 = vmatmul.mubr.msk.bf16.vlgmr.msra.gmra.mrb[68].mxu1 %vm1643_vm1, %v15782_v40 }
 0x557   : > { %14131 = vmatpush3.bf16.msra.mxu0 %v3435_v39  ;;  %14275 = vmatpush3.bf16.msra.mxu1 %v4832_v55  ;;  %v15788_v39 = vld [vmem:[%s19802_s6 + $0xc0] sm:$0xff]  }
 0x558   : > { %14132 = vmatprep.subr.bf16.mxu0 %v19785_v29  ;;  %14276 = vmatprep.subr.bf16.mxu1 %v19785_v29 }
 0x559   : > { %14122 = vmatprep.mubr.msk.bf16.mxu0 %vm16000_vm0, %v19785_v29  ;;  %14266 = vmatprep.mubr.msk.bf16.mxu1 %vm16000_vm0, %v19785_v29 }
 0x55b   : > { %14133 = vmatpush3.bf16.msra.mxu0 %v3437_v32  ;;  %14277 = vmatpush3.bf16.msra.mxu1 %v4834_v31  ;;  %v17565_v32 = vpop.permute.xlu1 %5021 }
 0x55c   : > { %14134 = vmatprep.subr.bf16.mxu0 %v19785_v29  ;;  %14278 = vmatprep.subr.bf16.mxu1 %v19785_v29 }
 0x55e   : > { %14123 = vmatmul.mubr.msk.bf16.gmra.mrb[56].mxu0 %vm1643_vm1, %v15786_v36  ;;  %14267 = vmatmul.mubr.msk.bf16.gmra.mrb[72].mxu1 %vm1643_vm1, %v15783_v52 }
 0x55f   : > { %14135 = vmatpush3.bf16.msra.mxu0 %v3439_v41  ;;  %14279 = vmatpush3.bf16.msra.mxu1 %v4836_v26  ;;  %v4982_v57 = vpop.permute.xlu1 %4981  ;;  %v4987_v41 = vpop.permute.xlu0 %4986 }
 0x560   : > { %14126 = vmatprep.mubr.msk.bf16.mxu0 %vm16000_vm0, %v19785_v29  ;;  %14270 = vmatprep.mubr.msk.bf16.mxu1 %vm16000_vm0, %v19785_v29 }
 0x561   : > { %14292 = vmatprep.subr.bf16.mxu1 %v19785_v29 }
 0x563   : > { %v17569_v18 = vpop.permute.xlu1 %5106  ;;  %v17571_v58 = vpop.permute.xlu0 %5111 }
 0x566   : > { %14127 = vmatmul.mubr.msk.bf16.gmra.mrb[60].mxu0 %vm1643_vm1, %v15787_v37  ;;  %14271 = vmatmul.mubr.msk.bf16.gmra.mrb[76].mxu1 %vm1643_vm1, %v15784_v8 }
 0x567   : > { %14136 = vmatprep.mubr.msk.bf16.mxu0 %vm16000_vm0, %v19785_v29  ;;  %14280 = vmatprep.mubr.msk.bf16.mxu1 %vm16000_vm0, %v19785_v29  ;;  %v5007_v4 = vpop.permute.xlu0 %5006 }
 0x56e   : > { %14137 = vmatmul.mubr.msk.bf16.vlgmr.msra.gmra.mrb[52].mxu0 %vm1643_vm1, %v15788_v39  ;;  %14281 = vmatmul.mubr.msk.bf16.vlgmr.msra.gmra.mrb[68].mxu1 %vm1643_vm1, %v15785_v23 }
 0x56f   : > { %14293 = vmatpush3.bf16.msra.mxu1 %v3441_v60  ;;  %14140 = vmatprep.mubr.msk.bf16.mxu0 %vm16000_vm0, %v19785_v29  ;;  %v5002_v60 = vpop.permute.xlu1 %5001 }
 0x570   : > { %14294 = vmatprep.subr.bf16.mxu1 %v19785_v29  ;;  %14284 = vmatprep.mubr.msk.bf16.mxu1 %vm16000_vm0, %v19785_v29 }
 0x573   : > { %14295 = vmatpush3.bf16.msra.mxu1 %v3443_v3  ;;  %v5012_v16 = vpop.permute.xlu1 %5011  ;;  %v5017_v3 = vpop.permute.xlu0 %5016 }
 0x574   : > { %14296 = vmatprep.subr.bf16.mxu1 %v19785_v29 }
 0x576   : > { %14141 = vmatmul.mubr.msk.bf16.gmra.mrb[56].mxu0 %vm1643_vm1, %v15789_v45  ;;  %14285 = vmatmul.mubr.msk.bf16.gmra.mrb[72].mxu1 %vm1643_vm1, %v15786_v36 }
 0x577   : > { %14297 = vmatpush3.bf16.msra.mxu1 %v3445_v48  ;;  %14144 = vmatprep.mubr.msk.bf16.mxu0 %vm16000_vm0, %v19785_v29  ;;  %v5067_v34 = vpop.permute.xlu1 %5066  ;;  %v5072_v24 = vpop.permute.xlu0 %5071 }
 0x578   : > { %14288 = vmatprep.mubr.msk.bf16.mxu1 %vm16000_vm0, %v19785_v29 }
 0x57b   : > { %v5087_v9 = vpop.permute.xlu1 %5086  ;;  %v5092_v11 = vpop.permute.xlu0 %5091 }
 0x57e   : > { %14145 = vmatmul.mubr.msk.bf16.gmra.mrb[60].mxu0 %vm1643_vm1, %v15790_v50  ;;  %14289 = vmatmul.mubr.msk.bf16.gmra.mrb[76].mxu1 %vm1643_vm1, %v15787_v37 }
 0x57f   : > { %14298 = vmatprep.mubr.msk.bf16.mxu1 %vm16000_vm0, %v19785_v29  ;;  %5409 = vmatprep.mubr.bf16.mxu0 %v19787_v61  ;;  %v5097_v13 = vpop.permute.xlu1 %5096  ;;  %v5102_v17 = vpop.permute.xlu0 %5101 }
 0x583   : > { %v4992_v15 = vpop.permute.xlu1 %4991  ;;  %v4997_v44 = vpop.permute.xlu0 %4996 }
 0x586   : > { %14299 = vmatmul.mubr.msk.bf16.vlgmr.msra.gmra.mrb[68].mxu1 %vm1643_vm1, %v15788_v39 }
 0x587   : > { %14302 = vmatprep.mubr.msk.bf16.mxu1 %vm16000_vm0, %v19785_v29  ;;  %v5032_v8 = vpop.permute.xlu1 %5031  ;;  %v5037_v55 = vpop.permute.xlu0 %5036 }
 0x58e   : > { %14303 = vmatmul.mubr.msk.bf16.gmra.mrb[72].mxu1 %vm1643_vm1, %v15789_v45 }
 0x58f   : > { %14306 = vmatprep.mubr.msk.bf16.mxu1 %vm16000_vm0, %v19785_v29 }
 0x596   : > { %14307 = vmatmul.mubr.msk.bf16.gmra.mrb[76].mxu1 %vm1643_vm1, %v15790_v50 }
 0x641   : > { %v4316_v28 = vpop.f32.mrb[52].mxu0 }
 0x642   : > { %v5039_v43 = vmul.f32 %v4982_v57, %v4316_v28  ;;  %v14138_v48 = vpop.f32.mrb[53].mxu0 }
 0x643   : > { %v4319_v46 = vpop.f32.mrb[54].mxu0 }
 0x644   : > { %v5124_v35 = vadd.f32 %v5067_v34, %v5039_v43  ;;  %v5040_v47 = vmul.f32 %v4987_v41, %v4319_v46  ;;  %v14139_v56 = vpop.f32.mrb[55].mxu0 }
 0x646   : > { %v5125_v62 = vadd.f32 %v5072_v24, %v5040_v47  ;;  %v17573_v63 = vmax.f32 %v5124_v35, 0.0 }
 0x648   : > { %v17575_v30 = vmax.f32 %v5125_v62, 0.0 }
 0x649   : > { %v4324_v1 = vpop.f32.mrb[56].mxu0 }
 0x64a   : > { %v17579_v38 = vpack.c.bf16 %v17575_v30, %v17573_v63  ;;  %v14142_v2 = vpop.f32.mrb[57].mxu0  ;;  %v5041_v57 = vmul.f32 %v4992_v15, %v4324_v1  ;;  %v5865_v15 = vld [vmem:[%s19748_s13 + $0x20] sm:$0xff] }
 0x64b   : > { %v4327_v6 = vpop.f32.mrb[58].mxu0 }
 0x64c   : > { %v14143_v10 = vpop.f32.mrb[59].mxu0  ;;  %5233 = vrot.lane.b32.xlu0 %v17579_v38, %s19776_s4  ;;  %5231 = vrot.lane.b32.xlu1 %v17579_v38, %s19782_s2  ;;  %v5042_v26 = vmul.f32 %v4997_v44, %v4327_v6  ;;  %v6008_v44 = vld [vmem:[%s19749_s14 + $0x18] sm:$0xff] }
 0x651   : > { %v4332_v12 = vpop.f32.mrb[60].mxu0 }
 0x652   : > { %v5043_v14 = vmul.f32 %v5002_v60, %v4332_v12  ;;  %v14146_v59 = vpop.f32.mrb[61].mxu0 }
 0x653   : > { %v4335_v20 = vpop.f32.mrb[62].mxu0  ;;  %v5861_v59 = vld [vmem:[%s19748_s13] sm:$0xff] }
 0x654   : > { %v5128_v21 = vadd.f32 %v5087_v9, %v5043_v14  ;;  %v5044_v7 = vmul.f32 %v5007_v4, %v4335_v20  ;;  %v14147_v19 = vpop.f32.mrb[63].mxu0  ;;  %v5862_v20 = vld [vmem:[%s19748_s13 + $0x8] sm:$0xff] }
 0x655   : > { %v6007_v19 = vld [vmem:[%s19749_s14 + $0x10] sm:$0xff] }
 0x656   : > { %v5129_v22 = vadd.f32 %v5092_v11, %v5044_v7  ;;  %v17585_v27 = vmax.f32 %v5128_v21, 0.0  ;;  %v5863_v21 = vld [vmem:[%s19748_s13 + $0x10] sm:$0xff]  ;;  %v6006_v7 = vld [vmem:[%s19749_s14 + $0x8] sm:$0xff] }
 0x658   : > { %v17587_v33 = vmax.f32 %v5129_v22, 0.0  ;;  %v5864_v22 = vld [vmem:[%s19748_s13 + $0x18] sm:$0xff] }
 0x659   : > { %v4937_v25 = vpop.f32.mrb[68].mxu1 }
 0x65a   : > { %v17591_v49 = vpack.c.bf16 %v17587_v33, %v17585_v27  ;;  %v5045_v42 = vmul.f32 %v5012_v16, %v4937_v25  ;;  %v14300_v40 = vpop.f32.mrb[69].mxu1  ;;  %v5077_v16 = vpop.permute.xlu1 %5076  ;;  %v6009_v25 = vld [vmem:[%s19749_s14 + $0x20] sm:$0xff] }
 0x65b   : > { %v4940_v53 = vpop.f32.mrb[70].mxu1  ;;  %v5126_v48 = vadd.f32 %v5077_v16, %v5041_v57  ;;  %v5867_v40 = vld [vmem:[%s19748_s13 + $0x30] sm:$0xff]  ;;  %v6017_v57 = vld [vmem:[%s19749_s14 + $0x60] sm:$0xff] }
 0x65c   : > { %v5130_v5 = vadd.f32 %v5097_v13, %v5045_v42  ;;  %v5046_v52 = vmul.f32 %v5017_v3, %v4940_v53  ;;  %5184 = vrot.lane.b32.xlu0 %v17591_v49, %s19803_s7  ;;  %5245 = vrot.lane.b32.xlu1 %v17591_v49, %s19804_s27  ;;  %v14301_v54 = vpop.f32.mrb[71].mxu1  ;;  %v5082_v3 = vpop.permute.xlu0 %5081  ;;  %v5866_v42 = vld [vmem:[%s19748_s13 + $0x28] sm:$0xff]  ;;  %v6019_v16 = vld [vmem:[%s19749_s14 + $0x70] sm:$0xff] }
 0x65d   : > { %v5127_v28 = vadd.f32 %v5082_v3, %v5042_v26  ;;  %v17627_v62 = vmax.f32 %v5126_v48, 0.0  ;;  %v6010_v53 = vld [vmem:[%s19749_s14 + $0x28] sm:$0xff]  ;;  %v5869_v54 = vld [vmem:[%s19748_s13 + $0x40] sm:$0xff]  ;;  %v5876_v3 = vld [vmem:[%s19748_s13 + $0x78] sm:$0xff] }
 0x65e   : > { %v5131_v0 = vadd.f32 %v5102_v17, %v5046_v52  ;;  %v17597_v23 = vmax.f32 %v5130_v5, 0.0  ;;  %v5117_v56 = vpop.permute.xlu1 %5116  ;;  %v6005_v17 = vld [vmem:[%s19749_s14] sm:$0xff]  ;;  %v6011_v5 = vld [vmem:[%s19749_s14 + $0x30] sm:$0xff]  ;;  %v5868_v52 = vld [vmem:[%s19748_s13 + $0x38] sm:$0xff] }
 0x65f   : > { %v17616_v46 = vmax.f32 %v5127_v28, 0.0  ;;  %v6014_v26 = vld [vmem:[%s19749_s14 + $0x48] sm:$0xff]  ;;  %v6197_v28 = vld [vmem:[%s19751_s16] sm:$0xff] }
 0x660   : > { %v17599_v31 = vmax.f32 %v5131_v0, 0.0  ;;  %5247 = vrot.lane.b32.xlu1 %v17591_v49, %s19805_s3  ;;  %v5122_v9 = vpop.permute.xlu0 %5121  ;;  %v6012_v0 = vld [vmem:[%s19749_s14 + $0x38] sm:$0xff] }
 0x661   : > { %v4945_v36 = vpop.f32.mrb[72].mxu1  ;;  %v17637_v10 = vpack.c.bf16 %v17616_v46, %v17627_v62 }
 0x662   : > { %v5151_v37 = vpack.c.bf16 %v17599_v31, %v17597_v23  ;;  %v5047_v39 = vmul.f32 %v17565_v32, %v4945_v36  ;;  %v14304_v45 = vpop.f32.mrb[73].mxu1  ;;  %v5871_v36 = vld [vmem:[%s19748_s13 + $0x50] sm:$0xff] }
 0x663   : > { %v4948_v50 = vpop.f32.mrb[74].mxu1  ;;  %v5873_v45 = vld [vmem:[%s19748_s13 + $0x60] sm:$0xff] }
 0x664   : > { %v5132_v41 = vadd.f32 %v17569_v18, %v5047_v39  ;;  %v5048_v60 = vmul.f32 %v17567_v51, %v4948_v50  ;;  %5237 = vrot.lane.b32.xlu1 %v5151_v37, %s19805_s3  ;;  %5161 = vrot.lane.b32.xlu0 %v5151_v37, %s19806_s22  ;;  %v14305_v4 = vpop.f32.mrb[75].mxu1  ;;  %v5872_v39 = vld [vmem:[%s19748_s13 + $0x58] sm:$0xff] }
 0x665   : > { %v6016_v50 = vld [vmem:[%s19749_s14 + $0x58] sm:$0xff]  ;;  %v6018_v4 = vld [vmem:[%s19749_s14 + $0x68] sm:$0xff] }
 0x666   : > { %v5133_v43 = vadd.f32 %v17571_v58, %v5048_v60  ;;  %v17611_v34 = vmax.f32 %v5132_v41, 0.0  ;;  %v17625_v58 = vld [vmem:[%s19747_s12] sm:$0xff]   ;;  %v5874_v41 = vld [vmem:[%s19748_s13 + $0x68] sm:$0xff]  ;;  %v5875_v60 = vld [vmem:[%s19748_s13 + $0x70] sm:$0xff] }
 0x667   : > { %14312 = vmatprep.mubr.msk.bf16.mxu1 %vm5188_vm3, %v17625_v58 }
 0x668   : > { %v17613_v32 = vmax.f32 %v5133_v43, 0.0  ;;  %5235 = vrot.lane.b32.xlu0 %v5151_v37, %s19804_s27  ;;  %v6020_v43 = vld [vmem:[%s19749_s14 + $0x78] sm:$0xff] }
 0x669   : > { %v4953_v18 = vpop.f32.mrb[76].mxu1 }
 0x66a   : > { %v17620_v51 = vpack.c.bf16 %v17613_v32, %v17611_v34  ;;  %v5049_v35 = vmul.f32 %v5032_v8, %v4953_v18  ;;  %v14308_v47 = vpop.f32.mrb[77].mxu1  ;;  %v6013_v8 = vld [vmem:[%s19749_s14 + $0x40] sm:$0xff] }
 0x66b   : > { %v4956_v24 = vpop.f32.mrb[78].mxu1  ;;  %v6375_v18 = vld [vmem:[%s19752_s17] sm:$0xff] }
 0x66c   : > { %v5134_v1 = vadd.f32 %v5117_v56, %v5049_v35  ;;  %v5050_v2 = vmul.f32 %v5037_v55, %v4956_v24  ;;  %5176 = vrot.lane.b32.xlu0 %v17620_v51, %s19776_s4  ;;  %5241 = vrot.lane.b32.xlu1 %v17620_v51, %s19782_s2  ;;  %v14309_v6 = vpop.f32.mrb[79].mxu1  ;;  %v5870_v55 = vld [vmem:[%s19748_s13 + $0x48] sm:$0xff]  ;;  %v6199_v24 = vld [vmem:[%s19751_s16 + $0x10] sm:$0xff] }
 0x66d   : > { %v6198_v35 = vld [vmem:[%s19751_s16 + $0x8] sm:$0xff] }
 0x66e   : > { %v5135_v11 = vadd.f32 %v5122_v9, %v5050_v2  ;;  %v17639_v12 = vmax.f32 %v5134_v1, 0.0  ;;  %v6376_v1 = vld [vmem:[%s19752_s17 + $0x8] sm:$0xff]  ;;  %v6377_v9 = vld [vmem:[%s19752_s17 + $0x10] sm:$0xff] }
 0x670   : > { %v17641_v13 = vmax.f32 %v5135_v11, 0.0  ;;  %5239 = vrot.lane.b32.xlu0 %v17637_v10, %s19803_s7  ;;  %5243 = vrot.lane.b32.xlu1 %v17620_v51, %s19806_s22  ;;  %v6200_v11 = vld [vmem:[%s19751_s16 + $0x18] sm:$0xff] }
 0x672   : > { %v17649_v14 = vpack.c.bf16 %v17641_v13, %v17639_v12 }
 0x674   : > { %5172 = vrot.lane.b32.xlu0 %v17637_v10, %s19807_s30  ;;  %5249 = vrot.lane.b32.xlu1 %v17649_v14, %s19807_s30 }
 0x678   : > { %5155 = vrot.lane.b32.xlu0 %v17637_v10, %s19782_s2  ;;  %5174 = vrot.lane.b32.xlu1 %v5151_v37, %s19782_s2 }
 0x67c   : > { %5164 = vrot.lane.b32.xlu0 %v17620_v51, %s19804_s27  ;;  %5158 = vrot.lane.b32.xlu1 %v17591_v49, %s19776_s4  ;;  %s19810_s4 = smov 32  }
 0x680   : > { %5178 = vrot.lane.b32.xlu0 %v17649_v14, %s19806_s22  ;;  %5180 = vrot.lane.b32.xlu1 %v17579_v38, %s19804_s27 }
 0x684   : > { %5167 = vrot.lane.b32.xlu0 %v17649_v14, %s19805_s3  ;;  %5182 = vrot.lane.b32.xlu1 %v17637_v10, %s19805_s3 }
 0x688   : > { %5186 = vrot.lane.b32.xlu0 %v5151_v37, %s19807_s30  ;;  %5170 = vrot.lane.b32.xlu1 %v17579_v38, %s19803_s7  ;;  %v6015_v37 = vld [vmem:[%s19749_s14 + $0x50] sm:$0xff] }
 0x68c   : > { %5879 = vperm.xlu0 %15568, %v5861_v59   ;;  %5225 = vrot.lane.b32.xlu1 %v17649_v14, %s19782_s2 }
 0x690   : > { %6023 = vperm.xlu0 %15568, %v6005_v17   ;;  %5884 = vperm.xlu1 %15569, %v5862_v20   ;;  %v6423_v17 = vld [vmem:[%s19754_s19] sm:$0xff]  ;;  %v6378_v20 = vld [vmem:[%s19752_s17 + $0x18] sm:$0xff] }
 0x694   : > { %5889 = vperm.xlu0 %15568, %v5863_v21   ;;  %6028 = vperm.xlu1 %15569, %v6006_v7  }
 0x698   : > { %6033 = vperm.xlu0 %15568, %v6007_v19   ;;  %5894 = vperm.xlu1 %15569, %v5864_v22   ;;  %v6539_v22 = vld [vmem:[#allocation2] sm:$0x1] }
 0x69c   : > { %5899 = vperm.xlu0 %15568, %v5865_v15   ;;  %6038 = vperm.xlu1 %15569, %v6008_v44   ;;  %v6523_v15 = vld [vmem:[%s19755_s20] sm:$0xff] }
 0x6a0   : > { %6043 = vperm.xlu0 %15568, %v6009_v25   ;;  %5904 = vperm.xlu1 %15569, %v5866_v42  }
 0x6a4   : > { %5909 = vperm.xlu0 %15568, %v5867_v40   ;;  %6048 = vperm.xlu1 %15569, %v6010_v53  }
 0x6a8   : > { %6053 = vperm.xlu0 %15568, %v6011_v5   ;;  %5914 = vperm.xlu1 %15569, %v5868_v52  }
 0x6ac   : > { %5919 = vperm.xlu0 %15568, %v5869_v54   ;;  %6058 = vperm.xlu1 %15569, %v6012_v0  }
 0x6b0   : > { %6063 = vperm.xlu0 %15568, %v6013_v8   ;;  %5924 = vperm.xlu1 %15569, %v5870_v55  }
 0x6b4   : > { %5929 = vperm.xlu0 %15568, %v5871_v36   ;;  %6068 = vperm.xlu1 %15569, %v6014_v26  }
 0x6b8   : > { %6073 = vperm.xlu0 %15568, %v6015_v37   ;;  %5934 = vperm.xlu1 %15569, %v5872_v39  }
 0x6bc   : > { %5939 = vperm.xlu0 %15568, %v5873_v45   ;;  %6078 = vperm.xlu1 %15569, %v6016_v50  }
 0x6be   : > { %v5232_v48 = vpop.permute.xlu1 %5231  ;;  %v5234_v47 = vpop.permute.xlu0 %5233 }
 0x6bf   : > { %v5252_v19 = vsel %vm5188_vm3, %v17579_v38, %v5232_v48 }
 0x6c0   : > { %6083 = vperm.xlu0 %15568, %v6017_v57   ;;  %5944 = vperm.xlu1 %15569, %v5874_v41   ;;  %v5254_v40 = vsel %vm5192_vm4, %v5252_v19, %v5234_v47 }
 0x6c4   : > { %5949 = vperm.xlu0 %15568, %v5875_v60   ;;  %6088 = vperm.xlu1 %15569, %v6018_v4  }
 0x6c8   : > { %6093 = vperm.xlu0 %15568, %v6019_v16   ;;  %5954 = vperm.xlu1 %15569, %v5876_v3  }
 0x6cc   : > { %6345 = vperm.xlu0 %15568, %v6197_v28   ;;  %6098 = vperm.xlu1 %15569, %v6020_v43   ;;  %v15792_v28 = vld [vmem:[%s19747_s12 + $0x8] sm:$0xff]  }
 0x6ce   : > { %v5246_v56 = vpop.permute.xlu1 %5245  ;;  %v17786_v2 = vpop.permute.xlu0 %5184 }
 0x6d0   : > { %6381 = vperm.xlu0 %15568, %v6375_v18   ;;  %6350 = vperm.xlu1 %15569, %v6198_v35  }
 0x6d2   : > { %v5248_v6 = vpop.permute.xlu1 %5247 }
 0x6d4   : > { %6355 = vperm.xlu0 %15568, %v6199_v24   ;;  %6386 = vperm.xlu1 %15569, %v6376_v1  }
 0x6d6   : > { %v5162_v59 = vpop.permute.xlu0 %5161  ;;  %v5238_v21 = vpop.permute.xlu1 %5237 }
 0x6d7   : > { %v5255_v53 = vsel %vm1643_vm1, %v5254_v40, %v5162_v59  ;;  %v15799_v40 = vld [vmem:[%s19746_s11] sm:$0xff]  }
 0x6d8   : > { %6391 = vperm.xlu0 %15568, %v6377_v9   ;;  %6360 = vperm.xlu1 %15569, %v6200_v11  }
 0x6da   : > { %v5236_v7 = vpop.permute.xlu0 %5235 }
 0x6db   : > { %v5257_v5 = vsel %vm3322_vm2, %v5255_v53, %v5236_v7  ;;  %v15800_v53 = vld [vmem:[%s19746_s11 + $0x8] sm:$0xff]  }
 0x6dc   : > { %6517 = vperm.xlu0 %15568, %v6423_v17   ;;  %6396 = vperm.xlu1 %15569, %v6378_v20  }
 0x6de   : > { %v5177_v44 = vpop.permute.xlu0 %5176  ;;  %v5242_v25 = vpop.permute.xlu1 %5241 }
 0x6df   : > { %v5266_v42 = vsel %vm5188_vm3, %v17637_v10, %v5242_v25  ;;  %v5259_v10 = vsel %vm5199_vm5, %v5257_v5, %v5238_v21  ;;  %v15797_v25 = vld [vmem:[%s19747_s12 + $0x30] sm:$0xff]  }
 0x6e0   : > { %6542 = vperm.xlu0 %15568, %v6539_v22   ;;  %6526 = vperm.xlu1 %15569, %v6523_v15   ;;  %v5267_v54 = vsel %vm5192_vm4, %v5266_v42, %v5177_v44  ;;  %v15798_v42 = vld [vmem:[%s19747_s12 + $0x38] sm:$0xff]   ;;  %v15801_v5 = vld [vmem:[%s19746_s11 + $0x10] sm:$0xff]  }
 0x6e2   : > { %v5240_v52 = vpop.permute.xlu0 %5239  ;;  %v5244_v0 = vpop.permute.xlu1 %5243 }
 0x6e3   : > { %v5269_v8 = vsel %vm1643_vm1, %v5267_v54, %v5244_v0  ;;  %v5261_v26 = vsel %vm5202_vm6, %v5259_v10, %v5240_v52  ;;  %v15802_v52 = vld [vmem:[%s19746_s11 + $0x18] sm:$0xff]   ;;  %v15803_v54 = vld [vmem:[%s19746_s11 + $0x20] sm:$0xff]   ;;  %v15804_v0 = vld [vmem:[%s19746_s11 + $0x28] sm:$0xff]  }
 0x6e4   : > { %v5271_v55 = vsel %vm3322_vm2, %v5269_v8, %v5246_v56  ;;  %v15805_v8 = vld [vmem:[%s19746_s11 + $0x30] sm:$0xff]  }
 0x6e5   : > { %v5273_v36 = vsel %vm5199_vm5, %v5271_v55, %v5248_v6  ;;  %v15793_v6 = vld [vmem:[%s19747_s12 + $0x10] sm:$0xff]   ;;  %v15806_v55 = vld [vmem:[%s19746_s11 + $0x38] sm:$0xff]  }
 0x6e6   : > { %v5173_v37 = vpop.permute.xlu0 %5172  ;;  %v5250_v39 = vpop.permute.xlu1 %5249  ;;  %v5274_v45 = vsel %vm5202_vm6, %v5273_v36, %v17786_v2 }
 0x6e7   : > { %v5276_v50 = vsel %vm5205_vm7, %v5274_v45, %v5250_v39  ;;  %v5262_v57 = vsel %vm5205_vm7, %v5261_v26, %v5173_v37 }
 0x6e8   : > { %5377 = vmatprep.subr.bf16.mxu0 %v5276_v50 }
 0x6e9   : > { %5378 = vmatpush1.bf16.msra.mxu0 %v5262_v57 }
 0x6ea   : > { %v5156_v41 = vpop.permute.xlu0 %5155  ;;  %v5175_v60 = vpop.permute.xlu1 %5174 }
 0x6eb   : > { %v5211_v3 = vsel %vm5188_vm3, %v17591_v49, %v5175_v60  ;;  %v5191_v43 = vsel %vm5188_vm3, %v17579_v38, %v5156_v41 }
 0x6ec   : > { %12740 = vmatmul.mubr.msk.bf16.vlgmr.msra.gmra.mrb[64].mxu0 %vm5188_vm3, %v17625_v58  ;;  %v5213_v18 = vsel %vm5192_vm4, %v5211_v3, %v5177_v44 }
 0x6ed   : > { %5419 = vmatprep.mubr.bf16.mxu0 %v19787_v61 }
 0x6ee   : > { %v5165_v4 = vpop.permute.xlu0 %5164  ;;  %v5159_v16 = vpop.permute.xlu1 %5158 }
 0x6ef   : > { %v5194_v58 = vsel %vm5192_vm4, %v5191_v43, %v5159_v16 }
 0x6f0   : > { %v5196_v49 = vsel %vm1643_vm1, %v5194_v58, %v5162_v59 }
 0x6f1   : > { %v5198_v9 = vsel %vm3322_vm2, %v5196_v49, %v5165_v4 }
 0x6f2   : > { %v5179_v48 = vpop.permute.xlu0 %5178  ;;  %v5181_v35 = vpop.permute.xlu1 %5180 }
 0x6f3   : > { %v5215_v47 = vsel %vm1643_vm1, %v5213_v18, %v5179_v48 }
 0x6f4   : > { %12741 = vmatmul.mubr.msk.bf16.gmra.mrb[68].mxu0 %vm5188_vm3, %v15792_v28  ;;  %v5217_v56 = vsel %vm3322_vm2, %v5215_v47, %v5181_v35 }
 0x6f5   : > { %5429 = vmatprep.mubr.bf16.mxu0 %v19787_v61 }
 0x6f6   : > { %v5168_v24 = vpop.permute.xlu0 %5167  ;;  %v5183_v1 = vpop.permute.xlu1 %5182 }
 0x6f7   : > { %v5219_v38 = vsel %vm5199_vm5, %v5217_v56, %v5183_v1  ;;  %v5201_v11 = vsel %vm5199_vm5, %v5198_v9, %v5168_v24 }
 0x6f8   : > { %v5221_v21 = vsel %vm5202_vm6, %v5219_v38, %v17786_v2  ;;  %v15794_v2 = vld [vmem:[%s19747_s12 + $0x18] sm:$0xff]  }
 0x6fa   : > { %v5187_v17 = vpop.permute.xlu0 %5186  ;;  %v5171_v20 = vpop.permute.xlu1 %5170 }
 0x6fb   : > { %v5204_v59 = vsel %vm5202_vm6, %v5201_v11, %v5171_v20  ;;  %v5223_v7 = vsel %vm5205_vm7, %v5221_v21, %v5187_v17 }
 0x6fc   : > { %12742 = vmatmul.mubr.msk.bf16.gmra.mrb[72].mxu0 %vm5188_vm3, %v15793_v6  ;;  %5651 = vmatprep.subr.bf16.mxu0 %v5223_v7  ;;  %v5207_v19 = vsel %vm5205_vm7, %v5204_v59, %v5173_v37 }
 0x6fd   : > { %5652 = vmatpush1.bf16.msra.mxu0 %v5207_v19  ;;  %5439 = vmatprep.mubr.bf16.mxu0 %v19787_v61 }
 0x6fe   : > { %v5226_v22 = vpop.permute.xlu1 %5225  ;;  %14374 = vmatprep.subr.bf16.mxu0 %v19785_v29 }
 0x6ff   : > { %v5279_v15 = vsel %vm5188_vm3, %v17649_v14, %v5226_v22  ;;  %v5229_v44 = vsel %vm5188_vm3, %v17620_v51, %v5226_v22  ;;  %v15795_v14 = vld [vmem:[%s19747_s12 + $0x20] sm:$0xff]   ;;  %v15796_v51 = vld [vmem:[%s19747_s12 + $0x28] sm:$0xff]  }
 0x700   : > { %14310 = vmatprep.subr.bf16.mxu1 %v5279_v15 }
 0x701   : > { %14311 = vmatpush3.bf16.msra.mxu1 %v5279_v15 }
 0x702   : > { %14328 = vmatprep.subr.bf16.mxu1 %v5229_v44 }
 0x704   : > { %12743 = vmatmul.mubr.msk.bf16.gmra.mrb[76].mxu0 %vm5188_vm3, %v15794_v2  ;;  %14313 = vmatmul.mubr.msk.bf16.vlgmr.msra.gmra.mrb[80].mxu1 %vm5188_vm3, %v15792_v28 }
 0x705   : > { %14329 = vmatpush3.bf16.msra.mxu1 %v5229_v44  ;;  %5449 = vmatprep.mubr.bf16.mxu0 %v19787_v61 }
 0x706   : > { %14316 = vmatprep.mubr.msk.bf16.mxu1 %vm5188_vm3, %v15793_v6 }
 0x70b   : > { %v5880_v10 = vpop.permute.xlu0 %5879 }
 0x70c   : > { %12744 = vmatmul.mubr.msk.bf16.gmra.mrb[80].mxu0 %vm5188_vm3, %v15795_v14  ;;  %14317 = vmatmul.mubr.msk.bf16.gmra.mrb[84].mxu1 %vm5188_vm3, %v15794_v2 }
 0x70d   : > { %5459 = vmatprep.mubr.bf16.mxu0 %v19787_v61  ;;  %14320 = vmatprep.mubr.msk.bf16.mxu1 %vm5188_vm3, %v15795_v14 }
 0x70f   : > { %v6024_v36 = vpop.permute.xlu0 %6023  ;;  %v5885_v26 = vpop.permute.xlu1 %5884 }
 0x713   : > { %v17937_v37 = vpop.permute.xlu0 %5889  ;;  %v17939_v39 = vpop.permute.xlu1 %6028 }
 0x714   : > { %12745 = vmatmul.mubr.msk.bf16.gmra.mrb[84].mxu0 %vm5188_vm3, %v15796_v51  ;;  %14321 = vmatmul.mubr.msk.bf16.gmra.mrb[88].mxu1 %vm5188_vm3, %v15796_v51 }
 0x715   : > { %5469 = vmatprep.mubr.bf16.mxu0 %v19787_v61  ;;  %14324 = vmatprep.mubr.msk.bf16.mxu1 %vm5188_vm3, %v15797_v25 }
 0x717   : > { %v17941_v45 = vpop.permute.xlu0 %6033  ;;  %v17943_v50 = vpop.permute.xlu1 %5894 }
 0x71b   : > { %v17945_v57 = vpop.permute.xlu0 %5899  ;;  %v17947_v41 = vpop.permute.xlu1 %6038 }
 0x71c   : > { %12746 = vmatmul.mubr.msk.bf16.gmra.mrb[88].mxu0 %vm5188_vm3, %v15797_v25  ;;  %14325 = vmatmul.mubr.msk.bf16.gmra.mrb[92].mxu1 %vm5188_vm3, %v15798_v42 }
 0x71d   : > { %5479 = vmatprep.mubr.bf16.mxu0 %v19787_v61  ;;  %14330 = vmatprep.mubr.msk.bf16.mxu1 %vm5188_vm3, %v15799_v40 }
 0x71f   : > { %v17949_v60 = vpop.permute.xlu0 %6043  ;;  %v17951_v4 = vpop.permute.xlu1 %5904 }
 0x723   : > { %v17953_v16 = vpop.permute.xlu0 %5909  ;;  %v17955_v3 = vpop.permute.xlu1 %6048 }
 0x724   : > { %12747 = vmatmul.mubr.msk.bf16.gmra.mrb[92].mxu0 %vm5188_vm3, %v15798_v42  ;;  %14331 = vmatmul.mubr.msk.bf16.vlgmr.msra.gmra.mrb[80].mxu1 %vm5188_vm3, %v15800_v53 }
 0x725   : > { %5683 = vmatprep.mubr.bf16.mxu0 %v19787_v61  ;;  %14334 = vmatprep.mubr.msk.bf16.mxu1 %vm5188_vm3, %v15801_v5 }
 0x727   : > { %v17957_v28 = vpop.permute.xlu0 %6053  ;;  %v17959_v43 = vpop.permute.xlu1 %5914 }
 0x72b   : > { %v17961_v48 = vpop.permute.xlu0 %5919  ;;  %v17963_v18 = vpop.permute.xlu1 %6058 }
 0x72c   : > { %12764 = vmatmul.mubr.msk.bf16.vlgmr.msra.gmra.mrb[64].mxu0 %vm5188_vm3, %v15799_v40  ;;  %14335 = vmatmul.mubr.msk.bf16.gmra.mrb[84].mxu1 %vm5188_vm3, %v15802_v52 }
 0x72d   : > { %5693 = vmatprep.mubr.bf16.mxu0 %v19787_v61  ;;  %14338 = vmatprep.mubr.msk.bf16.mxu1 %vm5188_vm3, %v15803_v54 }
 0x72f   : > { %v17965_v35 = vpop.permute.xlu0 %6063  ;;  %v17967_v58 = vpop.permute.xlu1 %5924 }
 0x733   : > { %v17969_v47 = vpop.permute.xlu0 %5929  ;;  %v17971_v49 = vpop.permute.xlu1 %6068 }
 0x734   : > { %12765 = vmatmul.mubr.msk.bf16.gmra.mrb[68].mxu0 %vm5188_vm3, %v15800_v53  ;;  %14339 = vmatmul.mubr.msk.bf16.gmra.mrb[88].mxu1 %vm5188_vm3, %v15804_v0 }
 0x735   : > { %5703 = vmatprep.mubr.bf16.mxu0 %v19787_v61  ;;  %14342 = vmatprep.mubr.msk.bf16.mxu1 %vm5188_vm3, %v15805_v8 }
 0x737   : > { %v17973_v56 = vpop.permute.xlu0 %6073  ;;  %v17975_v24 = vpop.permute.xlu1 %5934 }
 0x73b   : > { %v17977_v1 = vpop.permute.xlu0 %5939  ;;  %v17979_v6 = vpop.permute.xlu1 %6078 }
 0x73c   : > { %12766 = vmatmul.mubr.msk.bf16.gmra.mrb[72].mxu0 %vm5188_vm3, %v15801_v5  ;;  %14343 = vmatmul.mubr.msk.bf16.gmra.mrb[92].mxu1 %vm5188_vm3, %v15806_v55 }
 0x73d   : > { %5713 = vmatprep.mubr.bf16.mxu0 %v19787_v61  ;;  %6273 = vmatprep.mubr.bf16.mxu1 %v19787_v61 }
 0x73f   : > { %v17986_v44 = vpop.permute.xlu0 %6083  ;;  %v17988_v14 = vpop.permute.xlu1 %5944 }
 0x744   : > { %12767 = vmatmul.mubr.msk.bf16.gmra.mrb[76].mxu0 %vm5188_vm3, %v15802_v52 }
 0x745   : > { %5723 = vmatprep.mubr.bf16.mxu0 %v19787_v61 }
 0x74c   : > { %12768 = vmatmul.mubr.msk.bf16.gmra.mrb[80].mxu0 %vm5188_vm3, %v15803_v54 }
 0x74d   : > { %5733 = vmatprep.mubr.bf16.mxu0 %v19787_v61 }
 0x754   : > { %12769 = vmatmul.mubr.msk.bf16.gmra.mrb[84].mxu0 %vm5188_vm3, %v15804_v0 }
 0x755   : > { %5743 = vmatprep.mubr.bf16.mxu0 %v19787_v61 }
 0x75c   : > { %12770 = vmatmul.mubr.msk.bf16.gmra.mrb[88].mxu0 %vm5188_vm3, %v15805_v8 }
 0x75d   : > { %5753 = vmatprep.mubr.bf16.mxu0 %v19787_v61 }
 0x764   : > { %12771 = vmatmul.mubr.msk.bf16.gmra.mrb[92].mxu0 %vm5188_vm3, %v15806_v55 }
 0x765   : > { %14376 = vmatprep.mubr.msk.bf16.mxu0 %vm16000_vm0, %v19785_v29 }
 0x7f7   : > { %v14332_v38 = vpop.f32.mrb[80].mxu1 }
 0x7f8   : > { %v5965_v9 = vmul.f32 %v14332_v38, %v17937_v37  ;;  %v5798_v11 = vpop.f32.mrb[81].mxu1 }
 0x7f9   : > { %v5959_v17 = vmul.f32 %v5880_v10, %v5798_v11  ;;  %v14333_v20 = vpop.f32.mrb[82].mxu1 }
 0x7fa   : > { %v6109_v21 = vadd.f32 %v17941_v45, %v5965_v9  ;;  %v5968_v59 = vmul.f32 %v14333_v20, %v17943_v50  ;;  %v5801_v7 = vpop.f32.mrb[83].mxu1 }
 0x7fb   : > { %v6103_v19 = vadd.f32 %v6024_v36, %v5959_v17  ;;  %v5962_v22 = vmul.f32 %v5885_v26, %v5801_v7 }
 0x7fc   : > { %v6112_v15 = vadd.f32 %v17947_v41, %v5968_v59  ;;  %v6157_v51 = vmax.f32 %v6109_v21, 0.0 }
 0x7fd   : > { %v6106_v2 = vadd.f32 %v17939_v39, %v5962_v22  ;;  %v6151_v42 = vmax.f32 %v6103_v19, 0.0 }
 0x7fe   : > { %v6160_v25 = vmax.f32 %v6112_v15, 0.0 }
 0x7ff   : > { %v6154_v40 = vmax.f32 %v6106_v2, 0.0  ;;  %v5685_v53 = vpop.f32.mrb[64].mxu0  ;;  %v14336_v5 = vpop.f32.mrb[84].mxu1 }
 0x800   : > { %v5957_v52 = vmul.f32 %v5880_v10, %v5685_v53  ;;  %v5977_v54 = vmul.f32 %v14336_v5, %v17953_v16  ;;  %v5687_v0 = vpop.f32.mrb[65].mxu0  ;;  %v5814_v8 = vpop.f32.mrb[85].mxu1  ;;  %v17991_v55 = vpack.c.bf16 %v6160_v25, %v6157_v51 }
 0x801   : > { %v5958_v38 = vmul.f32 %v5880_v10, %v5687_v0  ;;  %v5971_v9 = vmul.f32 %v17945_v57, %v5814_v8  ;;  %v5689_v11 = vpop.f32.mrb[66].mxu0  ;;  %v14337_v17 = vpop.f32.mrb[86].mxu1  ;;  %v17994_v20 = vpack.c.bf16 %v6154_v40, %v6151_v42 }
 0x802   : > { %v6101_v21 = vadd.f32 %v6024_v36, %v5957_v52  ;;  %v6121_v59 = vadd.f32 %v17957_v28, %v5977_v54  ;;  %v5960_v7 = vmul.f32 %v5885_v26, %v5689_v11  ;;  %v5980_v19 = vmul.f32 %v14337_v17, %v17959_v43  ;;  %v5691_v22 = vpop.f32.mrb[67].mxu0  ;;  %v5817_v15 = vpop.f32.mrb[87].mxu1 }
 0x803   : > { %v6102_v2 = vadd.f32 %v6024_v36, %v5958_v38  ;;  %v6115_v53 = vadd.f32 %v17949_v60, %v5971_v9  ;;  %v5961_v51 = vmul.f32 %v5885_v26, %v5691_v22  ;;  %v5974_v10 = vmul.f32 %v17951_v4, %v5817_v15  ;;  %v18004_v52 = vpop.permute.xlu0 %5949  ;;  %v18006_v54 = vpop.permute.xlu1 %6088 }
 0x804   : > { %v6104_v25 = vadd.f32 %v17939_v39, %v5960_v7  ;;  %v6124_v5 = vadd.f32 %v17963_v18, %v5980_v19  ;;  %v6149_v0 = vmax.f32 %v6101_v21, 0.0  ;;  %v6169_v8 = vmax.f32 %v6121_v59, 0.0 }
 0x805   : > { %v6105_v42 = vadd.f32 %v17939_v39, %v5961_v51  ;;  %v6118_v40 = vadd.f32 %v17955_v3, %v5974_v10  ;;  %v6150_v9 = vmax.f32 %v6102_v2, 0.0  ;;  %v6163_v26 = vmax.f32 %v6115_v53, 0.0 }
 0x806   : > { %v6152_v36 = vmax.f32 %v6104_v25, 0.0  ;;  %v6172_v38 = vmax.f32 %v6124_v5, 0.0 }
 0x807   : > { %v6153_v11 = vmax.f32 %v6105_v42, 0.0  ;;  %v6166_v17 = vmax.f32 %v6118_v40, 0.0  ;;  %v5695_v22 = vpop.f32.mrb[68].mxu0  ;;  %v14340_v7 = vpop.f32.mrb[88].mxu1 }
 0x808   : > { %v6205_v15 = vpack.c.bf16 %v6152_v36, %v6149_v0  ;;  %v5963_v19 = vmul.f32 %v17937_v37, %v5695_v22  ;;  %v5989_v39 = vmul.f32 %v14340_v7, %v17969_v47  ;;  %v5697_v51 = vpop.f32.mrb[69].mxu0  ;;  %v5830_v10 = vpop.f32.mrb[89].mxu1  ;;  %v18010_v29 = vpack.c.bf16 %v6172_v38, %v6169_v8 }
 0x809   : > { %v5964_v21 = vmul.f32 %v17937_v37, %v5697_v51  ;;  %v5983_v59 = vmul.f32 %v17961_v48, %v5830_v10  ;;  %v5699_v25 = vpop.f32.mrb[70].mxu0  ;;  %v14341_v2 = vpop.f32.mrb[90].mxu1  ;;  %v6206_v53 = vpack.c.bf16 %v6153_v11, %v6150_v9  ;;  %v18014_v5 = vpack.c.bf16 %v6166_v17, %v6163_v26 }
 0x80a   : > { %v6107_v42 = vadd.f32 %v17941_v45, %v5963_v19  ;;  %v6133_v40 = vadd.f32 %v17973_v56, %v5989_v39  ;;  %v5966_v0 = vmul.f32 %v17943_v50, %v5699_v25  ;;  %v5992_v36 = vmul.f32 %v14341_v2, %v17975_v24  ;;  %v5701_v22 = vpop.f32.mrb[71].mxu0  ;;  %v5833_v8 = vpop.f32.mrb[91].mxu1 }
 0x80b   : > { %v6108_v38 = vadd.f32 %v17941_v45, %v5964_v21  ;;  %v6127_v37 = vadd.f32 %v17965_v35, %v5983_v59  ;;  %v5967_v7 = vmul.f32 %v17943_v50, %v5701_v22  ;;  %v5986_v9 = vmul.f32 %v17967_v58, %v5833_v8  ;;  %6241 = vmatprep.subr.bf16.mxu1 %v6206_v53  ;;  %v18026_v17 = vpop.permute.xlu1 %5954  ;;  %v18030_v51 = vpop.permute.xlu0 %6093 }
 0x80c   : > { %v6110_v26 = vadd.f32 %v17947_v41, %v5966_v0  ;;  %v6136_v11 = vadd.f32 %v17979_v6, %v5992_v36  ;;  %6242 = vmatpush1.bf16.msra.mxu1 %v6205_v15  ;;  %v6155_v45 = vmax.f32 %v6107_v42, 0.0  ;;  %v6181_v10 = vmax.f32 %v6133_v40, 0.0 }
 0x80d   : > { %v6111_v19 = vadd.f32 %v17947_v41, %v5967_v7  ;;  %v6130_v39 = vadd.f32 %v17971_v49, %v5986_v9  ;;  %v6156_v59 = vmax.f32 %v6108_v38, 0.0  ;;  %v6175_v25 = vmax.f32 %v6127_v37, 0.0 }
 0x80e   : > { %v6158_v21 = vmax.f32 %v6110_v26, 0.0  ;;  %v6184_v50 = vmax.f32 %v6136_v11, 0.0 }
 0x80f   : > { %v6159_v2 = vmax.f32 %v6111_v19, 0.0  ;;  %v6178_v53 = vmax.f32 %v6130_v39, 0.0  ;;  %v5705_v0 = vpop.f32.mrb[72].mxu0  ;;  %v14344_v22 = vpop.f32.mrb[92].mxu1 }
 0x810   : > { %v6208_v36 = vpack.c.bf16 %v6158_v21, %v6155_v45  ;;  %v5969_v15 = vmul.f32 %v17945_v57, %v5705_v0  ;;  %v6001_v8 = vmul.f32 %v14344_v22, %v18004_v52  ;;  %v5707_v41 = vpop.f32.mrb[73].mxu0  ;;  %v5846_v7 = vpop.f32.mrb[93].mxu1  ;;  %v18034_v9 = vpack.c.bf16 %v6184_v50, %v6181_v10 }
 0x811   : > { %v5970_v42 = vmul.f32 %v17945_v57, %v5707_v41  ;;  %v5995_v40 = vmul.f32 %v17977_v1, %v5846_v7  ;;  %v5709_v26 = vpop.f32.mrb[74].mxu0  ;;  %v14345_v38 = vpop.f32.mrb[94].mxu1  ;;  %v6209_v37 = vpack.c.bf16 %v6159_v2, %v6156_v59  ;;  %v18038_v11 = vpack.c.bf16 %v6178_v53, %v6175_v25 }
 0x812   : > { %v6113_v19 = vadd.f32 %v17949_v60, %v5969_v15  ;;  %v6145_v39 = vadd.f32 %v18030_v51, %v6001_v8  ;;  %v5972_v45 = vmul.f32 %v17951_v4, %v5709_v26  ;;  %v6004_v21 = vmul.f32 %v14345_v38, %v18026_v17  ;;  %v5711_v0 = vpop.f32.mrb[75].mxu0  ;;  %v5849_v10 = vpop.f32.mrb[95].mxu1 }
 0x813   : > { %v18044_v50 = vpop.permute.xlu1 %6098  ;;  %v6114_v57 = vadd.f32 %v17949_v60, %v5970_v42  ;;  %v6139_v22 = vadd.f32 %v17986_v44, %v5995_v40  ;;  %v5973_v59 = vmul.f32 %v17951_v4, %v5711_v0  ;;  %v5998_v25 = vmul.f32 %v17988_v14, %v5849_v10  ;;  %6243 = vmatprep.subr.bf16.mxu1 %v6209_v37 }
 0x814   : > { %v6116_v2 = vadd.f32 %v17955_v3, %v5972_v45  ;;  %v6148_v53 = vadd.f32 %v18044_v50, %v6004_v21  ;;  %6244 = vmatpush1.bf16.msra.mxu1 %v6208_v36  ;;  %v6161_v41 = vmax.f32 %v6113_v19, 0.0  ;;  %v6193_v7 = vmax.f32 %v6145_v39, 0.0 }
 0x815   : > { %v6117_v15 = vadd.f32 %v17955_v3, %v5973_v59  ;;  %v6142_v8 = vadd.f32 %v18006_v54, %v5998_v25  ;;  %v6162_v42 = vmax.f32 %v6114_v57, 0.0  ;;  %v6187_v40 = vmax.f32 %v6139_v22, 0.0 }
 0x816   : > { %v6164_v26 = vmax.f32 %v6116_v2, 0.0  ;;  %v6196_v60 = vmax.f32 %v6148_v53, 0.0 }
 0x817   : > { %v6165_v38 = vmax.f32 %v6117_v15, 0.0  ;;  %v6190_v4 = vmax.f32 %v6142_v8, 0.0  ;;  %v5715_v0 = vpop.f32.mrb[76].mxu0 }
 0x818   : > { %v6211_v10 = vpack.c.bf16 %v6164_v26, %v6161_v41  ;;  %v5975_v37 = vmul.f32 %v17953_v16, %v5715_v0  ;;  %v5717_v45 = vpop.f32.mrb[77].mxu0  ;;  %v18055_v61 = vpack.c.bf16 %v6196_v60, %v6193_v7 }
 0x819   : > { %v5976_v36 = vmul.f32 %v17953_v16, %v5717_v45  ;;  %v5719_v3 = vpop.f32.mrb[78].mxu0  ;;  %v6212_v21 = vpack.c.bf16 %v6165_v38, %v6162_v42  ;;  %v18058_v59 = vpack.c.bf16 %v6190_v4, %v6187_v40 }
 0x81a   : > { %v6119_v19 = vadd.f32 %v17957_v28, %v5975_v37  ;;  %v5978_v39 = vmul.f32 %v17959_v43, %v5719_v3  ;;  %v5721_v57 = vpop.f32.mrb[79].mxu0 }
 0x81b   : > { %v6120_v22 = vadd.f32 %v17957_v28, %v5976_v36  ;;  %v5979_v25 = vmul.f32 %v17959_v43, %v5721_v57  ;;  %6245 = vmatprep.subr.bf16.mxu1 %v6212_v21 }
 0x81c   : > { %v6122_v2 = vadd.f32 %v17963_v18, %v5978_v39  ;;  %6246 = vmatpush1.bf16.msra.mxu1 %v6211_v10  ;;  %v6167_v16 = vmax.f32 %v6119_v19, 0.0 }
 0x81d   : > { %v6123_v53 = vadd.f32 %v17963_v18, %v5979_v25  ;;  %v6168_v8 = vmax.f32 %v6120_v22, 0.0 }
 0x81e   : > { %v6170_v15 = vmax.f32 %v6122_v2, 0.0 }
 0x81f   : > { %v6171_v41 = vmax.f32 %v6123_v53, 0.0  ;;  %v5725_v7 = vpop.f32.mrb[80].mxu0 }
 0x820   : > { %v6214_v26 = vpack.c.bf16 %v6170_v15, %v6167_v16  ;;  %v5981_v60 = vmul.f32 %v17961_v48, %v5725_v7  ;;  %v5727_v42 = vpop.f32.mrb[81].mxu0 }
 0x821   : > { %v5982_v40 = vmul.f32 %v17961_v48, %v5727_v42  ;;  %v5729_v28 = vpop.f32.mrb[82].mxu0  ;;  %v6215_v38 = vpack.c.bf16 %v6171_v41, %v6168_v8 }
 0x822   : > { %v6125_v43 = vadd.f32 %v17965_v35, %v5981_v60  ;;  %v5984_v4 = vmul.f32 %v17967_v58, %v5729_v28  ;;  %v5731_v0 = vpop.f32.mrb[83].mxu0 }
 0x823   : > { %v6126_v18 = vadd.f32 %v17965_v35, %v5982_v40  ;;  %v5985_v10 = vmul.f32 %v17967_v58, %v5731_v0  ;;  %6247 = vmatprep.subr.bf16.mxu1 %v6215_v38 }
 0x824   : > { %v6128_v37 = vadd.f32 %v17971_v49, %v5984_v4  ;;  %6248 = vmatpush1.bf16.msra.mxu1 %v6214_v26  ;;  %v6173_v36 = vmax.f32 %v6125_v43, 0.0 }
 0x825   : > { %v6129_v45 = vadd.f32 %v17971_v49, %v5985_v10  ;;  %v6174_v48 = vmax.f32 %v6126_v18, 0.0 }
 0x826   : > { %v6176_v3 = vmax.f32 %v6128_v37, 0.0 }
 0x827   : > { %v6177_v21 = vmax.f32 %v6129_v45, 0.0  ;;  %v5735_v19 = vpop.f32.mrb[84].mxu0 }
 0x828   : > { %v6217_v39 = vpack.c.bf16 %v6176_v3, %v6173_v36  ;;  %v5987_v57 = vmul.f32 %v17969_v47, %v5735_v19  ;;  %v5737_v22 = vpop.f32.mrb[85].mxu0 }
 0x829   : > { %v5988_v25 = vmul.f32 %v17969_v47, %v5737_v22  ;;  %v5739_v35 = vpop.f32.mrb[86].mxu0  ;;  %v6218_v2 = vpack.c.bf16 %v6177_v21, %v6174_v48 }
 0x82a   : > { %v6131_v58 = vadd.f32 %v17973_v56, %v5987_v57  ;;  %v5990_v53 = vmul.f32 %v17975_v24, %v5739_v35  ;;  %v5741_v16 = vpop.f32.mrb[87].mxu0 }
 0x82b   : > { %v6132_v49 = vadd.f32 %v17973_v56, %v5988_v25  ;;  %v5991_v15 = vmul.f32 %v17975_v24, %v5741_v16  ;;  %6249 = vmatprep.subr.bf16.mxu1 %v6218_v2 }
 0x82c   : > { %v6134_v8 = vadd.f32 %v17979_v6, %v5990_v53  ;;  %6250 = vmatpush1.bf16.msra.mxu1 %v6217_v39  ;;  %v6179_v7 = vmax.f32 %v6131_v58, 0.0 }
 0x82d   : > { %v6135_v41 = vadd.f32 %v17979_v6, %v5991_v15  ;;  %v6180_v47 = vmax.f32 %v6132_v49, 0.0 }
 0x82e   : > { %v6182_v26 = vmax.f32 %v6134_v8, 0.0 }
 0x82f   : > { %v6183_v60 = vmax.f32 %v6135_v41, 0.0  ;;  %v5745_v42 = vpop.f32.mrb[88].mxu0 }
 0x830   : > { %v6220_v40 = vpack.c.bf16 %v6182_v26, %v6179_v7  ;;  %v5993_v28 = vmul.f32 %v17977_v1, %v5745_v42  ;;  %v5747_v38 = vpop.f32.mrb[89].mxu0  ;;  %v15807_v26 = vld [vmem:[%s19750_s15] sm:$0xff]  }
 0x831   : > { %v5994_v43 = vmul.f32 %v17977_v1, %v5747_v38  ;;  %v5749_v56 = vpop.f32.mrb[90].mxu0  ;;  %v6221_v4 = vpack.c.bf16 %v6183_v60, %v6180_v47 }
 0x832   : > { %v6137_v24 = vadd.f32 %v17986_v44, %v5993_v28  ;;  %v5996_v0 = vmul.f32 %v17988_v14, %v5749_v56  ;;  %v5751_v18 = vpop.f32.mrb[91].mxu0 }
 0x833   : > { %v6138_v6 = vadd.f32 %v17986_v44, %v5994_v43  ;;  %v5997_v10 = vmul.f32 %v17988_v14, %v5751_v18  ;;  %6251 = vmatprep.subr.bf16.mxu1 %v6221_v4 }
 0x834   : > { %v6140_v37 = vadd.f32 %v18006_v54, %v5996_v0  ;;  %6252 = vmatpush1.bf16.msra.mxu1 %v6220_v40  ;;  %v6185_v36 = vmax.f32 %v6137_v24, 0.0 }
 0x835   : > { %v6141_v45 = vadd.f32 %v18006_v54, %v5997_v10  ;;  %v6186_v1 = vmax.f32 %v6138_v6, 0.0 }
 0x836   : > { %v6188_v3 = vmax.f32 %v6140_v37, 0.0 }
 0x837   : > { %v6189_v48 = vmax.f32 %v6141_v45, 0.0  ;;  %v5755_v21 = vpop.f32.mrb[92].mxu0 }
 0x838   : > { %v6223_v19 = vpack.c.bf16 %v6188_v3, %v6185_v36  ;;  %v5999_v39 = vmul.f32 %v18004_v52, %v5755_v21  ;;  %v5757_v57 = vpop.f32.mrb[93].mxu0 }
 0x839   : > { %v6000_v22 = vmul.f32 %v18004_v52, %v5757_v57  ;;  %v5759_v44 = vpop.f32.mrb[94].mxu0  ;;  %v6224_v25 = vpack.c.bf16 %v6189_v48, %v6186_v1 }
 0x83a   : > { %v6143_v14 = vadd.f32 %v18030_v51, %v5999_v39  ;;  %v6002_v35 = vmul.f32 %v18026_v17, %v5759_v44  ;;  %v5761_v2 = vpop.f32.mrb[95].mxu0 }
 0x83b   : > { %v6144_v54 = vadd.f32 %v18030_v51, %v6000_v22  ;;  %v6003_v58 = vmul.f32 %v18026_v17, %v5761_v2  ;;  %6253 = vmatprep.subr.bf16.mxu1 %v6224_v25  ;;  %v19808_v17 = vmov 0   ;;  %v15808_v51 = vld [vmem:[%s19750_s15 + $0x8] sm:$0xff]  }
 0x83c   : > { %v6146_v53 = vadd.f32 %v18044_v50, %v6002_v35  ;;  %6254 = vmatpush1.bf16.msra.mxu1 %v6223_v19  ;;  %v6191_v49 = vmax.f32 %v6143_v14, 0.0 }
 0x83d   : > { %v6147_v16 = vadd.f32 %v18044_v50, %v6003_v58  ;;  %v6192_v52 = vmax.f32 %v6144_v54, 0.0 }
 0x83e   : > { %v6194_v15 = vmax.f32 %v6146_v53, 0.0 }
 0x83f   : > { %v6195_v8 = vmax.f32 %v6147_v16, 0.0 }
 0x840   : > { %v6226_v41 = vpack.c.bf16 %v6194_v15, %v6191_v49  ;;  %v6424_v15 = vld [vmem:[%s19753_s18] sm:$0xf] }
 0x841   : > { %v6227_v7 = vpack.c.bf16 %v6195_v8, %v6192_v52  ;;  %v19809_v52 = vmov 0.0  }
 0x843   : > { %6255 = vmatprep.subr.bf16.mxu1 %v6227_v7 }
 0x844   : > { %6256 = vmatpush1.bf16.msra.mxu1 %v6226_v41 }
 0x845   : > { %14346 = vmatprep.subr.bf16.mxu1 %v17994_v20 }
 0x847   : > { %6274 = vmatmul.mubr.bf16.vlgmr.msra.gmra.mrb[96].mxu1 %v15807_v26 }
 0x848   : > { %14347 = vmatpush3.bf16.msra.mxu1 %v17994_v20  ;;  %6283 = vmatprep.mubr.bf16.mxu1 %v19808_v17 }
 0x849   : > { %14348 = vmatprep.subr.bf16.mxu1 %v17991_v55 }
 0x84c   : > { %14349 = vmatpush3.bf16.msra.mxu1 %v17991_v55  ;;  %v6351_v55 = vpop.permute.xlu1 %6350 }
 0x84d   : > { %14350 = vmatprep.subr.bf16.mxu1 %v18014_v5 }
 0x84f   : > { %6284 = vmatmul.mubr.bf16.gmra.mrb[100].mxu1 %v15808_v51 }
 0x850   : > { %14351 = vmatpush3.bf16.msra.mxu1 %v18014_v5  ;;  %14362 = vmatprep.mubr.bf16.mxu1 %v15807_v26  ;;  %v6387_v5 = vpop.permute.xlu1 %6386 }
 0x851   : > { %14352 = vmatprep.subr.bf16.mxu1 %v18010_v29 }
 0x854   : > { %14353 = vmatpush3.bf16.msra.mxu1 %v18010_v29  ;;  %v6346_v29 = vpop.permute.xlu0 %6345 }
 0x855   : > { %14354 = vmatprep.subr.bf16.mxu1 %v18038_v11 }
 0x858   : > { %14355 = vmatpush3.bf16.msra.mxu1 %v18038_v11  ;;  %v6382_v20 = vpop.permute.xlu0 %6381 }
 0x859   : > { %14356 = vmatprep.subr.bf16.mxu1 %v18034_v9 }
 0x85c   : > { %14357 = vmatpush3.bf16.msra.mxu1 %v18034_v9 }
 0x85d   : > { %14358 = vmatprep.subr.bf16.mxu1 %v18058_v59 }
 0x860   : > { %14359 = vmatpush3.bf16.msra.mxu1 %v18058_v59  ;;  %v6356_v59 = vpop.permute.xlu0 %6355 }
 0x861   : > { %14360 = vmatprep.subr.bf16.mxu1 %v18055_v61 }
 0x864   : > { %14361 = vmatpush3.bf16.msra.mxu1 %v18055_v61  ;;  %v6361_v61 = vpop.permute.xlu1 %6360  ;;  %v6392_v3 = vpop.permute.xlu0 %6391 }
 0x867   : > { %14363 = vmatmul.mubr.bf16.vlgmr.msra.gmra.mrb[104].mxu1 %v15808_v51 }
 0x868   : > { %6466 = vmatprep.mubr.bf16.mxu1 %v19808_v17  ;;  %v6397_v22 = vpop.permute.xlu1 %6396 }
 0x91a   : > { %v6275_v11 = vpop.f32.mrb[96].mxu1 }
 0x91b   : > { %v6363_v50 = vmul.f32 %v6346_v29, %v6275_v11  ;;  %v6277_v47 = vpop.f32.mrb[97].mxu1 }
 0x91c   : > { %v6364_v60 = vmul.f32 %v6346_v29, %v6277_v47  ;;  %v6279_v9 = vpop.f32.mrb[98].mxu1 }
 0x91d   : > { %v6399_v42 = vadd.f32 %v6382_v20, %v6363_v50  ;;  %v6366_v40 = vmul.f32 %v6351_v55, %v6279_v9  ;;  %v6281_v28 = vpop.f32.mrb[99].mxu1 }
 0x91e   : > { %v6400_v38 = vadd.f32 %v6382_v20, %v6364_v60  ;;  %v6367_v43 = vmul.f32 %v6351_v55, %v6281_v28 }
 0x91f   : > { %v6402_v56 = vadd.f32 %v6387_v5, %v6366_v40  ;;  %v6411_v24 = vmax.f32 %v6399_v42, 0.0 }
 0x920   : > { %v6403_v4 = vadd.f32 %v6387_v5, %v6367_v43  ;;  %v6412_v18 = vmax.f32 %v6400_v38, 0.0 }
 0x921   : > { %v6414_v0 = vmax.f32 %v6402_v56, 0.0 }
 0x922   : > { %v6415_v6 = vmax.f32 %v6403_v4, 0.0  ;;  %v6285_v10 = vpop.f32.mrb[100].mxu1 }
 0x923   : > { %v6425_v37 = vpack.c.bf16 %v6414_v0, %v6411_v24  ;;  %v6369_v45 = vmul.f32 %v6356_v59, %v6285_v10  ;;  %v6287_v36 = vpop.f32.mrb[101].mxu1 }
 0x924   : > { %v6370_v1 = vmul.f32 %v6356_v59, %v6287_v36  ;;  %v6289_v48 = vpop.f32.mrb[102].mxu1  ;;  %v6426_v21 = vpack.c.bf16 %v6415_v6, %v6412_v18 }
 0x925   : > { %v6405_v19 = vadd.f32 %v6392_v3, %v6369_v45  ;;  %v6372_v39 = vmul.f32 %v6361_v61, %v6289_v48  ;;  %v6291_v57 = vpop.f32.mrb[103].mxu1  ;;  %v6535_v48 = vld [vmem:[%s19756_s21] sm:$0x1] }
 0x926   : > { %v6406_v44 = vadd.f32 %v6392_v3, %v6370_v1  ;;  %v6373_v25 = vmul.f32 %v6361_v61, %v6291_v57  ;;  %6434 = vmatprep.subr.bf16.mxu1 %v6426_v21 }
 0x927   : > { %v6408_v14 = vadd.f32 %v6397_v22, %v6372_v39  ;;  %6435 = vmatpush1.bf16.msra.mxu1 %v6425_v37  ;;  %v6417_v2 = vmax.f32 %v6405_v19, 0.0 }
 0x928   : > { %v6409_v35 = vadd.f32 %v6397_v22, %v6373_v25  ;;  %v6418_v58 = vmax.f32 %v6406_v44, 0.0 }
 0x929   : > { %v6420_v54 = vmax.f32 %v6408_v14, 0.0 }
 0x92a   : > { %v6421_v53 = vmax.f32 %v6409_v35, 0.0 }
 0x92b   : > { %v6428_v16 = vpack.c.bf16 %v6420_v54, %v6417_v2  ;;  %v6545_v2 = vlaneseq }
 0x92c   : > { %v6429_v49 = vpack.c.bf16 %v6421_v53, %v6418_v58 }
 0x92d   : > { %v6546_v54 = vshrl.u32 %v6545_v2, 7 }
 0x92e   : > { %6436 = vmatprep.subr.bf16.mxu1 %v6429_v49 }
 0x92f   : > { %6437 = vmatpush1.bf16.msra.mxu1 %v6428_v16  ;;  %v18140_v58 = vsub.s32 0, %v6546_v54 }
 0x930   : > { %14366 = vmatprep.subr.bf16.mxu1 %v19809_v52 }
 0x932   : > { %12782 = vmatmul.mubr.msk.bf16.vlgmr.msra.gmra.mrb[108].mxu1 %vm5192_vm4, %v6424_v15 }
 0x933   : > { %14370 = vmatprep.mubr.msk.bf16.mxu1 %vm16000_vm0, %v19809_v52 }
 0x93a   : > { %v14364_v8 = vpop.f32.mrb[104].mxu1 }
 0x93b   : > { %v6371_v41 = vmul.f32 %v14364_v8, %v6356_v59  ;;  %v6328_v7 = vpop.f32.mrb[105].mxu1 }
 0x93c   : > { %v6365_v26 = vmul.f32 %v6346_v29, %v6328_v7  ;;  %v14365_v51 = vpop.f32.mrb[106].mxu1  ;;  %v6518_v29 = vpop.permute.xlu0 %6517 }
 0x93d   : > { %v6407_v11 = vadd.f32 %v6392_v3, %v6371_v41  ;;  %v6374_v50 = vmul.f32 %v14365_v51, %v6361_v61  ;;  %v6331_v47 = vpop.f32.mrb[107].mxu1  ;;  %v6527_v61 = vpop.permute.xlu1 %6526 }
 0x93e   : > { %v6401_v60 = vadd.f32 %v6382_v20, %v6365_v26  ;;  %v6368_v9 = vmul.f32 %v6351_v55, %v6331_v47 }
 0x93f   : > { %v6410_v42 = vadd.f32 %v6397_v22, %v6374_v50  ;;  %v6419_v28 = vmax.f32 %v6407_v11, 0.0 }
 0x940   : > { %v6404_v40 = vadd.f32 %v6387_v5, %v6368_v9  ;;  %v6413_v43 = vmax.f32 %v6401_v60, 0.0  ;;  %v6543_v53 = vpop.permute.xlu0 %6542 }
 0x941   : > { %v6422_v38 = vmax.f32 %v6410_v42, 0.0  ;;  %v6548_v16 = vrot.slane %v6543_v53, %v18140_v58 }
 0x942   : > { %v6416_v56 = vmax.f32 %v6404_v40, 0.0 }
 0x943   : > { %v6430_v4 = vpack.c.bf16 %v6422_v38, %v6419_v28 }
 0x944   : > { %v6427_v24 = vpack.c.bf16 %v6416_v56, %v6413_v43 }
 0x946   : > { %14367 = vmatpush3.bf16.msra.mxu1 %v6427_v24 }
 0x947   : > { %14368 = vmatprep.subr.bf16.mxu1 %v19809_v52 }
 0x94a   : > { %14369 = vmatpush3.bf16.msra.mxu1 %v6430_v4 }
 0x94d   : > { %14371 = vmatmul.mubr.msk.bf16.vlgmr.msra.gmra.mrb[112].mxu1 %vm5192_vm4, %v6424_v15 }
 0x94e   : > { %6595 = vmatprep.mubr.bf16.mxu1 %v19808_v17 }
 0xa05   : > { %v6468_v59 = vpop.f32.mrb[108].mxu1 }
 0xa06   : > { %v6520_v20 = vmul.f32 %v6518_v29, %v6468_v59  ;;  %v6470_v55 = vpop.f32.mrb[109].mxu1 }
 0xa07   : > { %v6521_v5 = vmul.f32 %v6518_v29, %v6470_v55  ;;  %v6472_v0 = vpop.f32.mrb[110].mxu1 }
 0xa08   : > { %v6529_v18 = vadd.f32 %v6527_v61, %v6520_v20  ;;  %v6473_v6 = vpop.f32.mrb[111].mxu1 }
 0xa09   : > { %v6530_v10 = vadd.f32 %v6527_v61, %v6521_v5 }
 0xa0a   : > { %v6532_v37 = vmax.f32 %v6529_v18, 0.0 }
 0xa0b   : > { %v6533_v45 = vmax.f32 %v6530_v10, 0.0 }
 0xa0c   : > { %v6536_v36 = vpack.c.bf16 %v6532_v37, %v6532_v37 }
 0xa0d   : > { %v6537_v3 = vpack.c.bf16 %v6533_v45, %v6533_v45 }
 0xa0e   : > { %v6555_v1 = vsel %vm6553_vm8, %v6536_v36, 0 }
 0xa0f   : > { %12784 = vmatprep.subr.msk.bf16.mxu1 %vm6553_vm8, %v6537_v3 }
 0xa10   : > { %6564 = vmatpush1.bf16.msra.mxu1 %v6555_v1 }
 0xa13   : > { %12785 = vmatmul.mubr.msk.bf16.vlgmr.msra.gmra.mrb[116].mxu1 %vm6549_vm9, %v6535_v48 }
 0xa14   : > { %7123 = vmatprep.mubr.bf16.mxu1 %v19808_v17 }
 0xa20   : > { %v6509_v21 = vpop.f32.mrb[112].mxu1 }
 0xa21   : > { %v6522_v19 = vmul.f32 %v6518_v29, %v6509_v21  ;;  %v14372_v39 = vpop.f32.mrb[113].mxu1 }
 0xa22   : > { %v6512_v57 = vpop.f32.mrb[114].mxu1 }
 0xa23   : > { %v6531_v22 = vadd.f32 %v6527_v61, %v6522_v19  ;;  %v14373_v44 = vpop.f32.mrb[115].mxu1 }
 0xa25   : > { %v6534_v25 = vmax.f32 %v6531_v22, 0.0 }
 0xa27   : > { %v6538_v14 = vpack.c.bf16 %v6534_v25, %v6534_v25 }
 0xa29   : > { %v6561_v35 = vsel %vm6553_vm8, %v6538_v14, 0 }
 0xa2a   : > { %14375 = vmatpush3.bf16.msra.mxu0 %v6561_v35 }
 0xa2d   : > { %14377 = vmatmul.mubr.msk.bf16.vlgmr.msra.gmra.mrb[96].mxu0 %vm6549_vm9, %v6535_v48 }
 0xa2e   : > { %7216 = vmatprep.mubr.bf16.mxu0 %v19808_v17 }
 0xae6   : > { %v6597_v49 = vpop.f32.mrb[116].mxu1 }
 0xae7   : > { %v6598_v15 = vadd.f32 %v6597_v49, %v6548_v16  ;;  %v6599_v8 = vpop.f32.mrb[117].mxu1 }
 0xae8   : > { %v6600_v41 = vadd.f32 %v6599_v8, %v6548_v16  ;;  %v6601_v7 = vpop.f32.mrb[118].mxu1 }
 0xae9   : > { %v6644_v26 = vmax.f32 %v6598_v15, 0.0  ;;  %v6602_v51 = vpop.f32.mrb[119].mxu1 }
 0xaea   : > { %v6645_v11 = vmax.f32 %v6600_v41, 0.0 }
 0xaeb   : > { %6649 = vrot.lane.b32.xlu1 %v6644_v26, %s19810_s4 }
 0xaec   : > { %6651 = vrot.lane.b32.xlu0 %v6645_v11, %s19810_s4 }
 0xaef   : > { %6657 = vrot.lane.b32.xlu1 %v6645_v11, %s19804_s27 }
 0xb00   : > { %v6638_v50 = vpop.f32.mrb[96].mxu0 }
 0xb01   : > { %v6639_v47 = vadd.f32 %v6638_v50, %v6548_v16  ;;  %v14378_v60 = vpop.f32.mrb[97].mxu0 }
 0xb02   : > { %v6641_v9 = vpop.f32.mrb[98].mxu0 }
 0xb03   : > { %v6646_v42 = vmax.f32 %v6639_v47, 0.0  ;;  %v14379_v40 = vpop.f32.mrb[99].mxu0 }
 0xb05   : > { %6659 = vrot.lane.b32.xlu0 %v6646_v42, %s19804_s27 }
 0xb5d   : > { %v6650_v28 = vpop.permute.xlu1 %6649 }
 0xb5e   : > { %v6652_v38 = vpop.permute.xlu0 %6651 }
 0xb5f   : > { %v6653_v43 = vsel %vm5192_vm4, %v6650_v28, %v6652_v38 }
 0xb60   : > { %v6655_v56 = vmax.f32 %v6644_v26, %v6653_v43 }
 0xb61   : > { %v6658_v4 = vpop.permute.xlu1 %6657 }
 0xb77   : > { %v6660_v24 = vpop.permute.xlu0 %6659 }
 0xb78   : > { %v6661_v29 = vsel %vm3322_vm2, %v6658_v4, %v6660_v24 }
 0xb79   : > { %v6663_v59 = vmax.f32 %v6655_v56, %v6661_v29 }
 0xb7b   : > { %6677 = vrot.lane.b32.xlu0 %v6663_v59, %s19804_s27  ;;  %6668 = vrot.lane.b32.xlu1 %v6663_v59, %s19803_s7  ;;  %v6664_v21 = vsub.f32 %v6644_v26, %v6663_v59 }
 0xb7d   : > { %v6665_v19 = vmul.f32 1.442695, %v6664_v21  ;;  %v15811_v21 = vld [vmem:[%s19812_s26 + $0x4] ss:$20 sps:$4 sm:$0xff]  }
 0xb7e   : > { %7091 = vmatprep.subr.bf16.mxu1 %v15811_v21 }
 0xbed   : > { %v6678_v20 = vpop.permute.xlu0 %6677  ;;  %v6669_v55 = vpop.permute.xlu1 %6668 }
 0xbee   : > { %v6671_v61 = vsub.f32 %v6644_v26, %v6669_v55  ;;  %v6672_v5 = vsub.f32 %v6645_v11, %v6669_v55  ;;  %v6680_v0 = vsub.f32 %v6645_v11, %v6678_v20  ;;  %v6681_v6 = vsub.f32 %v6646_v42, %v6678_v20 }
 0xbf0   : > { %v6673_v18 = vmul.f32 1.442695, %v6671_v61  ;;  %v6675_v10 = vmul.f32 1.442695, %v6672_v5  ;;  %v6682_v37 = vmul.f32 1.442695, %v6680_v0 }
 0xbf1   : > { %v6684_v45 = vmul.f32 1.442695, %v6681_v6 }
 0xbf2   : > { %15978 = vpow2.f32 %v6673_v18 }
 0xbf3   : > { %15980 = vpow2.f32 %v6675_v10 }
 0xbf4   : > { %15982 = vpow2.f32 %v6682_v37 }
 0xbf5   : > { %15984 = vpow2.f32 %v6684_v45 }
 0xbf6   : > { %15986 = vpow2.f32 %v6665_v19  ;;  %v15814_v19 = vld [vmem:[%s19812_s26 + $0xc] ss:$20 sps:$4 sm:$0xff]  }
 0xbf7   : > { %7184 = vmatprep.subr.bf16.mxu0 %v15814_v19 }
 0xbfc   : > { %v15979_v36 = vpop.eup %15978 }
 0xbfd   : > { %v18151_v3 = vpop.eup %15980  ;;  %6688 = vrot.lane.b32.xlu1 %v15979_v36, %s19810_s4 }
 0xbfe   : > { %6690 = vrot.lane.b32.xlu0 %v18151_v3, %s19810_s4  ;;  %v15983_v1 = vpop.eup %15982 }
 0xbff   : > { %v18156_v48 = vpop.eup %15984 }
 0xc00   : > { %v15987_v44 = vpop.eup %15986 }
 0xc01   : > { %6697 = vrot.lane.b32.xlu1 %v15983_v1, %s19804_s27 }
 0xc02   : > { %6699 = vrot.lane.b32.xlu0 %v18156_v48, %s19804_s27 }
 0xc06   : > { %6783 = vrot.lane.b32.xlu0 %v17616_v46, %s19807_s30 }
 0xc6f   : > { %v6689_v39 = vpop.permute.xlu1 %6688 }
 0xc70   : > { %v6691_v57 = vpop.permute.xlu0 %6690 }
 0xc71   : > { %v6692_v22 = vsel %vm5192_vm4, %v6689_v39, %v6691_v57 }
 0xc72   : > { %v6694_v14 = vadd.f32 %v15987_v44, %v6692_v22 }
 0xc73   : > { %v6698_v25 = vpop.permute.xlu1 %6697 }
 0xc74   : > { %v6700_v35 = vpop.permute.xlu0 %6699 }
 0xc75   : > { %v6701_v2 = vsel %vm3322_vm2, %v6698_v25, %v6700_v35 }
 0xc76   : > { %v6703_v54 = vadd.f32 %v6701_v2, %v6694_v14 }
 0xc78   : > { %15988 = vrcp.f32 %v6703_v54 }
 0xc82   : > { %v15989_v53 = vpop.eup %15988 }
 0xc83   : > { %v18165_v16 = vmul.f32 %v15989_v53, %v15987_v44  ;;  %6712 = vrot.lane.b32.xlu0 %v15989_v53, %s19804_s27  ;;  %6707 = vrot.lane.b32.xlu1 %v15989_v53, %s19803_s7 }
 0xc87   : > { %6801 = vrot.lane.b32.xlu0 %v17587_v33, %s19805_s3  ;;  %6781 = vrot.lane.b32.xlu1 %v17627_v62, %s19807_s30 }
 0xc8b   : > { %6843 = vrot.lane.b32.xlu0 %v17587_v33, %s19803_s7  ;;  %6799 = vrot.lane.b32.xlu1 %v17585_v27, %s19805_s3 }
 0xc8f   : > { %6873 = vrot.lane.b32.xlu0 %v17613_v32, %s19811_s29  ;;  %6841 = vrot.lane.b32.xlu1 %v17585_v27, %s19803_s7 }
 0xc93   : > { %6893 = vrot.lane.b32.xlu0 %v17641_v13, %s19807_s30  ;;  %6871 = vrot.lane.b32.xlu1 %v17611_v34, %s19811_s29 }
 0xc97   : > { %6919 = vrot.lane.b32.xlu0 %v17613_v32, %s19810_s4  ;;  %6891 = vrot.lane.b32.xlu1 %v17639_v12, %s19807_s30 }
 0xc9b   : > { %6961 = vrot.lane.b32.xlu0 %v17613_v32, %s19806_s22  ;;  %6917 = vrot.lane.b32.xlu1 %v17611_v34, %s19810_s4 }
 0xc9f   : > { %6979 = vrot.lane.b32.xlu0 %v17641_v13, %s19811_s29  ;;  %6959 = vrot.lane.b32.xlu1 %v17611_v34, %s19806_s22 }
 0xca3   : > { %6731 = vrot.lane.b32.xlu0 %v17616_v46, %s19803_s7  ;;  %6977 = vrot.lane.b32.xlu1 %v17639_v12, %s19811_s29 }
 0xca7   : > { %6755 = vrot.lane.b32.xlu0 %v17587_v33, %s19804_s27  ;;  %6729 = vrot.lane.b32.xlu1 %v17627_v62, %s19803_s7 }
 0xcab   : > { %6775 = vrot.lane.b32.xlu0 %v17575_v30, %s19811_s29  ;;  %6753 = vrot.lane.b32.xlu1 %v17585_v27, %s19804_s27  ;;  %v6784_v27 = vpop.permute.xlu0 %6783 }
 0xcaf   : > { %6819 = vrot.lane.b32.xlu0 %v17575_v30, %s19810_s4  ;;  %6773 = vrot.lane.b32.xlu1 %v17573_v63, %s19811_s29 }
 0xcb3   : > { %6863 = vrot.lane.b32.xlu0 %v17599_v31, %s19806_s22  ;;  %6817 = vrot.lane.b32.xlu1 %v17573_v63, %s19810_s4 }
 0xcb7   : > { %6911 = vrot.lane.b32.xlu0 %v17599_v31, %s19804_s27  ;;  %6861 = vrot.lane.b32.xlu1 %v17597_v23, %s19806_s22 }
 0xcbb   : > { %6953 = vrot.lane.b32.xlu0 %v17599_v31, %s19805_s3  ;;  %6909 = vrot.lane.b32.xlu1 %v17597_v23, %s19804_s27 }
 0xcbf   : > { %6951 = vrot.lane.b32.xlu1 %v17597_v23, %s19805_s3 }
 0xcf5   : > { %v6713_v33 = vpop.permute.xlu0 %6712  ;;  %v6708_v34 = vpop.permute.xlu1 %6707 }
 0xcf6   : > { %v6715_v32 = vmul.f32 %v15983_v1, %v6713_v33  ;;  %v6710_v49 = vmul.f32 %v15979_v36, %v6708_v34  ;;  %v6711_v31 = vmul.f32 %v18151_v3, %v6708_v34  ;;  %v6716_v20 = vmul.f32 %v18156_v48, %v6713_v33 }
 0xcf8   : > { %v18228_v15 = vrot.slane %v6710_v49, %v18140_v58  ;;  %v18231_v7 = vrot.slane %v6715_v32, %v18140_v58  ;;  %v6828_v50 = vrot.slane %v6711_v31, %v18140_v58  ;;  %v6938_v18 = vrot.slane %v6716_v20, %v18140_v58 }
 0xcf9   : > { %v6802_v8 = vpop.permute.xlu0 %6801  ;;  %v6782_v41 = vpop.permute.xlu1 %6781 }
 0xcfa   : > { %v6787_v26 = vmul.f32 %v6782_v41, %v18228_v15  ;;  %v6788_v51 = vmul.f32 %v6784_v27, %v18228_v15  ;;  %v6806_v47 = vmul.f32 %v6802_v8, %v18231_v7  ;;  %v6830_v40 = vmul.f32 %v6828_v50, %v17616_v46 }
 0xcfb   : > { %v6829_v28 = vmul.f32 %v6828_v50, %v17627_v62  ;;  %v6940_v37 = vmul.f32 %v6938_v18, %v17641_v13  ;;  %v6939_v45 = vmul.f32 %v6938_v18, %v17639_v12  ;;  %v15809_v12 = vld [vmem:[%s19812_s26] ss:$20 sps:$4 sm:$0xff]   ;;  %v15812_v13 = vld [vmem:[%s19812_s26 + $0x8] ss:$20 sps:$4 sm:$0xff]  }
 0xcfc   : > { %6793 = vrot.lane.b32.xlu0 %v6788_v51, %s19810_s4  ;;  %6791 = vrot.lane.b32.xlu1 %v6787_v26, %s19810_s4  ;;  %v18292_v51 = vrot.slane %v18165_v16, %v18140_v58 }
 0xcfd   : > { %v6844_v23 = vpop.permute.xlu0 %6843  ;;  %v6800_v11 = vpop.permute.xlu1 %6799  ;;  %7092 = vmatpush1.bf16.msra.mxu1 %v15809_v12  ;;  %7185 = vmatpush1.bf16.msra.mxu0 %v15812_v13 }
 0xcfe   : > { %v6805_v60 = vmul.f32 %v6800_v11, %v18231_v7  ;;  %v6848_v56 = vmul.f32 %v6844_v23, %v18231_v7  ;;  %14394 = vmatprep.subr.bf16.mxu0 %v19809_v52 }
 0xd00   : > { %6811 = vrot.lane.b32.xlu0 %v6806_v47, %s19804_s27  ;;  %6809 = vrot.lane.b32.xlu1 %v6805_v60, %s19804_s27 }
 0xd01   : > { %v6874_v9 = vpop.permute.xlu0 %6873  ;;  %v6842_v42 = vpop.permute.xlu1 %6841 }
 0xd02   : > { %v6847_v4 = vmul.f32 %v6842_v42, %v18231_v7  ;;  %v6878_v29 = vmul.f32 %v6874_v9, %v6828_v50 }
 0xd04   : > { %6835 = vrot.lane.b32.xlu0 %v6830_v40, %s19810_s4  ;;  %6833 = vrot.lane.b32.xlu1 %v6829_v28, %s19810_s4 }
 0xd05   : > { %v6894_v38 = vpop.permute.xlu0 %6893  ;;  %v6872_v43 = vpop.permute.xlu1 %6871 }
 0xd06   : > { %v6877_v59 = vmul.f32 %v6872_v43, %v6828_v50  ;;  %v6898_v55 = vmul.f32 %v6894_v38, %v18231_v7 }
 0xd08   : > { %6853 = vrot.lane.b32.xlu0 %v6848_v56, %s19804_s27  ;;  %6851 = vrot.lane.b32.xlu1 %v6847_v4, %s19804_s27 }
 0xd09   : > { %v6892_v24 = vpop.permute.xlu1 %6891  ;;  %v6920_v46 = vpop.permute.xlu0 %6919 }
 0xd0a   : > { %v6897_v61 = vmul.f32 %v6892_v24, %v18231_v7  ;;  %v6924_v6 = vmul.f32 %v6920_v46, %v6828_v50 }
 0xd0c   : > { %6883 = vrot.lane.b32.xlu0 %v6878_v29, %s19810_s4  ;;  %6881 = vrot.lane.b32.xlu1 %v6877_v59, %s19810_s4 }
 0xd0d   : > { %v6918_v62 = vpop.permute.xlu1 %6917  ;;  %v6962_v5 = vpop.permute.xlu0 %6961 }
 0xd0e   : > { %v6923_v10 = vmul.f32 %v6918_v62, %v6828_v50  ;;  %v6966_v1 = vmul.f32 %v6962_v5, %v6828_v50 }
 0xd10   : > { %6903 = vrot.lane.b32.xlu0 %v6898_v55, %s19804_s27  ;;  %6901 = vrot.lane.b32.xlu1 %v6897_v61, %s19804_s27 }
 0xd11   : > { %v6960_v0 = vpop.permute.xlu1 %6959  ;;  %v6980_v36 = vpop.permute.xlu0 %6979 }
 0xd12   : > { %v6965_v48 = vmul.f32 %v6960_v0, %v6828_v50  ;;  %v6984_v22 = vmul.f32 %v6980_v36, %v6938_v18 }
 0xd14   : > { %6929 = vrot.lane.b32.xlu0 %v6924_v6, %s19810_s4  ;;  %6927 = vrot.lane.b32.xlu1 %v6923_v10, %s19810_s4 }
 0xd15   : > { %v6978_v3 = vpop.permute.xlu1 %6977  ;;  %v6732_v39 = vpop.permute.xlu0 %6731 }
 0xd16   : > { %v6983_v44 = vmul.f32 %v6978_v3, %v6938_v18  ;;  %v6736_v25 = vmul.f32 %v6732_v39, %v18228_v15 }
 0xd18   : > { %6945 = vrot.lane.b32.xlu0 %v6940_v37, %s19804_s27  ;;  %6943 = vrot.lane.b32.xlu1 %v6939_v45, %s19804_s27 }
 0xd19   : > { %v6730_v57 = vpop.permute.xlu1 %6729  ;;  %v6756_v35 = vpop.permute.xlu0 %6755 }
 0xd1a   : > { %v6735_v14 = vmul.f32 %v6730_v57, %v18228_v15  ;;  %v6760_v54 = vmul.f32 %v6756_v35, %v18231_v7 }
 0xd1c   : > { %6971 = vrot.lane.b32.xlu0 %v6966_v1, %s19810_s4  ;;  %6969 = vrot.lane.b32.xlu1 %v6965_v48, %s19810_s4 }
 0xd1d   : > { %v6754_v2 = vpop.permute.xlu1 %6753  ;;  %v6776_v27 = vpop.permute.xlu0 %6775 }
 0xd1e   : > { %v6759_v53 = vmul.f32 %v6754_v2, %v18231_v7  ;;  %v6780_v11 = vmul.f32 %v6776_v27, %v18292_v51 }
 0xd20   : > { %6989 = vrot.lane.b32.xlu0 %v6984_v22, %s19804_s27  ;;  %6987 = vrot.lane.b32.xlu1 %v6983_v44, %s19804_s27 }
 0xd21   : > { %v6774_v33 = vpop.permute.xlu1 %6773  ;;  %v6820_v34 = vpop.permute.xlu0 %6819 }
 0xd22   : > { %v6779_v50 = vmul.f32 %v6774_v33, %v18292_v51  ;;  %v6824_v4 = vmul.f32 %v6820_v34, %v18292_v51 }
 0xd24   : > { %6741 = vrot.lane.b32.xlu0 %v6736_v25, %s19810_s4  ;;  %6739 = vrot.lane.b32.xlu1 %v6735_v14, %s19810_s4 }
 0xd25   : > { %v6818_v32 = vpop.permute.xlu1 %6817  ;;  %v6864_v49 = vpop.permute.xlu0 %6863 }
 0xd26   : > { %v6823_v58 = vmul.f32 %v6818_v32, %v18292_v51  ;;  %v6868_v5 = vmul.f32 %v6864_v49, %v18292_v51 }
 0xd28   : > { %6765 = vrot.lane.b32.xlu0 %v6760_v54, %s19804_s27  ;;  %6763 = vrot.lane.b32.xlu1 %v6759_v53, %s19804_s27  ;;  %v15815_v53 = vld [vmem:[%s19812_s26 + $0x10] ss:$20 sps:$4 sm:$0xff]  }
 0xd29   : > { %v6862_v15 = vpop.permute.xlu1 %6861  ;;  %v6912_v8 = vpop.permute.xlu0 %6911  ;;  %14380 = vmatprep.subr.bf16.mxu1 %v15815_v53 }
 0xd2a   : > { %v6867_v0 = vmul.f32 %v6862_v15, %v18292_v51  ;;  %v6916_v21 = vmul.f32 %v6912_v8, %v18292_v51 }
 0xd2d   : > { %v6910_v41 = vpop.permute.xlu1 %6909  ;;  %v6954_v31 = vpop.permute.xlu0 %6953 }
 0xd2e   : > { %v6915_v19 = vmul.f32 %v6910_v41, %v18292_v51  ;;  %v6958_v2 = vmul.f32 %v6954_v31, %v18292_v51  ;;  %v6722_v31 = vmul.f32 %v18292_v51, %v17575_v30 }
 0xd31   : > { %v6952_v26 = vpop.permute.xlu1 %6951 }
 0xd32   : > { %v6957_v54 = vmul.f32 %v6952_v26, %v18292_v51  ;;  %v6721_v26 = vmul.f32 %v18292_v51, %v17573_v63 }
 0xd6e   : > { %v6794_v23 = vpop.permute.xlu0 %6793  ;;  %v6792_v7 = vpop.permute.xlu1 %6791 }
 0xd6f   : > { %v6798_v47 = vadd.f32 %v6794_v23, %v6780_v11  ;;  %v6797_v60 = vadd.f32 %v6792_v7, %v6779_v50 }
 0xd72   : > { %v6812_v9 = vpop.permute.xlu0 %6811  ;;  %v6810_v42 = vpop.permute.xlu1 %6809 }
 0xd73   : > { %v6816_v40 = vadd.f32 %v6812_v9, %v6798_v47  ;;  %v6815_v28 = vadd.f32 %v6810_v42, %v6797_v60 }
 0xd75   : > { %v15570_v38 = vpack.i.bf16 %v6816_v40, %v6815_v28 }
 0xd76   : > { %v6836_v43 = vpop.permute.xlu0 %6835  ;;  %v6834_v56 = vpop.permute.xlu1 %6833 }
 0xd77   : > { %15571 = vrot.lane.b32.xlu1 %v15570_v38, %s19807_s30  ;;  %v6840_v16 = vadd.f32 %v6836_v43, %v6824_v4  ;;  %v6839_v24 = vadd.f32 %v6834_v56, %v6823_v58 }
 0xd7a   : > { %v6854_v29 = vpop.permute.xlu0 %6853  ;;  %v6852_v59 = vpop.permute.xlu1 %6851 }
 0xd7b   : > { %v6858_v46 = vadd.f32 %v6854_v29, %v6840_v16  ;;  %v6857_v62 = vadd.f32 %v6852_v59, %v6839_v24 }
 0xd7d   : > { %v15575_v20 = vpack.i.bf16 %v6858_v46, %v6857_v62 }
 0xd7e   : > { %v6884_v55 = vpop.permute.xlu0 %6883  ;;  %v6882_v61 = vpop.permute.xlu1 %6881 }
 0xd7f   : > { %15576 = vrot.lane.b32.xlu0 %v15575_v20, %s19803_s7  ;;  %v6888_v18 = vadd.f32 %v6884_v55, %v6868_v5  ;;  %v6887_v6 = vadd.f32 %v6882_v61, %v6867_v0  ;;  %s19814_s7 = sld [smem:[#allocation8_spill]] }
 0xd82   : > { %v6904_v10 = vpop.permute.xlu0 %6903  ;;  %v6902_v37 = vpop.permute.xlu1 %6901 }
 0xd83   : > { %v6908_v45 = vadd.f32 %v6904_v10, %v6888_v18  ;;  %v6907_v36 = vadd.f32 %v6902_v37, %v6887_v6 }
 0xd85   : > { %v15580_v3 = vpack.i.bf16 %v6908_v45, %v6907_v36 }
 0xd86   : > { %v6930_v1 = vpop.permute.xlu0 %6929  ;;  %v6928_v48 = vpop.permute.xlu1 %6927 }
 0xd87   : > { %15581 = vrot.lane.b32.xlu1 %v15580_v3, %s19805_s3  ;;  %v6934_v12 = vadd.f32 %v6930_v1, %v6916_v21  ;;  %v6933_v13 = vadd.f32 %v6928_v48, %v6915_v19 }
 0xd8a   : > { %v6946_v39 = vpop.permute.xlu0 %6945  ;;  %v6944_v57 = vpop.permute.xlu1 %6943 }
 0xd8b   : > { %v6950_v22 = vadd.f32 %v6946_v39, %v6934_v12  ;;  %v6949_v44 = vadd.f32 %v6944_v57, %v6933_v13 }
 0xd8d   : > { %v15585_v25 = vpack.i.bf16 %v6950_v22, %v6949_v44 }
 0xd8e   : > { %v6972_v14 = vpop.permute.xlu0 %6971  ;;  %v6970_v35 = vpop.permute.xlu1 %6969 }
 0xd8f   : > { %15586 = vrot.lane.b32.xlu0 %v15585_v25, %s19804_s27  ;;  %v6976_v27 = vadd.f32 %v6972_v14, %v6958_v2  ;;  %v6975_v33 = vadd.f32 %v6970_v35, %v6957_v54 }
 0xd92   : > { %v6990_v34 = vpop.permute.xlu0 %6989  ;;  %v6988_v32 = vpop.permute.xlu1 %6987 }
 0xd93   : > { %v6994_v49 = vadd.f32 %v6990_v34, %v6976_v27  ;;  %v6993_v15 = vadd.f32 %v6988_v32, %v6975_v33 }
 0xd95   : > { %v15590_v8 = vpack.i.bf16 %v6994_v49, %v6993_v15 }
 0xd96   : > { %v6742_v41 = vpop.permute.xlu0 %6741  ;;  %v6740_v23 = vpop.permute.xlu1 %6739 }
 0xd97   : > { %15591 = vrot.lane.b32.xlu1 %v15590_v8, %s19806_s22  ;;  %v6746_v7 = vadd.f32 %v6742_v41, %v6722_v31  ;;  %v6745_v11 = vadd.f32 %v6740_v23, %v6721_v26 }
 0xd9a   : > { %v6766_v50 = vpop.permute.xlu0 %6765  ;;  %v6764_v47 = vpop.permute.xlu1 %6763 }
 0xd9b   : > { %v6770_v60 = vadd.f32 %v6766_v50, %v6746_v7  ;;  %v6769_v9 = vadd.f32 %v6764_v47, %v6745_v11 }
 0xd9d   : > { %v7035_v42 = vpack.c.bf16 %v6770_v60, %v6769_v9 }
 0xd9f   : > { %12792 = vmatmul.mubr.msk.bf16.vlgmr.msra.gmra.mrb[120].mxu1 %vm5188_vm3, %v7035_v42  ;;  %12798 = vmatmul.mubr.msk.bf16.vlgmr.msra.gmra.mrb[100].mxu0 %vm5188_vm3, %v7035_v42 }
 0xda0   : > { %7133 = vmatprep.mubr.bf16.mxu1 %v19808_v17  ;;  %7226 = vmatprep.mubr.bf16.mxu0 %v19808_v17 }
 0xda1   : > { %14381 = vmatpush3.bf16.msra.mxu1 %v15815_v53 }
 0xda2   : > { %14556 = vmatprep.subr.bf16.mxu1 %v19809_v52 }
 0xde9   : > { %v15572_v63 = vpop.permute.xlu1 %15571 }
 0xdea   : > { %v15574_v30 = vunpack.i.h.bf16 %v15572_v63  ;;  %v15573_v51 = vunpack.i.l.bf16 %v15572_v63 }
 0xdec   : > { %v7036_v40 = vpack.c.bf16 %v15574_v30, %v15573_v51 }
 0xdee   : > { %12793 = vmatmul.mubr.msk.bf16.gmra.mrb[124].mxu1 %vm5188_vm3, %v7036_v40  ;;  %12799 = vmatmul.mubr.msk.bf16.gmra.mrb[104].mxu0 %vm5188_vm3, %v7036_v40 }
 0xdef   : > { %7143 = vmatprep.mubr.bf16.mxu1 %v19808_v17  ;;  %7236 = vmatprep.mubr.bf16.mxu0 %v19808_v17 }
 0xdf1   : > { %v15577_v28 = vpop.permute.xlu0 %15576 }
 0xdf2   : > { %v15579_v38 = vunpack.i.h.bf16 %v15577_v28  ;;  %v15578_v43 = vunpack.i.l.bf16 %v15577_v28 }
 0xdf4   : > { %v7037_v56 = vpack.c.bf16 %v15579_v38, %v15578_v43 }
 0xdf6   : > { %12794 = vmatmul.mubr.msk.bf16.gmra.mrb[128].mxu1 %vm5188_vm3, %v7037_v56  ;;  %12800 = vmatmul.mubr.msk.bf16.gmra.mrb[108].mxu0 %vm5188_vm3, %v7037_v56 }
 0xdf7   : > { %7153 = vmatprep.mubr.bf16.mxu1 %v19808_v17  ;;  %7246 = vmatprep.mubr.bf16.mxu0 %v19808_v17 }
 0xdf9   : > { %v15582_v4 = vpop.permute.xlu1 %15581 }
 0xdfa   : > { %v15584_v58 = vunpack.i.h.bf16 %v15582_v4  ;;  %v15583_v16 = vunpack.i.l.bf16 %v15582_v4 }
 0xdfc   : > { %v7038_v24 = vpack.c.bf16 %v15584_v58, %v15583_v16 }
 0xdfe   : > { %12795 = vmatmul.mubr.msk.bf16.gmra.mrb[132].mxu1 %vm5188_vm3, %v7038_v24  ;;  %12801 = vmatmul.mubr.msk.bf16.gmra.mrb[112].mxu0 %vm5188_vm3, %v7038_v24 }
 0xdff   : > { %7163 = vmatprep.mubr.bf16.mxu1 %v19808_v17  ;;  %7256 = vmatprep.mubr.bf16.mxu0 %v19808_v17 }
 0xe01   : > { %v15587_v29 = vpop.permute.xlu0 %15586 }
 0xe02   : > { %v15589_v59 = vunpack.i.h.bf16 %v15587_v29  ;;  %v15588_v46 = vunpack.i.l.bf16 %v15587_v29 }
 0xe04   : > { %v7039_v62 = vpack.c.bf16 %v15589_v59, %v15588_v46 }
 0xe06   : > { %12796 = vmatmul.mubr.msk.bf16.gmra.mrb[136].mxu1 %vm5188_vm3, %v7039_v62  ;;  %12802 = vmatmul.mubr.msk.bf16.gmra.mrb[116].mxu0 %vm5188_vm3, %v7039_v62 }
 0xe07   : > { %7173 = vmatprep.mubr.bf16.mxu1 %v19808_v17  ;;  %7266 = vmatprep.mubr.bf16.mxu0 %v19808_v17 }
 0xe09   : > { %v15592_v20 = vpop.permute.xlu1 %15591 }
 0xe0a   : > { %v15594_v55 = vunpack.i.h.bf16 %v15592_v20  ;;  %v15593_v61 = vunpack.i.l.bf16 %v15592_v20 }
 0xe0c   : > { %v7040_v5 = vpack.c.bf16 %v15594_v55, %v15593_v61 }
 0xe0e   : > { %12797 = vmatmul.mubr.msk.bf16.gmra.mrb[140].mxu1 %vm5188_vm3, %v7040_v5  ;;  %12803 = vmatmul.mubr.msk.bf16.gmra.mrb[120].mxu0 %vm5188_vm3, %v7040_v5 }
 0xe0f   : > { %14382 = vmatprep.mubr.msk.bf16.mxu1 %vm5188_vm3, %v7035_v42  ;;  %14400 = vmatprep.mubr.msk.bf16.mxu0 %vm16000_vm0, %v19809_v52 }
 0xe16   : > { %14383 = vmatmul.mubr.msk.bf16.vlgmr.msra.gmra.mrb[144].mxu1 %vm5188_vm3, %v7036_v40 }
 0xe17   : > { %14386 = vmatprep.mubr.msk.bf16.mxu1 %vm5188_vm3, %v7037_v56 }
 0xe1e   : > { %14387 = vmatmul.mubr.msk.bf16.gmra.mrb[148].mxu1 %vm5188_vm3, %v7038_v24 }
 0xe1f   : > { %14390 = vmatprep.mubr.msk.bf16.mxu1 %vm5188_vm3, %v7039_v62 }
 0xe26   : > { %14391 = vmatmul.mubr.msk.bf16.gmra.mrb[152].mxu1 %vm5188_vm3, %v7040_v5 }
 0xe27   : > { %14562 = vmatprep.mubr.msk.bf16.mxu1 %vm16000_vm0, %v19809_v52 }
 0xe72   : > { %v7125_v0 = vpop.f32.mrb[120].mxu1  ;;  %v7218_v18 = vpop.f32.mrb[100].mxu0 }
 0xe73   : > { %v7127_v6 = vpop.f32.mrb[121].mxu1  ;;  %v7220_v10 = vpop.f32.mrb[101].mxu0 }
 0xe74   : > { %v7129_v37 = vpop.f32.mrb[122].mxu1  ;;  %v7222_v45 = vpop.f32.mrb[102].mxu0 }
 0xe75   : > { %v18349_v36 = vpack.c.bf16 %v7129_v37, %v7125_v0  ;;  %v18351_v3 = vpack.c.bf16 %v7222_v45, %v7218_v18  ;;  %v7131_v1 = vpop.f32.mrb[123].mxu1  ;;  %v7224_v48 = vpop.f32.mrb[103].mxu0 }
 0xe76   : > { %v18353_v21 = vpack.c.bf16 %v7131_v1, %v7127_v6  ;;  %v18355_v19 = vpack.c.bf16 %v7224_v48, %v7220_v10 }
 0xe77   : > { %7419 = vrot.lane.b32.xlu0 %v18349_v36, %s19804_s27 }
 0xec1   : > { %v7135_v12 = vpop.f32.mrb[124].mxu1  ;;  %v7228_v13 = vpop.f32.mrb[104].mxu0 }
 0xec2   : > { %v7137_v39 = vpop.f32.mrb[125].mxu1  ;;  %v7230_v57 = vpop.f32.mrb[105].mxu0 }
 0xec3   : > { %v7139_v22 = vpop.f32.mrb[126].mxu1  ;;  %v7232_v44 = vpop.f32.mrb[106].mxu0 }
 0xec4   : > { %v18359_v25 = vpack.c.bf16 %v7139_v22, %v7135_v12  ;;  %v18361_v14 = vpack.c.bf16 %v7232_v44, %v7228_v13  ;;  %v7141_v35 = vpop.f32.mrb[127].mxu1  ;;  %v7234_v2 = vpop.f32.mrb[107].mxu0 }
 0xec5   : > { %v18363_v54 = vpack.c.bf16 %v7141_v35, %v7137_v39  ;;  %v18365_v53 = vpack.c.bf16 %v7234_v2, %v7230_v57 }
 0xec6   : > { %7421 = vrot.lane.b32.xlu1 %v18359_v25, %s19804_s27 }
 0xec9   : > { %v7145_v27 = vpop.f32.mrb[128].mxu1  ;;  %v7238_v33 = vpop.f32.mrb[108].mxu0 }
 0xeca   : > { %v7147_v34 = vpop.f32.mrb[129].mxu1  ;;  %v7240_v32 = vpop.f32.mrb[109].mxu0 }
 0xecb   : > { %v7149_v49 = vpop.f32.mrb[130].mxu1  ;;  %v7242_v15 = vpop.f32.mrb[110].mxu0 }
 0xecc   : > { %v18369_v8 = vpack.c.bf16 %v7149_v49, %v7145_v27  ;;  %v18371_v41 = vpack.c.bf16 %v7242_v15, %v7238_v33  ;;  %v7151_v23 = vpop.f32.mrb[131].mxu1  ;;  %v7244_v31 = vpop.f32.mrb[111].mxu0 }
 0xecd   : > { %v18373_v26 = vpack.c.bf16 %v7151_v23, %v7147_v34  ;;  %v18375_v7 = vpack.c.bf16 %v7244_v31, %v7240_v32 }
 0xece   : > { %7423 = vrot.lane.b32.xlu0 %v18369_v8, %s19804_s27 }
 0xed1   : > { %v7155_v11 = vpop.f32.mrb[132].mxu1  ;;  %v7248_v50 = vpop.f32.mrb[112].mxu0 }
 0xed2   : > { %v7157_v47 = vpop.f32.mrb[133].mxu1  ;;  %v7250_v60 = vpop.f32.mrb[113].mxu0 }
 0xed3   : > { %v7159_v9 = vpop.f32.mrb[134].mxu1  ;;  %v7252_v42 = vpop.f32.mrb[114].mxu0 }
 0xed4   : > { %v18379_v63 = vpack.c.bf16 %v7159_v9, %v7155_v11  ;;  %v18381_v30 = vpack.c.bf16 %v7252_v42, %v7248_v50  ;;  %v7161_v51 = vpop.f32.mrb[135].mxu1  ;;  %v7254_v40 = vpop.f32.mrb[115].mxu0  ;;  %v12939_v42 = vld [vmem:[%s19744_s9 + $0xc0] sm:$0xff] }
 0xed5   : > { %v18383_v28 = vpack.c.bf16 %v7161_v51, %v7157_v47  ;;  %v18385_v38 = vpack.c.bf16 %v7254_v40, %v7250_v60  ;;  %v12951_v51 = vld [vmem:[%s19745_s10 + $0xc0] sm:$0xff]  ;;  %v12941_v40 = vld [vmem:[%s19744_s9 + $0xd0] sm:$0xff] }
 0xed6   : > { %8272 = vrot.lane.b32.xlu1 %v18379_v63, %s19804_s27 }
 0xed9   : > { %v7165_v43 = vpop.f32.mrb[136].mxu1  ;;  %v7258_v56 = vpop.f32.mrb[116].mxu0 }
 0xeda   : > { %v7167_v4 = vpop.f32.mrb[137].mxu1  ;;  %v7260_v58 = vpop.f32.mrb[117].mxu0 }
 0xedb   : > { %v7169_v16 = vpop.f32.mrb[138].mxu1  ;;  %v7262_v24 = vpop.f32.mrb[118].mxu0 }
 0xedc   : > { %v18389_v29 = vpack.c.bf16 %v7169_v16, %v7165_v43  ;;  %v18391_v59 = vpack.c.bf16 %v7262_v24, %v7258_v56  ;;  %v7171_v46 = vpop.f32.mrb[139].mxu1  ;;  %v7264_v62 = vpop.f32.mrb[119].mxu0  ;;  %v12940_v43 = vld [vmem:[%s19744_s9 + $0xc8] sm:$0xff]  ;;  %v12953_v56 = vld [vmem:[%s19745_s10 + $0xd0] sm:$0xff]  ;;  %v12942_v16 = vld [vmem:[%s19744_s9 + $0xd8] sm:$0xff] }
 0xedd   : > { %v18393_v20 = vpack.c.bf16 %v7171_v46, %v7167_v4  ;;  %v18395_v55 = vpack.c.bf16 %v7264_v62, %v7260_v58  ;;  %v12952_v4 = vld [vmem:[%s19745_s10 + $0xc8] sm:$0xff]  ;;  %v12943_v58 = vld [vmem:[%s19744_s9 + $0xe0] sm:$0xff]  ;;  %v12954_v46 = vld [vmem:[%s19745_s10 + $0xd8] sm:$0xff] }
 0xede   : > { %8274 = vrot.lane.b32.xlu0 %v18389_v29, %s19804_s27  ;;  %v12955_v24 = vld [vmem:[%s19745_s10 + $0xe0] sm:$0xff]  ;;  %v12945_v62 = vld [vmem:[%s19744_s9 + $0xf0] sm:$0xff] }
 0xee1   : > { %v7175_v61 = vpop.f32.mrb[140].mxu1  ;;  %v7268_v5 = vpop.f32.mrb[120].mxu0 }
 0xee2   : > { %v7270_v0 = vpop.f32.mrb[121].mxu0  ;;  %7694 = vrot.lane.b32.xlu0 %v18353_v21, %s19804_s27  ;;  %v7177_v18 = vpop.f32.mrb[141].mxu1 }
 0xee3   : > { %v7179_v6 = vpop.f32.mrb[142].mxu1  ;;  %v7272_v10 = vpop.f32.mrb[122].mxu0 }
 0xee4   : > { %v18401_v37 = vpack.c.bf16 %v7179_v6, %v7175_v61  ;;  %v18403_v45 = vpack.c.bf16 %v7272_v10, %v7268_v5  ;;  %v7181_v1 = vpop.f32.mrb[143].mxu1  ;;  %v7274_v48 = vpop.f32.mrb[123].mxu0  ;;  %v12944_v61 = vld [vmem:[%s19744_s9 + $0xe8] sm:$0xff]  ;;  %v12957_v5 = vld [vmem:[%s19745_s10 + $0xf0] sm:$0xff]  ;;  %v12946_v6 = vld [vmem:[%s19744_s9 + $0xf8] sm:$0xff] }
 0xee5   : > { %v18405_v12 = vpack.c.bf16 %v7181_v1, %v7177_v18  ;;  %v18407_v13 = vpack.c.bf16 %v7274_v48, %v7270_v0  ;;  %v12956_v0 = vld [vmem:[%s19745_s10 + $0xe8] sm:$0xff]  ;;  %v12947_v18 = vld [vmem:[%s19744_s9 + $0x100] sm:$0xff]  ;;  %v12958_v1 = vld [vmem:[%s19745_s10 + $0xf8] sm:$0xff] }
 0xee6   : > { %7698 = vrot.lane.b32.xlu0 %v18373_v26, %s19804_s27  ;;  %8276 = vrot.lane.b32.xlu1 %v18401_v37, %s19804_s27  ;;  %v12959_v10 = vld [vmem:[%s19745_s10 + $0x100] sm:$0xff]  ;;  %v12949_v48 = vld [vmem:[%s19744_s9 + $0x110] sm:$0xff] }
 0xee9   : > { %v7420_v39 = vpop.permute.xlu0 %7419  ;;  %v18413_v57 = vpop.f32.mrb[144].mxu1 }
 0xeea   : > { %14395 = vmatpush3.bf16.msra.mxu0 %v7420_v39  ;;  %8463 = vrot.lane.b32.xlu0 %v18393_v20, %s19804_s27  ;;  %v18417_v22 = vpop.f32.mrb[145].mxu1  ;;  %v12948_v39 = vld [vmem:[%s19744_s9 + $0x108] sm:$0xff] }
 0xeeb   : > { %7696 = vrot.lane.b32.xlu1 %v18363_v54, %s19804_s27  ;;  %v18421_v44 = vpop.f32.mrb[146].mxu1  ;;  %14396 = vmatprep.subr.bf16.mxu0 %v19809_v52 }
 0xeec   : > { %v7367_v35 = vpack.c.bf16 %v18421_v44, %v18413_v57  ;;  %v18426_v2 = vpop.f32.mrb[147].mxu1  ;;  %v15839_v57 = vld [vmem:[%s19813_s5 + $0xb8] sm:$0xff]   ;;  %v15840_v44 = vld [vmem:[%s19813_s5 + $0xc0] sm:$0xff]  }
 0xeed   : > { %v7362_v27 = vpack.c.bf16 %v18426_v2, %v18417_v22  ;;  %v15845_v22 = vld [vmem:[%s19814_s7 + $0x4] ss:$72 sps:$4 sm:$0xff]  }
 0xeee   : > { %7894 = vrot.lane.b32.xlu0 %v18351_v3, %s19804_s27 }
 0xeef   : > { %8461 = vrot.lane.b32.xlu1 %v18383_v28, %s19804_s27 }
 0xef1   : > { %v18434_v33 = vpop.f32.mrb[148].mxu1 }
 0xef2   : > { %7898 = vrot.lane.b32.xlu0 %v18371_v41, %s19804_s27  ;;  %v18438_v34 = vpop.f32.mrb[149].mxu1 }
 0xef3   : > { %8465 = vrot.lane.b32.xlu1 %v18405_v12, %s19804_s27  ;;  %v18442_v32 = vpop.f32.mrb[150].mxu1 }
 0xef4   : > { %v7377_v49 = vpack.c.bf16 %v18442_v32, %v18434_v33  ;;  %v18446_v15 = vpop.f32.mrb[151].mxu1  ;;  %v15848_v33 = vld [vmem:[%s19814_s7 + $0xc] ss:$72 sps:$4 sm:$0xff]  }
 0xef5   : > { %v7372_v23 = vpack.c.bf16 %v18446_v15, %v18438_v34  ;;  %v15849_v34 = vld [vmem:[%s19814_s7 + $0x90] ss:$72 sps:$4 sm:$0xff]   ;;  %v15841_v15 = vld [vmem:[%s19813_s5 + $0xc8] sm:$0xff]  }
 0xef6   : > { %8601 = vrot.lane.b32.xlu0 %v18391_v59, %s19804_s27  ;;  %v15842_v32 = vld [vmem:[%s19813_s5 + $0xd0] sm:$0xff]  }
 0xef7   : > { %7896 = vrot.lane.b32.xlu1 %v18361_v14, %s19804_s27 }
 0xef9   : > { %v18454_v31 = vpop.f32.mrb[152].mxu1 }
 0xefa   : > { %8094 = vrot.lane.b32.xlu0 %v18355_v19, %s19804_s27  ;;  %v18458_v11 = vpop.f32.mrb[153].mxu1 }
 0xefb   : > { %8599 = vrot.lane.b32.xlu1 %v18381_v30, %s19804_s27  ;;  %v18462_v50 = vpop.f32.mrb[154].mxu1 }
 0xefc   : > { %v7387_v47 = vpack.c.bf16 %v18462_v50, %v18454_v31  ;;  %v18466_v60 = vpop.f32.mrb[155].mxu1  ;;  %v15852_v31 = vld [vmem:[%s19814_s7 + $0x98] ss:$72 sps:$4 sm:$0xff]   ;;  %v15860_v50 = vld [vmem:[%s19814_s7 + $0x12c] ss:$72 sps:$4 sm:$0xff]  }
 0xefd   : > { %v7382_v9 = vpack.c.bf16 %v18466_v60, %v18458_v11  ;;  %v15857_v11 = vld [vmem:[%s19814_s7 + $0x124] ss:$72 sps:$4 sm:$0xff]   ;;  %v15863_v60 = vld [vmem:[%s19814_s7 + $0x1b4] ss:$72 sps:$4 sm:$0xff]  }
 0xefe   : > { %8098 = vrot.lane.b32.xlu0 %v18375_v7, %s19804_s27 }
 0xeff   : > { %8603 = vrot.lane.b32.xlu1 %v18403_v45, %s19804_s27 }
 0xf02   : > { %8739 = vrot.lane.b32.xlu0 %v18395_v55, %s19804_s27 }
 0xf03   : > { %8096 = vrot.lane.b32.xlu1 %v18365_v53, %s19804_s27 }
 0xf06   : > { %8887 = vperm.xlu0 %15568, %v12939_v42   ;;  %v12961_v42 = vld [vmem:[%s19745_s10 + $0x110] sm:$0xff] }
 0xf07   : > { %8737 = vrot.lane.b32.xlu1 %v18385_v38, %s19804_s27 }
 0xf0a   : > { %8972 = vperm.xlu0 %15568, %v12951_v51   ;;  %v12960_v51 = vld [vmem:[%s19745_s10 + $0x108] sm:$0xff] }
 0xf0b   : > { %8741 = vrot.lane.b32.xlu1 %v18407_v13, %s19804_s27  ;;  %s13245_s27 = sshll.u32 %s19817_s0, 4 }
 0xf0c   : > { %s19692_s22 = scalar_lea.vmem %s19758_s23, %s13245_s27 }
 0xf0e   : > { %8897 = vperm.xlu0 %15568, %v12941_v40   ;;  %v13218_v40 = vld [vmem:[%s19744_s9 + $0x120] sm:$0xff] }
 0xf0f   : > { %8892 = vperm.xlu1 %15569, %v12940_v43   ;;  %v12950_v43 = vld [vmem:[%s19744_s9 + $0x118] sm:$0xff] }
 0xf12   : > { %8982 = vperm.xlu0 %15568, %v12953_v56   ;;  %v13220_v56 = vld [vmem:[%s19744_s9 + $0x130] sm:$0xff] }
 0xf13   : > { %8977 = vperm.xlu1 %15569, %v12952_v4  }
 0xf16   : > { %8907 = vperm.xlu0 %15568, %v12943_v58   ;;  %v12962_v58 = vld [vmem:[%s19745_s10 + $0x118] sm:$0xff] }
 0xf17   : > { %8902 = vperm.xlu1 %15569, %v12942_v16   ;;  %v13222_v16 = vld [vmem:[%s19744_s9 + $0x140] sm:$0xff] }
 0xf1a   : > { %8992 = vperm.xlu0 %15568, %v12955_v24   ;;  %v13219_v24 = vld [vmem:[%s19744_s9 + $0x128] sm:$0xff] }
 0xf1b   : > { %8987 = vperm.xlu1 %15569, %v12954_v46   ;;  %v13224_v46 = vld [vmem:[%s19744_s9 + $0x150] sm:$0xff] }
 0xf1e   : > { %8917 = vperm.xlu0 %15568, %v12945_v62  }
 0xf1f   : > { %8912 = vperm.xlu1 %15569, %v12944_v61   ;;  %v13221_v61 = vld [vmem:[%s19744_s9 + $0x138] sm:$0xff] }
 0xf22   : > { %9002 = vperm.xlu0 %15568, %v12957_v5   ;;  %v15816_v5 = vld [vmem:[%s19813_s5 + $0x18] sm:$0xff]  }
 0xf23   : > { %8997 = vperm.xlu1 %15569, %v12956_v0   ;;  %v13226_v0 = vld [vmem:[%s19744_s9 + $0x160] sm:$0xff] }
 0xf26   : > { %8927 = vperm.xlu0 %15568, %v12947_v18   ;;  %v13223_v18 = vld [vmem:[%s19744_s9 + $0x148] sm:$0xff] }
 0xf27   : > { %8922 = vperm.xlu1 %15569, %v12946_v6   ;;  %v13228_v6 = vld [vmem:[%s19744_s9 + $0x170] sm:$0xff] }
 0xf2a   : > { %9012 = vperm.xlu0 %15568, %v12959_v10  }
 0xf2b   : > { %9007 = vperm.xlu1 %15569, %v12958_v1   ;;  %v13225_v1 = vld [vmem:[%s19744_s9 + $0x158] sm:$0xff] }
 0xf2e   : > { %8937 = vperm.xlu0 %15568, %v12949_v48   ;;  %v13230_v48 = vld [vmem:[%s19745_s10 + $0x120] sm:$0xff] }
 0xf2f   : > { %8932 = vperm.xlu1 %15569, %v12948_v39   ;;  %v13227_v39 = vld [vmem:[%s19744_s9 + $0x168] sm:$0xff] }
 0xf32   : > { %9022 = vperm.xlu0 %15568, %v12961_v42  }
 0xf33   : > { %9017 = vperm.xlu1 %15569, %v12960_v51   ;;  %v13229_v51 = vld [vmem:[%s19744_s9 + $0x178] sm:$0xff] }
 0xf36   : > { %12050 = vperm.xlu0 %15568, %v13218_v40   ;;  %v13234_v40 = vld [vmem:[%s19745_s10 + $0x140] sm:$0xff] }
 0xf37   : > { %8942 = vperm.xlu1 %15569, %v12950_v43   ;;  %v13231_v43 = vld [vmem:[%s19745_s10 + $0x128] sm:$0xff] }
 0xf38   : > { %v7422_v4 = vpop.permute.xlu1 %7421 }
 0xf39   : > { %14397 = vmatpush3.bf16.msra.mxu0 %v7422_v4 }
 0xf3a   : > { %12060 = vperm.xlu0 %15568, %v13220_v56   ;;  %14398 = vmatprep.subr.bf16.mxu0 %v19809_v52  ;;  %v13236_v56 = vld [vmem:[%s19745_s10 + $0x150] sm:$0xff] }
 0xf3b   : > { %9027 = vperm.xlu1 %15569, %v12962_v58   ;;  %v13233_v58 = vld [vmem:[%s19745_s10 + $0x138] sm:$0xff] }
 0xf3e   : > { %12070 = vperm.xlu0 %15568, %v13222_v16   ;;  %v15819_v16 = vld [vmem:[%s19813_s5] sm:$0xff]  }
 0xf3f   : > { %12055 = vperm.xlu1 %15569, %v13219_v24   ;;  %v13238_v24 = vld [vmem:[%s19745_s10 + $0x160] sm:$0xff] }
 0xf40   : > { %v7424_v62 = vpop.permute.xlu0 %7423 }
 0xf41   : > { %14399 = vmatpush3.bf16.msra.mxu0 %v7424_v62  ;;  %v13240_v62 = vld [vmem:[%s19745_s10 + $0x170] sm:$0xff] }
 0xf42   : > { %12080 = vperm.xlu0 %15568, %v13224_v46   ;;  %14412 = vmatprep.subr.bf16.mxu0 %v19809_v52  ;;  %v13235_v46 = vld [vmem:[%s19745_s10 + $0x148] sm:$0xff] }
 0xf43   : > { %12065 = vperm.xlu1 %15569, %v13221_v61   ;;  %v13237_v61 = vld [vmem:[%s19745_s10 + $0x158] sm:$0xff] }
 0xf44   : > { %14401 = vmatmul.mubr.msk.bf16.vlgmr.msra.gmra.mrb[124].mxu0 %vm1643_vm1, %v15816_v5 }
 0xf45   : > { %14413 = vmatpush3.bf16.msra.mxu0 %v18349_v36  ;;  %14404 = vmatprep.mubr.msk.bf16.mxu0 %vm16000_vm0, %v19809_v52  ;;  %v15817_v36 = vld [vmem:[%s19813_s5 + $0x20] sm:$0xff]  }
 0xf46   : > { %12090 = vperm.xlu0 %15568, %v13226_v0   ;;  %14414 = vmatprep.subr.bf16.mxu0 %v19809_v52  ;;  %v15823_v0 = vld [vmem:[%s19813_s5 + $0x38] sm:$0xff]  }
 0xf47   : > { %12075 = vperm.xlu1 %15569, %v13223_v18  }
 0xf48   : > { %v8273_v10 = vpop.permute.xlu1 %8272 }
 0xf49   : > { %14415 = vmatpush3.bf16.msra.mxu0 %v18359_v25  ;;  %14557 = vmatpush3.bf16.msra.mxu1 %v8273_v10  ;;  %v13232_v25 = vld [vmem:[%s19745_s10 + $0x130] sm:$0xff] }
 0xf4a   : > { %12100 = vperm.xlu0 %15568, %v13228_v6   ;;  %14416 = vmatprep.subr.bf16.mxu0 %v19809_v52  ;;  %v15826_v10 = vld [vmem:[%s19813_s5 + $0x50] sm:$0xff]  }
 0xf4b   : > { %12085 = vperm.xlu1 %15569, %v13225_v1   ;;  %14558 = vmatprep.subr.bf16.mxu1 %v19809_v52 }
 0xf4c   : > { %14405 = vmatmul.mubr.msk.bf16.gmra.mrb[128].mxu0 %vm1643_vm1, %v15817_v36 }
 0xf4d   : > { %14417 = vmatpush3.bf16.msra.mxu0 %v18369_v8  ;;  %14408 = vmatprep.mubr.msk.bf16.mxu0 %vm16000_vm0, %v19809_v52  ;;  %v15818_v8 = vld [vmem:[%s19813_s5 + $0x28] sm:$0xff]  }
 0xf4e   : > { %12147 = vperm.xlu0 %15568, %v13230_v48   ;;  %14430 = vmatprep.subr.bf16.mxu0 %v19809_v52  ;;  %v15829_v48 = vld [vmem:[%s19813_s5 + $0x68] sm:$0xff]  }
 0xf4f   : > { %12095 = vperm.xlu1 %15569, %v13227_v39  }
 0xf50   : > { %v8275_v42 = vpop.permute.xlu0 %8274 }
 0xf51   : > { %14559 = vmatpush3.bf16.msra.mxu1 %v8275_v42  ;;  %v15832_v42 = vld [vmem:[%s19813_s5 + $0x80] sm:$0xff]  }
 0xf52   : > { %12157 = vperm.xlu0 %15568, %v13232_v25   ;;  %14560 = vmatprep.subr.bf16.mxu1 %v19809_v52 }
 0xf53   : > { %12105 = vperm.xlu1 %15569, %v13229_v51  }
 0xf54   : > { %14409 = vmatmul.mubr.msk.bf16.gmra.mrb[132].mxu0 %vm1643_vm1, %v15818_v8 }
 0xf55   : > { %14418 = vmatprep.mubr.msk.bf16.mxu0 %vm16000_vm0, %v19809_v52 }
 0xf56   : > { %12167 = vperm.xlu0 %15568, %v13234_v40   ;;  %v15835_v40 = vld [vmem:[%s19813_s5 + $0x98] sm:$0xff]  }
 0xf57   : > { %12152 = vperm.xlu1 %15569, %v13231_v43  }
 0xf58   : > { %v8277_v4 = vpop.permute.xlu1 %8276 }
 0xf59   : > { %14561 = vmatpush3.bf16.msra.mxu1 %v8277_v4  ;;  %v15838_v4 = vld [vmem:[%s19813_s5 + $0xb0] sm:$0xff]  }
 0xf5a   : > { %12177 = vperm.xlu0 %15568, %v13236_v56   ;;  %14574 = vmatprep.subr.bf16.mxu1 %v19809_v52 }
 0xf5b   : > { %12162 = vperm.xlu1 %15569, %v13233_v58   ;;  %v15861_v58 = vld [vmem:[%s19814_s7 + $0x1b0] ss:$72 sps:$4 sm:$0xff]  }
 0xf5c   : > { %14419 = vmatmul.mubr.msk.bf16.vlgmr.msra.gmra.mrb[124].mxu0 %vm1643_vm1, %v15819_v16  ;;  %14563 = vmatmul.mubr.msk.bf16.vlgmr.msra.gmra.mrb[156].mxu1 %vm1643_vm1, %v15816_v5 }
 0xf5d   : > { %14431 = vmatpush3.bf16.msra.mxu0 %v18353_v21  ;;  %14575 = vmatpush3.bf16.msra.mxu1 %v18379_v63  ;;  %v15820_v21 = vld [vmem:[%s19813_s5 + $0x8] sm:$0xff]   ;;  %v7697_v5 = vpop.permute.xlu1 %7696 }
 0xf5e   : > { %12187 = vperm.xlu0 %15568, %v13238_v24   ;;  %14432 = vmatprep.subr.bf16.mxu0 %v19809_v52  ;;  %v13239_v63 = vld [vmem:[%s19745_s10 + $0x168] sm:$0xff]  ;;  %v15869_v24 = vld [vmem:[%s19814_s7 + $0x14] ss:$72 sps:$4 sm:$0xff]  }
 0xf5f   : > { %12172 = vperm.xlu1 %15569, %v13235_v46   ;;  %14576 = vmatprep.subr.bf16.mxu1 %v19809_v52  ;;  %v15872_v46 = vld [vmem:[%s19814_s7 + $0x1c] ss:$72 sps:$4 sm:$0xff]  }
 0xf60   : > { %14422 = vmatprep.mubr.msk.bf16.mxu0 %vm16000_vm0, %v19809_v52  ;;  %14566 = vmatprep.mubr.msk.bf16.mxu1 %vm16000_vm0, %v19809_v52 }
 0xf61   : > { %14433 = vmatpush3.bf16.msra.mxu0 %v18363_v54  ;;  %14577 = vmatpush3.bf16.msra.mxu1 %v18389_v29  ;;  %v13241_v54 = vld [vmem:[%s19745_s10 + $0x178] sm:$0xff]  ;;  %v15821_v29 = vld [vmem:[%s19813_s5 + $0x10] sm:$0xff]   ;;  %v8462_v18 = vpop.permute.xlu1 %8461 }
 0xf62   : > { %12197 = vperm.xlu0 %15568, %v13240_v62   ;;  %14434 = vmatprep.subr.bf16.mxu0 %v19809_v52 }
 0xf63   : > { %12182 = vperm.xlu1 %15569, %v13237_v61   ;;  %14578 = vmatprep.subr.bf16.mxu1 %v19809_v52 }
 0xf64   : > { %14423 = vmatmul.mubr.msk.bf16.gmra.mrb[128].mxu0 %vm1643_vm1, %v15820_v21  ;;  %14567 = vmatmul.mubr.msk.bf16.gmra.mrb[160].mxu1 %vm1643_vm1, %v15817_v36 }
 0xf65   : > { %14435 = vmatpush3.bf16.msra.mxu0 %v18373_v26  ;;  %14579 = vmatpush3.bf16.msra.mxu1 %v18401_v37  ;;  %v15822_v26 = vld [vmem:[%s19813_s5 + $0x30] sm:$0xff]   ;;  %v7695_v37 = vpop.permute.xlu0 %7694 }
 0xf66   : > { %14426 = vmatprep.mubr.msk.bf16.mxu0 %vm16000_vm0, %v19809_v52  ;;  %14570 = vmatprep.mubr.msk.bf16.mxu1 %vm16000_vm0, %v19809_v52 }
 0xf67   : > { %12192 = vperm.xlu1 %15569, %v13239_v63   ;;  %14448 = vmatprep.subr.bf16.mxu0 %v19809_v52 }
 0xf68   : > { %14592 = vmatprep.subr.bf16.mxu1 %v19809_v52 }
 0xf6b   : > { %12202 = vperm.xlu1 %15569, %v13241_v54  }
 0xf6c   : > { %14427 = vmatmul.mubr.msk.bf16.gmra.mrb[132].mxu0 %vm1643_vm1, %v15821_v29  ;;  %14571 = vmatmul.mubr.msk.bf16.gmra.mrb[164].mxu1 %vm1643_vm1, %v15818_v8 }
 0xf6d   : > { %14436 = vmatprep.mubr.msk.bf16.mxu0 %vm16000_vm0, %v19809_v52  ;;  %14580 = vmatprep.mubr.msk.bf16.mxu1 %vm16000_vm0, %v19809_v52 }
 0xf74   : > { %14437 = vmatmul.mubr.msk.bf16.vlgmr.msra.gmra.mrb[124].mxu0 %vm1643_vm1, %v15822_v26  ;;  %14581 = vmatmul.mubr.msk.bf16.vlgmr.msra.gmra.mrb[156].mxu1 %vm1643_vm1, %v15819_v16  ;;  %v15864_v16 = vld [vmem:[%s19814_s7 + $0x1b8] ss:$72 sps:$4 sm:$0xff]  }
 0xf75   : > { %14449 = vmatpush3.bf16.msra.mxu0 %v7695_v37  ;;  %14593 = vmatpush3.bf16.msra.mxu1 %v18383_v28  ;;  %v7699_v28 = vpop.permute.xlu0 %7698 }
 0xf76   : > { %14450 = vmatprep.subr.bf16.mxu0 %v19809_v52  ;;  %14594 = vmatprep.subr.bf16.mxu1 %v19809_v52 }
 0xf77   : > { %14440 = vmatprep.mubr.msk.bf16.mxu0 %vm16000_vm0, %v19809_v52  ;;  %14584 = vmatprep.mubr.msk.bf16.mxu1 %vm16000_vm0, %v19809_v52 }
 0xf79   : > { %14451 = vmatpush3.bf16.msra.mxu0 %v7697_v5  ;;  %14595 = vmatpush3.bf16.msra.mxu1 %v18393_v20  ;;  %v15824_v20 = vld [vmem:[%s19813_s5 + $0x40] sm:$0xff]   ;;  %v8464_v6 = vpop.permute.xlu0 %8463 }
 0xf7a   : > { %14452 = vmatprep.subr.bf16.mxu0 %v19809_v52  ;;  %14596 = vmatprep.subr.bf16.mxu1 %v19809_v52 }
 0xf7c   : > { %14441 = vmatmul.mubr.msk.bf16.gmra.mrb[128].mxu0 %vm1643_vm1, %v15823_v0  ;;  %14585 = vmatmul.mubr.msk.bf16.gmra.mrb[160].mxu1 %vm1643_vm1, %v15820_v21 }
 0xf7d   : > { %14453 = vmatpush3.bf16.msra.mxu0 %v7699_v28  ;;  %14597 = vmatpush3.bf16.msra.mxu1 %v18405_v12  ;;  %v15825_v12 = vld [vmem:[%s19813_s5 + $0x48] sm:$0xff]   ;;  %v7895_v1 = vpop.permute.xlu0 %7894 }
 0xf7e   : > { %14444 = vmatprep.mubr.msk.bf16.mxu0 %vm16000_vm0, %v19809_v52  ;;  %14588 = vmatprep.mubr.msk.bf16.mxu1 %vm16000_vm0, %v19809_v52 }
 0xf7f   : > { %14466 = vmatprep.subr.bf16.mxu0 %v19809_v52  ;;  %14610 = vmatprep.subr.bf16.mxu1 %v19809_v52 }
 0xf84   : > { %14445 = vmatmul.mubr.msk.bf16.gmra.mrb[132].mxu0 %vm1643_vm1, %v15824_v20  ;;  %14589 = vmatmul.mubr.msk.bf16.gmra.mrb[164].mxu1 %vm1643_vm1, %v15821_v29 }
 0xf85   : > { %14454 = vmatprep.mubr.msk.bf16.mxu0 %vm16000_vm0, %v19809_v52  ;;  %14598 = vmatprep.mubr.msk.bf16.mxu1 %vm16000_vm0, %v19809_v52 }
 0xf8c   : > { %14455 = vmatmul.mubr.msk.bf16.vlgmr.msra.gmra.mrb[124].mxu0 %vm1643_vm1, %v15825_v12  ;;  %14599 = vmatmul.mubr.msk.bf16.vlgmr.msra.gmra.mrb[156].mxu1 %vm1643_vm1, %v15822_v26 }
 0xf8d   : > { %14467 = vmatpush3.bf16.msra.mxu0 %v18351_v3  ;;  %14611 = vmatpush3.bf16.msra.mxu1 %v8462_v18  ;;  %v8466_v3 = vpop.permute.xlu1 %8465 }
 0xf8e   : > { %14468 = vmatprep.subr.bf16.mxu0 %v19809_v52  ;;  %14612 = vmatprep.subr.bf16.mxu1 %v19809_v52 }
 0xf8f   : > { %14458 = vmatprep.mubr.msk.bf16.mxu0 %vm16000_vm0, %v19809_v52  ;;  %14602 = vmatprep.mubr.msk.bf16.mxu1 %vm16000_vm0, %v19809_v52 }
 0xf91   : > { %14469 = vmatpush3.bf16.msra.mxu0 %v18361_v14  ;;  %14613 = vmatpush3.bf16.msra.mxu1 %v8464_v6  ;;  %v15827_v14 = vld [vmem:[%s19813_s5 + $0x58] sm:$0xff]   ;;  %v7897_v36 = vpop.permute.xlu1 %7896 }
 0xf92   : > { %14470 = vmatprep.subr.bf16.mxu0 %v19809_v52  ;;  %14614 = vmatprep.subr.bf16.mxu1 %v19809_v52 }
 0xf94   : > { %14459 = vmatmul.mubr.msk.bf16.gmra.mrb[128].mxu0 %vm1643_vm1, %v15826_v10  ;;  %14603 = vmatmul.mubr.msk.bf16.gmra.mrb[160].mxu1 %vm1643_vm1, %v15823_v0 }
 0xf95   : > { %14471 = vmatpush3.bf16.msra.mxu0 %v18371_v41  ;;  %14615 = vmatpush3.bf16.msra.mxu1 %v8466_v3  ;;  %v15828_v41 = vld [vmem:[%s19813_s5 + $0x60] sm:$0xff]   ;;  %v8600_v39 = vpop.permute.xlu1 %8599 }
 0xf96   : > { %14462 = vmatprep.mubr.msk.bf16.mxu0 %vm16000_vm0, %v19809_v52  ;;  %14606 = vmatprep.mubr.msk.bf16.mxu1 %vm16000_vm0, %v19809_v52 }
 0xf97   : > { %14484 = vmatprep.subr.bf16.mxu0 %v19809_v52  ;;  %14628 = vmatprep.subr.bf16.mxu1 %v19809_v52 }
 0xf9c   : > { %14463 = vmatmul.mubr.msk.bf16.gmra.mrb[132].mxu0 %vm1643_vm1, %v15827_v14  ;;  %14607 = vmatmul.mubr.msk.bf16.gmra.mrb[164].mxu1 %vm1643_vm1, %v15824_v20 }
 0xf9d   : > { %14472 = vmatprep.mubr.msk.bf16.mxu0 %vm16000_vm0, %v19809_v52  ;;  %14616 = vmatprep.mubr.msk.bf16.mxu1 %vm16000_vm0, %v19809_v52 }
 0xfa4   : > { %14473 = vmatmul.mubr.msk.bf16.vlgmr.msra.gmra.mrb[124].mxu0 %vm1643_vm1, %v15828_v41  ;;  %14617 = vmatmul.mubr.msk.bf16.vlgmr.msra.gmra.mrb[156].mxu1 %vm1643_vm1, %v15825_v12 }
 0xfa5   : > { %14485 = vmatpush3.bf16.msra.mxu0 %v7895_v1  ;;  %14629 = vmatpush3.bf16.msra.mxu1 %v18381_v30  ;;  %v7899_v30 = vpop.permute.xlu0 %7898 }
 0xfa6   : > { %14486 = vmatprep.subr.bf16.mxu0 %v19809_v52  ;;  %14630 = vmatprep.subr.bf16.mxu1 %v19809_v52 }
 0xfa7   : > { %14476 = vmatprep.mubr.msk.bf16.mxu0 %vm16000_vm0, %v19809_v52  ;;  %14620 = vmatprep.mubr.msk.bf16.mxu1 %vm16000_vm0, %v19809_v52 }
 0xfa9   : > { %14487 = vmatpush3.bf16.msra.mxu0 %v7897_v36  ;;  %14631 = vmatpush3.bf16.msra.mxu1 %v18391_v59  ;;  %v15830_v59 = vld [vmem:[%s19813_s5 + $0x70] sm:$0xff]   ;;  %v8602_v25 = vpop.permute.xlu0 %8601 }
 0xfaa   : > { %14488 = vmatprep.subr.bf16.mxu0 %v19809_v52  ;;  %14632 = vmatprep.subr.bf16.mxu1 %v19809_v52 }
 0xfac   : > { %14477 = vmatmul.mubr.msk.bf16.gmra.mrb[128].mxu0 %vm1643_vm1, %v15829_v48  ;;  %14621 = vmatmul.mubr.msk.bf16.gmra.mrb[160].mxu1 %vm1643_vm1, %v15826_v10 }
 0xfad   : > { %14489 = vmatpush3.bf16.msra.mxu0 %v7899_v30  ;;  %14633 = vmatpush3.bf16.msra.mxu1 %v18403_v45  ;;  %v15831_v45 = vld [vmem:[%s19813_s5 + $0x78] sm:$0xff]   ;;  %v8095_v51 = vpop.permute.xlu0 %8094 }
 0xfae   : > { %14480 = vmatprep.mubr.msk.bf16.mxu0 %vm16000_vm0, %v19809_v52  ;;  %14624 = vmatprep.mubr.msk.bf16.mxu1 %vm16000_vm0, %v19809_v52 }
 0xfaf   : > { %14502 = vmatprep.subr.bf16.mxu0 %v19809_v52  ;;  %14646 = vmatprep.subr.bf16.mxu1 %v19809_v52 }
 0xfb4   : > { %14481 = vmatmul.mubr.msk.bf16.gmra.mrb[132].mxu0 %vm1643_vm1, %v15830_v59  ;;  %14625 = vmatmul.mubr.msk.bf16.gmra.mrb[164].mxu1 %vm1643_vm1, %v15827_v14 }
 0xfb5   : > { %14490 = vmatprep.mubr.msk.bf16.mxu0 %vm16000_vm0, %v19809_v52  ;;  %14634 = vmatprep.mubr.msk.bf16.mxu1 %vm16000_vm0, %v19809_v52 }
 0xfbc   : > { %14491 = vmatmul.mubr.msk.bf16.vlgmr.msra.gmra.mrb[124].mxu0 %vm1643_vm1, %v15831_v45  ;;  %14635 = vmatmul.mubr.msk.bf16.vlgmr.msra.gmra.mrb[156].mxu1 %vm1643_vm1, %v15828_v41 }
 0xfbd   : > { %14503 = vmatpush3.bf16.msra.mxu0 %v18355_v19  ;;  %14647 = vmatpush3.bf16.msra.mxu1 %v8600_v39  ;;  %v8604_v19 = vpop.permute.xlu1 %8603 }
 0xfbe   : > { %14504 = vmatprep.subr.bf16.mxu0 %v19809_v52  ;;  %14648 = vmatprep.subr.bf16.mxu1 %v19809_v52 }
 0xfbf   : > { %14494 = vmatprep.mubr.msk.bf16.mxu0 %vm16000_vm0, %v19809_v52  ;;  %14638 = vmatprep.mubr.msk.bf16.mxu1 %vm16000_vm0, %v19809_v52 }
 0xfc1   : > { %14505 = vmatpush3.bf16.msra.mxu0 %v18365_v53  ;;  %14649 = vmatpush3.bf16.msra.mxu1 %v8602_v25  ;;  %v15833_v53 = vld [vmem:[%s19813_s5 + $0x88] sm:$0xff]   ;;  %v8097_v8 = vpop.permute.xlu1 %8096  ;;  %v15867_v25 = vld [vmem:[%s19814_s7 + $0x10] ss:$72 sps:$4 sm:$0xff]  }
 0xfc2   : > { %14506 = vmatprep.subr.bf16.mxu0 %v19809_v52  ;;  %14650 = vmatprep.subr.bf16.mxu1 %v19809_v52 }
 0xfc4   : > { %14495 = vmatmul.mubr.msk.bf16.gmra.mrb[128].mxu0 %vm1643_vm1, %v15832_v42  ;;  %14639 = vmatmul.mubr.msk.bf16.gmra.mrb[160].mxu1 %vm1643_vm1, %v15829_v48 }
 0xfc5   : > { %14507 = vmatpush3.bf16.msra.mxu0 %v18375_v7  ;;  %14651 = vmatpush3.bf16.msra.mxu1 %v8604_v19  ;;  %v15834_v7 = vld [vmem:[%s19813_s5 + $0x90] sm:$0xff]   ;;  %v8738_v43 = vpop.permute.xlu1 %8737 }
 0xfc6   : > { %14498 = vmatprep.mubr.msk.bf16.mxu0 %vm16000_vm0, %v19809_v52  ;;  %14642 = vmatprep.mubr.msk.bf16.mxu1 %vm16000_vm0, %v19809_v52 }
 0xfc7   : > { %14520 = vmatprep.subr.bf16.mxu0 %v19809_v52  ;;  %14664 = vmatprep.subr.bf16.mxu1 %v19809_v52 }
 0xfc9   : > { %v8742_v2 = vpop.permute.xlu1 %8741 }
 0xfcc   : > { %14499 = vmatmul.mubr.msk.bf16.gmra.mrb[132].mxu0 %vm1643_vm1, %v15833_v53  ;;  %14643 = vmatmul.mubr.msk.bf16.gmra.mrb[164].mxu1 %vm1643_vm1, %v15830_v59 }
 0xfcd   : > { %14508 = vmatprep.mubr.msk.bf16.mxu0 %vm16000_vm0, %v19809_v52  ;;  %14652 = vmatprep.mubr.msk.bf16.mxu1 %vm16000_vm0, %v19809_v52  ;;  %v8893_v61 = vpop.permute.xlu1 %8892 }
 0xfd1   : > { %v8978_v63 = vpop.permute.xlu1 %8977 }
 0xfd4   : > { %14509 = vmatmul.mubr.msk.bf16.vlgmr.msra.gmra.mrb[124].mxu0 %vm1643_vm1, %v15834_v7  ;;  %14653 = vmatmul.mubr.msk.bf16.vlgmr.msra.gmra.mrb[156].mxu1 %vm1643_vm1, %v15831_v45 }
 0xfd5   : > { %14521 = vmatpush3.bf16.msra.mxu0 %v8095_v51  ;;  %14665 = vmatpush3.bf16.msra.mxu1 %v18385_v38  ;;  %v8099_v38 = vpop.permute.xlu0 %8098  ;;  %v8903_v29 = vpop.permute.xlu1 %8902 }
 0xfd6   : > { %14522 = vmatprep.subr.bf16.mxu0 %v19809_v52  ;;  %14666 = vmatprep.subr.bf16.mxu1 %v19809_v52 }
 0xfd7   : > { %14512 = vmatprep.mubr.msk.bf16.mxu0 %vm16000_vm0, %v19809_v52  ;;  %14656 = vmatprep.mubr.msk.bf16.mxu1 %vm16000_vm0, %v19809_v52 }
 0xfd9   : > { %14523 = vmatpush3.bf16.msra.mxu0 %v8097_v8  ;;  %14667 = vmatpush3.bf16.msra.mxu1 %v18395_v55  ;;  %v15836_v55 = vld [vmem:[%s19813_s5 + $0xa0] sm:$0xff]   ;;  %v8740_v56 = vpop.permute.xlu0 %8739  ;;  %v8988_v37 = vpop.permute.xlu1 %8987 }
 0xfda   : > { %14524 = vmatprep.subr.bf16.mxu0 %v19809_v52  ;;  %14668 = vmatprep.subr.bf16.mxu1 %v19809_v52 }
 0xfdc   : > { %14513 = vmatmul.mubr.msk.bf16.gmra.mrb[128].mxu0 %vm1643_vm1, %v15835_v40  ;;  %14657 = vmatmul.mubr.msk.bf16.gmra.mrb[160].mxu1 %vm1643_vm1, %v15832_v42  ;;  %v15870_v42 = vld [vmem:[%s19814_s7 + $0x18] ss:$72 sps:$4 sm:$0xff]  }
 0xfdd   : > { %14525 = vmatpush3.bf16.msra.mxu0 %v8099_v38  ;;  %14669 = vmatpush3.bf16.msra.mxu1 %v18407_v13  ;;  %v15837_v13 = vld [vmem:[%s19813_s5 + $0xa8] sm:$0xff]   ;;  %v8888_v62 = vpop.permute.xlu0 %8887  ;;  %v8913_v12 = vpop.permute.xlu1 %8912 }
 0xfde   : > { %14516 = vmatprep.mubr.msk.bf16.mxu0 %vm16000_vm0, %v19809_v52  ;;  %14660 = vmatprep.mubr.msk.bf16.mxu1 %vm16000_vm0, %v19809_v52 }
 0xfdf   : > { %14538 = vmatprep.subr.bf16.mxu0 %v19809_v52  ;;  %14682 = vmatprep.subr.bf16.mxu1 %v19809_v52 }
 0xfe1   : > { %v8973_v21 = vpop.permute.xlu0 %8972  ;;  %v8998_v48 = vpop.permute.xlu1 %8997 }
 0xfe4   : > { %14517 = vmatmul.mubr.msk.bf16.gmra.mrb[132].mxu0 %vm1643_vm1, %v15836_v55  ;;  %14661 = vmatmul.mubr.msk.bf16.gmra.mrb[164].mxu1 %vm1643_vm1, %v15833_v53  ;;  %v15875_v53 = vld [vmem:[%s19814_s7 + $0xa4] ss:$72 sps:$4 sm:$0xff]  }
 0xfe5   : > { %14526 = vmatprep.mubr.msk.bf16.mxu0 %vm16000_vm0, %v19809_v52  ;;  %14670 = vmatprep.mubr.msk.bf16.mxu1 %vm16000_vm0, %v19809_v52  ;;  %v8898_v54 = vpop.permute.xlu0 %8897 }
 0xfe9   : > { %v8983_v26 = vpop.permute.xlu0 %8982 }
 0xfec   : > { %14527 = vmatmul.mubr.msk.bf16.vlgmr.msra.gmra.mrb[124].mxu0 %vm1643_vm1, %v15837_v13  ;;  %14671 = vmatmul.mubr.msk.bf16.vlgmr.msra.gmra.mrb[156].mxu1 %vm1643_vm1, %v15834_v7  ;;  %v15878_v7 = vld [vmem:[%s19814_s7 + $0xac] ss:$72 sps:$4 sm:$0xff]  }
 0xfed   : > { %14539 = vmatpush3.bf16.msra.mxu0 %v7362_v27  ;;  %14683 = vmatpush3.bf16.msra.mxu1 %v8738_v43  ;;  %v15851_v27 = vld [vmem:[%s19814_s7 + $0x94] ss:$72 sps:$4 sm:$0xff]   ;;  %v8908_v5 = vpop.permute.xlu0 %8907  ;;  %v15876_v43 = vld [vmem:[%s19814_s7 + $0xa8] ss:$72 sps:$4 sm:$0xff]  }
 0xfee   : > { %14540 = vmatprep.subr.bf16.mxu0 %v19809_v52  ;;  %14684 = vmatprep.subr.bf16.mxu1 %v19809_v52 }
 0xfef   : > { %14530 = vmatprep.mubr.msk.bf16.mxu0 %vm16000_vm0, %v19809_v52  ;;  %14674 = vmatprep.mubr.msk.bf16.mxu1 %vm16000_vm0, %v19809_v52 }
 0xff1   : > { %14541 = vmatpush3.bf16.msra.mxu0 %v7367_v35  ;;  %14685 = vmatpush3.bf16.msra.mxu1 %v8740_v56  ;;  %v15843_v35 = vld [vmem:[%s19814_s7] ss:$72 sps:$4 sm:$0xff]   ;;  %v8993_v41 = vpop.permute.xlu0 %8992  ;;  %v8923_v56 = vpop.permute.xlu1 %8922 }
 0xff2   : > { %14542 = vmatprep.subr.bf16.mxu0 %v19809_v52  ;;  %14686 = vmatprep.subr.bf16.mxu1 %v19809_v52 }
 0xff4   : > { %14531 = vmatmul.mubr.msk.bf16.gmra.mrb[128].mxu0 %vm1643_vm1, %v15838_v4  ;;  %14675 = vmatmul.mubr.msk.bf16.gmra.mrb[160].mxu1 %vm1643_vm1, %v15835_v40 }
 0xff5   : > { %14543 = vmatpush3.bf16.msra.mxu0 %v7372_v23  ;;  %14687 = vmatpush3.bf16.msra.mxu1 %v8742_v2  ;;  %v15854_v23 = vld [vmem:[%s19814_s7 + $0x9c] ss:$72 sps:$4 sm:$0xff]   ;;  %v8918_v38 = vpop.permute.xlu0 %8917 }
 0xff6   : > { %14534 = vmatprep.mubr.msk.bf16.mxu0 %vm16000_vm0, %v19809_v52  ;;  %14678 = vmatprep.mubr.msk.bf16.mxu1 %vm16000_vm0, %v19809_v52 }
 0xff7   : > { %14700 = vmatprep.subr.bf16.mxu1 %v19809_v52  ;;  %9510 = vmatprep.subr.bf16.mxu0 %v15845_v22  ;;  %v15884_v22 = vld [vmem:[%s19814_s7 + $0x13c] ss:$72 sps:$4 sm:$0xff]  }
 0xffc   : > { %14535 = vmatmul.mubr.msk.bf16.gmra.mrb[132].mxu0 %vm1643_vm1, %v15839_v57  ;;  %14679 = vmatmul.mubr.msk.bf16.gmra.mrb[164].mxu1 %vm1643_vm1, %v15836_v55 }
 0xffd   : > { %14544 = vmatprep.mubr.msk.bf16.mxu0 %vm16000_vm0, %v19809_v52  ;;  %14688 = vmatprep.mubr.msk.bf16.mxu1 %vm16000_vm0, %v19809_v52 }
0x1004   : > { %14545 = vmatmul.mubr.msk.bf16.vlgmr.msra.gmra.mrb[124].mxu0 %vm1643_vm1, %v15840_v44  ;;  %14689 = vmatmul.mubr.msk.bf16.vlgmr.msra.gmra.mrb[156].mxu1 %vm1643_vm1, %v15837_v13  ;;  %v15873_v13 = vld [vmem:[%s19814_s7 + $0xa0] ss:$72 sps:$4 sm:$0xff]  }
0x1005   : > { %14701 = vmatpush3.bf16.msra.mxu1 %v7377_v49  ;;  %14548 = vmatprep.mubr.msk.bf16.mxu0 %vm16000_vm0, %v19809_v52  ;;  %v15846_v49 = vld [vmem:[%s19814_s7 + $0x8] ss:$72 sps:$4 sm:$0xff]  }
0x1006   : > { %14702 = vmatprep.subr.bf16.mxu1 %v19809_v52  ;;  %14692 = vmatprep.mubr.msk.bf16.mxu1 %vm16000_vm0, %v19809_v52 }
0x1007   : > { %9511 = vmatpush1.bf16.msra.mxu0 %v15843_v35 }
0x1008   : > { %9512 = vmatprep.subr.bf16.mxu0 %v15851_v27 }
0x1009   : > { %14703 = vmatpush3.bf16.msra.mxu1 %v7382_v9  ;;  %v15866_v9 = vld [vmem:[%s19814_s7 + $0x1bc] ss:$72 sps:$4 sm:$0xff]  }
0x100a   : > { %14704 = vmatprep.subr.bf16.mxu1 %v19809_v52 }
0x100b   : > { %9513 = vmatpush1.bf16.msra.mxu0 %v15849_v34 }
0x100c   : > { %14549 = vmatmul.mubr.msk.bf16.gmra.mrb[128].mxu0 %vm1643_vm1, %v15841_v15  ;;  %14693 = vmatmul.mubr.msk.bf16.gmra.mrb[160].mxu1 %vm1643_vm1, %v15838_v4  ;;  %v15881_v4 = vld [vmem:[%s19814_s7 + $0x134] ss:$72 sps:$4 sm:$0xff]  }
0x100d   : > { %14705 = vmatpush3.bf16.msra.mxu1 %v7387_v47  ;;  %14552 = vmatprep.mubr.msk.bf16.mxu0 %vm16000_vm0, %v19809_v52  ;;  %v15855_v47 = vld [vmem:[%s19814_s7 + $0x120] ss:$72 sps:$4 sm:$0xff]  }
0x100e   : > { %14696 = vmatprep.mubr.msk.bf16.mxu1 %vm16000_vm0, %v19809_v52  ;;  %9603 = vmatprep.subr.bf16.mxu1 %v15848_v33  ;;  %v15882_v33 = vld [vmem:[%s19814_s7 + $0x138] ss:$72 sps:$4 sm:$0xff]  }
0x100f   : > { %9514 = vmatprep.subr.bf16.mxu0 %v15857_v11 }
0x1010   : > { %9515 = vmatpush1.bf16.msra.mxu0 %v15855_v47 }
0x1011   : > { %9516 = vmatprep.subr.bf16.mxu0 %v15863_v60 }
0x1014   : > { %14553 = vmatmul.mubr.msk.bf16.gmra.mrb[132].mxu0 %vm1643_vm1, %v15842_v32  ;;  %14697 = vmatmul.mubr.msk.bf16.gmra.mrb[164].mxu1 %vm1643_vm1, %v15839_v57 }
0x1015   : > { %14706 = vmatprep.mubr.msk.bf16.mxu1 %vm16000_vm0, %v19809_v52  ;;  %9542 = vmatprep.mubr.bf16.mxu0 %v19808_v17 }
0x1016   : > { %9517 = vmatpush1.bf16.msra.mxu0 %v15861_v58  ;;  %v15888_v58 = vld [vmem:[%s19814_s7 + $0x1c8] ss:$72 sps:$4 sm:$0xff]  }
0x1017   : > { %9696 = vmatprep.subr.bf16.mxu0 %v15869_v24  ;;  %v15896_v24 = vld [vmem:[%s19814_s7 + $0x2c] ss:$72 sps:$4 sm:$0xff]  }
0x101c   : > { %14707 = vmatmul.mubr.msk.bf16.vlgmr.msra.gmra.mrb[156].mxu1 %vm1643_vm1, %v15840_v44 }
0x101d   : > { %14710 = vmatprep.mubr.msk.bf16.mxu1 %vm16000_vm0, %v19809_v52  ;;  %9604 = vmatpush1.bf16.msra.mxu1 %v15846_v49 }
0x101e   : > { %9605 = vmatprep.subr.bf16.mxu1 %v15854_v23  ;;  %v15887_v23 = vld [vmem:[%s19814_s7 + $0x1c4] ss:$72 sps:$4 sm:$0xff]  }
0x1021   : > { %9606 = vmatpush1.bf16.msra.mxu1 %v15852_v31  ;;  %v15890_v31 = vld [vmem:[%s19814_s7 + $0x1cc] ss:$72 sps:$4 sm:$0xff]  }
0x1022   : > { %9607 = vmatprep.subr.bf16.mxu1 %v15860_v50 }
0x1024   : > { %14711 = vmatmul.mubr.msk.bf16.gmra.mrb[160].mxu1 %vm1643_vm1, %v15841_v15  ;;  %v15879_v15 = vld [vmem:[%s19814_s7 + $0x130] ss:$72 sps:$4 sm:$0xff]  }
0x1025   : > { %14714 = vmatprep.mubr.msk.bf16.mxu1 %vm16000_vm0, %v19809_v52  ;;  %v15858_v52 = vld [vmem:[%s19814_s7 + $0x128] ss:$72 sps:$4 sm:$0xff]  }
0x1026   : > { %9608 = vmatpush1.bf16.msra.mxu1 %v15858_v52  ;;  %v9008_v52 = vpop.permute.xlu1 %9007 }
0x1027   : > { %9609 = vmatprep.subr.bf16.mxu1 %v15866_v9  ;;  %v15885_v9 = vld [vmem:[%s19814_s7 + $0x1c0] ss:$72 sps:$4 sm:$0xff]  }
0x102a   : > { %9610 = vmatpush1.bf16.msra.mxu1 %v15864_v16  ;;  %v15893_v16 = vld [vmem:[%s19814_s7 + $0x24] ss:$72 sps:$4 sm:$0xff]  }
0x102b   : > { %9789 = vmatprep.subr.bf16.mxu1 %v15872_v46 }
0x102c   : > { %14715 = vmatmul.mubr.msk.bf16.gmra.mrb[164].mxu1 %vm1643_vm1, %v15842_v32  ;;  %v9003_v32 = vpop.permute.xlu0 %9002 }
0x102d   : > { %9635 = vmatprep.mubr.bf16.mxu1 %v19808_v17 }
0x10d7   : > { %v8240_v0 = vpop.f32.mrb[124].mxu0 }
0x10d8   : > { %v8945_v28 = vmul.f32 %v8888_v62, %v8240_v0  ;;  %v14546_v20 = vpop.f32.mrb[125].mxu0 }
0x10d9   : > { %v8243_v18 = vpop.f32.mrb[126].mxu0 }
0x10da   : > { %v9030_v6 = vadd.f32 %v8973_v21, %v8945_v28  ;;  %v8946_v10 = vmul.f32 %v8893_v61, %v8243_v18  ;;  %v14547_v3 = vpop.f32.mrb[127].mxu0  ;;  %v8928_v61 = vpop.permute.xlu0 %8927 }
0x10dc   : > { %v9031_v14 = vadd.f32 %v8978_v63, %v8946_v10  ;;  %v9042_v1 = vmax.f32 %v9030_v6, 0.0 }
0x10de   : > { %v9043_v36 = vmax.f32 %v9031_v14, 0.0 }
0x10df   : > { %v8248_v30 = vpop.f32.mrb[128].mxu0 }
0x10e0   : > { %v19014_v59 = vpack.c.bf16 %v9043_v36, %v9042_v1  ;;  %v8947_v45 = vmul.f32 %v8898_v54, %v8248_v30  ;;  %v14550_v39 = vpop.f32.mrb[129].mxu0 }
0x10e1   : > { %v8251_v19 = vpop.f32.mrb[130].mxu0 }
0x10e2   : > { %v9032_v51 = vadd.f32 %v8983_v26, %v8947_v45  ;;  %v8948_v8 = vmul.f32 %v8903_v29, %v8251_v19  ;;  %v14551_v40 = vpop.f32.mrb[131].mxu0  ;;  %13035 = vmatmul.mubr.msk.bf16.vlgmr.msra.gmra.mrb[136].mxu0 %vm3322_vm2, %v19014_v59  ;;  %13041 = vmatmul.mubr.msk.bf16.vlgmr.msra.gmra.mrb[168].mxu1 %vm3322_vm2, %v19014_v59  ;;  %v8933_v26 = vpop.permute.xlu1 %8932 }
0x10e3   : > { %9552 = vmatprep.mubr.bf16.mxu0 %v19808_v17  ;;  %9645 = vmatprep.mubr.bf16.mxu1 %v19808_v17 }
0x10e4   : > { %v9033_v55 = vadd.f32 %v8988_v37, %v8948_v8  ;;  %9697 = vmatpush1.bf16.msra.mxu0 %v15867_v25  ;;  %9790 = vmatpush1.bf16.msra.mxu1 %v15870_v42  ;;  %v9044_v2 = vmax.f32 %v9032_v51, 0.0 }
0x10e5   : > { %9698 = vmatprep.subr.bf16.mxu0 %v15875_v53  ;;  %9791 = vmatprep.subr.bf16.mxu1 %v15878_v7 }
0x10e6   : > { %v9045_v57 = vmax.f32 %v9033_v55, 0.0  ;;  %v9018_v10 = vpop.permute.xlu1 %9017 }
0x10e7   : > { %v8256_v44 = vpop.f32.mrb[132].mxu0 }
0x10e8   : > { %v19046_v35 = vpack.c.bf16 %v9045_v57, %v9044_v2  ;;  %v8949_v27 = vmul.f32 %v8908_v5, %v8256_v44  ;;  %v14554_v34 = vpop.f32.mrb[133].mxu0  ;;  %9699 = vmatpush1.bf16.msra.mxu0 %v15873_v13  ;;  %9792 = vmatpush1.bf16.msra.mxu1 %v15876_v43 }
0x10e9   : > { %v8259_v49 = vpop.f32.mrb[134].mxu0  ;;  %9700 = vmatprep.subr.bf16.mxu0 %v15881_v4  ;;  %9793 = vmatprep.subr.bf16.mxu1 %v15884_v22  ;;  %v15894_v34 = vld [vmem:[%s19814_s7 + $0x28] ss:$72 sps:$4 sm:$0xff]  }
0x10ea   : > { %v9034_v11 = vadd.f32 %v8993_v41, %v8949_v27  ;;  %v8950_v50 = vmul.f32 %v8913_v12, %v8259_v49  ;;  %v14555_v47 = vpop.f32.mrb[135].mxu0  ;;  %13036 = vmatmul.mubr.msk.bf16.gmra.mrb[140].mxu0 %vm3322_vm2, %v19046_v35  ;;  %13042 = vmatmul.mubr.msk.bf16.gmra.mrb[172].mxu1 %vm3322_vm2, %v19046_v35  ;;  %v9013_v12 = vpop.permute.xlu0 %9012  ;;  %v15891_v27 = vld [vmem:[%s19814_s7 + $0x20] ss:$72 sps:$4 sm:$0xff]  }
0x10eb   : > { %9562 = vmatprep.mubr.bf16.mxu0 %v19808_v17  ;;  %9655 = vmatprep.mubr.bf16.mxu1 %v19808_v17  ;;  %v8943_v42 = vpop.permute.xlu1 %8942  ;;  %v15900_v49 = vld [vmem:[%s19814_s7 + $0xb8] ss:$72 sps:$4 sm:$0xff]   ;;  %v15911_v47 = vld [vmem:[%s19814_s7 + $0x1d4] ss:$72 sps:$4 sm:$0xff]  }
0x10ec   : > { %v9035_v60 = vadd.f32 %v8998_v48, %v8950_v50  ;;  %9701 = vmatpush1.bf16.msra.mxu0 %v15879_v15  ;;  %9794 = vmatpush1.bf16.msra.mxu1 %v15882_v33  ;;  %v9046_v46 = vmax.f32 %v9034_v11, 0.0  ;;  %v15899_v15 = vld [vmem:[%s19814_s7 + $0xb4] ss:$72 sps:$4 sm:$0xff]   ;;  %v15903_v11 = vld [vmem:[%s19814_s7 + $0x140] ss:$72 sps:$4 sm:$0xff]  }
0x10ed   : > { %9702 = vmatprep.subr.bf16.mxu0 %v15887_v23  ;;  %9795 = vmatprep.subr.bf16.mxu1 %v15890_v31  ;;  %v15902_v33 = vld [vmem:[%s19814_s7 + $0xbc] ss:$72 sps:$4 sm:$0xff]   ;;  %v15908_v31 = vld [vmem:[%s19814_s7 + $0x14c] ss:$72 sps:$4 sm:$0xff]   ;;  %v15906_v50 = vld [vmem:[%s19814_s7 + $0x148] ss:$72 sps:$4 sm:$0xff]  }
0x10ee   : > { %v9047_v62 = vmax.f32 %v9035_v60, 0.0  ;;  %v8938_v39 = vpop.permute.xlu0 %8937  ;;  %v15905_v23 = vld [vmem:[%s19814_s7 + $0x144] ss:$72 sps:$4 sm:$0xff]   ;;  %v15909_v60 = vld [vmem:[%s19814_s7 + $0x1d0] ss:$72 sps:$4 sm:$0xff]  }
0x10ef   : > { %v8843_v21 = vpop.f32.mrb[156].mxu1  ;;  %v9028_v4 = vpop.permute.xlu1 %9027 }
0x10f0   : > { %v19078_v63 = vpack.c.bf16 %v9047_v62, %v9046_v46  ;;  %v8951_v54 = vmul.f32 %v8918_v38, %v8843_v21  ;;  %v14708_v29 = vpop.f32.mrb[157].mxu1  ;;  %9703 = vmatpush1.bf16.msra.mxu0 %v15885_v9  ;;  %9796 = vmatpush1.bf16.msra.mxu1 %v15888_v58  ;;  %v15912_v9 = vld [vmem:[%s19814_s7 + $0x1d8] ss:$72 sps:$4 sm:$0xff]   ;;  %v15917_v58 = vld [vmem:[%s19814_s7 + $0x34] ss:$72 sps:$4 sm:$0xff]  }
0x10f1   : > { %v8846_v37 = vpop.f32.mrb[158].mxu1  ;;  %9882 = vmatprep.subr.bf16.mxu0 %v15893_v16  ;;  %9975 = vmatprep.subr.bf16.mxu1 %v15896_v24  ;;  %v15920_v16 = vld [vmem:[%s19814_s7 + $0x3c] ss:$72 sps:$4 sm:$0xff]   ;;  %v15915_v24 = vld [vmem:[%s19814_s7 + $0x30] ss:$72 sps:$4 sm:$0xff]  }
0x10f2   : > { %v9036_v5 = vadd.f32 %v9003_v32, %v8951_v54  ;;  %v8952_v0 = vmul.f32 %v8923_v56, %v8846_v37  ;;  %v14709_v28 = vpop.f32.mrb[159].mxu1  ;;  %13037 = vmatmul.mubr.msk.bf16.gmra.mrb[144].mxu0 %vm3322_vm2, %v19078_v63  ;;  %13043 = vmatmul.mubr.msk.bf16.gmra.mrb[176].mxu1 %vm3322_vm2, %v19078_v63  ;;  %v9023_v38 = vpop.permute.xlu0 %9022  ;;  %v15897_v32 = vld [vmem:[%s19814_s7 + $0xb0] ss:$72 sps:$4 sm:$0xff]   ;;  %v15923_v62 = vld [vmem:[%s19814_s7 + $0xc4] ss:$72 sps:$4 sm:$0xff]  }
0x10f3   : > { %9572 = vmatprep.mubr.bf16.mxu0 %v19808_v17  ;;  %9665 = vmatprep.mubr.bf16.mxu1 %v19808_v17  ;;  %v15918_v46 = vld [vmem:[%s19814_s7 + $0x38] ss:$72 sps:$4 sm:$0xff]   ;;  %v15924_v54 = vld [vmem:[%s19814_s7 + $0xc8] ss:$72 sps:$4 sm:$0xff]   ;;  %v15929_v29 = vld [vmem:[%s19814_s7 + $0x154] ss:$72 sps:$4 sm:$0xff]  }
0x10f4   : > { %v9037_v20 = vadd.f32 %v9008_v52, %v8952_v0  ;;  %v9048_v18 = vmax.f32 %v9036_v5, 0.0  ;;  %v15914_v52 = vld [vmem:[%s19814_s7 + $0x1dc] ss:$72 sps:$4 sm:$0xff]   ;;  %v15921_v21 = vld [vmem:[%s19814_s7 + $0xc0] ss:$72 sps:$4 sm:$0xff]  }
0x10f5   : > { %v15927_v37 = vld [vmem:[%s19814_s7 + $0x150] ss:$72 sps:$4 sm:$0xff]   ;;  %v15935_v0 = vld [vmem:[%s19814_s7 + $0x1e4] ss:$72 sps:$4 sm:$0xff]  }
0x10f6   : > { %v9049_v6 = vmax.f32 %v9037_v20, 0.0  ;;  %v15930_v5 = vld [vmem:[%s19814_s7 + $0x158] ss:$72 sps:$4 sm:$0xff]   ;;  %v15938_v28 = vld [vmem:[%s19814_s7 + $0x1ec] ss:$72 sps:$4 sm:$0xff]  }
0x10f7   : > { %v8851_v3 = vpop.f32.mrb[160].mxu1  ;;  %v15933_v20 = vld [vmem:[%s19814_s7 + $0x1e0] ss:$72 sps:$4 sm:$0xff]  }
0x10f8   : > { %v19086_v14 = vpack.c.bf16 %v9049_v6, %v9048_v18  ;;  %v8953_v41 = vmul.f32 %v8928_v61, %v8851_v3  ;;  %v14712_v1 = vpop.f32.mrb[161].mxu1  ;;  %v15926_v61 = vld [vmem:[%s19814_s7 + $0xcc] ss:$72 sps:$4 sm:$0xff]   ;;  %v15939_v6 = vld [vmem:[%s19814_s7 + $0x40] ss:$72 sps:$4 sm:$0xff]  }
0x10f9   : > { %v8854_v36 = vpop.f32.mrb[162].mxu1  ;;  %v15941_v18 = vld [vmem:[%s19814_s7 + $0x44] ss:$72 sps:$4 sm:$0xff]   ;;  %v15942_v3 = vld [vmem:[%s19814_s7 + $0xd0] ss:$72 sps:$4 sm:$0xff]  }
0x10fa   : > { %v9038_v48 = vadd.f32 %v9013_v12, %v8953_v41  ;;  %v8954_v30 = vmul.f32 %v8933_v26, %v8854_v36  ;;  %v14713_v45 = vpop.f32.mrb[163].mxu1  ;;  %13038 = vmatmul.mubr.msk.bf16.gmra.mrb[148].mxu0 %vm3322_vm2, %v19086_v14  ;;  %13044 = vmatmul.mubr.msk.bf16.gmra.mrb[180].mxu1 %vm3322_vm2, %v19086_v14  ;;  %v15932_v26 = vld [vmem:[%s19814_s7 + $0x15c] ss:$72 sps:$4 sm:$0xff]   ;;  %v15936_v12 = vld [vmem:[%s19814_s7 + $0x1e8] ss:$72 sps:$4 sm:$0xff]  }
0x10fb   : > { %9582 = vmatprep.mubr.bf16.mxu0 %v19808_v17  ;;  %9675 = vmatprep.mubr.bf16.mxu1 %v19808_v17  ;;  %v15947_v41 = vld [vmem:[%s19814_s7 + $0x164] ss:$72 sps:$4 sm:$0xff]   ;;  %v15945_v1 = vld [vmem:[%s19814_s7 + $0x160] ss:$72 sps:$4 sm:$0xff]   ;;  %v15950_v36 = vld [vmem:[%s19814_s7 + $0x1f4] ss:$72 sps:$4 sm:$0xff]  }
0x10fc   : > { %v9039_v25 = vadd.f32 %v9018_v10, %v8954_v30  ;;  %v9050_v19 = vmax.f32 %v9038_v48, 0.0  ;;  %v15944_v10 = vld [vmem:[%s19814_s7 + $0xd4] ss:$72 sps:$4 sm:$0xff]   ;;  %v15948_v48 = vld [vmem:[%s19814_s7 + $0x1f0] ss:$72 sps:$4 sm:$0xff]  }
0x10fe   : > { %v9051_v53 = vmax.f32 %v9039_v25, 0.0 }
0x10ff   : > { %v8859_v7 = vpop.f32.mrb[164].mxu1 }
0x1100   : > { %v19094_v51 = vpack.c.bf16 %v9051_v53, %v9050_v19  ;;  %v8955_v8 = vmul.f32 %v8938_v39, %v8859_v7  ;;  %v14716_v40 = vpop.f32.mrb[165].mxu1 }
0x1101   : > { %v8862_v55 = vpop.f32.mrb[166].mxu1 }
0x1102   : > { %v9040_v13 = vadd.f32 %v9023_v38, %v8955_v8  ;;  %v8956_v43 = vmul.f32 %v8943_v42, %v8862_v55  ;;  %v14717_v56 = vpop.f32.mrb[167].mxu1  ;;  %13039 = vmatmul.mubr.msk.bf16.gmra.mrb[152].mxu0 %vm3322_vm2, %v19094_v51  ;;  %13045 = vmatmul.mubr.msk.bf16.gmra.mrb[184].mxu1 %vm3322_vm2, %v19094_v51 }
0x1103   : > { %9592 = vmatprep.mubr.bf16.mxu0 %v19808_v17  ;;  %9685 = vmatprep.mubr.bf16.mxu1 %v19808_v17 }
0x1104   : > { %v9041_v22 = vadd.f32 %v9028_v4, %v8956_v43  ;;  %v9052_v2 = vmax.f32 %v9040_v13, 0.0 }
0x1106   : > { %v9053_v57 = vmax.f32 %v9041_v22, 0.0 }
0x1108   : > { %v19102_v44 = vpack.c.bf16 %v9053_v57, %v9052_v2 }
0x110a   : > { %13040 = vmatmul.mubr.msk.bf16.gmra.mrb[156].mxu0 %vm3322_vm2, %v19102_v44  ;;  %13046 = vmatmul.mubr.msk.bf16.gmra.mrb[188].mxu1 %vm3322_vm2, %v19102_v44 }
0x110b   : > { %9728 = vmatprep.mubr.bf16.mxu0 %v19808_v17  ;;  %9821 = vmatprep.mubr.bf16.mxu1 %v19808_v17 }
0x1112   : > { %13047 = vmatmul.mubr.msk.bf16.vlgmr.msra.gmra.mrb[160].mxu0 %vm3322_vm2, %v19014_v59  ;;  %13053 = vmatmul.mubr.msk.bf16.vlgmr.msra.gmra.mrb[192].mxu1 %vm3322_vm2, %v19014_v59 }
0x1113   : > { %9738 = vmatprep.mubr.bf16.mxu0 %v19808_v17  ;;  %9831 = vmatprep.mubr.bf16.mxu1 %v19808_v17 }
0x1114   : > { %9883 = vmatpush1.bf16.msra.mxu0 %v15891_v27  ;;  %9976 = vmatpush1.bf16.msra.mxu1 %v15894_v34 }
0x1115   : > { %9884 = vmatprep.subr.bf16.mxu0 %v15899_v15  ;;  %9977 = vmatprep.subr.bf16.mxu1 %v15902_v33 }
0x1118   : > { %9885 = vmatpush1.bf16.msra.mxu0 %v15897_v32  ;;  %9978 = vmatpush1.bf16.msra.mxu1 %v15900_v49 }
0x1119   : > { %9886 = vmatprep.subr.bf16.mxu0 %v15905_v23  ;;  %9979 = vmatprep.subr.bf16.mxu1 %v15908_v31 }
0x111a   : > { %13048 = vmatmul.mubr.msk.bf16.gmra.mrb[164].mxu0 %vm3322_vm2, %v19046_v35  ;;  %13054 = vmatmul.mubr.msk.bf16.gmra.mrb[196].mxu1 %vm3322_vm2, %v19046_v35 }
0x111b   : > { %9748 = vmatprep.mubr.bf16.mxu0 %v19808_v17  ;;  %9841 = vmatprep.mubr.bf16.mxu1 %v19808_v17 }
0x111c   : > { %9887 = vmatpush1.bf16.msra.mxu0 %v15903_v11  ;;  %9980 = vmatpush1.bf16.msra.mxu1 %v15906_v50 }
0x111d   : > { %9888 = vmatprep.subr.bf16.mxu0 %v15911_v47  ;;  %9981 = vmatprep.subr.bf16.mxu1 %v15914_v52 }
0x1120   : > { %9889 = vmatpush1.bf16.msra.mxu0 %v15909_v60  ;;  %9982 = vmatpush1.bf16.msra.mxu1 %v15912_v9 }
0x1121   : > { %10068 = vmatprep.subr.bf16.mxu0 %v15917_v58  ;;  %10161 = vmatprep.subr.bf16.mxu1 %v15920_v16 }
0x1122   : > { %13049 = vmatmul.mubr.msk.bf16.gmra.mrb[168].mxu0 %vm3322_vm2, %v19078_v63  ;;  %13055 = vmatmul.mubr.msk.bf16.gmra.mrb[200].mxu1 %vm3322_vm2, %v19078_v63 }
0x1123   : > { %9758 = vmatprep.mubr.bf16.mxu0 %v19808_v17  ;;  %9851 = vmatprep.mubr.bf16.mxu1 %v19808_v17 }
0x112a   : > { %13050 = vmatmul.mubr.msk.bf16.gmra.mrb[172].mxu0 %vm3322_vm2, %v19086_v14  ;;  %13056 = vmatmul.mubr.msk.bf16.gmra.mrb[204].mxu1 %vm3322_vm2, %v19086_v14 }
0x112b   : > { %9768 = vmatprep.mubr.bf16.mxu0 %v19808_v17  ;;  %9861 = vmatprep.mubr.bf16.mxu1 %v19808_v17 }
0x1132   : > { %13051 = vmatmul.mubr.msk.bf16.gmra.mrb[176].mxu0 %vm3322_vm2, %v19094_v51  ;;  %13057 = vmatmul.mubr.msk.bf16.gmra.mrb[208].mxu1 %vm3322_vm2, %v19094_v51 }
0x1133   : > { %9778 = vmatprep.mubr.bf16.mxu0 %v19808_v17  ;;  %9871 = vmatprep.mubr.bf16.mxu1 %v19808_v17 }
0x113a   : > { %13052 = vmatmul.mubr.msk.bf16.gmra.mrb[180].mxu0 %vm3322_vm2, %v19102_v44  ;;  %13058 = vmatmul.mubr.msk.bf16.gmra.mrb[212].mxu1 %vm3322_vm2, %v19102_v44 }
0x113b   : > { %9914 = vmatprep.mubr.bf16.mxu0 %v19808_v17  ;;  %10007 = vmatprep.mubr.bf16.mxu1 %v19808_v17 }
0x1142   : > { %13059 = vmatmul.mubr.msk.bf16.vlgmr.msra.gmra.mrb[184].mxu0 %vm3322_vm2, %v19014_v59  ;;  %13065 = vmatmul.mubr.msk.bf16.vlgmr.msra.gmra.mrb[216].mxu1 %vm3322_vm2, %v19014_v59 }
0x1143   : > { %9924 = vmatprep.mubr.bf16.mxu0 %v19808_v17  ;;  %10017 = vmatprep.mubr.bf16.mxu1 %v19808_v17 }
0x1144   : > { %10069 = vmatpush1.bf16.msra.mxu0 %v15915_v24  ;;  %10162 = vmatpush1.bf16.msra.mxu1 %v15918_v46 }
0x1145   : > { %10070 = vmatprep.subr.bf16.mxu0 %v15923_v62  ;;  %10163 = vmatprep.subr.bf16.mxu1 %v15926_v61 }
0x1148   : > { %10071 = vmatpush1.bf16.msra.mxu0 %v15921_v21  ;;  %10164 = vmatpush1.bf16.msra.mxu1 %v15924_v54 }
0x1149   : > { %10072 = vmatprep.subr.bf16.mxu0 %v15929_v29  ;;  %10165 = vmatprep.subr.bf16.mxu1 %v15932_v26 }
0x114a   : > { %13060 = vmatmul.mubr.msk.bf16.gmra.mrb[188].mxu0 %vm3322_vm2, %v19046_v35  ;;  %13066 = vmatmul.mubr.msk.bf16.gmra.mrb[220].mxu1 %vm3322_vm2, %v19046_v35 }
0x114b   : > { %9934 = vmatprep.mubr.bf16.mxu0 %v19808_v17  ;;  %10027 = vmatprep.mubr.bf16.mxu1 %v19808_v17 }
0x114c   : > { %10073 = vmatpush1.bf16.msra.mxu0 %v15927_v37  ;;  %10166 = vmatpush1.bf16.msra.mxu1 %v15930_v5  ;;  %v19367_v37 = vld [vmem:[%s19743_s8 + $0x20] sm:$0xff]  }
0x114d   : > { %10074 = vmatprep.subr.bf16.mxu0 %v15935_v0  ;;  %10167 = vmatprep.subr.bf16.mxu1 %v15938_v28 }
0x1150   : > { %10075 = vmatpush1.bf16.msra.mxu0 %v15933_v20  ;;  %10168 = vmatpush1.bf16.msra.mxu1 %v15936_v12 }
0x1151   : > { %10254 = vmatprep.subr.bf16.mxu0 %v15941_v18 }
0x1152   : > { %13061 = vmatmul.mubr.msk.bf16.gmra.mrb[192].mxu0 %vm3322_vm2, %v19078_v63  ;;  %13067 = vmatmul.mubr.msk.bf16.gmra.mrb[224].mxu1 %vm3322_vm2, %v19078_v63 }
0x1153   : > { %9944 = vmatprep.mubr.bf16.mxu0 %v19808_v17  ;;  %10037 = vmatprep.mubr.bf16.mxu1 %v19808_v17 }
0x115a   : > { %13062 = vmatmul.mubr.msk.bf16.gmra.mrb[196].mxu0 %vm3322_vm2, %v19086_v14  ;;  %13068 = vmatmul.mubr.msk.bf16.gmra.mrb[228].mxu1 %vm3322_vm2, %v19086_v14 }
0x115b   : > { %9954 = vmatprep.mubr.bf16.mxu0 %v19808_v17  ;;  %10047 = vmatprep.mubr.bf16.mxu1 %v19808_v17 }
0x1162   : > { %13063 = vmatmul.mubr.msk.bf16.gmra.mrb[200].mxu0 %vm3322_vm2, %v19094_v51  ;;  %13069 = vmatmul.mubr.msk.bf16.gmra.mrb[232].mxu1 %vm3322_vm2, %v19094_v51 }
0x1163   : > { %9964 = vmatprep.mubr.bf16.mxu0 %v19808_v17  ;;  %10057 = vmatprep.mubr.bf16.mxu1 %v19808_v17 }
0x116a   : > { %13064 = vmatmul.mubr.msk.bf16.gmra.mrb[204].mxu0 %vm3322_vm2, %v19102_v44  ;;  %13070 = vmatmul.mubr.msk.bf16.gmra.mrb[236].mxu1 %vm3322_vm2, %v19102_v44 }
0x116b   : > { %10100 = vmatprep.mubr.bf16.mxu0 %v19808_v17  ;;  %10193 = vmatprep.mubr.bf16.mxu1 %v19808_v17 }
0x1172   : > { %13071 = vmatmul.mubr.msk.bf16.vlgmr.msra.gmra.mrb[208].mxu0 %vm3322_vm2, %v19014_v59  ;;  %13077 = vmatmul.mubr.msk.bf16.vlgmr.msra.gmra.mrb[240].mxu1 %vm3322_vm2, %v19014_v59 }
0x1173   : > { %10110 = vmatprep.mubr.bf16.mxu0 %v19808_v17  ;;  %10203 = vmatprep.mubr.bf16.mxu1 %v19808_v17 }
0x1174   : > { %10255 = vmatpush1.bf16.msra.mxu0 %v15939_v6 }
0x1175   : > { %10256 = vmatprep.subr.bf16.mxu0 %v15944_v10 }
0x1178   : > { %10257 = vmatpush1.bf16.msra.mxu0 %v15942_v3 }
0x1179   : > { %10258 = vmatprep.subr.bf16.mxu0 %v15947_v41 }
0x117a   : > { %13072 = vmatmul.mubr.msk.bf16.gmra.mrb[212].mxu0 %vm3322_vm2, %v19046_v35  ;;  %13078 = vmatmul.mubr.msk.bf16.gmra.mrb[244].mxu1 %vm3322_vm2, %v19046_v35 }
0x117b   : > { %10120 = vmatprep.mubr.bf16.mxu0 %v19808_v17  ;;  %10213 = vmatprep.mubr.bf16.mxu1 %v19808_v17 }
0x117c   : > { %10259 = vmatpush1.bf16.msra.mxu0 %v15945_v1 }
0x117d   : > { %10260 = vmatprep.subr.bf16.mxu0 %v15950_v36 }
0x1180   : > { %10261 = vmatpush1.bf16.msra.mxu0 %v15948_v48  ;;  %v19375_v48 = vld [vmem:[%s19743_s8 + $0x28] sm:$0xff]  }
0x1182   : > { %13073 = vmatmul.mubr.msk.bf16.gmra.mrb[216].mxu0 %vm3322_vm2, %v19078_v63  ;;  %13079 = vmatmul.mubr.msk.bf16.gmra.mrb[248].mxu1 %vm3322_vm2, %v19078_v63 }
0x1183   : > { %10130 = vmatprep.mubr.bf16.mxu0 %v19808_v17  ;;  %10223 = vmatprep.mubr.bf16.mxu1 %v19808_v17 }
0x118a   : > { %13074 = vmatmul.mubr.msk.bf16.gmra.mrb[220].mxu0 %vm3322_vm2, %v19086_v14  ;;  %13080 = vmatmul.mubr.msk.bf16.gmra.mrb[252].mxu1 %vm3322_vm2, %v19086_v14 }
0x118b   : > { %10140 = vmatprep.mubr.bf16.mxu0 %v19808_v17  ;;  %10233 = vmatprep.mubr.bf16.mxu1 %v19808_v17 }
0x1192   : > { %13075 = vmatmul.mubr.msk.bf16.gmra.mrb[224].mxu0 %vm3322_vm2, %v19094_v51  ;;  %13081 = vmatmul.mubr.msk.bf16.gmra.mrb[0].mxu1 %vm3322_vm2, %v19094_v51 }
0x1193   : > { %10150 = vmatprep.mubr.bf16.mxu0 %v19808_v17  ;;  %10243 = vmatprep.mubr.bf16.mxu1 %v19808_v17 }
0x119a   : > { %13076 = vmatmul.mubr.msk.bf16.gmra.mrb[228].mxu0 %vm3322_vm2, %v19102_v44  ;;  %13082 = vmatmul.mubr.msk.bf16.gmra.mrb[4].mxu1 %vm3322_vm2, %v19102_v44 }
0x119b   : > { %10286 = vmatprep.mubr.bf16.mxu0 %v19808_v17  ;;  %10524 = vmatprep.mubr.bf16.mxu1 %v19808_v17 }
0x11a2   : > { %13083 = vmatmul.mubr.msk.bf16.vlgmr.msra.gmra.mrb[232].mxu0 %vm3322_vm2, %v19014_v59 }
0x11a3   : > { %10296 = vmatprep.mubr.bf16.mxu0 %v19808_v17 }
0x11aa   : > { %13084 = vmatmul.mubr.msk.bf16.gmra.mrb[236].mxu0 %vm3322_vm2, %v19046_v35 }
0x11ab   : > { %10306 = vmatprep.mubr.bf16.mxu0 %v19808_v17 }
0x11b2   : > { %13085 = vmatmul.mubr.msk.bf16.gmra.mrb[240].mxu0 %vm3322_vm2, %v19078_v63 }
0x11b3   : > { %10316 = vmatprep.mubr.bf16.mxu0 %v19808_v17 }
0x11b5   : > { %v9544_v30 = vpop.f32.mrb[136].mxu0  ;;  %v9637_v45 = vpop.f32.mrb[168].mxu1 }
0x11b6   : > { %v9546_v39 = vpop.f32.mrb[137].mxu0  ;;  %v9639_v25 = vpop.f32.mrb[169].mxu1 }
0x11b7   : > { %v9548_v42 = vpop.f32.mrb[138].mxu0  ;;  %v9641_v19 = vpop.f32.mrb[170].mxu1 }
0x11b8   : > { %v10347_v53 = vpack.c.bf16 %v9548_v42, %v9544_v30  ;;  %v10349_v59 = vpack.c.bf16 %v9641_v19, %v9637_v45  ;;  %v9550_v7 = vpop.f32.mrb[139].mxu0  ;;  %v9643_v8 = vpop.f32.mrb[171].mxu1 }
0x11b9   : > { %v10348_v40 = vpack.c.bf16 %v9550_v7, %v9546_v39  ;;  %v10350_v38 = vpack.c.bf16 %v9643_v8, %v9639_v25 }
0x11ba   : > { %13086 = vmatmul.mubr.msk.bf16.gmra.mrb[244].mxu0 %vm3322_vm2, %v19086_v14 }
0x11bb   : > { %10492 = vmatprep.subr.bf16.mxu1 %v10350_v38  ;;  %10326 = vmatprep.mubr.bf16.mxu0 %v19808_v17 }
0x11bc   : > { %10493 = vmatpush1.bf16.msra.mxu1 %v10349_v59 }
0x11bd   : > { %v9554_v35 = vpop.f32.mrb[140].mxu0  ;;  %v9647_v63 = vpop.f32.mrb[172].mxu1 }
0x11be   : > { %v9556_v55 = vpop.f32.mrb[141].mxu0  ;;  %v9649_v13 = vpop.f32.mrb[173].mxu1 }
0x11bf   : > { %v9558_v43 = vpop.f32.mrb[142].mxu0  ;;  %v9651_v56 = vpop.f32.mrb[174].mxu1 }
0x11c0   : > { %v10365_v4 = vpack.c.bf16 %v9558_v43, %v9554_v35  ;;  %v10367_v22 = vpack.c.bf16 %v9651_v56, %v9647_v63  ;;  %v9560_v2 = vpop.f32.mrb[143].mxu0  ;;  %v9653_v57 = vpop.f32.mrb[175].mxu1  ;;  %v19383_v35 = vld [vmem:[%s19743_s8] sm:$0xff]  }
0x11c1   : > { %v10366_v27 = vpack.c.bf16 %v9560_v2, %v9556_v55  ;;  %v10368_v34 = vpack.c.bf16 %v9653_v57, %v9649_v13 }
0x11c2   : > { %13087 = vmatmul.mubr.msk.bf16.gmra.mrb[248].mxu0 %vm3322_vm2, %v19094_v51  ;;  %v19352_v51 = vld [vmem:[%s19743_s8 + $0x18] sm:$0xff]  }
0x11c3   : > { %10494 = vmatprep.subr.bf16.mxu1 %v10368_v34  ;;  %10336 = vmatprep.mubr.bf16.mxu0 %v19808_v17 }
0x11c4   : > { %10495 = vmatpush1.bf16.msra.mxu1 %v10367_v22 }
0x11c5   : > { %v9564_v14 = vpop.f32.mrb[144].mxu0  ;;  %v9657_v15 = vpop.f32.mrb[176].mxu1 }
0x11c6   : > { %v9566_v33 = vpop.f32.mrb[145].mxu0  ;;  %v9659_v32 = vpop.f32.mrb[177].mxu1 }
0x11c7   : > { %v9568_v49 = vpop.f32.mrb[146].mxu0  ;;  %v9661_v23 = vpop.f32.mrb[178].mxu1 }
0x11c8   : > { %v10383_v31 = vpack.c.bf16 %v9568_v49, %v9564_v14  ;;  %v10385_v11 = vpack.c.bf16 %v9661_v23, %v9657_v15  ;;  %v9570_v50 = vpop.f32.mrb[147].mxu0  ;;  %v9663_v47 = vpop.f32.mrb[179].mxu1  ;;  %v19400_v15 = vld [vmem:[%s19743_s8 + $0x8] sm:$0xff]  }
0x11c9   : > { %v10384_v52 = vpack.c.bf16 %v9570_v50, %v9566_v33  ;;  %v10386_v60 = vpack.c.bf16 %v9663_v47, %v9659_v32 }
0x11ca   : > { %13088 = vmatmul.mubr.msk.bf16.gmra.mrb[252].mxu0 %vm3322_vm2, %v19102_v44 }
0x11cb   : > { %10496 = vmatprep.subr.bf16.mxu1 %v10386_v60  ;;  %11416 = vmatprep.mubr.bf16.mxu0 %v19808_v17 }
0x11cc   : > { %10497 = vmatpush1.bf16.msra.mxu1 %v10385_v11 }
0x11cd   : > { %v19355_v9 = vpop.f32.mrb[148].mxu0  ;;  %v9667_v58 = vpop.f32.mrb[180].mxu1  ;;  %10579 = vmatprep.subr.bf16.mxu1 %v10348_v40 }
0x11ce   : > { %v9576_v16 = vpop.f32.mrb[149].mxu0  ;;  %v9669_v24 = vpop.f32.mrb[181].mxu1 }
0x11cf   : > { %v19357_v46 = vpop.f32.mrb[150].mxu0  ;;  %v9671_v62 = vpop.f32.mrb[182].mxu1  ;;  %13098 = vmatmul.mubr.msk.bf16.vlgmr.msra.gmra.mrb[8].mxu1 %vm1643_vm1, %v19352_v51 }
0x11d0   : > { %v10401_v44 = vpack.c.bf16 %v19357_v46, %v19355_v9  ;;  %v10403_v61 = vpack.c.bf16 %v9671_v62, %v9667_v58  ;;  %v9580_v21 = vpop.f32.mrb[151].mxu0  ;;  %v9673_v54 = vpop.f32.mrb[183].mxu1  ;;  %10580 = vmatpush1.bf16.msra.mxu1 %v10347_v53  ;;  %10534 = vmatprep.mubr.bf16.mxu1 %v19808_v17  ;;  %v19411_v58 = vld [vmem:[%s19743_s8 + $0x10] sm:$0xff]  }
0x11d1   : > { %v10402_v29 = vpack.c.bf16 %v9580_v21, %v9576_v16  ;;  %v10404_v26 = vpack.c.bf16 %v9673_v54, %v9669_v24  ;;  %10581 = vmatprep.subr.bf16.mxu1 %v10366_v27 }
0x11d3   : > { %11384 = vmatprep.subr.bf16.mxu0 %v10404_v26 }
0x11d4   : > { %10582 = vmatpush1.bf16.msra.mxu1 %v10365_v4  ;;  %11385 = vmatpush1.bf16.msra.mxu0 %v10403_v61 }
0x11d5   : > { %v9584_v5 = vpop.f32.mrb[152].mxu0  ;;  %v9677_v0 = vpop.f32.mrb[184].mxu1  ;;  %10583 = vmatprep.subr.bf16.mxu1 %v10384_v52 }
0x11d6   : > { %v9586_v28 = vpop.f32.mrb[153].mxu0  ;;  %v9679_v20 = vpop.f32.mrb[185].mxu1 }
0x11d7   : > { %v9588_v12 = vpop.f32.mrb[154].mxu0  ;;  %v9681_v18 = vpop.f32.mrb[186].mxu1  ;;  %13099 = vmatmul.mubr.msk.bf16.gmra.mrb[12].mxu1 %vm1643_vm1, %v19367_v37 }
0x11d8   : > { %v10419_v6 = vpack.c.bf16 %v9588_v12, %v9584_v5  ;;  %v10421_v10 = vpack.c.bf16 %v9681_v18, %v9677_v0  ;;  %v9590_v3 = vpop.f32.mrb[155].mxu0  ;;  %v9683_v41 = vpop.f32.mrb[187].mxu1  ;;  %10584 = vmatpush1.bf16.msra.mxu1 %v10383_v31  ;;  %10544 = vmatprep.mubr.bf16.mxu1 %v19808_v17  ;;  %v19422_v0 = vld [vmem:[%s19743_s8 + $0x30] sm:$0xff]  }
0x11d9   : > { %v10420_v1 = vpack.c.bf16 %v9590_v3, %v9586_v28  ;;  %v10422_v36 = vpack.c.bf16 %v9683_v41, %v9679_v20 }
0x11db   : > { %11386 = vmatprep.subr.bf16.mxu0 %v10422_v36 }
0x11dc   : > { %11387 = vmatpush1.bf16.msra.mxu0 %v10421_v10 }
0x11dd   : > { %v9594_v30 = vpop.f32.mrb[156].mxu0  ;;  %v9687_v45 = vpop.f32.mrb[188].mxu1 }
0x11de   : > { %v9596_v39 = vpop.f32.mrb[157].mxu0  ;;  %v9689_v25 = vpop.f32.mrb[189].mxu1 }
0x11df   : > { %v9598_v42 = vpop.f32.mrb[158].mxu0  ;;  %v9691_v19 = vpop.f32.mrb[190].mxu1  ;;  %13100 = vmatmul.mubr.msk.bf16.gmra.mrb[16].mxu1 %vm1643_vm1, %v19375_v48 }
0x11e0   : > { %v10437_v53 = vpack.c.bf16 %v9598_v42, %v9594_v30  ;;  %v10439_v59 = vpack.c.bf16 %v9691_v19, %v9687_v45  ;;  %v9600_v7 = vpop.f32.mrb[159].mxu0  ;;  %v9693_v8 = vpop.f32.mrb[191].mxu1  ;;  %10611 = vmatprep.mubr.bf16.mxu1 %v19808_v17  ;;  %v19442_v45 = vld [vmem:[%s19743_s8 + $0x38] sm:$0xff]  }
0x11e1   : > { %v10438_v40 = vpack.c.bf16 %v9600_v7, %v9596_v39  ;;  %v10440_v38 = vpack.c.bf16 %v9693_v8, %v9689_v25 }
0x11e3   : > { %11388 = vmatprep.subr.bf16.mxu0 %v10440_v38 }
0x11e4   : > { %11389 = vmatpush1.bf16.msra.mxu0 %v10439_v59 }
0x11e5   : > { %v9730_v63 = vpop.f32.mrb[160].mxu0  ;;  %v19385_v55 = vpop.f32.mrb[192].mxu1  ;;  %11447 = vmatprep.subr.bf16.mxu0 %v10402_v29 }
0x11e6   : > { %v9732_v13 = vpop.f32.mrb[161].mxu0  ;;  %v9825_v43 = vpop.f32.mrb[193].mxu1 }
0x11e7   : > { %v9734_v56 = vpop.f32.mrb[162].mxu0  ;;  %v19387_v4 = vpop.f32.mrb[194].mxu1  ;;  %13104 = vmatmul.mubr.msk.bf16.vlgmr.msra.gmra.mrb[8].mxu1 %vm1643_vm1, %v19383_v35  ;;  %13191 = vmatmul.mubr.msk.bf16.vlgmr.msra.gmra.mrb[0].mxu0 %vm1643_vm1, %v19352_v51 }
0x11e8   : > { %v10351_v22 = vpack.c.bf16 %v9734_v56, %v9730_v63  ;;  %v10353_v2 = vpack.c.bf16 %v19387_v4, %v19385_v55  ;;  %v9736_v57 = vpop.f32.mrb[163].mxu0  ;;  %v9829_v27 = vpop.f32.mrb[195].mxu1  ;;  %11448 = vmatpush1.bf16.msra.mxu0 %v10401_v44  ;;  %10621 = vmatprep.mubr.bf16.mxu1 %v19808_v17  ;;  %v19453_v55 = vld [vmem:[%s19743_s8 + $0x40] sm:$0xff]  }
0x11e9   : > { %v10352_v34 = vpack.c.bf16 %v9736_v57, %v9732_v13  ;;  %v10354_v14 = vpack.c.bf16 %v9829_v27, %v9825_v43  ;;  %11449 = vmatprep.subr.bf16.mxu0 %v10420_v1  ;;  %11426 = vmatprep.mubr.bf16.mxu0 %v19808_v17 }
0x11eb   : > { %10673 = vmatprep.subr.bf16.mxu1 %v10352_v34 }
0x11ec   : > { %10674 = vmatpush1.bf16.msra.mxu1 %v10351_v22  ;;  %11450 = vmatpush1.bf16.msra.mxu0 %v10419_v6 }
0x11ed   : > { %v9740_v33 = vpop.f32.mrb[164].mxu0  ;;  %v9833_v32 = vpop.f32.mrb[196].mxu1  ;;  %11451 = vmatprep.subr.bf16.mxu0 %v10438_v40 }
0x11ee   : > { %v9742_v49 = vpop.f32.mrb[165].mxu0  ;;  %v9835_v23 = vpop.f32.mrb[197].mxu1 }
0x11ef   : > { %v9744_v31 = vpop.f32.mrb[166].mxu0  ;;  %v9837_v11 = vpop.f32.mrb[198].mxu1  ;;  %13105 = vmatmul.mubr.msk.bf16.gmra.mrb[12].mxu1 %vm1643_vm1, %v19400_v15  ;;  %13192 = vmatmul.mubr.msk.bf16.gmra.mrb[4].mxu0 %vm1643_vm1, %v19367_v37 }
0x11f0   : > { %v10369_v50 = vpack.c.bf16 %v9744_v31, %v9740_v33  ;;  %v10371_v47 = vpack.c.bf16 %v9837_v11, %v9833_v32  ;;  %v9746_v52 = vpop.f32.mrb[167].mxu0  ;;  %v9839_v60 = vpop.f32.mrb[199].mxu1  ;;  %11452 = vmatpush1.bf16.msra.mxu0 %v10437_v53  ;;  %10631 = vmatprep.mubr.bf16.mxu1 %v19808_v17  ;;  %v19464_v32 = vld [vmem:[%s19743_s8 + $0x48] sm:$0xff]  }
0x11f1   : > { %v10370_v51 = vpack.c.bf16 %v9746_v52, %v9742_v49  ;;  %v10372_v9 = vpack.c.bf16 %v9839_v60, %v9835_v23  ;;  %11436 = vmatprep.mubr.bf16.mxu0 %v19808_v17 }
0x11f3   : > { %10675 = vmatprep.subr.bf16.mxu1 %v10370_v51 }
0x11f4   : > { %10676 = vmatpush1.bf16.msra.mxu1 %v10369_v50 }
0x11f5   : > { %v9750_v16 = vpop.f32.mrb[168].mxu0  ;;  %v9843_v24 = vpop.f32.mrb[200].mxu1 }
0x11f6   : > { %v9752_v46 = vpop.f32.mrb[169].mxu0  ;;  %v9845_v62 = vpop.f32.mrb[201].mxu1 }
0x11f7   : > { %v9754_v44 = vpop.f32.mrb[170].mxu0  ;;  %v9847_v61 = vpop.f32.mrb[202].mxu1  ;;  %13106 = vmatmul.mubr.msk.bf16.gmra.mrb[16].mxu1 %vm1643_vm1, %v19411_v58  ;;  %13193 = vmatmul.mubr.msk.bf16.gmra.mrb[8].mxu0 %vm1643_vm1, %v19375_v48 }
0x11f8   : > { %v10387_v21 = vpack.c.bf16 %v9754_v44, %v9750_v16  ;;  %v10389_v54 = vpack.c.bf16 %v9847_v61, %v9843_v24  ;;  %v9756_v29 = vpop.f32.mrb[171].mxu0  ;;  %v9849_v26 = vpop.f32.mrb[203].mxu1  ;;  %10705 = vmatprep.mubr.bf16.mxu1 %v19808_v17  ;;  %11479 = vmatprep.mubr.bf16.mxu0 %v19808_v17  ;;  %v19484_v24 = vld [vmem:[%s19743_s8 + $0x50] sm:$0xff]  }
0x11f9   : > { %v10388_v37 = vpack.c.bf16 %v9756_v29, %v9752_v46  ;;  %v10390_v5 = vpack.c.bf16 %v9849_v26, %v9845_v62 }
0x11fb   : > { %10677 = vmatprep.subr.bf16.mxu1 %v10388_v37 }
0x11fc   : > { %10678 = vmatpush1.bf16.msra.mxu1 %v10387_v21 }
0x11fd   : > { %v9760_v28 = vpop.f32.mrb[172].mxu0  ;;  %v19424_v20 = vpop.f32.mrb[204].mxu1  ;;  %10779 = vmatprep.subr.bf16.mxu1 %v10354_v14 }
0x11fe   : > { %v9762_v12 = vpop.f32.mrb[173].mxu0  ;;  %v9855_v18 = vpop.f32.mrb[205].mxu1 }
0x11ff   : > { %v9764_v6 = vpop.f32.mrb[174].mxu0  ;;  %v19426_v10 = vpop.f32.mrb[206].mxu1  ;;  %13116 = vmatmul.mubr.msk.bf16.vlgmr.msra.gmra.mrb[8].mxu1 %vm1643_vm1, %v19422_v0  ;;  %13194 = vmatmul.mubr.msk.bf16.vlgmr.msra.gmra.mrb[0].mxu0 %vm1643_vm1, %v19383_v35 }
0x1200   : > { %v10405_v3 = vpack.c.bf16 %v9764_v6, %v9760_v28  ;;  %v10407_v41 = vpack.c.bf16 %v19426_v10, %v19424_v20  ;;  %v9766_v1 = vpop.f32.mrb[175].mxu0  ;;  %v9859_v36 = vpop.f32.mrb[207].mxu1  ;;  %10780 = vmatpush1.bf16.msra.mxu1 %v10353_v2  ;;  %10715 = vmatprep.mubr.bf16.mxu1 %v19808_v17  ;;  %v19495_v20 = vld [vmem:[%s19743_s8 + $0x58] sm:$0xff]  }
0x1201   : > { %v10406_v48 = vpack.c.bf16 %v9766_v1, %v9762_v12  ;;  %v10408_v30 = vpack.c.bf16 %v9859_v36, %v9855_v18  ;;  %10781 = vmatprep.subr.bf16.mxu1 %v10372_v9  ;;  %11489 = vmatprep.mubr.bf16.mxu0 %v19808_v17 }
0x1203   : > { %11510 = vmatprep.subr.bf16.mxu0 %v10406_v48 }
0x1204   : > { %10782 = vmatpush1.bf16.msra.mxu1 %v10371_v47  ;;  %11511 = vmatpush1.bf16.msra.mxu0 %v10405_v3 }
0x1205   : > { %v9770_v39 = vpop.f32.mrb[176].mxu0  ;;  %v9863_v25 = vpop.f32.mrb[208].mxu1  ;;  %10783 = vmatprep.subr.bf16.mxu1 %v10390_v5 }
0x1206   : > { %v9772_v42 = vpop.f32.mrb[177].mxu0  ;;  %v9865_v19 = vpop.f32.mrb[209].mxu1 }
0x1207   : > { %v9774_v53 = vpop.f32.mrb[178].mxu0  ;;  %v9867_v59 = vpop.f32.mrb[210].mxu1  ;;  %13117 = vmatmul.mubr.msk.bf16.gmra.mrb[12].mxu1 %vm1643_vm1, %v19442_v45  ;;  %13195 = vmatmul.mubr.msk.bf16.gmra.mrb[4].mxu0 %vm1643_vm1, %v19400_v15 }
0x1208   : > { %v10423_v7 = vpack.c.bf16 %v9774_v53, %v9770_v39  ;;  %v10425_v8 = vpack.c.bf16 %v9867_v59, %v9863_v25  ;;  %v9776_v40 = vpop.f32.mrb[179].mxu0  ;;  %v9869_v38 = vpop.f32.mrb[211].mxu1  ;;  %10784 = vmatpush1.bf16.msra.mxu1 %v10389_v54  ;;  %10725 = vmatprep.mubr.bf16.mxu1 %v19808_v17  ;;  %v19506_v25 = vld [vmem:[%s19743_s8 + $0x60] sm:$0xff]  }
0x1209   : > { %v10424_v35 = vpack.c.bf16 %v9776_v40, %v9772_v42  ;;  %v10426_v63 = vpack.c.bf16 %v9869_v38, %v9865_v19  ;;  %11499 = vmatprep.mubr.bf16.mxu0 %v19808_v17 }
0x120b   : > { %11512 = vmatprep.subr.bf16.mxu0 %v10424_v35 }
0x120c   : > { %11513 = vmatpush1.bf16.msra.mxu0 %v10423_v7 }
0x120d   : > { %v9780_v13 = vpop.f32.mrb[180].mxu0  ;;  %v9873_v43 = vpop.f32.mrb[212].mxu1 }
0x120e   : > { %v9782_v56 = vpop.f32.mrb[181].mxu0  ;;  %v9875_v4 = vpop.f32.mrb[213].mxu1 }
0x120f   : > { %v9784_v22 = vpop.f32.mrb[182].mxu0  ;;  %v9877_v2 = vpop.f32.mrb[214].mxu1  ;;  %13118 = vmatmul.mubr.msk.bf16.gmra.mrb[16].mxu1 %vm1643_vm1, %v19453_v55  ;;  %13196 = vmatmul.mubr.msk.bf16.gmra.mrb[8].mxu0 %vm1643_vm1, %v19411_v58 }
0x1210   : > { %v10441_v57 = vpack.c.bf16 %v9784_v22, %v9780_v13  ;;  %v10443_v27 = vpack.c.bf16 %v9877_v2, %v9873_v43  ;;  %v9786_v34 = vpop.f32.mrb[183].mxu0  ;;  %v9879_v14 = vpop.f32.mrb[215].mxu1  ;;  %10811 = vmatprep.mubr.bf16.mxu1 %v19808_v17  ;;  %11542 = vmatprep.mubr.bf16.mxu0 %v19808_v17  ;;  %v19526_v43 = vld [vmem:[%s19743_s8 + $0x68] sm:$0xff]  }
0x1211   : > { %v10442_v15 = vpack.c.bf16 %v9786_v34, %v9782_v56  ;;  %v10444_v33 = vpack.c.bf16 %v9879_v14, %v9875_v4 }
0x1213   : > { %11514 = vmatprep.subr.bf16.mxu0 %v10442_v15 }
0x1214   : > { %11515 = vmatpush1.bf16.msra.mxu0 %v10441_v57 }
0x1215   : > { %v9916_v49 = vpop.f32.mrb[184].mxu0  ;;  %v19466_v23 = vpop.f32.mrb[216].mxu1  ;;  %11585 = vmatprep.subr.bf16.mxu0 %v10408_v30 }
0x1216   : > { %v9918_v31 = vpop.f32.mrb[185].mxu0  ;;  %v10011_v11 = vpop.f32.mrb[217].mxu1 }
0x1217   : > { %v9920_v50 = vpop.f32.mrb[186].mxu0  ;;  %v19468_v47 = vpop.f32.mrb[218].mxu1  ;;  %13128 = vmatmul.mubr.msk.bf16.vlgmr.msra.gmra.mrb[8].mxu1 %vm1643_vm1, %v19464_v32  ;;  %13197 = vmatmul.mubr.msk.bf16.vlgmr.msra.gmra.mrb[0].mxu0 %vm1643_vm1, %v19422_v0 }
0x1218   : > { %v10355_v52 = vpack.c.bf16 %v9920_v50, %v9916_v49  ;;  %v10357_v60 = vpack.c.bf16 %v19468_v47, %v19466_v23  ;;  %v9922_v51 = vpop.f32.mrb[187].mxu0  ;;  %v10015_v9 = vpop.f32.mrb[219].mxu1  ;;  %11586 = vmatpush1.bf16.msra.mxu0 %v10407_v41  ;;  %10821 = vmatprep.mubr.bf16.mxu1 %v19808_v17  ;;  %v19537_v23 = vld [vmem:[%s19743_s8 + $0x70] sm:$0xff]  }
0x1219   : > { %v10356_v58 = vpack.c.bf16 %v9922_v51, %v9918_v31  ;;  %v10358_v16 = vpack.c.bf16 %v10015_v9, %v10011_v11  ;;  %11587 = vmatprep.subr.bf16.mxu0 %v10426_v63  ;;  %11552 = vmatprep.mubr.bf16.mxu0 %v19808_v17 }
0x121b   : > { %10885 = vmatprep.subr.bf16.mxu1 %v10356_v58 }
0x121c   : > { %10886 = vmatpush1.bf16.msra.mxu1 %v10355_v52  ;;  %11588 = vmatpush1.bf16.msra.mxu0 %v10425_v8 }
0x121d   : > { %v9926_v46 = vpop.f32.mrb[188].mxu0  ;;  %v10019_v62 = vpop.f32.mrb[220].mxu1  ;;  %11589 = vmatprep.subr.bf16.mxu0 %v10444_v33 }
0x121e   : > { %v9928_v44 = vpop.f32.mrb[189].mxu0  ;;  %v10021_v61 = vpop.f32.mrb[221].mxu1 }
0x121f   : > { %v9930_v21 = vpop.f32.mrb[190].mxu0  ;;  %v10023_v54 = vpop.f32.mrb[222].mxu1  ;;  %13129 = vmatmul.mubr.msk.bf16.gmra.mrb[12].mxu1 %vm1643_vm1, %v19484_v24  ;;  %13198 = vmatmul.mubr.msk.bf16.gmra.mrb[4].mxu0 %vm1643_vm1, %v19442_v45 }
0x1220   : > { %v10373_v29 = vpack.c.bf16 %v9930_v21, %v9926_v46  ;;  %v10375_v26 = vpack.c.bf16 %v10023_v54, %v10019_v62  ;;  %v9932_v37 = vpop.f32.mrb[191].mxu0  ;;  %v10025_v5 = vpop.f32.mrb[223].mxu1  ;;  %11590 = vmatpush1.bf16.msra.mxu0 %v10443_v27  ;;  %10831 = vmatprep.mubr.bf16.mxu1 %v19808_v17  ;;  %v19548_v62 = vld [vmem:[%s19743_s8 + $0x78] sm:$0xff]  }
0x1221   : > { %v10374_v0 = vpack.c.bf16 %v9932_v37, %v9928_v44  ;;  %v10376_v28 = vpack.c.bf16 %v10025_v5, %v10021_v61  ;;  %11562 = vmatprep.mubr.bf16.mxu0 %v19808_v17 }
0x1223   : > { %10887 = vmatprep.subr.bf16.mxu1 %v10374_v0 }
0x1224   : > { %10888 = vmatpush1.bf16.msra.mxu1 %v10373_v29 }
0x1225   : > { %v9936_v12 = vpop.f32.mrb[192].mxu0  ;;  %v10029_v18 = vpop.f32.mrb[224].mxu1 }
0x1226   : > { %v9938_v6 = vpop.f32.mrb[193].mxu0  ;;  %v10031_v10 = vpop.f32.mrb[225].mxu1 }
0x1227   : > { %v9940_v3 = vpop.f32.mrb[194].mxu0  ;;  %v10033_v41 = vpop.f32.mrb[226].mxu1  ;;  %13130 = vmatmul.mubr.msk.bf16.gmra.mrb[16].mxu1 %vm1643_vm1, %v19495_v20  ;;  %13199 = vmatmul.mubr.msk.bf16.gmra.mrb[8].mxu0 %vm1643_vm1, %v19453_v55 }
0x1228   : > { %v10391_v1 = vpack.c.bf16 %v9940_v3, %v9936_v12  ;;  %v10393_v36 = vpack.c.bf16 %v10033_v41, %v10029_v18  ;;  %v9942_v48 = vpop.f32.mrb[195].mxu0  ;;  %v10035_v30 = vpop.f32.mrb[227].mxu1  ;;  %10917 = vmatprep.mubr.bf16.mxu1 %v19808_v17  ;;  %11617 = vmatprep.mubr.bf16.mxu0 %v19808_v17  ;;  %v19568_v18 = vld [vmem:[%s19743_s8 + $0x80] sm:$0xff]  }
0x1229   : > { %v10392_v45 = vpack.c.bf16 %v9942_v48, %v9938_v6  ;;  %v10394_v39 = vpack.c.bf16 %v10035_v30, %v10031_v10 }
0x122b   : > { %10889 = vmatprep.subr.bf16.mxu1 %v10392_v45 }
0x122c   : > { %10890 = vmatpush1.bf16.msra.mxu1 %v10391_v1 }
0x122d   : > { %v9946_v42 = vpop.f32.mrb[196].mxu0  ;;  %v19508_v19 = vpop.f32.mrb[228].mxu1  ;;  %10991 = vmatprep.subr.bf16.mxu1 %v10358_v16 }
0x122e   : > { %v9948_v53 = vpop.f32.mrb[197].mxu0  ;;  %v10041_v59 = vpop.f32.mrb[229].mxu1 }
0x122f   : > { %v9950_v7 = vpop.f32.mrb[198].mxu0  ;;  %v19510_v8 = vpop.f32.mrb[230].mxu1  ;;  %13140 = vmatmul.mubr.msk.bf16.vlgmr.msra.gmra.mrb[8].mxu1 %vm1643_vm1, %v19506_v25  ;;  %13200 = vmatmul.mubr.msk.bf16.vlgmr.msra.gmra.mrb[0].mxu0 %vm1643_vm1, %v19464_v32 }
0x1230   : > { %v10409_v40 = vpack.c.bf16 %v9950_v7, %v9946_v42  ;;  %v10411_v38 = vpack.c.bf16 %v19510_v8, %v19508_v19  ;;  %v9952_v35 = vpop.f32.mrb[199].mxu0  ;;  %v10045_v63 = vpop.f32.mrb[231].mxu1  ;;  %10992 = vmatpush1.bf16.msra.mxu1 %v10357_v60  ;;  %10927 = vmatprep.mubr.bf16.mxu1 %v19808_v17  ;;  %v19579_v19 = vld [vmem:[%s19743_s8 + $0x88] sm:$0xff]  }
0x1231   : > { %v10410_v55 = vpack.c.bf16 %v9952_v35, %v9948_v53  ;;  %v10412_v13 = vpack.c.bf16 %v10045_v63, %v10041_v59  ;;  %10993 = vmatprep.subr.bf16.mxu1 %v10376_v28  ;;  %11627 = vmatprep.mubr.bf16.mxu0 %v19808_v17 }
0x1233   : > { %11660 = vmatprep.subr.bf16.mxu0 %v10410_v55 }
0x1234   : > { %10994 = vmatpush1.bf16.msra.mxu1 %v10375_v26  ;;  %11661 = vmatpush1.bf16.msra.mxu0 %v10409_v40 }
0x1235   : > { %v9956_v56 = vpop.f32.mrb[200].mxu0  ;;  %v10049_v4 = vpop.f32.mrb[232].mxu1  ;;  %10995 = vmatprep.subr.bf16.mxu1 %v10394_v39 }
0x1236   : > { %v9958_v22 = vpop.f32.mrb[201].mxu0  ;;  %v10051_v2 = vpop.f32.mrb[233].mxu1 }
0x1237   : > { %v9960_v57 = vpop.f32.mrb[202].mxu0  ;;  %v10053_v27 = vpop.f32.mrb[234].mxu1  ;;  %13141 = vmatmul.mubr.msk.bf16.gmra.mrb[12].mxu1 %vm1643_vm1, %v19526_v43  ;;  %13201 = vmatmul.mubr.msk.bf16.gmra.mrb[4].mxu0 %vm1643_vm1, %v19484_v24 }
0x1238   : > { %v10427_v34 = vpack.c.bf16 %v9960_v57, %v9956_v56  ;;  %v10429_v14 = vpack.c.bf16 %v10053_v27, %v10049_v4  ;;  %v9962_v15 = vpop.f32.mrb[203].mxu0  ;;  %v10055_v33 = vpop.f32.mrb[235].mxu1  ;;  %10996 = vmatpush1.bf16.msra.mxu1 %v10393_v36  ;;  %10937 = vmatprep.mubr.bf16.mxu1 %v19808_v17  ;;  %v19590_v4 = vld [vmem:[%s19743_s8 + $0x90] sm:$0xff]  }
0x1239   : > { %v10428_v32 = vpack.c.bf16 %v9962_v15, %v9958_v22  ;;  %v10430_v49 = vpack.c.bf16 %v10055_v33, %v10051_v2  ;;  %11637 = vmatprep.mubr.bf16.mxu0 %v19808_v17 }
0x123b   : > { %11662 = vmatprep.subr.bf16.mxu0 %v10428_v32 }
0x123c   : > { %11663 = vmatpush1.bf16.msra.mxu0 %v10427_v34 }
0x123d   : > { %v9966_v31 = vpop.f32.mrb[204].mxu0  ;;  %v10059_v11 = vpop.f32.mrb[236].mxu1 }
0x123e   : > { %v9968_v50 = vpop.f32.mrb[205].mxu0  ;;  %v10061_v47 = vpop.f32.mrb[237].mxu1 }
0x123f   : > { %v9970_v52 = vpop.f32.mrb[206].mxu0  ;;  %v10063_v60 = vpop.f32.mrb[238].mxu1  ;;  %13142 = vmatmul.mubr.msk.bf16.gmra.mrb[16].mxu1 %vm1643_vm1, %v19537_v23  ;;  %13202 = vmatmul.mubr.msk.bf16.gmra.mrb[8].mxu0 %vm1643_vm1, %v19495_v20 }
0x1240   : > { %v10445_v51 = vpack.c.bf16 %v9970_v52, %v9966_v31  ;;  %v10447_v9 = vpack.c.bf16 %v10063_v60, %v10059_v11  ;;  %v9972_v58 = vpop.f32.mrb[207].mxu0  ;;  %v10065_v16 = vpop.f32.mrb[239].mxu1  ;;  %11023 = vmatprep.mubr.bf16.mxu1 %v19808_v17  ;;  %11692 = vmatprep.mubr.bf16.mxu0 %v19808_v17  ;;  %v19610_v11 = vld [vmem:[%s19743_s8 + $0x98] sm:$0xff]  }
0x1241   : > { %v10446_v24 = vpack.c.bf16 %v9972_v58, %v9968_v50  ;;  %v10448_v46 = vpack.c.bf16 %v10065_v16, %v10061_v47 }
0x1243   : > { %11664 = vmatprep.subr.bf16.mxu0 %v10446_v24 }
0x1244   : > { %11665 = vmatpush1.bf16.msra.mxu0 %v10445_v51 }
0x1245   : > { %v10102_v44 = vpop.f32.mrb[208].mxu0  ;;  %v19550_v61 = vpop.f32.mrb[240].mxu1  ;;  %11735 = vmatprep.subr.bf16.mxu0 %v10412_v13 }
0x1246   : > { %v10104_v21 = vpop.f32.mrb[209].mxu0  ;;  %v10197_v54 = vpop.f32.mrb[241].mxu1 }
0x1247   : > { %v10106_v29 = vpop.f32.mrb[210].mxu0  ;;  %v19552_v26 = vpop.f32.mrb[242].mxu1  ;;  %13152 = vmatmul.mubr.msk.bf16.vlgmr.msra.gmra.mrb[8].mxu1 %vm1643_vm1, %v19548_v62  ;;  %13203 = vmatmul.mubr.msk.bf16.vlgmr.msra.gmra.mrb[0].mxu0 %vm1643_vm1, %v19506_v25 }
0x1248   : > { %v10359_v37 = vpack.c.bf16 %v10106_v29, %v10102_v44  ;;  %v10361_v5 = vpack.c.bf16 %v19552_v26, %v19550_v61  ;;  %v10108_v0 = vpop.f32.mrb[211].mxu0  ;;  %v10201_v28 = vpop.f32.mrb[243].mxu1  ;;  %11736 = vmatpush1.bf16.msra.mxu0 %v10411_v38  ;;  %11033 = vmatprep.mubr.bf16.mxu1 %v19808_v17  ;;  %v15971_v61 = vld [vmem:[%s19743_s8 + $0xa0] sm:$0xff]  }
0x1249   : > { %v10360_v20 = vpack.c.bf16 %v10108_v0, %v10104_v21  ;;  %v10362_v12 = vpack.c.bf16 %v10201_v28, %v10197_v54  ;;  %11737 = vmatprep.subr.bf16.mxu0 %v10430_v49  ;;  %11702 = vmatprep.mubr.bf16.mxu0 %v19808_v17 }
0x124b   : > { %11097 = vmatprep.subr.bf16.mxu1 %v10360_v20 }
0x124c   : > { %11098 = vmatpush1.bf16.msra.mxu1 %v10359_v37  ;;  %11738 = vmatpush1.bf16.msra.mxu0 %v10429_v14 }
0x124d   : > { %v10112_v6 = vpop.f32.mrb[212].mxu0  ;;  %v10205_v10 = vpop.f32.mrb[244].mxu1  ;;  %11739 = vmatprep.subr.bf16.mxu0 %v10448_v46 }
0x124e   : > { %v10114_v3 = vpop.f32.mrb[213].mxu0  ;;  %v10207_v41 = vpop.f32.mrb[245].mxu1 }
0x124f   : > { %v10116_v1 = vpop.f32.mrb[214].mxu0  ;;  %v10209_v36 = vpop.f32.mrb[246].mxu1  ;;  %13153 = vmatmul.mubr.msk.bf16.gmra.mrb[12].mxu1 %vm1643_vm1, %v19568_v18  ;;  %13204 = vmatmul.mubr.msk.bf16.gmra.mrb[4].mxu0 %vm1643_vm1, %v19526_v43 }
0x1250   : > { %v10377_v48 = vpack.c.bf16 %v10116_v1, %v10112_v6  ;;  %v10379_v30 = vpack.c.bf16 %v10209_v36, %v10205_v10  ;;  %v10118_v45 = vpop.f32.mrb[215].mxu0  ;;  %v10211_v39 = vpop.f32.mrb[247].mxu1  ;;  %11740 = vmatpush1.bf16.msra.mxu0 %v10447_v9  ;;  %11043 = vmatprep.mubr.bf16.mxu1 %v19808_v17  ;;  %v15972_v10 = vld [vmem:[%s19743_s8 + $0xa8] sm:$0xff]  }
0x1251   : > { %v10378_v25 = vpack.c.bf16 %v10118_v45, %v10114_v3  ;;  %v10380_v42 = vpack.c.bf16 %v10211_v39, %v10207_v41  ;;  %11712 = vmatprep.mubr.bf16.mxu0 %v19808_v17  ;;  %v15973_v45 = vld [vmem:[%s19743_s8 + $0xb0] sm:$0xff]  }
0x1253   : > { %11099 = vmatprep.subr.bf16.mxu1 %v10378_v25 }
0x1254   : > { %11100 = vmatpush1.bf16.msra.mxu1 %v10377_v48 }
0x1255   : > { %v10122_v53 = vpop.f32.mrb[216].mxu0  ;;  %v10215_v59 = vpop.f32.mrb[248].mxu1 }
0x1256   : > { %v10124_v7 = vpop.f32.mrb[217].mxu0  ;;  %v10217_v8 = vpop.f32.mrb[249].mxu1 }
0x1257   : > { %v10126_v40 = vpop.f32.mrb[218].mxu0  ;;  %v10219_v38 = vpop.f32.mrb[250].mxu1  ;;  %13154 = vmatmul.mubr.msk.bf16.gmra.mrb[16].mxu1 %vm1643_vm1, %v19579_v19  ;;  %13205 = vmatmul.mubr.msk.bf16.gmra.mrb[8].mxu0 %vm1643_vm1, %v19537_v23 }
0x1258   : > { %v10395_v35 = vpack.c.bf16 %v10126_v40, %v10122_v53  ;;  %v10397_v63 = vpack.c.bf16 %v10219_v38, %v10215_v59  ;;  %v10128_v55 = vpop.f32.mrb[219].mxu0  ;;  %v10221_v13 = vpop.f32.mrb[251].mxu1  ;;  %11129 = vmatprep.mubr.bf16.mxu1 %v19808_v17  ;;  %11767 = vmatprep.mubr.bf16.mxu0 %v19808_v17 }
0x1259   : > { %v10396_v43 = vpack.c.bf16 %v10128_v55, %v10124_v7  ;;  %v10398_v56 = vpack.c.bf16 %v10221_v13, %v10217_v8  ;;  %v15974_v7 = vld [vmem:[%s19743_s8 + $0xb8] sm:$0xff]   ;;  %v15975_v13 = vld [vmem:[%s19743_s8 + $0xc0] sm:$0xff]  }
0x125b   : > { %11101 = vmatprep.subr.bf16.mxu1 %v10396_v43 }
0x125c   : > { %11102 = vmatpush1.bf16.msra.mxu1 %v10395_v35 }
0x125d   : > { %v10132_v22 = vpop.f32.mrb[220].mxu0  ;;  %v19592_v2 = vpop.f32.mrb[252].mxu1  ;;  %11203 = vmatprep.subr.bf16.mxu1 %v10362_v12 }
0x125e   : > { %v10134_v57 = vpop.f32.mrb[221].mxu0  ;;  %v10227_v27 = vpop.f32.mrb[253].mxu1 }
0x125f   : > { %v10136_v34 = vpop.f32.mrb[222].mxu0  ;;  %v19594_v14 = vpop.f32.mrb[254].mxu1  ;;  %13164 = vmatmul.mubr.msk.bf16.vlgmr.msra.gmra.mrb[8].mxu1 %vm1643_vm1, %v19590_v4  ;;  %13206 = vmatmul.mubr.msk.bf16.vlgmr.msra.gmra.mrb[0].mxu0 %vm1643_vm1, %v19548_v62 }
0x1260   : > { %v10413_v15 = vpack.c.bf16 %v10136_v34, %v10132_v22  ;;  %v10415_v33 = vpack.c.bf16 %v19594_v14, %v19592_v2  ;;  %v10138_v32 = vpop.f32.mrb[223].mxu0  ;;  %v10231_v49 = vpop.f32.mrb[255].mxu1  ;;  %11204 = vmatpush1.bf16.msra.mxu1 %v10361_v5  ;;  %11139 = vmatprep.mubr.bf16.mxu1 %v19808_v17 }
0x1261   : > { %v10414_v23 = vpack.c.bf16 %v10138_v32, %v10134_v57  ;;  %v10416_v31 = vpack.c.bf16 %v10231_v49, %v10227_v27  ;;  %11205 = vmatprep.subr.bf16.mxu1 %v10380_v42  ;;  %11777 = vmatprep.mubr.bf16.mxu0 %v19808_v17  ;;  %v15976_v27 = vld [vmem:[%s19743_s8 + $0xc8] sm:$0xff]  }
0x1263   : > { %11810 = vmatprep.subr.bf16.mxu0 %v10414_v23  ;;  %v15977_v23 = vld [vmem:[%s19743_s8 + $0xd0] sm:$0xff]  }
0x1264   : > { %11206 = vmatpush1.bf16.msra.mxu1 %v10379_v30  ;;  %11811 = vmatpush1.bf16.msra.mxu0 %v10413_v15 }
0x1265   : > { %v10142_v50 = vpop.f32.mrb[224].mxu0  ;;  %v10235_v47 = vpop.f32.mrb[0].mxu1  ;;  %11207 = vmatprep.subr.bf16.mxu1 %v10398_v56 }
0x1266   : > { %v10144_v52 = vpop.f32.mrb[225].mxu0  ;;  %v10237_v60 = vpop.f32.mrb[1].mxu1 }
0x1267   : > { %v10146_v51 = vpop.f32.mrb[226].mxu0  ;;  %v10239_v9 = vpop.f32.mrb[2].mxu1  ;;  %13165 = vmatmul.mubr.msk.bf16.gmra.mrb[12].mxu1 %vm1643_vm1, %v19610_v11  ;;  %13207 = vmatmul.mubr.msk.bf16.gmra.mrb[4].mxu0 %vm1643_vm1, %v19568_v18 }
0x1268   : > { %v10431_v58 = vpack.c.bf16 %v10146_v51, %v10142_v50  ;;  %v10433_v16 = vpack.c.bf16 %v10239_v9, %v10235_v47  ;;  %v10148_v24 = vpop.f32.mrb[227].mxu0  ;;  %v10241_v46 = vpop.f32.mrb[3].mxu1  ;;  %11208 = vmatpush1.bf16.msra.mxu1 %v10397_v63  ;;  %11149 = vmatprep.mubr.bf16.mxu1 %v19808_v17 }
0x1269   : > { %v10432_v62 = vpack.c.bf16 %v10148_v24, %v10144_v52  ;;  %v10434_v44 = vpack.c.bf16 %v10241_v46, %v10237_v60  ;;  %11787 = vmatprep.mubr.bf16.mxu0 %v19808_v17  ;;  %v12051_v51 = vpop.permute.xlu0 %12050  ;;  %v12056_v9 = vpop.permute.xlu1 %12055 }
0x126b   : > { %11812 = vmatprep.subr.bf16.mxu0 %v10432_v62 }
0x126c   : > { %11813 = vmatpush1.bf16.msra.mxu0 %v10431_v58 }
0x126d   : > { %v10152_v21 = vpop.f32.mrb[228].mxu0  ;;  %v10245_v54 = vpop.f32.mrb[4].mxu1 }
0x126e   : > { %v10154_v29 = vpop.f32.mrb[229].mxu0  ;;  %v10247_v26 = vpop.f32.mrb[5].mxu1 }
0x126f   : > { %v10156_v37 = vpop.f32.mrb[230].mxu0  ;;  %v10249_v5 = vpop.f32.mrb[6].mxu1  ;;  %13166 = vmatmul.mubr.msk.bf16.gmra.mrb[16].mxu1 %vm1643_vm1, %v15971_v61  ;;  %13208 = vmatmul.mubr.msk.bf16.gmra.mrb[8].mxu0 %vm1643_vm1, %v19579_v19 }
0x1270   : > { %v10449_v0 = vpack.c.bf16 %v10156_v37, %v10152_v21  ;;  %v10451_v28 = vpack.c.bf16 %v10249_v5, %v10245_v54  ;;  %v10158_v20 = vpop.f32.mrb[231].mxu0  ;;  %v10251_v12 = vpop.f32.mrb[7].mxu1  ;;  %11235 = vmatprep.mubr.bf16.mxu1 %v19808_v17  ;;  %11842 = vmatprep.mubr.bf16.mxu0 %v19808_v17 }
0x1271   : > { %v10450_v18 = vpack.c.bf16 %v10158_v20, %v10154_v29  ;;  %v10452_v6 = vpack.c.bf16 %v10251_v12, %v10247_v26  ;;  %v12061_v58 = vpop.permute.xlu0 %12060 }
0x1273   : > { %11814 = vmatprep.subr.bf16.mxu0 %v10450_v18 }
0x1274   : > { %11815 = vmatpush1.bf16.msra.mxu0 %v10449_v0 }
0x1275   : > { %v10288_v3 = vpop.f32.mrb[232].mxu0  ;;  %11885 = vmatprep.subr.bf16.mxu0 %v10416_v31  ;;  %v12071_v24 = vpop.permute.xlu0 %12070 }
0x1276   : > { %v10290_v41 = vpop.f32.mrb[233].mxu0 }
0x1277   : > { %v10292_v1 = vpop.f32.mrb[234].mxu0  ;;  %13176 = vmatmul.mubr.msk.bf16.vlgmr.msra.gmra.mrb[8].mxu1 %vm1643_vm1, %v15972_v10  ;;  %13209 = vmatmul.mubr.msk.bf16.vlgmr.msra.gmra.mrb[0].mxu0 %vm1643_vm1, %v19590_v4 }
0x1278   : > { %v10363_v36 = vpack.c.bf16 %v10292_v1, %v10288_v3  ;;  %v10294_v48 = vpop.f32.mrb[235].mxu0  ;;  %11886 = vmatpush1.bf16.msra.mxu0 %v10415_v33  ;;  %11245 = vmatprep.mubr.bf16.mxu1 %v19808_v17 }
0x1279   : > { %v10364_v30 = vpack.c.bf16 %v10294_v48, %v10290_v41  ;;  %11887 = vmatprep.subr.bf16.mxu0 %v10434_v44  ;;  %11852 = vmatprep.mubr.bf16.mxu0 %v19808_v17  ;;  %v19676_v62 = vpop.permute.xlu0 %12080 }
0x127b   : > { %11309 = vmatprep.subr.bf16.mxu1 %v10364_v30 }
0x127c   : > { %11310 = vmatpush1.bf16.msra.mxu1 %v10363_v36  ;;  %11888 = vmatpush1.bf16.msra.mxu0 %v10433_v16  ;;  %v12066_v16 = vpop.permute.xlu1 %12065 }
0x127d   : > { %v10298_v39 = vpop.f32.mrb[236].mxu0  ;;  %11889 = vmatprep.subr.bf16.mxu0 %v10452_v6 }
0x127e   : > { %v10300_v25 = vpop.f32.mrb[237].mxu0 }
0x127f   : > { %v10302_v42 = vpop.f32.mrb[238].mxu0  ;;  %13177 = vmatmul.mubr.msk.bf16.gmra.mrb[12].mxu1 %vm1643_vm1, %v15973_v45  ;;  %13210 = vmatmul.mubr.msk.bf16.gmra.mrb[4].mxu0 %vm1643_vm1, %v19610_v11 }
0x1280   : > { %v10381_v19 = vpack.c.bf16 %v10302_v42, %v10298_v39  ;;  %v10304_v53 = vpop.f32.mrb[239].mxu0  ;;  %11890 = vmatpush1.bf16.msra.mxu0 %v10451_v28  ;;  %11255 = vmatprep.mubr.bf16.mxu1 %v19808_v17  ;;  %v19674_v46 = vpop.permute.xlu1 %12075 }
0x1281   : > { %v10382_v59 = vpack.c.bf16 %v10304_v53, %v10300_v25  ;;  %11862 = vmatprep.mubr.bf16.mxu0 %v19808_v17 }
0x1283   : > { %11311 = vmatprep.subr.bf16.mxu1 %v10382_v59 }
0x1284   : > { %11312 = vmatpush1.bf16.msra.mxu1 %v10381_v19  ;;  %v19678_v44 = vpop.permute.xlu1 %12085 }
0x1285   : > { %v10308_v8 = vpop.f32.mrb[240].mxu0 }
0x1286   : > { %v10310_v40 = vpop.f32.mrb[241].mxu0 }
0x1287   : > { %v10312_v38 = vpop.f32.mrb[242].mxu0  ;;  %13178 = vmatmul.mubr.msk.bf16.gmra.mrb[16].mxu1 %vm1643_vm1, %v15974_v7  ;;  %13211 = vmatmul.mubr.msk.bf16.gmra.mrb[8].mxu0 %vm1643_vm1, %v15971_v61  ;;  %v19680_v61 = vpop.permute.xlu0 %12090 }
0x1288   : > { %v10399_v35 = vpack.c.bf16 %v10312_v38, %v10308_v8  ;;  %v10314_v63 = vpop.f32.mrb[243].mxu0  ;;  %11341 = vmatprep.mubr.bf16.mxu1 %v19808_v17  ;;  %11917 = vmatprep.mubr.bf16.mxu0 %v19808_v17  ;;  %v19682_v21 = vpop.permute.xlu1 %12095 }
0x1289   : > { %v10400_v55 = vpack.c.bf16 %v10314_v63, %v10310_v40 }
0x128b   : > { %11313 = vmatprep.subr.bf16.mxu1 %v10400_v55  ;;  %v19684_v54 = vpop.permute.xlu0 %12100 }
0x128c   : > { %11314 = vmatpush1.bf16.msra.mxu1 %v10399_v35 }
0x128d   : > { %v10318_v43 = vpop.f32.mrb[244].mxu0 }
0x128e   : > { %v10320_v56 = vpop.f32.mrb[245].mxu0 }
0x128f   : > { %v10322_v4 = vpop.f32.mrb[246].mxu0  ;;  %13188 = vmatmul.mubr.msk.bf16.vlgmr.msra.gmra.mrb[8].mxu1 %vm1643_vm1, %v15975_v13  ;;  %13212 = vmatmul.mubr.msk.bf16.vlgmr.msra.gmra.mrb[0].mxu0 %vm1643_vm1, %v15972_v10  ;;  %v12148_v5 = vpop.permute.xlu0 %12147 }
0x1290   : > { %v10417_v22 = vpack.c.bf16 %v10322_v4, %v10318_v43  ;;  %v10324_v2 = vpop.f32.mrb[247].mxu0  ;;  %11351 = vmatprep.mubr.bf16.mxu1 %v19808_v17  ;;  %11927 = vmatprep.mubr.bf16.mxu0 %v19808_v17 }
0x1291   : > { %v10418_v57 = vpack.c.bf16 %v10324_v2, %v10320_v56 }
0x1293   : > { %11960 = vmatprep.subr.bf16.mxu0 %v10418_v57  ;;  %v12158_v19 = vpop.permute.xlu0 %12157 }
0x1294   : > { %11961 = vmatpush1.bf16.msra.mxu0 %v10417_v22 }
0x1295   : > { %v10328_v34 = vpop.f32.mrb[248].mxu0 }
0x1296   : > { %v10330_v14 = vpop.f32.mrb[249].mxu0 }
0x1297   : > { %v10332_v15 = vpop.f32.mrb[250].mxu0  ;;  %13189 = vmatmul.mubr.msk.bf16.gmra.mrb[12].mxu1 %vm1643_vm1, %v15976_v27  ;;  %13213 = vmatmul.mubr.msk.bf16.gmra.mrb[4].mxu0 %vm1643_vm1, %v15973_v45 }
0x1298   : > { %v10435_v33 = vpack.c.bf16 %v10332_v15, %v10328_v34  ;;  %v10334_v32 = vpop.f32.mrb[251].mxu0  ;;  %11361 = vmatprep.mubr.bf16.mxu1 %v19808_v17  ;;  %11937 = vmatprep.mubr.bf16.mxu0 %v19808_v17  ;;  %v12168_v34 = vpop.permute.xlu0 %12167 }
0x1299   : > { %v10436_v49 = vpack.c.bf16 %v10334_v32, %v10330_v14 }
0x129b   : > { %11962 = vmatprep.subr.bf16.mxu0 %v10436_v49 }
0x129c   : > { %11963 = vmatpush1.bf16.msra.mxu0 %v10435_v33 }
0x129d   : > { %v10338_v31 = vpop.f32.mrb[252].mxu0 }
0x129e   : > { %v10340_v11 = vpop.f32.mrb[253].mxu0 }
0x129f   : > { %v10342_v50 = vpop.f32.mrb[254].mxu0  ;;  %13190 = vmatmul.mubr.msk.bf16.gmra.mrb[16].mxu1 %vm1643_vm1, %v15977_v23  ;;  %13214 = vmatmul.mubr.msk.bf16.gmra.mrb[8].mxu0 %vm1643_vm1, %v15974_v7 }
0x12a0   : > { %v10453_v47 = vpack.c.bf16 %v10342_v50, %v10338_v31  ;;  %v10344_v52 = vpop.f32.mrb[255].mxu0  ;;  %11992 = vmatprep.mubr.bf16.mxu0 %v19808_v17 }
0x12a1   : > { %v10454_v60 = vpack.c.bf16 %v10344_v52, %v10340_v11 }
0x12a3   : > { %11964 = vmatprep.subr.bf16.mxu0 %v10454_v60 }
0x12a4   : > { %11965 = vmatpush1.bf16.msra.mxu0 %v10453_v47 }
0x12a7   : > { %13215 = vmatmul.mubr.msk.bf16.vlgmr.msra.gmra.mrb[0].mxu0 %vm1643_vm1, %v15975_v13 }
0x12a8   : > { %12002 = vmatprep.mubr.bf16.mxu0 %v19808_v17 }
0x12af   : > { %13216 = vmatmul.mubr.msk.bf16.gmra.mrb[4].mxu0 %vm1643_vm1, %v15976_v27 }
0x12b0   : > { %12012 = vmatprep.mubr.bf16.mxu0 %v19808_v17  ;;  %v19686_v17 = vpop.permute.xlu1 %12105 }
0x12b4   : > { %v12153_v6 = vpop.permute.xlu1 %12152 }
0x12b7   : > { %13217 = vmatmul.mubr.msk.bf16.gmra.mrb[8].mxu0 %vm1643_vm1, %v15977_v23 }
0x12b8   : > { %v12163_v38 = vpop.permute.xlu1 %12162 }
0x12bc   : > { %v12173_v23 = vpop.permute.xlu1 %12172 }
0x1362   : > { %v11343_v29 = vpop.f32.mrb[8].mxu1 }
0x1363   : > { %v12108_v26 = vmul.f32 %v12051_v51, %v11343_v29  ;;  %v11345_v37 = vpop.f32.mrb[9].mxu1  ;;  %v12178_v29 = vpop.permute.xlu0 %12177 }
0x1364   : > { %v12109_v0 = vmul.f32 %v12051_v51, %v11345_v37  ;;  %v11347_v28 = vpop.f32.mrb[10].mxu1 }
0x1365   : > { %v12205_v20 = vadd.f32 %v12148_v5, %v12108_v26  ;;  %v12110_v12 = vmul.f32 %v12056_v9, %v11347_v28  ;;  %v11349_v18 = vpop.f32.mrb[11].mxu1  ;;  %v12183_v28 = vpop.permute.xlu1 %12182 }
0x1366   : > { %v12206_v10 = vadd.f32 %v12148_v5, %v12109_v0  ;;  %v12111_v3 = vmul.f32 %v12056_v9, %v11349_v18 }
0x1367   : > { %v12229_v41 = vmax.f32 %v12205_v20, 0.0  ;;  %v12207_v1 = vadd.f32 %v12153_v6, %v12110_v12 }
0x1368   : > { %v12230_v36 = vmax.f32 %v12206_v10, 0.0  ;;  %v12208_v48 = vadd.f32 %v12153_v6, %v12111_v3 }
0x1369   : > { %12253 = vst [vmem:[%s19692_s22] sm:$0xff] %v12229_v41  ;;  %v12231_v30 = vmax.f32 %v12207_v1, 0.0 }
0x136a   : > { %12254 = vst [vmem:[%s19692_s22 + $0x8] sm:$0xff] %v12230_v36  ;;  %v12232_v45 = vmax.f32 %v12208_v48, 0.0  ;;  %v11353_v39 = vpop.f32.mrb[12].mxu1 }
0x136b   : > { %12255 = vst [vmem:[%s19692_s22 + $0x10] sm:$0xff] %v12231_v30  ;;  %v12112_v25 = vmul.f32 %v12061_v58, %v11353_v39  ;;  %v11355_v42 = vpop.f32.mrb[13].mxu1  ;;  %v12188_v30 = vpop.permute.xlu0 %12187 }
0x136c   : > { %12256 = vst [vmem:[%s19692_s22 + $0x18] sm:$0xff] %v12232_v45  ;;  %v12113_v53 = vmul.f32 %v12061_v58, %v11355_v42  ;;  %v11357_v59 = vpop.f32.mrb[14].mxu1 }
0x136d   : > { %v12209_v7 = vadd.f32 %v12158_v19, %v12112_v25  ;;  %v12114_v8 = vmul.f32 %v12066_v16, %v11357_v59  ;;  %v11359_v40 = vpop.f32.mrb[15].mxu1 }
0x136e   : > { %v12210_v35 = vadd.f32 %v12158_v19, %v12113_v53  ;;  %v12115_v63 = vmul.f32 %v12066_v16, %v11359_v40  ;;  %v12193_v19 = vpop.permute.xlu1 %12192 }
0x136f   : > { %v12233_v55 = vmax.f32 %v12209_v7, 0.0  ;;  %v12211_v13 = vadd.f32 %v12163_v38, %v12114_v8 }
0x1370   : > { %v12234_v43 = vmax.f32 %v12210_v35, 0.0  ;;  %v12212_v56 = vadd.f32 %v12163_v38, %v12115_v63 }
0x1371   : > { %12257 = vst [vmem:[%s19692_s22 + $0x20] sm:$0xff] %v12233_v55  ;;  %v12235_v4 = vmax.f32 %v12211_v13, 0.0 }
0x1372   : > { %12258 = vst [vmem:[%s19692_s22 + $0x28] sm:$0xff] %v12234_v43  ;;  %v12236_v22 = vmax.f32 %v12212_v56, 0.0  ;;  %v11363_v2 = vpop.f32.mrb[16].mxu1  ;;  %v12198_v43 = vpop.permute.xlu0 %12197 }
0x1373   : > { %12259 = vst [vmem:[%s19692_s22 + $0x30] sm:$0xff] %v12235_v4  ;;  %v12116_v57 = vmul.f32 %v12071_v24, %v11363_v2  ;;  %v11365_v27 = vpop.f32.mrb[17].mxu1 }
0x1374   : > { %12260 = vst [vmem:[%s19692_s22 + $0x38] sm:$0xff] %v12236_v22  ;;  %v12117_v14 = vmul.f32 %v12071_v24, %v11365_v27  ;;  %v11367_v15 = vpop.f32.mrb[18].mxu1 }
0x1375   : > { %v12213_v33 = vadd.f32 %v12168_v34, %v12116_v57  ;;  %v12118_v32 = vmul.f32 %v19674_v46, %v11367_v15  ;;  %v11369_v49 = vpop.f32.mrb[19].mxu1  ;;  %v12203_v57 = vpop.permute.xlu1 %12202 }
0x1376   : > { %v12214_v31 = vadd.f32 %v12168_v34, %v12117_v14  ;;  %v12119_v11 = vmul.f32 %v19674_v46, %v11369_v49 }
0x1377   : > { %v12237_v50 = vmax.f32 %v12213_v33, 0.0  ;;  %v12215_v47 = vadd.f32 %v12173_v23, %v12118_v32 }
0x1378   : > { %v12238_v52 = vmax.f32 %v12214_v31, 0.0  ;;  %v12216_v60 = vadd.f32 %v12173_v23, %v12119_v11 }
0x1379   : > { %12261 = vst [vmem:[%s19692_s22 + $0x40] sm:$0xff] %v12237_v50  ;;  %v12239_v51 = vmax.f32 %v12215_v47, 0.0 }
0x137a   : > { %12262 = vst [vmem:[%s19692_s22 + $0x48] sm:$0xff] %v12238_v52  ;;  %v12240_v9 = vmax.f32 %v12216_v60, 0.0  ;;  %v11994_v58 = vpop.f32.mrb[0].mxu0 }
0x137b   : > { %12263 = vst [vmem:[%s19692_s22 + $0x50] sm:$0xff] %v12239_v51  ;;  %v12120_v16 = vmul.f32 %v19676_v62, %v11994_v58  ;;  %v11996_v24 = vpop.f32.mrb[1].mxu0 }
0x137c   : > { %12264 = vst [vmem:[%s19692_s22 + $0x58] sm:$0xff] %v12240_v9  ;;  %v12121_v26 = vmul.f32 %v19676_v62, %v11996_v24  ;;  %v11998_v46 = vpop.f32.mrb[2].mxu0 }
0x137d   : > { %v12217_v37 = vadd.f32 %v12178_v29, %v12120_v16  ;;  %v12122_v5 = vmul.f32 %v19678_v44, %v11998_v46  ;;  %v12000_v0 = vpop.f32.mrb[3].mxu0 }
0x137e   : > { %v12218_v20 = vadd.f32 %v12178_v29, %v12121_v26  ;;  %v12123_v12 = vmul.f32 %v19678_v44, %v12000_v0 }
0x137f   : > { %v12241_v18 = vmax.f32 %v12217_v37, 0.0  ;;  %v12219_v6 = vadd.f32 %v12183_v28, %v12122_v5 }
0x1380   : > { %v12242_v10 = vmax.f32 %v12218_v20, 0.0  ;;  %v12220_v3 = vadd.f32 %v12183_v28, %v12123_v12 }
0x1381   : > { %12265 = vst [vmem:[%s19692_s22 + $0x60] sm:$0xff] %v12241_v18  ;;  %v12243_v41 = vmax.f32 %v12219_v6, 0.0 }
0x1382   : > { %12266 = vst [vmem:[%s19692_s22 + $0x68] sm:$0xff] %v12242_v10  ;;  %v12244_v1 = vmax.f32 %v12220_v3, 0.0  ;;  %v12004_v62 = vpop.f32.mrb[4].mxu0 }
0x1383   : > { %12267 = vst [vmem:[%s19692_s22 + $0x70] sm:$0xff] %v12243_v41  ;;  %v12124_v36 = vmul.f32 %v19680_v61, %v12004_v62  ;;  %v12006_v48 = vpop.f32.mrb[5].mxu0 }
0x1384   : > { %12268 = vst [vmem:[%s19692_s22 + $0x78] sm:$0xff] %v12244_v1  ;;  %v12125_v45 = vmul.f32 %v19680_v61, %v12006_v48  ;;  %v12008_v44 = vpop.f32.mrb[6].mxu0 }
0x1385   : > { %v12221_v39 = vadd.f32 %v12188_v30, %v12124_v36  ;;  %v12126_v25 = vmul.f32 %v19682_v21, %v12008_v44  ;;  %v12010_v42 = vpop.f32.mrb[7].mxu0 }
0x1386   : > { %v12222_v53 = vadd.f32 %v12188_v30, %v12125_v45  ;;  %v12127_v59 = vmul.f32 %v19682_v21, %v12010_v42 }
0x1387   : > { %v12245_v7 = vmax.f32 %v12221_v39, 0.0  ;;  %v12223_v8 = vadd.f32 %v12193_v19, %v12126_v25 }
0x1388   : > { %v12246_v40 = vmax.f32 %v12222_v53, 0.0  ;;  %v12224_v38 = vadd.f32 %v12193_v19, %v12127_v59 }
0x1389   : > { %12269 = vst [vmem:[%s19692_s22 + $0x80] sm:$0xff] %v12245_v7  ;;  %v12247_v35 = vmax.f32 %v12223_v8, 0.0 }
0x138a   : > { %12270 = vst [vmem:[%s19692_s22 + $0x88] sm:$0xff] %v12246_v40  ;;  %v12248_v63 = vmax.f32 %v12224_v38, 0.0  ;;  %v12014_v61 = vpop.f32.mrb[8].mxu0 }
0x138b   : > { %12271 = vst [vmem:[%s19692_s22 + $0x90] sm:$0xff] %v12247_v35  ;;  %v12128_v55 = vmul.f32 %v19684_v54, %v12014_v61  ;;  %v12016_v13 = vpop.f32.mrb[9].mxu0 }
0x138c   : > { %12272 = vst [vmem:[%s19692_s22 + $0x98] sm:$0xff] %v12248_v63  ;;  %v12129_v56 = vmul.f32 %v19684_v54, %v12016_v13  ;;  %v12018_v21 = vpop.f32.mrb[10].mxu0 }
0x138d   : > { %v12225_v4 = vadd.f32 %v12198_v43, %v12128_v55  ;;  %v12130_v22 = vmul.f32 %v19686_v17, %v12018_v21  ;;  %v12020_v2 = vpop.f32.mrb[11].mxu0 }
0x138e   : > { %v12226_v27 = vadd.f32 %v12198_v43, %v12129_v56  ;;  %v12131_v34 = vmul.f32 %v19686_v17, %v12020_v2 }
0x138f   : > { %v12249_v14 = vmax.f32 %v12225_v4, 0.0  ;;  %v12227_v15 = vadd.f32 %v12203_v57, %v12130_v22 }
0x1390   : > { %v12250_v33 = vmax.f32 %v12226_v27, 0.0  ;;  %v12228_v32 = vadd.f32 %v12203_v57, %v12131_v34 }
0x1391   : > { %12273 = vst [vmem:[%s19692_s22 + $0xa0] sm:$0xff] %v12249_v14  ;;  %v12251_v49 = vmax.f32 %v12227_v15, 0.0 }
0x1392   : > { %12274 = vst [vmem:[%s19692_s22 + $0xa8] sm:$0xff] %v12250_v33  ;;  %v12252_v23 = vmax.f32 %v12228_v32, 0.0 }
0x1393   : > { %12275 = vst [vmem:[%s19692_s22 + $0xb0] sm:$0xff] %v12251_v49 }
0x1394   : > { %12276 = vst [vmem:[%s19692_s22 + $0xb8] sm:$0xff] %v12252_v23 }
0x1395 PF: > { %s19815_s0 = sld [smem:[#allocation3_spill]] }
0x139b   : > { %s35_s24 = sadd.s32 1, %s19815_s0  }
0x139c   : > { %p32_p4 = scmp.ge.s32.totalorder %s35_s24, 4  }
0x139e   :  { %34 = sbr.rel (!%p32_p4) target bundleno = 9 (0x9), region = 180 }

</bundles_post_ra>
